<compile_context>
chip_gen: v7x
topology: tpu7x:2x2x1
jax: 0.10.0
libtpu: 0.0.40
codegen_flags: <defaults>
</compile_context>

<pallas_src>
import jax
import jax.numpy as jnp
from jax.experimental import pallas as pl
from jax.experimental.pallas import tpu as pltpu

BN_EPS = 0.8


# ----------------------------- kernel helpers --------------------------------

def _zero_halo(pad_ref):
    """Zero only the 1-element halo of a (N, H+2, W+2, C) padded buffer."""
    N, Hp, Wp, C = pad_ref.shape
    zrow = jnp.zeros((N, 1, Wp, C), pad_ref.dtype)
    pad_ref[:, 0:1, :, :] = zrow                       # top pad row
    pad_ref[:, Hp - 1:Hp, :, :] = zrow                 # bottom pad row
    zcol = jnp.zeros((N, Hp - 2, 1, C), pad_ref.dtype)
    pad_ref[:, 1:Hp - 1, 0:1, :] = zcol                # left pad column
    pad_ref[:, 1:Hp - 1, Wp - 1:Wp, :] = zcol          # right pad column


def _im2col(pad_ref, patch_ref):
    """Fill the (M, 9C) im2col slab from a (N, H+2, W+2, C) padded buffer."""
    N, Hp, Wp, C = pad_ref.shape
    H, W = Hp - 2, Wp - 2
    M = N * H * W
    for k in range(9):
        dy, dx = k // 3, k % 3
        patch_ref[:, k * C:(k + 1) * C] = (
            pad_ref[:, dy:dy + H, dx:dx + W, :]
            .reshape(M, C).astype(patch_ref.dtype))


def _batchnorm(acc, gamma, beta, inv_m):
    """Training-mode BN; single-pass per-channel sum / sum-of-squares (f32)."""
    s = jnp.sum(acc, axis=0, keepdims=True)
    sq = jnp.sum(acc * acc, axis=0, keepdims=True)
    mean = s * inv_m
    var = sq * inv_m - mean * mean                     # eps=0.8 -> numerically safe
    scale = jax.lax.rsqrt(var + BN_EPS) * gamma
    return (acc - mean) * scale + beta


# --------------------------------- kernel ------------------------------------

def _residual_block_kernel(x_ref, w1_ref, g1_ref, be1_ref, a_ref,
                           w2_ref, g2_ref, be2_ref,
                           o_ref,
                           xpad_ref, ypad_ref, patch_ref):
    N, H, W, C = x_ref.shape
    M = N * H * W
    inv_m = 1.0 / M

    # ---- padded input built in VMEM (no padded HBM copy); halo-only zeroing --
    _zero_halo(xpad_ref)
    xpad_ref[:, 1:H + 1, 1:W + 1, :] = x_ref[...]

    # ---- Conv1: one im2col matmul, bf16 operands, f32 accumulation ----------
    _im2col(xpad_ref, patch_ref)
    acc1 = jnp.dot(patch_ref[...], w1_ref[...],
                   preferred_element_type=jnp.float32)          # (M, C) f32
    # conv1 bias omitted: exactly cancelled by the BN mean subtraction below.

    # ---- BN1 (batch statistics) + PReLU, all f32 elementwise ----------------
    y = _batchnorm(acc1, g1_ref[...], be1_ref[...], inv_m)
    alpha = a_ref[0, 0]
    y = jnp.where(y > 0, y, alpha * y)

    # ---- padded intermediate for Conv2 ---------------------------------------
    _zero_halo(ypad_ref)
    ypad_ref[:, 1:H + 1, 1:W + 1, :] = y.reshape(N, H, W, C)

    # ---- Conv2 (slab reused) + BN2 -------------------------------------------
    _im2col(ypad_ref, patch_ref)
    acc2 = jnp.dot(patch_ref[...], w2_ref[...],
                   preferred_element_type=jnp.float32)
    # conv2 bias omitted (same cancellation).
    y2 = _batchnorm(acc2, g2_ref[...], be2_ref[...], inv_m)

    # ---- residual add: x re-read from the unpadded input ref ----------------
    o_ref[...] = (x_ref[...] + y2.reshape(N, H, W, C)).astype(o_ref.dtype)


# -------------------------------- wrapper ------------------------------------

def residual_block(x_nchw, params, *, mxu_dtype=jnp.bfloat16):
    """Pallas ResidualBlock forward. x_nchw: (N, C, H, W) float32."""
    x = jnp.transpose(x_nchw, (0, 2, 3, 1))            # NCHW -> NHWC (lane-dense C)
    N, H, W, C = x.shape
    M = N * H * W

    # PyTorch conv weight (C_out, C_in, 3, 3) -> im2col matrix (9*C_in, C_out)
    # with row index = (kh*3 + kw)*C_in + c_in, matching the patch-slab columns.
    def to_im2col_mat(w):
        return jnp.transpose(w, (2, 3, 1, 0)).reshape(9 * C, C).astype(mxu_dtype)

    w1 = to_im2col_mat(params["w1"])
    w2 = to_im2col_mat(params["w2"])
    g1 = params["g1"].reshape(1, C).astype(jnp.float32)
    be1 = params["be1"].reshape(1, C).astype(jnp.float32)
    g2 = params["g2"].reshape(1, C).astype(jnp.float32)
    be2 = params["be2"].reshape(1, C).astype(jnp.float32)
    alpha = params["alpha"].reshape(1, 1).astype(jnp.float32)

    vmem = pl.BlockSpec(memory_space=pltpu.MemorySpace.VMEM)
    out = pl.pallas_call(
        _residual_block_kernel,
        out_shape=jax.ShapeDtypeStruct((N, H, W, C), x.dtype),
        in_specs=[vmem] * 8,                            # conv biases not passed
        out_specs=vmem,
        scratch_shapes=[
            pltpu.VMEM((N, H + 2, W + 2, C), jnp.float32),   # padded x
            pltpu.VMEM((N, H + 2, W + 2, C), jnp.float32),   # padded mid activation
            pltpu.VMEM((M, 9 * C), mxu_dtype),               # im2col slab (reused)
        ],
        compiler_params=pltpu.CompilerParams(
            vmem_limit_bytes=32 * 1024 * 1024),
    )(x, w1, g1, be1, alpha, w2, g2, be2)

    return jnp.transpose(out, (0, 3, 1, 2))             # NHWC -> NCHW


# --------------------------- pure-JAX reference -------------------------------

def residual_block_reference(x_nchw, params):
    """Pure-JAX reference matching PyTorch semantics (training-mode BN, with biases)."""
    def conv(x, w, b):
        y = jax.lax.conv_general_dilated(
            x, w, window_strides=(1, 1), padding=((1, 1), (1, 1)),
            dimension_numbers=("NCHW", "OIHW", "NCHW"),
            precision=jax.lax.Precision.HIGHEST)
        return y + b[None, :, None, None]

    def bn(y, g, b):
        mean = y.mean(axis=(0, 2, 3), keepdims=True)
        var = ((y - mean) ** 2).mean(axis=(0, 2, 3), keepdims=True)
        return ((y - mean) / jnp.sqrt(var + BN_EPS)
                * g[None, :, None, None] + b[None, :, None, None])

    a = params["alpha"]
    h = conv(x_nchw, params["w1"], params["b1"])
    h = bn(h, params["g1"], params["be1"])
    h = jnp.where(h > 0, h, a * h)
    h = conv(h, params["w2"], params["b2"])
    h = bn(h, params["g2"], params["be2"])
    return x_nchw + h


def make_params(key, C):
    ks = jax.random.split(key, 8)
    return {
        "w1": 0.1 * jax.random.normal(ks[0], (C, C, 3, 3), jnp.float32),
        "b1": 0.1 * jax.random.normal(ks[1], (C,), jnp.float32),
        "g1": 1.0 + 0.1 * jax.random.normal(ks[2], (C,), jnp.float32),
        "be1": 0.1 * jax.random.normal(ks[3], (C,), jnp.float32),
        "alpha": jnp.array(0.25, jnp.float32),           # PReLU default init
        "w2": 0.1 * jax.random.normal(ks[4], (C, C, 3, 3), jnp.float32),
        "b2": 0.1 * jax.random.normal(ks[5], (C,), jnp.float32),
        "g2": 1.0 + 0.1 * jax.random.normal(ks[6], (C,), jnp.float32),
        "be2": 0.1 * jax.random.normal(ks[7], (C,), jnp.float32),
    }


if __name__ == "__main__":
    key = jax.random.PRNGKey(0)
    kx, kp = jax.random.split(key)

    # C=128 keeps the channel (lane) axis dense; real CycleGAN res-blocks use 256.
    N, C, H, W = 2, 128, 16, 16
    x = jax.random.normal(kx, (N, C, H, W), jnp.float32)
    params = make_params(kp, C)

    out = jax.block_until_ready(jax.jit(residual_block)(x, params))
    ref = jax.block_until_ready(residual_block_reference(x, params))

    assert out.shape == (N, C, H, W)
    # bf16 MXU operands (f32 accumulation) -> validate at bf16-level tolerance.
    assert jnp.allclose(out, ref, rtol=5e-2, atol=5e-2), (
        float(jnp.max(jnp.abs(out - ref))))
    print("KERNEL_OK")
</pallas_src>

<mosaic_0001>
module attributes {stable_mosaic.version = 11 : i64} {
  func.func @_residual_block_kernel(%arg0: memref<2x16x16x128xf32, #tpu.memory_space<vmem>>, %arg1: memref<1152x128xbf16, #tpu.memory_space<vmem>>, %arg2: memref<1x128xf32, #tpu.memory_space<vmem>>, %arg3: memref<1x128xf32, #tpu.memory_space<vmem>>, %arg4: memref<1x1xf32, #tpu.memory_space<vmem>>, %arg5: memref<1152x128xbf16, #tpu.memory_space<vmem>>, %arg6: memref<1x128xf32, #tpu.memory_space<vmem>>, %arg7: memref<1x128xf32, #tpu.memory_space<vmem>>, %arg8: memref<2x16x16x128xf32, #tpu.memory_space<vmem>>, %arg9: memref<2x18x18x128xf32, #tpu.memory_space<vmem>>, %arg10: memref<2x18x18x128xf32, #tpu.memory_space<vmem>>, %arg11: memref<512x1152xbf16, #tpu.memory_space<vmem>>) attributes {dimension_semantics = [], scalar_prefetch = 0 : i64, scratch_operands = 3 : i64, tpu.core_type = #tpu.core_type<tc>} {
    %cst = arith.constant 0.000000e+00 : f32
    %0 = vector.broadcast %cst : f32 to vector<2x1x18x128xf32>
    %c0 = arith.constant 0 : index
    %c0_0 = arith.constant 0 : index
    %c0_1 = arith.constant 0 : index
    %c0_2 = arith.constant 0 : index
    %1 = vector.load %arg9[%c0, %c0_0, %c0_1, %c0_2] : memref<2x18x18x128xf32, #tpu.memory_space<vmem>>, vector<2x1x18x128xf32>
    tpu.vector_store %arg9[%c0, %c0_0, %c0_1, %c0_2], %0 {strides = array<i32>} : memref<2x18x18x128xf32, #tpu.memory_space<vmem>>, vector<2x1x18x128xf32>,
    %c0_3 = arith.constant 0 : index
    %c17 = arith.constant 17 : index
    %c0_4 = arith.constant 0 : index
    %c0_5 = arith.constant 0 : index
    %2 = vector.load %arg9[%c0_3, %c17, %c0_4, %c0_5] : memref<2x18x18x128xf32, #tpu.memory_space<vmem>>, vector<2x1x18x128xf32>
    tpu.vector_store %arg9[%c0_3, %c17, %c0_4, %c0_5], %0 {strides = array<i32>} : memref<2x18x18x128xf32, #tpu.memory_space<vmem>>, vector<2x1x18x128xf32>,
    %cst_6 = arith.constant 0.000000e+00 : f32
    %3 = vector.broadcast %cst_6 : f32 to vector<2x16x1x128xf32>
    %c0_7 = arith.constant 0 : index
    %c1 = arith.constant 1 : index
    %c0_8 = arith.constant 0 : index
    %c0_9 = arith.constant 0 : index
    %4 = vector.load %arg9[%c0_7, %c1, %c0_8, %c0_9] : memref<2x18x18x128xf32, #tpu.memory_space<vmem>>, vector<2x16x1x128xf32>
    tpu.vector_store %arg9[%c0_7, %c1, %c0_8, %c0_9], %3 {strides = array<i32>} : memref<2x18x18x128xf32, #tpu.memory_space<vmem>>, vector<2x16x1x128xf32>,
    %c0_10 = arith.constant 0 : index
    %c1_11 = arith.constant 1 : index
    %c17_12 = arith.constant 17 : index
    %c0_13 = arith.constant 0 : index
    %5 = vector.load %arg9[%c0_10, %c1_11, %c17_12, %c0_13] : memref<2x18x18x128xf32, #tpu.memory_space<vmem>>, vector<2x16x1x128xf32>
    tpu.vector_store %arg9[%c0_10, %c1_11, %c17_12, %c0_13], %3 {strides = array<i32>} : memref<2x18x18x128xf32, #tpu.memory_space<vmem>>, vector<2x16x1x128xf32>,
    %c0_14 = arith.constant 0 : index
    %c0_15 = arith.constant 0 : index
    %c0_16 = arith.constant 0 : index
    %c0_17 = arith.constant 0 : index
    %6 = vector.load %arg0[%c0_14, %c0_15, %c0_16, %c0_17] : memref<2x16x16x128xf32, #tpu.memory_space<vmem>>, vector<2x16x16x128xf32>
    %c0_18 = arith.constant 0 : index
    %c1_19 = arith.constant 1 : index
    %c1_20 = arith.constant 1 : index
    %c0_21 = arith.constant 0 : index
    %7 = vector.load %arg9[%c0_18, %c1_19, %c1_20, %c0_21] : memref<2x18x18x128xf32, #tpu.memory_space<vmem>>, vector<2x16x16x128xf32>
    tpu.vector_store %arg9[%c0_18, %c1_19, %c1_20, %c0_21], %6 {strides = array<i32>} : memref<2x18x18x128xf32, #tpu.memory_space<vmem>>, vector<2x16x16x128xf32>,
    %c0_22 = arith.constant 0 : index
    %c0_23 = arith.constant 0 : index
    %c0_24 = arith.constant 0 : index
    %c0_25 = arith.constant 0 : index
    %8 = vector.load %arg9[%c0_22, %c0_23, %c0_24, %c0_25] : memref<2x18x18x128xf32, #tpu.memory_space<vmem>>, vector<2x16x16x128xf32>
    %9 = vector.shape_cast %8 : vector<2x16x16x128xf32> to vector<512x128xf32>
    %10 = arith.truncf %9 : vector<512x128xf32> to vector<512x128xbf16>
    %c0_26 = arith.constant 0 : index
    %c0_27 = arith.constant 0 : index
    %11 = vector.load %arg11[%c0_26, %c0_27] : memref<512x1152xbf16, #tpu.memory_space<vmem>>, vector<512x128xbf16>
    tpu.vector_store %arg11[%c0_26, %c0_27], %10 {strides = array<i32>} : memref<512x1152xbf16, #tpu.memory_space<vmem>>, vector<512x128xbf16>,
    %c0_28 = arith.constant 0 : index
    %c0_29 = arith.constant 0 : index
    %c1_30 = arith.constant 1 : index
    %c0_31 = arith.constant 0 : index
    %12 = vector.load %arg9[%c0_28, %c0_29, %c1_30, %c0_31] : memref<2x18x18x128xf32, #tpu.memory_space<vmem>>, vector<2x16x16x128xf32>
    %13 = vector.shape_cast %12 : vector<2x16x16x128xf32> to vector<512x128xf32>
    %14 = arith.truncf %13 : vector<512x128xf32> to vector<512x128xbf16>
    %c0_32 = arith.constant 0 : index
    %c128 = arith.constant 128 : index
    %15 = vector.load %arg11[%c0_32, %c128] : memref<512x1152xbf16, #tpu.memory_space<vmem>>, vector<512x128xbf16>
    tpu.vector_store %arg11[%c0_32, %c128], %14 {strides = array<i32>} : memref<512x1152xbf16, #tpu.memory_space<vmem>>, vector<512x128xbf16>,
    %c0_33 = arith.constant 0 : index
    %c0_34 = arith.constant 0 : index
    %c2 = arith.constant 2 : index
    %c0_35 = arith.constant 0 : index
    %16 = vector.load %arg9[%c0_33, %c0_34, %c2, %c0_35] : memref<2x18x18x128xf32, #tpu.memory_space<vmem>>, vector<2x16x16x128xf32>
    %17 = vector.shape_cast %16 : vector<2x16x16x128xf32> to vector<512x128xf32>
    %18 = arith.truncf %17 : vector<512x128xf32> to vector<512x128xbf16>
    %c0_36 = arith.constant 0 : index
    %c256 = arith.constant 256 : index
    %19 = vector.load %arg11[%c0_36, %c256] : memref<512x1152xbf16, #tpu.memory_space<vmem>>, vector<512x128xbf16>
    tpu.vector_store %arg11[%c0_36, %c256], %18 {strides = array<i32>} : memref<512x1152xbf16, #tpu.memory_space<vmem>>, vector<512x128xbf16>,
    %c0_37 = arith.constant 0 : index
    %c1_38 = arith.constant 1 : index
    %c0_39 = arith.constant 0 : index
    %c0_40 = arith.constant 0 : index
    %20 = vector.load %arg9[%c0_37, %c1_38, %c0_39, %c0_40] : memref<2x18x18x128xf32, #tpu.memory_space<vmem>>, vector<2x16x16x128xf32>
    %21 = vector.shape_cast %20 : vector<2x16x16x128xf32> to vector<512x128xf32>
    %22 = arith.truncf %21 : vector<512x128xf32> to vector<512x128xbf16>
    %c0_41 = arith.constant 0 : index
    %c384 = arith.constant 384 : index
    %23 = vector.load %arg11[%c0_41, %c384] : memref<512x1152xbf16, #tpu.memory_space<vmem>>, vector<512x128xbf16>
    tpu.vector_store %arg11[%c0_41, %c384], %22 {strides = array<i32>} : memref<512x1152xbf16, #tpu.memory_space<vmem>>, vector<512x128xbf16>,
    %c0_42 = arith.constant 0 : index
    %c1_43 = arith.constant 1 : index
    %c1_44 = arith.constant 1 : index
    %c0_45 = arith.constant 0 : index
    %24 = vector.load %arg9[%c0_42, %c1_43, %c1_44, %c0_45] : memref<2x18x18x128xf32, #tpu.memory_space<vmem>>, vector<2x16x16x128xf32>
    %25 = vector.shape_cast %24 : vector<2x16x16x128xf32> to vector<512x128xf32>
    %26 = arith.truncf %25 : vector<512x128xf32> to vector<512x128xbf16>
    %c0_46 = arith.constant 0 : index
    %c512 = arith.constant 512 : index
    %27 = vector.load %arg11[%c0_46, %c512] : memref<512x1152xbf16, #tpu.memory_space<vmem>>, vector<512x128xbf16>
    tpu.vector_store %arg11[%c0_46, %c512], %26 {strides = array<i32>} : memref<512x1152xbf16, #tpu.memory_space<vmem>>, vector<512x128xbf16>,
    %c0_47 = arith.constant 0 : index
    %c1_48 = arith.constant 1 : index
    %c2_49 = arith.constant 2 : index
    %c0_50 = arith.constant 0 : index
    %28 = vector.load %arg9[%c0_47, %c1_48, %c2_49, %c0_50] : memref<2x18x18x128xf32, #tpu.memory_space<vmem>>, vector<2x16x16x128xf32>
    %29 = vector.shape_cast %28 : vector<2x16x16x128xf32> to vector<512x128xf32>
    %30 = arith.truncf %29 : vector<512x128xf32> to vector<512x128xbf16>
    %c0_51 = arith.constant 0 : index
    %c640 = arith.constant 640 : index
    %31 = vector.load %arg11[%c0_51, %c640] : memref<512x1152xbf16, #tpu.memory_space<vmem>>, vector<512x128xbf16>
    tpu.vector_store %arg11[%c0_51, %c640], %30 {strides = array<i32>} : memref<512x1152xbf16, #tpu.memory_space<vmem>>, vector<512x128xbf16>,
    %c0_52 = arith.constant 0 : index
    %c2_53 = arith.constant 2 : index
    %c0_54 = arith.constant 0 : index
    %c0_55 = arith.constant 0 : index
    %32 = vector.load %arg9[%c0_52, %c2_53, %c0_54, %c0_55] : memref<2x18x18x128xf32, #tpu.memory_space<vmem>>, vector<2x16x16x128xf32>
    %33 = vector.shape_cast %32 : vector<2x16x16x128xf32> to vector<512x128xf32>
    %34 = arith.truncf %33 : vector<512x128xf32> to vector<512x128xbf16>
    %c0_56 = arith.constant 0 : index
    %c768 = arith.constant 768 : index
    %35 = vector.load %arg11[%c0_56, %c768] : memref<512x1152xbf16, #tpu.memory_space<vmem>>, vector<512x128xbf16>
    tpu.vector_store %arg11[%c0_56, %c768], %34 {strides = array<i32>} : memref<512x1152xbf16, #tpu.memory_space<vmem>>, vector<512x128xbf16>,
    %c0_57 = arith.constant 0 : index
    %c2_58 = arith.constant 2 : index
    %c1_59 = arith.constant 1 : index
    %c0_60 = arith.constant 0 : index
    %36 = vector.load %arg9[%c0_57, %c2_58, %c1_59, %c0_60] : memref<2x18x18x128xf32, #tpu.memory_space<vmem>>, vector<2x16x16x128xf32>
    %37 = vector.shape_cast %36 : vector<2x16x16x128xf32> to vector<512x128xf32>
    %38 = arith.truncf %37 : vector<512x128xf32> to vector<512x128xbf16>
    %c0_61 = arith.constant 0 : index
    %c896 = arith.constant 896 : index
    %39 = vector.load %arg11[%c0_61, %c896] : memref<512x1152xbf16, #tpu.memory_space<vmem>>, vector<512x128xbf16>
    tpu.vector_store %arg11[%c0_61, %c896], %38 {strides = array<i32>} : memref<512x1152xbf16, #tpu.memory_space<vmem>>, vector<512x128xbf16>,
    %c0_62 = arith.constant 0 : index
    %c2_63 = arith.constant 2 : index
    %c2_64 = arith.constant 2 : index
    %c0_65 = arith.constant 0 : index
    %40 = vector.load %arg9[%c0_62, %c2_63, %c2_64, %c0_65] : memref<2x18x18x128xf32, #tpu.memory_space<vmem>>, vector<2x16x16x128xf32>
    %41 = vector.shape_cast %40 : vector<2x16x16x128xf32> to vector<512x128xf32>
    %42 = arith.truncf %41 : vector<512x128xf32> to vector<512x128xbf16>
    %c0_66 = arith.constant 0 : index
    %c1024 = arith.constant 1024 : index
    %43 = vector.load %arg11[%c0_66, %c1024] : memref<512x1152xbf16, #tpu.memory_space<vmem>>, vector<512x128xbf16>
    tpu.vector_store %arg11[%c0_66, %c1024], %42 {strides = array<i32>} : memref<512x1152xbf16, #tpu.memory_space<vmem>>, vector<512x128xbf16>,
    %c0_67 = arith.constant 0 : index
    %c0_68 = arith.constant 0 : index
    %44 = vector.load %arg11[%c0_67, %c0_68] : memref<512x1152xbf16, #tpu.memory_space<vmem>>, vector<512x1152xbf16>
    %c0_69 = arith.constant 0 : index
    %c0_70 = arith.constant 0 : index
    %45 = vector.load %arg1[%c0_69, %c0_70] : memref<1152x128xbf16, #tpu.memory_space<vmem>>, vector<1152x128xbf16>
    %cst_71 = arith.constant dense<0.000000e+00> : vector<512x128xf32>
    %46 = tpu.matmul %44, %45, %cst_71 {dimension_numbers = #tpu.dot_dimension_numbers<[1], [0], [0], [1], [0, 0, 1, 1], [], []>} : vector<512x1152xbf16>, vector<1152x128xbf16>, vector<512x128xf32> -> vector<512x128xf32>
    %c0_72 = arith.constant 0 : index
    %c0_73 = arith.constant 0 : index
    %47 = vector.load %arg2[%c0_72, %c0_73] : memref<1x128xf32, #tpu.memory_space<vmem>>, vector<1x128xf32>
    %c0_74 = arith.constant 0 : index
    %c0_75 = arith.constant 0 : index
    %48 = vector.load %arg3[%c0_74, %c0_75] : memref<1x128xf32, #tpu.memory_space<vmem>>, vector<1x128xf32>
    %cst_76 = arith.constant dense<0.000000e+00> : vector<128xf32>
    %49 = vector.multi_reduction <add>, %46, %cst_76 [0] : vector<512x128xf32> to vector<128xf32>
    %50 = vector.shape_cast %49 : vector<128xf32> to vector<1x128xf32>
    %51 = arith.mulf %46, %46 : vector<512x128xf32>
    %cst_77 = arith.constant dense<0.000000e+00> : vector<128xf32>
    %52 = vector.multi_reduction <add>, %51, %cst_77 [0] : vector<512x128xf32> to vector<128xf32>
    %53 = vector.shape_cast %52 : vector<128xf32> to vector<1x128xf32>
    %cst_78 = arith.constant 0.001953125 : f32
    %54 = vector.broadcast %cst_78 : f32 to vector<1x128xf32>
    %55 = arith.mulf %50, %54 : vector<1x128xf32>
    %cst_79 = arith.constant 0.001953125 : f32
    %56 = vector.broadcast %cst_79 : f32 to vector<1x128xf32>
    %57 = arith.mulf %53, %56 : vector<1x128xf32>
    %58 = arith.mulf %55, %55 : vector<1x128xf32>
    %59 = arith.subf %57, %58 : vector<1x128xf32>
    %cst_80 = arith.constant 8.000000e-01 : f32
    %60 = vector.broadcast %cst_80 : f32 to vector<1x128xf32>
    %61 = arith.addf %59, %60 : vector<1x128xf32>
    %62 = math.rsqrt %61 : vector<1x128xf32>
    %63 = arith.mulf %62, %47 : vector<1x128xf32>
    %64 = vector.broadcast %55 : vector<1x128xf32> to vector<512x128xf32>
    %65 = arith.subf %46, %64 : vector<512x128xf32>
    %66 = vector.broadcast %63 : vector<1x128xf32> to vector<512x128xf32>
    %67 = arith.mulf %65, %66 : vector<512x128xf32>
    %68 = vector.broadcast %48 : vector<1x128xf32> to vector<512x128xf32>
    %69 = arith.addf %67, %68 : vector<512x128xf32>
    %c0_81 = arith.constant 0 : index
    %c0_82 = arith.constant 0 : index
    %70 = vector.load %arg4[%c0_81, %c0_82] : memref<1x1xf32, #tpu.memory_space<vmem>>, vector<1x1xf32>
    %71 = vector.extract %70[0, 0] : f32 from vector<1x1xf32>
    %cst_83 = arith.constant 0.000000e+00 : f32
    %72 = vector.broadcast %cst_83 : f32 to vector<512x128xf32>
    %73 = arith.cmpf ogt, %69, %72 : vector<512x128xf32>
    %74 = vector.broadcast %71 : f32 to vector<512x128xf32>
    %75 = arith.mulf %74, %69 : vector<512x128xf32>
    %76 = arith.select %73, %69, %75 : vector<512x128xi1>, vector<512x128xf32>
    %cst_84 = arith.constant 0.000000e+00 : f32
    %77 = vector.broadcast %cst_84 : f32 to vector<2x1x18x128xf32>
    %c0_85 = arith.constant 0 : index
    %c0_86 = arith.constant 0 : index
    %c0_87 = arith.constant 0 : index
    %c0_88 = arith.constant 0 : index
    %78 = vector.load %arg10[%c0_85, %c0_86, %c0_87, %c0_88] : memref<2x18x18x128xf32, #tpu.memory_space<vmem>>, vector<2x1x18x128xf32>
    tpu.vector_store %arg10[%c0_85, %c0_86, %c0_87, %c0_88], %77 {strides = array<i32>} : memref<2x18x18x128xf32, #tpu.memory_space<vmem>>, vector<2x1x18x128xf32>,
    %c0_89 = arith.constant 0 : index
    %c17_90 = arith.constant 17 : index
    %c0_91 = arith.constant 0 : index
    %c0_92 = arith.constant 0 : index
    %79 = vector.load %arg10[%c0_89, %c17_90, %c0_91, %c0_92] : memref<2x18x18x128xf32, #tpu.memory_space<vmem>>, vector<2x1x18x128xf32>
    tpu.vector_store %arg10[%c0_89, %c17_90, %c0_91, %c0_92], %77 {strides = array<i32>} : memref<2x18x18x128xf32, #tpu.memory_space<vmem>>, vector<2x1x18x128xf32>,
    %cst_93 = arith.constant 0.000000e+00 : f32
    %80 = vector.broadcast %cst_93 : f32 to vector<2x16x1x128xf32>
    %c0_94 = arith.constant 0 : index
    %c1_95 = arith.constant 1 : index
    %c0_96 = arith.constant 0 : index
    %c0_97 = arith.constant 0 : index
    %81 = vector.load %arg10[%c0_94, %c1_95, %c0_96, %c0_97] : memref<2x18x18x128xf32, #tpu.memory_space<vmem>>, vector<2x16x1x128xf32>
    tpu.vector_store %arg10[%c0_94, %c1_95, %c0_96, %c0_97], %80 {strides = array<i32>} : memref<2x18x18x128xf32, #tpu.memory_space<vmem>>, vector<2x16x1x128xf32>,
    %c0_98 = arith.constant 0 : index
    %c1_99 = arith.constant 1 : index
    %c17_100 = arith.constant 17 : index
    %c0_101 = arith.constant 0 : index
    %82 = vector.load %arg10[%c0_98, %c1_99, %c17_100, %c0_101] : memref<2x18x18x128xf32, #tpu.memory_space<vmem>>, vector<2x16x1x128xf32>
    tpu.vector_store %arg10[%c0_98, %c1_99, %c17_100, %c0_101], %80 {strides = array<i32>} : memref<2x18x18x128xf32, #tpu.memory_space<vmem>>, vector<2x16x1x128xf32>,
    %83 = vector.shape_cast %76 : vector<512x128xf32> to vector<2x16x16x128xf32>
    %c0_102 = arith.constant 0 : index
    %c1_103 = arith.constant 1 : index
    %c1_104 = arith.constant 1 : index
    %c0_105 = arith.constant 0 : index
    %84 = vector.load %arg10[%c0_102, %c1_103, %c1_104, %c0_105] : memref<2x18x18x128xf32, #tpu.memory_space<vmem>>, vector<2x16x16x128xf32>
    tpu.vector_store %arg10[%c0_102, %c1_103, %c1_104, %c0_105], %83 {strides = array<i32>} : memref<2x18x18x128xf32, #tpu.memory_space<vmem>>, vector<2x16x16x128xf32>,
    %c0_106 = arith.constant 0 : index
    %c0_107 = arith.constant 0 : index
    %c0_108 = arith.constant 0 : index
    %c0_109 = arith.constant 0 : index
    %85 = vector.load %arg10[%c0_106, %c0_107, %c0_108, %c0_109] : memref<2x18x18x128xf32, #tpu.memory_space<vmem>>, vector<2x16x16x128xf32>
    %86 = vector.shape_cast %85 : vector<2x16x16x128xf32> to vector<512x128xf32>
    %87 = arith.truncf %86 : vector<512x128xf32> to vector<512x128xbf16>
    %c0_110 = arith.constant 0 : index
    %c0_111 = arith.constant 0 : index
    %88 = vector.load %arg11[%c0_110, %c0_111] : memref<512x1152xbf16, #tpu.memory_space<vmem>>, vector<512x128xbf16>
    tpu.vector_store %arg11[%c0_110, %c0_111], %87 {strides = array<i32>} : memref<512x1152xbf16, #tpu.memory_space<vmem>>, vector<512x128xbf16>,
    %c0_112 = arith.constant 0 : index
    %c0_113 = arith.constant 0 : index
    %c1_114 = arith.constant 1 : index
    %c0_115 = arith.constant 0 : index
    %89 = vector.load %arg10[%c0_112, %c0_113, %c1_114, %c0_115] : memref<2x18x18x128xf32, #tpu.memory_space<vmem>>, vector<2x16x16x128xf32>
    %90 = vector.shape_cast %89 : vector<2x16x16x128xf32> to vector<512x128xf32>
    %91 = arith.truncf %90 : vector<512x128xf32> to vector<512x128xbf16>
    %c0_116 = arith.constant 0 : index
    %c128_117 = arith.constant 128 : index
    %92 = vector.load %arg11[%c0_116, %c128_117] : memref<512x1152xbf16, #tpu.memory_space<vmem>>, vector<512x128xbf16>
    tpu.vector_store %arg11[%c0_116, %c128_117], %91 {strides = array<i32>} : memref<512x1152xbf16, #tpu.memory_space<vmem>>, vector<512x128xbf16>,
    %c0_118 = arith.constant 0 : index
    %c0_119 = arith.constant 0 : index
    %c2_120 = arith.constant 2 : index
    %c0_121 = arith.constant 0 : index
    %93 = vector.load %arg10[%c0_118, %c0_119, %c2_120, %c0_121] : memref<2x18x18x128xf32, #tpu.memory_space<vmem>>, vector<2x16x16x128xf32>
    %94 = vector.shape_cast %93 : vector<2x16x16x128xf32> to vector<512x128xf32>
    %95 = arith.truncf %94 : vector<512x128xf32> to vector<512x128xbf16>
    %c0_122 = arith.constant 0 : index
    %c256_123 = arith.constant 256 : index
    %96 = vector.load %arg11[%c0_122, %c256_123] : memref<512x1152xbf16, #tpu.memory_space<vmem>>, vector<512x128xbf16>
    tpu.vector_store %arg11[%c0_122, %c256_123], %95 {strides = array<i32>} : memref<512x1152xbf16, #tpu.memory_space<vmem>>, vector<512x128xbf16>,
    %c0_124 = arith.constant 0 : index
    %c1_125 = arith.constant 1 : index
    %c0_126 = arith.constant 0 : index
    %c0_127 = arith.constant 0 : index
    %97 = vector.load %arg10[%c0_124, %c1_125, %c0_126, %c0_127] : memref<2x18x18x128xf32, #tpu.memory_space<vmem>>, vector<2x16x16x128xf32>
    %98 = vector.shape_cast %97 : vector<2x16x16x128xf32> to vector<512x128xf32>
    %99 = arith.truncf %98 : vector<512x128xf32> to vector<512x128xbf16>
    %c0_128 = arith.constant 0 : index
    %c384_129 = arith.constant 384 : index
    %100 = vector.load %arg11[%c0_128, %c384_129] : memref<512x1152xbf16, #tpu.memory_space<vmem>>, vector<512x128xbf16>
    tpu.vector_store %arg11[%c0_128, %c384_129], %99 {strides = array<i32>} : memref<512x1152xbf16, #tpu.memory_space<vmem>>, vector<512x128xbf16>,
    %c0_130 = arith.constant 0 : index
    %c1_131 = arith.constant 1 : index
    %c1_132 = arith.constant 1 : index
    %c0_133 = arith.constant 0 : index
    %101 = vector.load %arg10[%c0_130, %c1_131, %c1_132, %c0_133] : memref<2x18x18x128xf32, #tpu.memory_space<vmem>>, vector<2x16x16x128xf32>
    %102 = vector.shape_cast %101 : vector<2x16x16x128xf32> to vector<512x128xf32>
    %103 = arith.truncf %102 : vector<512x128xf32> to vector<512x128xbf16>
    %c0_134 = arith.constant 0 : index
    %c512_135 = arith.constant 512 : index
    %104 = vector.load %arg11[%c0_134, %c512_135] : memref<512x1152xbf16, #tpu.memory_space<vmem>>, vector<512x128xbf16>
    tpu.vector_store %arg11[%c0_134, %c512_135], %103 {strides = array<i32>} : memref<512x1152xbf16, #tpu.memory_space<vmem>>, vector<512x128xbf16>,
    %c0_136 = arith.constant 0 : index
    %c1_137 = arith.constant 1 : index
    %c2_138 = arith.constant 2 : index
    %c0_139 = arith.constant 0 : index
    %105 = vector.load %arg10[%c0_136, %c1_137, %c2_138, %c0_139] : memref<2x18x18x128xf32, #tpu.memory_space<vmem>>, vector<2x16x16x128xf32>
    %106 = vector.shape_cast %105 : vector<2x16x16x128xf32> to vector<512x128xf32>
    %107 = arith.truncf %106 : vector<512x128xf32> to vector<512x128xbf16>
    %c0_140 = arith.constant 0 : index
    %c640_141 = arith.constant 640 : index
    %108 = vector.load %arg11[%c0_140, %c640_141] : memref<512x1152xbf16, #tpu.memory_space<vmem>>, vector<512x128xbf16>
    tpu.vector_store %arg11[%c0_140, %c640_141], %107 {strides = array<i32>} : memref<512x1152xbf16, #tpu.memory_space<vmem>>, vector<512x128xbf16>,
    %c0_142 = arith.constant 0 : index
    %c2_143 = arith.constant 2 : index
    %c0_144 = arith.constant 0 : index
    %c0_145 = arith.constant 0 : index
    %109 = vector.load %arg10[%c0_142, %c2_143, %c0_144, %c0_145] : memref<2x18x18x128xf32, #tpu.memory_space<vmem>>, vector<2x16x16x128xf32>
    %110 = vector.shape_cast %109 : vector<2x16x16x128xf32> to vector<512x128xf32>
    %111 = arith.truncf %110 : vector<512x128xf32> to vector<512x128xbf16>
    %c0_146 = arith.constant 0 : index
    %c768_147 = arith.constant 768 : index
    %112 = vector.load %arg11[%c0_146, %c768_147] : memref<512x1152xbf16, #tpu.memory_space<vmem>>, vector<512x128xbf16>
    tpu.vector_store %arg11[%c0_146, %c768_147], %111 {strides = array<i32>} : memref<512x1152xbf16, #tpu.memory_space<vmem>>, vector<512x128xbf16>,
    %c0_148 = arith.constant 0 : index
    %c2_149 = arith.constant 2 : index
    %c1_150 = arith.constant 1 : index
    %c0_151 = arith.constant 0 : index
    %113 = vector.load %arg10[%c0_148, %c2_149, %c1_150, %c0_151] : memref<2x18x18x128xf32, #tpu.memory_space<vmem>>, vector<2x16x16x128xf32>
    %114 = vector.shape_cast %113 : vector<2x16x16x128xf32> to vector<512x128xf32>
    %115 = arith.truncf %114 : vector<512x128xf32> to vector<512x128xbf16>
    %c0_152 = arith.constant 0 : index
    %c896_153 = arith.constant 896 : index
    %116 = vector.load %arg11[%c0_152, %c896_153] : memref<512x1152xbf16, #tpu.memory_space<vmem>>, vector<512x128xbf16>
    tpu.vector_store %arg11[%c0_152, %c896_153], %115 {strides = array<i32>} : memref<512x1152xbf16, #tpu.memory_space<vmem>>, vector<512x128xbf16>,
    %c0_154 = arith.constant 0 : index
    %c2_155 = arith.constant 2 : index
    %c2_156 = arith.constant 2 : index
    %c0_157 = arith.constant 0 : index
    %117 = vector.load %arg10[%c0_154, %c2_155, %c2_156, %c0_157] : memref<2x18x18x128xf32, #tpu.memory_space<vmem>>, vector<2x16x16x128xf32>
    %118 = vector.shape_cast %117 : vector<2x16x16x128xf32> to vector<512x128xf32>
    %119 = arith.truncf %118 : vector<512x128xf32> to vector<512x128xbf16>
    %c0_158 = arith.constant 0 : index
    %c1024_159 = arith.constant 1024 : index
    %120 = vector.load %arg11[%c0_158, %c1024_159] : memref<512x1152xbf16, #tpu.memory_space<vmem>>, vector<512x128xbf16>
    tpu.vector_store %arg11[%c0_158, %c1024_159], %119 {strides = array<i32>} : memref<512x1152xbf16, #tpu.memory_space<vmem>>, vector<512x128xbf16>,
    %c0_160 = arith.constant 0 : index
    %c0_161 = arith.constant 0 : index
    %121 = vector.load %arg11[%c0_160, %c0_161] : memref<512x1152xbf16, #tpu.memory_space<vmem>>, vector<512x1152xbf16>
    %c0_162 = arith.constant 0 : index
    %c0_163 = arith.constant 0 : index
    %122 = vector.load %arg5[%c0_162, %c0_163] : memref<1152x128xbf16, #tpu.memory_space<vmem>>, vector<1152x128xbf16>
    %cst_164 = arith.constant dense<0.000000e+00> : vector<512x128xf32>
    %123 = tpu.matmul %121, %122, %cst_164 {dimension_numbers = #tpu.dot_dimension_numbers<[1], [0], [0], [1], [0, 0, 1, 1], [], []>} : vector<512x1152xbf16>, vector<1152x128xbf16>, vector<512x128xf32> -> vector<512x128xf32>
    %c0_165 = arith.constant 0 : index
    %c0_166 = arith.constant 0 : index
    %124 = vector.load %arg6[%c0_165, %c0_166] : memref<1x128xf32, #tpu.memory_space<vmem>>, vector<1x128xf32>
    %c0_167 = arith.constant 0 : index
    %c0_168 = arith.constant 0 : index
    %125 = vector.load %arg7[%c0_167, %c0_168] : memref<1x128xf32, #tpu.memory_space<vmem>>, vector<1x128xf32>
    %cst_169 = arith.constant dense<0.000000e+00> : vector<128xf32>
    %126 = vector.multi_reduction <add>, %123, %cst_169 [0] : vector<512x128xf32> to vector<128xf32>
    %127 = vector.shape_cast %126 : vector<128xf32> to vector<1x128xf32>
    %128 = arith.mulf %123, %123 : vector<512x128xf32>
    %cst_170 = arith.constant dense<0.000000e+00> : vector<128xf32>
    %129 = vector.multi_reduction <add>, %128, %cst_170 [0] : vector<512x128xf32> to vector<128xf32>
    %130 = vector.shape_cast %129 : vector<128xf32> to vector<1x128xf32>
    %cst_171 = arith.constant 0.001953125 : f32
    %131 = vector.broadcast %cst_171 : f32 to vector<1x128xf32>
    %132 = arith.mulf %127, %131 : vector<1x128xf32>
    %cst_172 = arith.constant 0.001953125 : f32
    %133 = vector.broadcast %cst_172 : f32 to vector<1x128xf32>
    %134 = arith.mulf %130, %133 : vector<1x128xf32>
    %135 = arith.mulf %132, %132 : vector<1x128xf32>
    %136 = arith.subf %134, %135 : vector<1x128xf32>
    %cst_173 = arith.constant 8.000000e-01 : f32
    %137 = vector.broadcast %cst_173 : f32 to vector<1x128xf32>
    %138 = arith.addf %136, %137 : vector<1x128xf32>
    %139 = math.rsqrt %138 : vector<1x128xf32>
    %140 = arith.mulf %139, %124 : vector<1x128xf32>
    %141 = vector.broadcast %132 : vector<1x128xf32> to vector<512x128xf32>
    %142 = arith.subf %123, %141 : vector<512x128xf32>
    %143 = vector.broadcast %140 : vector<1x128xf32> to vector<512x128xf32>
    %144 = arith.mulf %142, %143 : vector<512x128xf32>
    %145 = vector.broadcast %125 : vector<1x128xf32> to vector<512x128xf32>
    %146 = arith.addf %144, %145 : vector<512x128xf32>
    %c0_174 = arith.constant 0 : index
    %c0_175 = arith.constant 0 : index
    %c0_176 = arith.constant 0 : index
    %c0_177 = arith.constant 0 : index
    %147 = vector.load %arg0[%c0_174, %c0_175, %c0_176, %c0_177] : memref<2x16x16x128xf32, #tpu.memory_space<vmem>>, vector<2x16x16x128xf32>
    %148 = vector.shape_cast %146 : vector<512x128xf32> to vector<2x16x16x128xf32>
    %149 = arith.addf %147, %148 : vector<2x16x16x128xf32>
    %c0_178 = arith.constant 0 : index
    %c0_179 = arith.constant 0 : index
    %c0_180 = arith.constant 0 : index
    %c0_181 = arith.constant 0 : index
    %150 = vector.load %arg8[%c0_178, %c0_179, %c0_180, %c0_181] : memref<2x16x16x128xf32, #tpu.memory_space<vmem>>, vector<2x16x16x128xf32>
    tpu.vector_store %arg8[%c0_178, %c0_179, %c0_180, %c0_181], %149 {strides = array<i32>} : memref<2x16x16x128xf32, #tpu.memory_space<vmem>>, vector<2x16x16x128xf32>,
    return
  }
}

</mosaic_0001>

<bundles_post_ra>
// kernel: residual_block.1
= control target key start
LH: loop header
LB: loop body
LE: loop exit
PB: predicated region body
PF: predicated region fallthrough
CT: control target
= control target key end

     0   :  { %s15621_s0 = inlined_call_operand.vmem [shape: f32[2,16,16,128], index: 0, kind: input, shape index: {}]   ;;  %s15622_s1 = inlined_call_operand.vmem [shape: bf16[1152,128], index: 1, kind: input, shape index: {}]   ;;  %s15623_s2 = inlined_call_operand.vmem [shape: f32[1,128], index: 2, kind: input, shape index: {}]   ;;  %s15624_s3 = inlined_call_operand.vmem [shape: f32[1,128], index: 3, kind: input, shape index: {}]   ;;  %s15625_s4 = inlined_call_operand.<no memory space> [shape: f32[1,1], index: 4, kind: input, shape index: {}]   ;;  %s15626_s5 = inlined_call_operand.vmem [shape: bf16[1152,128], index: 5, kind: input, shape index: {}]   ;;  %s15627_s6 = inlined_call_operand.vmem [shape: f32[1,128], index: 6, kind: input, shape index: {}]   ;;  %s15628_s7 = inlined_call_operand.vmem [shape: f32[1,128], index: 7, kind: input, shape index: {}]   ;;  %s15629_s8 = inlined_call_operand.hbm [shape: f32[2,16,16,128], index: 8, kind: output, shape index: {}]  }
   0x1   :  { %v13_v0 = vstv %s15625_s4 }
   0x2   :  { %14 = vst [vmem:[#allocation5] sm:$0x1] %v13_v0 }
   0x3   :  { %v9711_v1 = vld [vmem:[%s15622_s1] sm:$0xff]   ;;  %v15634_v2 = vmov 0   ;;  %v9955_v3 = vld [vmem:[%s15622_s1 + $0x8] sm:$0xff]   ;;  %v9895_v4 = vmov 0.0   ;;  %v9713_v5 = vld [vmem:[%s15622_s1 + $0x10] sm:$0xff]  }
   0x4   :  { %2256 = vmatprep.subr.bf16.mxu0 %v15634_v2  ;;  %33 = vst [vmem:[#allocation2] sm:$0xff] %v9895_v4  ;;  %34 = vst [vmem:[#allocation2 + $0x8] sm:$0xff] %v9895_v4  ;;  %v9714_v6 = vld [vmem:[%s15622_s1 + $0x18] sm:$0xff]   ;;  %v9715_v7 = vld [vmem:[%s15622_s1 + $0x20] sm:$0xff]  }
   0x5   :  { %2257 = vmatpush1.bf16.msra.mxu0 %v9711_v1  ;;  %35 = vst [vmem:[#allocation2 + $0x10] sm:$0x3] %v9895_v4  ;;  %36 = vst [vmem:[#allocation2 + $0x1b0] sm:$0xff] %v9895_v4  ;;  %v9716_v10 = vld [vmem:[%s15622_s1 + $0x28] sm:$0xff]   ;;  %v10129_v12 = vld [vmem:[%s15621_s0] sm:$0xff] }
   0x6   :  { %37 = vst [vmem:[#allocation2 + $0x1b8] sm:$0xff] %v9895_v4  ;;  %38 = vst [vmem:[#allocation2 + $0x1c0] sm:$0x3] %v9895_v4  ;;  %2258 = vmatprep.subr.bf16.mxu0 %v15634_v2  ;;  %v10134_v13 = vld [vmem:[%s15621_s0 + $0x8] sm:$0xff]  ;;  %v10140_v14 = vld [vmem:[%s15621_s0 + $0x10] sm:$0xff] }
   0x7   :  { %40 = vst [vmem:[#allocation2 + $0x198] sm:$0xff] %v9895_v4  ;;  %41 = vst [vmem:[#allocation2 + $0x1a0] sm:$0xff] %v9895_v4  ;;  %v10145_v15 = vld [vmem:[%s15621_s0 + $0x18] sm:$0xff]  ;;  %v10154_v16 = vld [vmem:[%s15621_s0 + $0x20] sm:$0xff]  ;;  %v432_v1 = vpack.c.bf16 %v10134_v13, %v10129_v12 }
   0x8   :  { %42 = vst [vmem:[#allocation2 + $0x1a8] sm:$0x3] %v9895_v4  ;;  %43 = vst [vmem:[#allocation2 + $0x348] sm:$0xff] %v9895_v4  ;;  %v10159_v17 = vld [vmem:[%s15621_s0 + $0x28] sm:$0xff]  ;;  %v10164_v18 = vld [vmem:[%s15621_s0 + $0x30] sm:$0xff] }
   0x9   :  { %44 = vst [vmem:[#allocation2 + $0x350] sm:$0xff] %v9895_v4  ;;  %45 = vst [vmem:[#allocation2 + $0x358] sm:$0x3] %v9895_v4  ;;  %2259 = vmatpush1.bf16.msra.mxu0 %v9955_v3  ;;  %v10171_v19 = vld [vmem:[%s15621_s0 + $0x38] sm:$0xff]  ;;  %v9717_v20 = vld [vmem:[%s15622_s1 + $0x30] sm:$0xff]  }
   0xa   :  { %47 = vst [vmem:[#allocation2 + $0x18] sm:$0x1] %v9895_v4  ;;  %48 = vst [vmem:[#allocation2 + $0x30] sm:$0x1] %v9895_v4  ;;  %2260 = vmatprep.subr.bf16.mxu0 %v15634_v2  ;;  %v435_v21 = vpack.c.bf16 %v10171_v19, %v10164_v18  ;;  %v10183_v22 = vld [vmem:[%s15621_s0 + $0x40] sm:$0xff]  ;;  %v10188_v23 = vld [vmem:[%s15621_s0 + $0x48] sm:$0xff] }
   0xb   :  { %49 = vst [vmem:[#allocation2 + $0x48] sm:$0x1] %v9895_v4  ;;  %50 = vst [vmem:[#allocation2 + $0x60] sm:$0x1] %v9895_v4  ;;  %v367_v8 = vld [vmem:[#allocation2 + $0x1] sm:$0xff]  ;;  %v436_v24 = vpack.c.bf16 %v10188_v23, %v10183_v22  ;;  %v10198_v25 = vld [vmem:[%s15621_s0 + $0x50] sm:$0xff] }
   0xc   :  { %51 = vst [vmem:[#allocation2 + $0x78] sm:$0x1] %v9895_v4  ;;  %52 = vst [vmem:[#allocation2 + $0x90] sm:$0x1] %v9895_v4  ;;  %v368_v9 = vld [vmem:[#allocation2 + $0x9] sm:$0xff]  ;;  %v10203_v26 = vld [vmem:[%s15621_s0 + $0x58] sm:$0xff] }
   0xd   :  { %53 = vst [vmem:[#allocation2 + $0xa8] sm:$0x1] %v9895_v4  ;;  %54 = vst [vmem:[#allocation2 + $0xc0] sm:$0x1] %v9895_v4  ;;  %2261 = vmatpush1.bf16.msra.mxu0 %v9713_v5  ;;  %v431_v11 = vpack.c.bf16 %v368_v9, %v367_v8  ;;  %v437_v27 = vpack.c.bf16 %v10203_v26, %v10198_v25  ;;  %v10212_v28 = vld [vmem:[%s15621_s0 + $0x60] sm:$0xff]  ;;  %v10217_v29 = vld [vmem:[%s15621_s0 + $0x68] sm:$0xff] }
   0xe   :  { %55 = vst [vmem:[#allocation2 + $0xd8] sm:$0x1] %v9895_v4  ;;  %56 = vst [vmem:[#allocation2 + $0xf0] sm:$0x1] %v9895_v4  ;;  %2262 = vmatprep.subr.bf16.mxu0 %v15634_v2  ;;  %v10223_v30 = vld [vmem:[%s15621_s0 + $0x70] sm:$0xff]  ;;  %v9718_v31 = vld [vmem:[%s15622_s1 + $0x38] sm:$0xff]   ;;  %v438_v32 = vpack.c.bf16 %v10217_v29, %v10212_v28 }
   0xf   :  { %57 = vst [vmem:[#allocation2 + $0x108] sm:$0x1] %v9895_v4  ;;  %58 = vst [vmem:[#allocation2 + $0x120] sm:$0x1] %v9895_v4  ;;  %2288 = vmatprep.mubr.bf16.mxu0 %v431_v11  ;;  %v10236_v33 = vld [vmem:[%s15621_s0 + $0x78] sm:$0xff]  ;;  %v10244_v35 = vld [vmem:[%s15621_s0 + $0x80] sm:$0xff]  ;;  %v433_v11 = vpack.c.bf16 %v10145_v15, %v10140_v14 }
  0x10   :  { %59 = vst [vmem:[#allocation2 + $0x138] sm:$0x1] %v9895_v4  ;;  %60 = vst [vmem:[#allocation2 + $0x150] sm:$0x1] %v9895_v4  ;;  %v439_v34 = vpack.c.bf16 %v10236_v33, %v10223_v30  ;;  %v9719_v36 = vld [vmem:[%s15622_s1 + $0x40] sm:$0xff]   ;;  %v10252_v37 = vld [vmem:[%s15621_s0 + $0x88] sm:$0xff] }
  0x11   :  { %61 = vst [vmem:[#allocation2 + $0x168] sm:$0x1] %v9895_v4  ;;  %62 = vst [vmem:[#allocation2 + $0x180] sm:$0x1] %v9895_v4  ;;  %2263 = vmatpush1.bf16.msra.mxu0 %v9714_v6  ;;  %v440_v38 = vpack.c.bf16 %v10252_v37, %v10244_v35  ;;  %v10262_v39 = vld [vmem:[%s15621_s0 + $0x90] sm:$0xff]  ;;  %v10267_v40 = vld [vmem:[%s15621_s0 + $0x98] sm:$0xff] }
  0x12   :  { %63 = vst [vmem:[#allocation2 + $0x1c8] sm:$0x1] %v9895_v4  ;;  %64 = vst [vmem:[#allocation2 + $0x1e0] sm:$0x1] %v9895_v4  ;;  %2264 = vmatprep.subr.bf16.mxu0 %v15634_v2  ;;  %v441_v41 = vpack.c.bf16 %v10267_v40, %v10262_v39  ;;  %v9720_v42 = vld [vmem:[%s15622_s1 + $0x48] sm:$0xff]   ;;  %v10279_v43 = vld [vmem:[%s15621_s0 + $0xa0] sm:$0xff] }
  0x13   :  { %65 = vst [vmem:[#allocation2 + $0x1f8] sm:$0x1] %v9895_v4  ;;  %66 = vst [vmem:[#allocation2 + $0x210] sm:$0x1] %v9895_v4  ;;  %v10284_v44 = vld [vmem:[%s15621_s0 + $0xa8] sm:$0xff]  ;;  %v10294_v46 = vld [vmem:[%s15621_s0 + $0xb0] sm:$0xff] }
  0x14   :  { %67 = vst [vmem:[#allocation2 + $0x228] sm:$0x1] %v9895_v4  ;;  %68 = vst [vmem:[#allocation2 + $0x240] sm:$0x1] %v9895_v4  ;;  %v442_v45 = vpack.c.bf16 %v10284_v44, %v10279_v43  ;;  %v10299_v47 = vld [vmem:[%s15621_s0 + $0xb8] sm:$0xff]  ;;  %v10308_v49 = vld [vmem:[%s15621_s0 + $0xc0] sm:$0xff] }
  0x15   :  { %69 = vst [vmem:[#allocation2 + $0x258] sm:$0x1] %v9895_v4  ;;  %70 = vst [vmem:[#allocation2 + $0x270] sm:$0x1] %v9895_v4  ;;  %2265 = vmatpush1.bf16.msra.mxu0 %v9715_v7  ;;  %v443_v48 = vpack.c.bf16 %v10299_v47, %v10294_v46  ;;  %v10313_v50 = vld [vmem:[%s15621_s0 + $0xc8] sm:$0xff]  ;;  %v9721_v51 = vld [vmem:[%s15622_s1 + $0x50] sm:$0xff]  }
  0x16   :  { %71 = vst [vmem:[#allocation2 + $0x288] sm:$0x1] %v9895_v4  ;;  %72 = vst [vmem:[#allocation2 + $0x2a0] sm:$0x1] %v9895_v4  ;;  %2266 = vmatprep.subr.bf16.mxu0 %v15634_v2  ;;  %v444_v52 = vpack.c.bf16 %v10313_v50, %v10308_v49  ;;  %v10325_v53 = vld [vmem:[%s15621_s0 + $0xd0] sm:$0xff]  ;;  %v10330_v54 = vld [vmem:[%s15621_s0 + $0xd8] sm:$0xff] }
  0x17   :  { %73 = vst [vmem:[#allocation2 + $0x2b8] sm:$0x1] %v9895_v4  ;;  %74 = vst [vmem:[#allocation2 + $0x2d0] sm:$0x1] %v9895_v4  ;;  %v445_v55 = vpack.c.bf16 %v10330_v54, %v10325_v53  ;;  %v9722_v56 = vld [vmem:[%s15622_s1 + $0x58] sm:$0xff]   ;;  %v9723_v57 = vld [vmem:[%s15622_s1 + $0x60] sm:$0xff]  }
  0x18   :  { %75 = vst [vmem:[#allocation2 + $0x2e8] sm:$0x1] %v9895_v4  ;;  %76 = vst [vmem:[#allocation2 + $0x300] sm:$0x1] %v9895_v4  ;;  %v10347_v58 = vld [vmem:[%s15621_s0 + $0xe0] sm:$0xff]  ;;  %v10353_v59 = vld [vmem:[%s15621_s0 + $0xe8] sm:$0xff] }
  0x19   :  { %77 = vst [vmem:[#allocation2 + $0x318] sm:$0x1] %v9895_v4  ;;  %78 = vst [vmem:[#allocation2 + $0x330] sm:$0x1] %v9895_v4  ;;  %2267 = vmatpush1.bf16.msra.mxu0 %v9716_v10  ;;  %v9724_v60 = vld [vmem:[%s15622_s1 + $0x68] sm:$0xff]   ;;  %v446_v61 = vpack.c.bf16 %v10353_v59, %v10347_v58  ;;  %v9725_v62 = vld [vmem:[%s15622_s1 + $0x70] sm:$0xff]  }
  0x1a   :  { %79 = vst [vmem:[#allocation2 + $0x29] sm:$0x1] %v9895_v4  ;;  %80 = vst [vmem:[#allocation2 + $0x41] sm:$0x1] %v9895_v4  ;;  %2268 = vmatprep.subr.bf16.mxu0 %v15634_v2  ;;  %v9726_v63 = vld [vmem:[%s15622_s1 + $0x78] sm:$0xff]   ;;  %v9727_v0 = vld [vmem:[%s15622_s1 + $0x80] sm:$0xff]  }
  0x1b   :  { %81 = vst [vmem:[#allocation2 + $0x59] sm:$0x1] %v9895_v4  ;;  %82 = vst [vmem:[#allocation2 + $0x71] sm:$0x1] %v9895_v4  ;;  %v10379_v3 = vld [vmem:[%s15621_s0 + $0x100] sm:$0xff]  ;;  %v9728_v6 = vld [vmem:[%s15622_s1 + $0x88] sm:$0xff]  }
  0x1c   :  { %83 = vst [vmem:[#allocation2 + $0x89] sm:$0x1] %v9895_v4  ;;  %84 = vst [vmem:[#allocation2 + $0xa1] sm:$0x1] %v9895_v4  ;;  %v9896_v7 = vmov 0.0|0.0  }
  0x1d   :  { %85 = vst [vmem:[#allocation2 + $0xb9] sm:$0x1] %v9895_v4  ;;  %86 = vst [vmem:[#allocation2 + $0xd1] sm:$0x1] %v9895_v4  ;;  %2269 = vmatpush1.bf16.msra.mxu0 %v9717_v20  ;;  %v10412_v20 = vld [vmem:[%s15621_s0 + $0x118] sm:$0xff] }
  0x1e   :  { %87 = vst [vmem:[#allocation2 + $0xe9] sm:$0x1] %v9895_v4  ;;  %88 = vst [vmem:[#allocation2 + $0x101] sm:$0x1] %v9895_v4  ;;  %2270 = vmatprep.subr.bf16.mxu0 %v15634_v2 }
  0x1f   :  { %89 = vst [vmem:[#allocation2 + $0x119] sm:$0x1] %v9895_v4  ;;  %90 = vst [vmem:[#allocation2 + $0x131] sm:$0x1] %v9895_v4 }
  0x20   :  { %91 = vst [vmem:[#allocation2 + $0x149] sm:$0x1] %v9895_v4  ;;  %92 = vst [vmem:[#allocation2 + $0x161] sm:$0x1] %v9895_v4 }
  0x21   :  { %93 = vst [vmem:[#allocation2 + $0x179] sm:$0x1] %v9895_v4  ;;  %94 = vst [vmem:[#allocation2 + $0x191] sm:$0x1] %v9895_v4  ;;  %2271 = vmatpush1.bf16.msra.mxu0 %v9718_v31  ;;  %v9730_v31 = vld [vmem:[%s15622_s1 + $0x98] sm:$0xff]  }
  0x22   :  { %95 = vst [vmem:[#allocation2 + $0x1d9] sm:$0x1] %v9895_v4  ;;  %96 = vst [vmem:[#allocation2 + $0x1f1] sm:$0x1] %v9895_v4  ;;  %2272 = vmatprep.subr.bf16.mxu0 %v15634_v2 }
  0x23   :  { %97 = vst [vmem:[#allocation2 + $0x209] sm:$0x1] %v9895_v4  ;;  %98 = vst [vmem:[#allocation2 + $0x221] sm:$0x1] %v9895_v4 }
  0x24   :  { %99 = vst [vmem:[#allocation2 + $0x239] sm:$0x1] %v9895_v4  ;;  %100 = vst [vmem:[#allocation2 + $0x251] sm:$0x1] %v9895_v4 }
  0x25   :  { %101 = vst [vmem:[#allocation2 + $0x269] sm:$0x1] %v9895_v4  ;;  %102 = vst [vmem:[#allocation2 + $0x281] sm:$0x1] %v9895_v4  ;;  %2273 = vmatpush1.bf16.msra.mxu0 %v9719_v36 }
  0x26   :  { %103 = vst [vmem:[#allocation2 + $0x299] sm:$0x1] %v9895_v4  ;;  %104 = vst [vmem:[#allocation2 + $0x2b1] sm:$0x1] %v9895_v4  ;;  %2274 = vmatprep.subr.bf16.mxu0 %v15634_v2 }
  0x27   :  { %105 = vst [vmem:[#allocation2 + $0x2c9] sm:$0x1] %v9895_v4  ;;  %106 = vst [vmem:[#allocation2 + $0x2e1] sm:$0x1] %v9895_v4 }
  0x28   :  { %107 = vst [vmem:[#allocation2 + $0x2f9] sm:$0x1] %v9895_v4  ;;  %108 = vst [vmem:[#allocation2 + $0x311] sm:$0x1] %v9895_v4 }
  0x29   :  { %109 = vst [vmem:[#allocation2 + $0x329] sm:$0x1] %v9895_v4  ;;  %110 = vst [vmem:[#allocation2 + $0x341] sm:$0x1] %v9895_v4  ;;  %2275 = vmatpush1.bf16.msra.mxu0 %v9720_v42 }
  0x2a   :  { %4309 = vst [vmem:[#allocation3] sm:$0xff] %v9895_v4  ;;  %4310 = vst [vmem:[#allocation3 + $0x8] sm:$0xff] %v9895_v4  ;;  %2276 = vmatprep.subr.bf16.mxu0 %v15634_v2 }
  0x2b   :  { %4311 = vst [vmem:[#allocation3 + $0x10] sm:$0x3] %v9895_v4  ;;  %4312 = vst [vmem:[#allocation3 + $0x1b0] sm:$0xff] %v9895_v4 }
  0x2c   :  { %4313 = vst [vmem:[#allocation3 + $0x1b8] sm:$0xff] %v9895_v4  ;;  %4314 = vst [vmem:[#allocation3 + $0x1c0] sm:$0x3] %v9895_v4 }
  0x2d   :  { %4316 = vst [vmem:[#allocation3 + $0x198] sm:$0xff] %v9895_v4  ;;  %4317 = vst [vmem:[#allocation3 + $0x1a0] sm:$0xff] %v9895_v4  ;;  %2277 = vmatpush1.bf16.msra.mxu0 %v9721_v51  ;;  %v434_v51 = vpack.c.bf16 %v10159_v17, %v10154_v16 }
  0x2e   :  { %4318 = vst [vmem:[#allocation3 + $0x1a8] sm:$0x3] %v9895_v4  ;;  %4319 = vst [vmem:[#allocation3 + $0x348] sm:$0xff] %v9895_v4  ;;  %2278 = vmatprep.subr.bf16.mxu0 %v15634_v2 }
  0x2f   :  { %4320 = vst [vmem:[#allocation3 + $0x350] sm:$0xff] %v9895_v4  ;;  %4321 = vst [vmem:[#allocation3 + $0x358] sm:$0x3] %v9895_v4 }
  0x30   :  { %4323 = vst [vmem:[#allocation3 + $0x18] sm:$0x1] %v9895_v4  ;;  %4324 = vst [vmem:[#allocation3 + $0x30] sm:$0x1] %v9895_v4 }
  0x31   :  { %4325 = vst [vmem:[#allocation3 + $0x48] sm:$0x1] %v9895_v4  ;;  %4326 = vst [vmem:[#allocation3 + $0x60] sm:$0x1] %v9895_v4  ;;  %2279 = vmatpush1.bf16.msra.mxu0 %v9722_v56  ;;  %v9731_v56 = vld [vmem:[%s15622_s1 + $0xa0] sm:$0xff]  }
  0x32   :  { %4327 = vst [vmem:[#allocation3 + $0x78] sm:$0x1] %v9895_v4  ;;  %4328 = vst [vmem:[#allocation3 + $0x90] sm:$0x1] %v9895_v4  ;;  %2280 = vmatprep.subr.bf16.mxu0 %v15634_v2 }
  0x33   :  { %4329 = vst [vmem:[#allocation3 + $0xa8] sm:$0x1] %v9895_v4  ;;  %4330 = vst [vmem:[#allocation3 + $0xc0] sm:$0x1] %v9895_v4 }
  0x34   :  { %4331 = vst [vmem:[#allocation3 + $0xd8] sm:$0x1] %v9895_v4  ;;  %4332 = vst [vmem:[#allocation3 + $0xf0] sm:$0x1] %v9895_v4 }
  0x35   :  { %4333 = vst [vmem:[#allocation3 + $0x108] sm:$0x1] %v9895_v4  ;;  %4334 = vst [vmem:[#allocation3 + $0x120] sm:$0x1] %v9895_v4  ;;  %2281 = vmatpush1.bf16.msra.mxu0 %v9723_v57  ;;  %v10433_v57 = vld [vmem:[%s15621_s0 + $0x120] sm:$0xff] }
  0x36   :  { %4335 = vst [vmem:[#allocation3 + $0x138] sm:$0x1] %v9895_v4  ;;  %4336 = vst [vmem:[#allocation3 + $0x150] sm:$0x1] %v9895_v4  ;;  %2282 = vmatprep.subr.bf16.mxu0 %v15634_v2 }
  0x37   :  { %4337 = vst [vmem:[#allocation3 + $0x168] sm:$0x1] %v9895_v4  ;;  %4338 = vst [vmem:[#allocation3 + $0x180] sm:$0x1] %v9895_v4 }
  0x38   :  { %4339 = vst [vmem:[#allocation3 + $0x1c8] sm:$0x1] %v9895_v4  ;;  %4340 = vst [vmem:[#allocation3 + $0x1e0] sm:$0x1] %v9895_v4 }
  0x39   :  { %4341 = vst [vmem:[#allocation3 + $0x1f8] sm:$0x1] %v9895_v4  ;;  %4342 = vst [vmem:[#allocation3 + $0x210] sm:$0x1] %v9895_v4  ;;  %2283 = vmatpush1.bf16.msra.mxu0 %v9724_v60  ;;  %v10438_v60 = vld [vmem:[%s15621_s0 + $0x128] sm:$0xff] }
  0x3a   :  { %4343 = vst [vmem:[#allocation3 + $0x228] sm:$0x1] %v9895_v4  ;;  %4344 = vst [vmem:[#allocation3 + $0x240] sm:$0x1] %v9895_v4  ;;  %2284 = vmatprep.subr.bf16.mxu0 %v15634_v2 }
  0x3b   :  { %4345 = vst [vmem:[#allocation3 + $0x258] sm:$0x1] %v9895_v4  ;;  %4346 = vst [vmem:[#allocation3 + $0x270] sm:$0x1] %v9895_v4 }
  0x3c   :  { %4347 = vst [vmem:[#allocation3 + $0x288] sm:$0x1] %v9895_v4  ;;  %4348 = vst [vmem:[#allocation3 + $0x2a0] sm:$0x1] %v9895_v4 }
  0x3d   :  { %4349 = vst [vmem:[#allocation3 + $0x2b8] sm:$0x1] %v9895_v4  ;;  %4350 = vst [vmem:[#allocation3 + $0x2d0] sm:$0x1] %v9895_v4  ;;  %2285 = vmatpush1.bf16.msra.mxu0 %v9725_v62  ;;  %v9732_v62 = vld [vmem:[%s15622_s1 + $0xa8] sm:$0xff]  }
  0x3e   :  { %4351 = vst [vmem:[#allocation3 + $0x2e8] sm:$0x1] %v9895_v4  ;;  %4352 = vst [vmem:[#allocation3 + $0x300] sm:$0x1] %v9895_v4  ;;  %2286 = vmatprep.subr.bf16.mxu0 %v15634_v2 }
  0x3f   :  { %4353 = vst [vmem:[#allocation3 + $0x318] sm:$0x1] %v9895_v4  ;;  %4354 = vst [vmem:[#allocation3 + $0x330] sm:$0x1] %v9895_v4 }
  0x40   :  { %4355 = vst [vmem:[#allocation3 + $0x29] sm:$0x1] %v9895_v4  ;;  %4356 = vst [vmem:[#allocation3 + $0x41] sm:$0x1] %v9895_v4 }
  0x41   :  { %4357 = vst [vmem:[#allocation3 + $0x59] sm:$0x1] %v9895_v4  ;;  %4358 = vst [vmem:[#allocation3 + $0x71] sm:$0x1] %v9895_v4  ;;  %2287 = vmatpush1.bf16.msra.mxu0 %v9726_v63  ;;  %v450_v63 = vpack.c.bf16 %v10438_v60, %v10433_v57 }
  0x42   :  { %4359 = vst [vmem:[#allocation3 + $0x89] sm:$0x1] %v9895_v4  ;;  %4360 = vst [vmem:[#allocation3 + $0xa1] sm:$0x1] %v9895_v4  ;;  %2545 = vmatprep.subr.bf16.mxu0 %v15634_v2 }
  0x43   :  { %4361 = vst [vmem:[#allocation3 + $0xb9] sm:$0x1] %v9895_v4  ;;  %4362 = vst [vmem:[#allocation3 + $0xd1] sm:$0x1] %v9895_v4 }
  0x44   :  { %4363 = vst [vmem:[#allocation3 + $0xe9] sm:$0x1] %v9895_v4  ;;  %4364 = vst [vmem:[#allocation3 + $0x101] sm:$0x1] %v9895_v4  ;;  %2289 = vmatmul.mubr.bf16.vlgmr.msra.gmra.mrb[0].mxu0 %v9896_v7 }
  0x45   :  { %4365 = vst [vmem:[#allocation3 + $0x119] sm:$0x1] %v9895_v4  ;;  %4366 = vst [vmem:[#allocation3 + $0x131] sm:$0x1] %v9895_v4  ;;  %2546 = vmatpush1.bf16.msra.mxu0 %v9727_v0  ;;  %2296 = vmatprep.mubr.bf16.mxu0 %v432_v1  ;;  %v9733_v1 = vld [vmem:[%s15622_s1 + $0xb0] sm:$0xff]  }
  0x46   :  { %4367 = vst [vmem:[#allocation3 + $0x149] sm:$0x1] %v9895_v4  ;;  %4368 = vst [vmem:[#allocation3 + $0x161] sm:$0x1] %v9895_v4  ;;  %2547 = vmatprep.subr.bf16.mxu0 %v15634_v2 }
  0x47   :  { %4369 = vst [vmem:[#allocation3 + $0x179] sm:$0x1] %v9895_v4  ;;  %4370 = vst [vmem:[#allocation3 + $0x191] sm:$0x1] %v9895_v4 }
  0x48   :  { %4371 = vst [vmem:[#allocation3 + $0x1d9] sm:$0x1] %v9895_v4  ;;  %4372 = vst [vmem:[#allocation3 + $0x1f1] sm:$0x1] %v9895_v4 }
  0x49   :  { %4373 = vst [vmem:[#allocation3 + $0x209] sm:$0x1] %v9895_v4  ;;  %4374 = vst [vmem:[#allocation3 + $0x221] sm:$0x1] %v9895_v4  ;;  %2548 = vmatpush1.bf16.msra.mxu0 %v9728_v6  ;;  %v10464_v6 = vld [vmem:[%s15621_s0 + $0x138] sm:$0xff] }
  0x4a   :  { %4375 = vst [vmem:[#allocation3 + $0x239] sm:$0x1] %v9895_v4  ;;  %4376 = vst [vmem:[#allocation3 + $0x251] sm:$0x1] %v9895_v4  ;;  %2549 = vmatprep.subr.bf16.mxu0 %v15634_v2 }
  0x4b   :  { %4377 = vst [vmem:[#allocation3 + $0x269] sm:$0x1] %v9895_v4  ;;  %4378 = vst [vmem:[#allocation3 + $0x281] sm:$0x1] %v9895_v4 }
  0x4c   :  { %4379 = vst [vmem:[#allocation3 + $0x299] sm:$0x1] %v9895_v4  ;;  %4380 = vst [vmem:[#allocation3 + $0x2b1] sm:$0x1] %v9895_v4 }
  0x4d   :  { %4381 = vst [vmem:[#allocation3 + $0x2c9] sm:$0x1] %v9895_v4  ;;  %4382 = vst [vmem:[#allocation3 + $0x2e1] sm:$0x1] %v9895_v4 }
  0x4e   :  { %4383 = vst [vmem:[#allocation3 + $0x2f9] sm:$0x1] %v9895_v4  ;;  %4384 = vst [vmem:[#allocation3 + $0x311] sm:$0x1] %v9895_v4 }
  0x4f   :  { %4385 = vst [vmem:[#allocation3 + $0x329] sm:$0x1] %v9895_v4  ;;  %4386 = vst [vmem:[#allocation3 + $0x341] sm:$0x1] %v9895_v4  ;;  %v10384_v4 = vld [vmem:[%s15621_s0 + $0x108] sm:$0xff] }
  0x50   :  { %175 = vst [vmem:[#allocation2 + $0x19] sm:$0xff] %v10129_v12  ;;  %176 = vst [vmem:[#allocation2 + $0x21] sm:$0xff] %v10134_v13  ;;  %v448_v9 = vpack.c.bf16 %v10384_v4, %v10379_v3  ;;  %v9729_v12 = vld [vmem:[%s15622_s1 + $0x90] sm:$0xff]  }
  0x51   :  { %177 = vst [vmem:[#allocation2 + $0x31] sm:$0xff] %v10140_v14  ;;  %178 = vst [vmem:[#allocation2 + $0x39] sm:$0xff] %v10145_v15  ;;  %v10406_v13 = vld [vmem:[%s15621_s0 + $0x110] sm:$0xff]  ;;  %2550 = vmatpush1.bf16.msra.mxu0 %v9729_v12  ;;  %v9734_v12 = vld [vmem:[%s15622_s1 + $0xb8] sm:$0xff]  }
  0x52   :  { %179 = vst [vmem:[#allocation2 + $0x49] sm:$0xff] %v10154_v16  ;;  %180 = vst [vmem:[#allocation2 + $0x51] sm:$0xff] %v10159_v17  ;;  %v449_v36 = vpack.c.bf16 %v10412_v20, %v10406_v13  ;;  %2551 = vmatprep.subr.bf16.mxu0 %v15634_v2 }
  0x53   :  { %181 = vst [vmem:[#allocation2 + $0x61] sm:$0xff] %v10164_v18  ;;  %182 = vst [vmem:[#allocation2 + $0x69] sm:$0xff] %v10171_v19  ;;  %v10491_v18 = vld [vmem:[%s15621_s0 + $0x148] sm:$0xff] }
  0x54   :  { %183 = vst [vmem:[#allocation2 + $0x79] sm:$0xff] %v10183_v22  ;;  %184 = vst [vmem:[#allocation2 + $0x81] sm:$0xff] %v10188_v23  ;;  %v10520_v22 = vld [vmem:[%s15621_s0 + $0x158] sm:$0xff] }
  0x55   :  { %185 = vst [vmem:[#allocation2 + $0x91] sm:$0xff] %v10198_v25  ;;  %186 = vst [vmem:[#allocation2 + $0x99] sm:$0xff] %v10203_v26  ;;  %2552 = vmatpush1.bf16.msra.mxu0 %v9730_v31  ;;  %v9735_v31 = vld [vmem:[%s15622_s1 + $0xc0] sm:$0xff]  }
  0x56   :  { %187 = vst [vmem:[#allocation2 + $0xa9] sm:$0xff] %v10212_v28  ;;  %188 = vst [vmem:[#allocation2 + $0xb1] sm:$0xff] %v10217_v29  ;;  %2553 = vmatprep.subr.bf16.mxu0 %v15634_v2 }
  0x57   :  { %189 = vst [vmem:[#allocation2 + $0xc1] sm:$0xff] %v10223_v30  ;;  %190 = vst [vmem:[#allocation2 + $0xc9] sm:$0xff] %v10236_v33  ;;  %v241_v5 = vld [vmem:[#allocation2 + $0x18] sm:$0xff]  ;;  %v242_v8 = vld [vmem:[#allocation2 + $0x20] sm:$0xff] }
  0x58   :  { %191 = vst [vmem:[#allocation2 + $0xd9] sm:$0xff] %v10244_v35  ;;  %192 = vst [vmem:[#allocation2 + $0xe1] sm:$0xff] %v10252_v37  ;;  %v10396_v10 = vpack.c.bf16 %v242_v8, %v241_v5  ;;  %v243_v14 = vld [vmem:[#allocation2 + $0x30] sm:$0xff]  ;;  %v244_v15 = vld [vmem:[#allocation2 + $0x38] sm:$0xff] }
  0x59   :  { %193 = vst [vmem:[#allocation2 + $0xf1] sm:$0xff] %v10262_v39  ;;  %194 = vst [vmem:[#allocation2 + $0xf9] sm:$0xff] %v10267_v40  ;;  %v10423_v42 = vpack.c.bf16 %v244_v15, %v243_v14  ;;  %v245_v16 = vld [vmem:[#allocation2 + $0x48] sm:$0xff]  ;;  %v246_v17 = vld [vmem:[#allocation2 + $0x50] sm:$0xff]  ;;  %2554 = vmatpush1.bf16.msra.mxu0 %v9731_v56 }
  0x5a   :  { %195 = vst [vmem:[#allocation2 + $0x109] sm:$0xff] %v10279_v43  ;;  %196 = vst [vmem:[#allocation2 + $0x111] sm:$0xff] %v10284_v44  ;;  %2297 = vmatmul.mubr.bf16.gmra.mrb[4].mxu0 %v10396_v10  ;;  %2555 = vmatprep.subr.bf16.mxu0 %v15634_v2  ;;  %v10450_v0 = vpack.c.bf16 %v246_v17, %v245_v16  ;;  %v10458_v5 = vld [vmem:[%s15621_s0 + $0x130] sm:$0xff]  ;;  %v247_v8 = vld [vmem:[#allocation2 + $0x60] sm:$0xff] }
  0x5b   :  { %197 = vst [vmem:[#allocation2 + $0x121] sm:$0xff] %v10294_v46  ;;  %198 = vst [vmem:[#allocation2 + $0x129] sm:$0xff] %v10299_v47  ;;  %2304 = vmatprep.mubr.bf16.mxu0 %v433_v11  ;;  %v248_v11 = vld [vmem:[#allocation2 + $0x68] sm:$0xff]  ;;  %v451_v14 = vpack.c.bf16 %v10464_v6, %v10458_v5  ;;  %v249_v19 = vld [vmem:[#allocation2 + $0x78] sm:$0xff] }
  0x5c   :  { %199 = vst [vmem:[#allocation2 + $0x139] sm:$0xff] %v10308_v49  ;;  %200 = vst [vmem:[#allocation2 + $0x141] sm:$0xff] %v10313_v50  ;;  %v10478_v15 = vpack.c.bf16 %v248_v11, %v247_v8  ;;  %v9736_v56 = vld [vmem:[%s15622_s1 + $0xc8] sm:$0xff]   ;;  %v251_v23 = vld [vmem:[#allocation2 + $0x90] sm:$0xff] }
  0x5d   :  { %201 = vst [vmem:[#allocation2 + $0x151] sm:$0xff] %v10325_v53  ;;  %202 = vst [vmem:[#allocation2 + $0x159] sm:$0xff] %v10330_v54  ;;  %2556 = vmatpush1.bf16.msra.mxu0 %v9732_v62  ;;  %v9737_v62 = vld [vmem:[%s15622_s1 + $0xd0] sm:$0xff]   ;;  %v253_v25 = vld [vmem:[#allocation2 + $0xa8] sm:$0xff] }
  0x5e   :  { %203 = vst [vmem:[#allocation2 + $0x169] sm:$0xff] %v10347_v58  ;;  %204 = vst [vmem:[#allocation2 + $0x171] sm:$0xff] %v10353_v59  ;;  %2557 = vmatprep.subr.bf16.mxu0 %v15634_v2  ;;  %v254_v26 = vld [vmem:[#allocation2 + $0xb0] sm:$0xff]  ;;  %v256_v28 = vld [vmem:[#allocation2 + $0xc8] sm:$0xff] }
  0x5f   :  { %207 = vst [vmem:[#allocation2 + $0x1c9] sm:$0xff] %v10379_v3  ;;  %208 = vst [vmem:[#allocation2 + $0x1d1] sm:$0xff] %v10384_v4  ;;  %v9739_v30 = vld [vmem:[%s15622_s1 + $0xe0] sm:$0xff]  }
  0x60   :  { %209 = vst [vmem:[#allocation2 + $0x1e1] sm:$0xff] %v10406_v13  ;;  %210 = vst [vmem:[#allocation2 + $0x1e9] sm:$0xff] %v10412_v20  ;;  %v259_v33 = vld [vmem:[#allocation2 + $0xf0] sm:$0xff]  ;;  %v260_v35 = vld [vmem:[#allocation2 + $0xf8] sm:$0xff] }
  0x61   :  { %211 = vst [vmem:[#allocation2 + $0x1f9] sm:$0xff] %v10433_v57  ;;  %212 = vst [vmem:[#allocation2 + $0x201] sm:$0xff] %v10438_v60  ;;  %2558 = vmatpush1.bf16.msra.mxu0 %v9733_v1  ;;  %v10514_v1 = vld [vmem:[%s15621_s0 + $0x150] sm:$0xff] }
  0x62   :  { %2305 = vmatmul.mubr.bf16.gmra.mrb[8].mxu0 %v10423_v42  ;;  %213 = vst [vmem:[#allocation2 + $0x211] sm:$0xff] %v10458_v5  ;;  %214 = vst [vmem:[#allocation2 + $0x219] sm:$0xff] %v10464_v6  ;;  %2559 = vmatprep.subr.bf16.mxu0 %v15634_v2  ;;  %v453_v8 = vpack.c.bf16 %v10520_v22, %v10514_v1 }
  0x63   :  { %2312 = vmatprep.mubr.bf16.mxu0 %v434_v51  ;;  %v10486_v51 = vld [vmem:[%s15621_s0 + $0x140] sm:$0xff]  ;;  %216 = vst [vmem:[#allocation2 + $0x231] sm:$0xff] %v10491_v18  ;;  %217 = vst [vmem:[#allocation2 + $0x241] sm:$0xff] %v10514_v1 }
  0x64   :  { %215 = vst [vmem:[#allocation2 + $0x229] sm:$0xff] %v10486_v51  ;;  %v452_v16 = vpack.c.bf16 %v10491_v18, %v10486_v51  ;;  %218 = vst [vmem:[#allocation2 + $0x249] sm:$0xff] %v10520_v22 }
  0x65   :  { %2560 = vmatpush1.bf16.msra.mxu0 %v9734_v12  ;;  %v10536_v12 = vld [vmem:[%s15621_s0 + $0x160] sm:$0xff] }
  0x66   :  { %2561 = vmatprep.subr.bf16.mxu0 %v15634_v2  ;;  %219 = vst [vmem:[#allocation2 + $0x259] sm:$0xff] %v10536_v12 }
  0x69   :  { %2562 = vmatpush1.bf16.msra.mxu0 %v9735_v31  ;;  %v10541_v31 = vld [vmem:[%s15621_s0 + $0x168] sm:$0xff] }
  0x6a   :  { %2313 = vmatmul.mubr.bf16.gmra.mrb[12].mxu0 %v10450_v0  ;;  %2563 = vmatprep.subr.bf16.mxu0 %v15634_v2  ;;  %220 = vst [vmem:[#allocation2 + $0x261] sm:$0xff] %v10541_v31 }
  0x6b   :  { %2320 = vmatprep.mubr.bf16.mxu0 %v435_v21  ;;  %v250_v21 = vld [vmem:[#allocation2 + $0x80] sm:$0xff] }
  0x6c   :  { %v10506_v17 = vpack.c.bf16 %v250_v21, %v249_v19  ;;  %v454_v19 = vpack.c.bf16 %v10541_v31, %v10536_v12  ;;  %v10555_v21 = vpack.c.bf16 %v254_v26, %v253_v25  ;;  %v10585_v25 = vld [vmem:[%s15621_s0 + $0x188] sm:$0xff]  ;;  %v257_v26 = vld [vmem:[#allocation2 + $0xd8] sm:$0xff] }
  0x6d   :  { %2564 = vmatpush1.bf16.msra.mxu0 %v9736_v56  ;;  %v10560_v56 = vld [vmem:[%s15621_s0 + $0x170] sm:$0xff]  ;;  %224 = vst [vmem:[#allocation2 + $0x291] sm:$0xff] %v10585_v25 }
  0x6e   :  { %2565 = vmatprep.subr.bf16.mxu0 %v15634_v2  ;;  %221 = vst [vmem:[#allocation2 + $0x271] sm:$0xff] %v10560_v56 }
  0x71   :  { %2566 = vmatpush1.bf16.msra.mxu0 %v9737_v62  ;;  %v10565_v62 = vld [vmem:[%s15621_s0 + $0x178] sm:$0xff] }
  0x72   :  { %2321 = vmatmul.mubr.bf16.gmra.mrb[16].mxu0 %v10478_v15  ;;  %2567 = vmatprep.subr.bf16.mxu0 %v15634_v2  ;;  %222 = vst [vmem:[#allocation2 + $0x279] sm:$0xff] %v10565_v62 }
  0x73   :  { %2328 = vmatprep.mubr.bf16.mxu0 %v436_v24  ;;  %v252_v24 = vld [vmem:[#allocation2 + $0x98] sm:$0xff] }
  0x74   :  { %v10531_v11 = vpack.c.bf16 %v252_v24, %v251_v23  ;;  %v255_v23 = vld [vmem:[#allocation2 + $0xc0] sm:$0xff] }
  0x75   :  { %v10580_v24 = vld [vmem:[%s15621_s0 + $0x180] sm:$0xff] }
  0x76   :  { %223 = vst [vmem:[#allocation2 + $0x289] sm:$0xff] %v10580_v24 }
  0x7a   :  { %2329 = vmatmul.mubr.bf16.gmra.mrb[20].mxu0 %v10506_v17 }
  0x7b   :  { %2336 = vmatprep.mubr.bf16.mxu0 %v437_v27  ;;  %v9738_v27 = vld [vmem:[%s15622_s1 + $0xd8] sm:$0xff]  }
  0x7c   :  { %2568 = vmatpush1.bf16.msra.mxu0 %v9738_v27  ;;  %v258_v27 = vld [vmem:[#allocation2 + $0xe0] sm:$0xff] }
  0x7d   :  { %2569 = vmatprep.subr.bf16.mxu0 %v15634_v2 }
  0x80   :  { %2570 = vmatpush1.bf16.msra.mxu0 %v9739_v30 }
  0x81   :  { %2571 = vmatprep.subr.bf16.mxu0 %v15634_v2 }
  0x82   :  { %2337 = vmatmul.mubr.bf16.gmra.mrb[24].mxu0 %v10531_v11 }
  0x83   :  { %2344 = vmatprep.mubr.bf16.mxu0 %v438_v32  ;;  %v10575_v32 = vpack.c.bf16 %v256_v28, %v255_v23  ;;  %v10604_v23 = vld [vmem:[%s15621_s0 + $0x190] sm:$0xff]  ;;  %v10609_v28 = vld [vmem:[%s15621_s0 + $0x198] sm:$0xff] }
  0x84   :  { %225 = vst [vmem:[#allocation2 + $0x2a1] sm:$0xff] %v10604_v23  ;;  %226 = vst [vmem:[#allocation2 + $0x2a9] sm:$0xff] %v10609_v28 }
  0x8a   :  { %2345 = vmatmul.mubr.bf16.gmra.mrb[28].mxu0 %v10555_v21 }
  0x8b   :  { %2352 = vmatprep.mubr.bf16.mxu0 %v439_v34  ;;  %v10599_v34 = vpack.c.bf16 %v258_v27, %v257_v26 }
  0x92   :  { %2353 = vmatmul.mubr.bf16.gmra.mrb[32].mxu0 %v10575_v32 }
  0x93   :  { %2360 = vmatprep.mubr.bf16.mxu0 %v440_v38 }
  0x9a   :  { %2361 = vmatmul.mubr.bf16.gmra.mrb[36].mxu0 %v10599_v34 }
  0x9b   :  { %2368 = vmatprep.mubr.bf16.mxu0 %v441_v41 }
  0x9c   :  { %15 = vsyncpa [#allocation7], 0  ;;  %v10619_v38 = vpack.c.bf16 %v260_v35, %v259_v33  ;;  %v10624_v26 = vld [vmem:[%s15621_s0 + $0x1a0] sm:$0xff]  ;;  %v10629_v27 = vld [vmem:[%s15621_s0 + $0x1a8] sm:$0xff]  ;;  %v15782_v12 = vpack.c.bf16 %v10585_v25, %v10580_v24 }
  0x9d   :  { %227 = vst [vmem:[#allocation2 + $0x2b9] sm:$0xff] %v10624_v26  ;;  %228 = vst [vmem:[#allocation2 + $0x2c1] sm:$0xff] %v10629_v27  ;;  %v9740_v39 = vld [vmem:[%s15622_s1 + $0xe8] sm:$0xff]   ;;  %v262_v30 = vld [vmem:[#allocation2 + $0x110] sm:$0xff]  ;;  %v15784_v24 = vpack.c.bf16 %v10629_v27, %v10624_v26 }
  0x9e   :  { %v261_v41 = vld [vmem:[#allocation2 + $0x108] sm:$0xff]  ;;  %2572 = vmatpush1.bf16.msra.mxu0 %v9740_v39  ;;  %v10648_v35 = vld [vmem:[%s15621_s0 + $0x1b0] sm:$0xff]  ;;  %v10653_v40 = vld [vmem:[%s15621_s0 + $0x1b8] sm:$0xff] }
  0x9f   :  { %2573 = vmatprep.subr.bf16.mxu0 %v15634_v2  ;;  %v10643_v33 = vpack.c.bf16 %v262_v30, %v261_v41  ;;  %229 = vst [vmem:[#allocation2 + $0x2d1] sm:$0xff] %v10648_v35  ;;  %230 = vst [vmem:[#allocation2 + $0x2d9] sm:$0xff] %v10653_v40  ;;  %v263_v44 = vld [vmem:[#allocation2 + $0x120] sm:$0xff]  ;;  %v10673_v30 = vld [vmem:[%s15621_s0 + $0x1c8] sm:$0xff] }
  0xa0   :  { %v10668_v41 = vld [vmem:[%s15621_s0 + $0x1c0] sm:$0xff]  ;;  %232 = vst [vmem:[#allocation2 + $0x2f1] sm:$0xff] %v10673_v30  ;;  %v9741_v46 = vld [vmem:[%s15622_s1 + $0xf0] sm:$0xff]   ;;  %v10697_v47 = vld [vmem:[%s15621_s0 + $0x1d8] sm:$0xff] }
  0xa1   :  { %231 = vst [vmem:[#allocation2 + $0x2e9] sm:$0xff] %v10668_v41  ;;  %v10692_v43 = vld [vmem:[%s15621_s0 + $0x1d0] sm:$0xff]  ;;  %234 = vst [vmem:[#allocation2 + $0x309] sm:$0xff] %v10697_v47  ;;  %v9742_v53 = vld [vmem:[%s15622_s1 + $0xf8] sm:$0xff]   ;;  %v15786_v26 = vpack.c.bf16 %v10673_v30, %v10668_v41 }
  0xa2   :  { %2369 = vmatmul.mubr.bf16.gmra.mrb[40].mxu0 %v10619_v38  ;;  %233 = vst [vmem:[#allocation2 + $0x301] sm:$0xff] %v10692_v43  ;;  %v267_v50 = vld [vmem:[#allocation2 + $0x150] sm:$0xff]  ;;  %v400_v49 = vld [vmem:[#allocation2 + $0x1b9] sm:$0xff]  ;;  %v273_v58 = vld [vmem:[#allocation2 + $0x1c8] sm:$0xff] }
  0xa3   :  { %2376 = vmatprep.mubr.bf16.mxu0 %v442_v45  ;;  %v264_v45 = vld [vmem:[#allocation2 + $0x128] sm:$0xff]  ;;  %2574 = vmatpush1.bf16.msra.mxu0 %v9741_v46  ;;  %v274_v59 = vld [vmem:[#allocation2 + $0x1d0] sm:$0xff]  ;;  %v277_v3 = vld [vmem:[#allocation2 + $0x1f8] sm:$0xff] }
  0xa4   :  { %v10663_v39 = vpack.c.bf16 %v264_v45, %v263_v44  ;;  %v266_v44 = vld [vmem:[#allocation2 + $0x140] sm:$0xff]  ;;  %2575 = vmatprep.subr.bf16.mxu0 %v15634_v2  ;;  %v280_v13 = vld [vmem:[#allocation2 + $0x218] sm:$0xff]  ;;  %v282_v57 = vld [vmem:[#allocation2 + $0x230] sm:$0xff] }
  0xa5   :  { %v278_v4 = vld [vmem:[#allocation2 + $0x200] sm:$0xff]  ;;  %v284_v5 = vld [vmem:[#allocation2 + $0x248] sm:$0xff]  ;;  %v287_v1 = vld [vmem:[#allocation2 + $0x270] sm:$0xff] }
  0xa6   :  { %v286_v51 = vld [vmem:[#allocation2 + $0x260] sm:$0xff]  ;;  %v288_v22 = vld [vmem:[#allocation2 + $0x278] sm:$0xff]  ;;  %v289_v31 = vld [vmem:[#allocation2 + $0x288] sm:$0xff] }
  0xa7   :  { %2576 = vmatpush1.bf16.msra.mxu0 %v9742_v53  ;;  %v276_v53 = vld [vmem:[#allocation2 + $0x1e8] sm:$0xff]  ;;  %v293_v25 = vld [vmem:[#allocation2 + $0x2b8] sm:$0xff] }
  0xa8   :  { %2834 = vmatprep.subr.bf16.mxu0 %v15634_v2  ;;  %v297_v27 = vld [vmem:[#allocation2 + $0x2e8] sm:$0xff]  ;;  %v10826_v41 = vld [vmem:[%s15621_s0 + $0xf8] sm:$0xff] }
  0xa9   :  { %206 = vst [vmem:[#allocation2 + $0x189] sm:$0xff] %v10826_v41 }
  0xaa   :  { %2377 = vmatmul.mubr.bf16.gmra.mrb[44].mxu0 %v10643_v33 }
  0xab   :  { %2384 = vmatprep.mubr.bf16.mxu0 %v443_v48  ;;  %v265_v48 = vld [vmem:[#allocation2 + $0x138] sm:$0xff] }
  0xac   :  { %v10687_v45 = vpack.c.bf16 %v266_v44, %v265_v48  ;;  %v10712_v48 = vld [vmem:[%s15621_s0 + $0x1e0] sm:$0xff]  ;;  %v10717_v44 = vld [vmem:[%s15621_s0 + $0x1e8] sm:$0xff] }
  0xad   :  { %235 = vst [vmem:[#allocation2 + $0x319] sm:$0xff] %v10712_v48  ;;  %236 = vst [vmem:[#allocation2 + $0x321] sm:$0xff] %v10717_v44  ;;  %v462_v54 = vpack.c.bf16 %v10717_v44, %v10712_v48  ;;  %v497_v48 = vld [vmem:[#allocation2 + $0x1a] sm:$0xff]  ;;  %v498_v44 = vld [vmem:[#allocation2 + $0x22] sm:$0xff] }
  0xb2   :  { %2385 = vmatmul.mubr.bf16.gmra.mrb[48].mxu0 %v10663_v39 }
  0xb3   :  { %2392 = vmatprep.mubr.bf16.mxu0 %v444_v52  ;;  %v268_v52 = vld [vmem:[#allocation2 + $0x158] sm:$0xff] }
  0xb4   :  { %v10707_v46 = vpack.c.bf16 %v268_v52, %v267_v50  ;;  %v270_v50 = vld [vmem:[#allocation2 + $0x170] sm:$0xff]  ;;  %v302_v30 = vld [vmem:[#allocation2 + $0x320] sm:$0xff] }
  0xb5   :  { %v399_v52 = vld [vmem:[#allocation2 + $0x1b1] sm:$0xff] }
  0xb6   :  { %v447_v29 = vpack.c.bf16 %v400_v49, %v399_v52  ;;  %v275_v49 = vld [vmem:[#allocation2 + $0x1e0] sm:$0xff] }
  0xba   :  { %2393 = vmatmul.mubr.bf16.gmra.mrb[52].mxu0 %v10687_v45 }
  0xbb   :  { %2400 = vmatprep.mubr.bf16.mxu0 %v445_v55  ;;  %v269_v55 = vld [vmem:[#allocation2 + $0x168] sm:$0xff] }
  0xbc   :  { %v10731_v37 = vpack.c.bf16 %v270_v50, %v269_v55  ;;  %v10744_v55 = vpack.c.bf16 %v276_v53, %v275_v49  ;;  %v292_v50 = vld [vmem:[#allocation2 + $0x2a8] sm:$0xff]  ;;  %v296_v49 = vld [vmem:[#allocation2 + $0x2d8] sm:$0xff] }
  0xc2   :  { %2401 = vmatmul.mubr.bf16.gmra.mrb[56].mxu0 %v10707_v46 }
  0xc3   :  { %2408 = vmatprep.mubr.bf16.mxu0 %v446_v61  ;;  %v10738_v61 = vpack.c.bf16 %v274_v59, %v273_v58  ;;  %v294_v58 = vld [vmem:[#allocation2 + $0x2c0] sm:$0xff] }
  0xc4   :  { %v10798_v59 = vpack.c.bf16 %v294_v58, %v293_v25  ;;  %v9751_v58 = vld [vmem:[%s15622_s1 + $0x140] sm:$0xff]  }
  0xca   :  { %2409 = vmatmul.mubr.bf16.gmra.mrb[60].mxu0 %v10731_v37 }
  0xcb   :  { %2416 = vmatprep.mubr.bf16.mxu0 %v447_v29 }
  0xd2   :  { %2417 = vmatmul.mubr.bf16.gmra.mrb[64].mxu0 %v9896_v7  ;;  %v10750_v7 = vpack.c.bf16 %v278_v4, %v277_v3  ;;  %v298_v3 = vld [vmem:[#allocation2 + $0x2f0] sm:$0xff] }
  0xd3   :  { %2424 = vmatprep.mubr.bf16.mxu0 %v448_v9  ;;  %v279_v9 = vld [vmem:[#allocation2 + $0x210] sm:$0xff]  ;;  %v10810_v4 = vpack.c.bf16 %v298_v3, %v297_v27  ;;  %v508_v27 = vld [vmem:[#allocation2 + $0x9a] sm:$0xff] }
  0xd4   :  { %v10756_v20 = vpack.c.bf16 %v280_v13, %v279_v9  ;;  %v300_v9 = vld [vmem:[#allocation2 + $0x308] sm:$0xff] }
  0xda   :  { %2425 = vmatmul.mubr.bf16.gmra.mrb[68].mxu0 %v10738_v61 }
  0xdb   :  { %2432 = vmatprep.mubr.bf16.mxu0 %v449_v36  ;;  %v281_v36 = vld [vmem:[#allocation2 + $0x228] sm:$0xff] }
  0xdc   :  { %v10762_v60 = vpack.c.bf16 %v282_v57, %v281_v36  ;;  %v10821_v36 = vld [vmem:[%s15621_s0 + $0xf0] sm:$0xff]  ;;  %v495_v57 = vld [vmem:[#allocation2 + $0x2] sm:$0xff] }
  0xdd   :  { %205 = vst [vmem:[#allocation2 + $0x181] sm:$0xff] %v10821_v36 }
  0xe2   :  { %2433 = vmatmul.mubr.bf16.gmra.mrb[72].mxu0 %v10744_v55 }
  0xe3   :  { %2440 = vmatprep.mubr.bf16.mxu0 %v450_v63  ;;  %v283_v63 = vld [vmem:[#allocation2 + $0x240] sm:$0xff] }
  0xe4   :  { %v10768_v6 = vpack.c.bf16 %v284_v5, %v283_v63  ;;  %v496_v63 = vld [vmem:[#allocation2 + $0xa] sm:$0xff] }
  0xe5   :  { %v559_v5 = vpack.c.bf16 %v496_v63, %v495_v57  ;;  %v513_v63 = vld [vmem:[#allocation2 + $0xda] sm:$0xff] }
  0xea   :  { %2441 = vmatmul.mubr.bf16.gmra.mrb[76].mxu0 %v10750_v7 }
  0xeb   :  { %2448 = vmatprep.mubr.bf16.mxu0 %v451_v14  ;;  %v285_v14 = vld [vmem:[#allocation2 + $0x258] sm:$0xff] }
  0xec   :  { %v10774_v18 = vpack.c.bf16 %v286_v51, %v285_v14  ;;  %v9743_v14 = vld [vmem:[%s15622_s1 + $0x100] sm:$0xff]   ;;  %v9745_v51 = vld [vmem:[%s15622_s1 + $0x110] sm:$0xff]  }
  0xf2   :  { %2449 = vmatmul.mubr.bf16.gmra.mrb[80].mxu0 %v10756_v20 }
  0xf3   :  { %2456 = vmatprep.mubr.bf16.mxu0 %v452_v16  ;;  %v15781_v16 = vpack.c.bf16 %v10565_v62, %v10560_v56  ;;  %v15783_v56 = vpack.c.bf16 %v10609_v28, %v10604_v23  ;;  %v291_v62 = vld [vmem:[#allocation2 + $0x2a0] sm:$0xff]  ;;  %v15785_v23 = vpack.c.bf16 %v10653_v40, %v10648_v35  ;;  %v295_v28 = vld [vmem:[#allocation2 + $0x2d0] sm:$0xff]  ;;  %v15787_v40 = vpack.c.bf16 %v10697_v47, %v10692_v43  ;;  %v301_v43 = vld [vmem:[#allocation2 + $0x318] sm:$0xff] }
  0xf4   :  { %v10792_v52 = vpack.c.bf16 %v292_v50, %v291_v62  ;;  %v10804_v53 = vpack.c.bf16 %v296_v49, %v295_v28  ;;  %v299_v35 = vld [vmem:[#allocation2 + $0x300] sm:$0xff]  ;;  %v10834_v47 = vpack.c.bf16 %v302_v30, %v301_v43  ;;  %v9749_v62 = vld [vmem:[%s15622_s1 + $0x130] sm:$0xff]   ;;  %v9752_v28 = vld [vmem:[%s15622_s1 + $0x148] sm:$0xff]  }
  0xf5   :  { %v10816_v13 = vpack.c.bf16 %v300_v9, %v299_v35  ;;  %v504_v50 = vld [vmem:[#allocation2 + $0x6a] sm:$0xff]  ;;  %v510_v9 = vld [vmem:[#allocation2 + $0xb2] sm:$0xff]  ;;  %v511_v43 = vld [vmem:[#allocation2 + $0xc2] sm:$0xff] }
  0xf6   :  { %v509_v35 = vld [vmem:[#allocation2 + $0xaa] sm:$0xff] }
  0xf7   :  { %v512_v30 = vld [vmem:[#allocation2 + $0xca] sm:$0xff] }
  0xf8   :  { %v10915_v57 = vpack.c.bf16 %v512_v30, %v511_v43  ;;  %v531_v43 = vld [vmem:[#allocation2 + $0x1e2] sm:$0xff]  ;;  %v532_v30 = vld [vmem:[#allocation2 + $0x1ea] sm:$0xff] }
  0xfa   :  { %2457 = vmatmul.mubr.bf16.gmra.mrb[84].mxu0 %v10762_v60 }
  0xfb   :  { %2464 = vmatprep.mubr.bf16.mxu0 %v453_v8  ;;  %v10780_v8 = vpack.c.bf16 %v288_v22, %v287_v1  ;;  %v9746_v1 = vld [vmem:[%s15622_s1 + $0x118] sm:$0xff]  }
 0x102   :  { %2465 = vmatmul.mubr.bf16.gmra.mrb[88].mxu0 %v10768_v6 }
 0x103   :  { %2472 = vmatprep.mubr.bf16.mxu0 %v454_v19  ;;  %v290_v19 = vld [vmem:[#allocation2 + $0x290] sm:$0xff] }
 0x104   :  { %v10786_v29 = vpack.c.bf16 %v290_v19, %v289_v31  ;;  %v502_v31 = vld [vmem:[#allocation2 + $0x52] sm:$0xff]  ;;  %v9748_v19 = vld [vmem:[%s15622_s1 + $0x128] sm:$0xff]  }
 0x10a   :  { %2473 = vmatmul.mubr.bf16.gmra.mrb[92].mxu0 %v10774_v18 }
 0x10b   :  { %2480 = vmatprep.mubr.bf16.mxu0 %v15781_v16  ;;  %v500_v16 = vld [vmem:[#allocation2 + $0x3a] sm:$0xff] }
 0x112   :  { %2481 = vmatmul.mubr.bf16.gmra.mrb[96].mxu0 %v10780_v8 }
 0x113   :  { %2488 = vmatprep.mubr.bf16.mxu0 %v15782_v12  ;;  %v9747_v12 = vld [vmem:[%s15622_s1 + $0x120] sm:$0xff]  }
 0x11a   :  { %2489 = vmatmul.mubr.bf16.gmra.mrb[100].mxu0 %v10786_v29 }
 0x11b   :  { %2496 = vmatprep.mubr.bf16.mxu0 %v15783_v56 }
 0x122   :  { %2497 = vmatmul.mubr.bf16.gmra.mrb[104].mxu0 %v10792_v52 }
 0x123   :  { %2504 = vmatprep.mubr.bf16.mxu0 %v15784_v24  ;;  %v9750_v24 = vld [vmem:[%s15622_s1 + $0x138] sm:$0xff]  }
 0x12a   :  { %2505 = vmatmul.mubr.bf16.gmra.mrb[108].mxu0 %v10798_v59 }
 0x12b   :  { %2512 = vmatprep.mubr.bf16.mxu0 %v15785_v23  ;;  %v506_v23 = vld [vmem:[#allocation2 + $0x82] sm:$0xff] }
 0x132   :  { %2513 = vmatmul.mubr.bf16.gmra.mrb[112].mxu0 %v10804_v53 }
 0x133   :  { %2520 = vmatprep.mubr.bf16.mxu0 %v15786_v26  ;;  %v9753_v26 = vld [vmem:[%s15622_s1 + $0x150] sm:$0xff]  }
 0x13a   :  { %2521 = vmatmul.mubr.bf16.gmra.mrb[116].mxu0 %v10810_v4 }
 0x13b   :  { %2528 = vmatprep.mubr.bf16.mxu0 %v15787_v40  ;;  %v9754_v40 = vld [vmem:[%s15622_s1 + $0x158] sm:$0xff]  }
 0x142   :  { %2529 = vmatmul.mubr.bf16.gmra.mrb[120].mxu0 %v10816_v13 }
 0x143   :  { %2536 = vmatprep.mubr.bf16.mxu0 %v462_v54  ;;  %v9744_v54 = vld [vmem:[%s15622_s1 + $0x108] sm:$0xff]  }
 0x14a   :  { %2537 = vmatmul.mubr.bf16.gmra.mrb[124].mxu0 %v10834_v47 }
 0x14b   :  { %2577 = vmatprep.mubr.bf16.mxu0 %v10396_v10  ;;  %v10846_v10 = vpack.c.bf16 %v498_v44, %v497_v48  ;;  %v516_v48 = vld [vmem:[#allocation2 + $0xfa] sm:$0xff] }
 0x152   :  { %2578 = vmatmul.mubr.bf16.vlgmr.msra.gmra.mrb[0].mxu0 %v559_v5  ;;  %v514_v5 = vld [vmem:[#allocation2 + $0xe2] sm:$0xff] }
 0x153   :  { %2835 = vmatpush1.bf16.msra.mxu0 %v9743_v14  ;;  %2585 = vmatprep.mubr.bf16.mxu0 %v10423_v42  ;;  %v499_v42 = vld [vmem:[#allocation2 + $0x32] sm:$0xff]  ;;  %v10923_v14 = vpack.c.bf16 %v514_v5, %v513_v63  ;;  %v534_v63 = vld [vmem:[#allocation2 + $0x202] sm:$0xff] }
 0x154   :  { %2836 = vmatprep.subr.bf16.mxu0 %v15634_v2  ;;  %v10858_v22 = vpack.c.bf16 %v500_v16, %v499_v42  ;;  %v520_v16 = vld [vmem:[#allocation2 + $0x12a] sm:$0xff] }
 0x157   :  { %2837 = vmatpush1.bf16.msra.mxu0 %v9744_v54  ;;  %v517_v54 = vld [vmem:[#allocation2 + $0x10a] sm:$0xff] }
 0x158   :  { %2838 = vmatprep.subr.bf16.mxu0 %v15634_v2 }
 0x15a   :  { %2586 = vmatmul.mubr.bf16.gmra.mrb[4].mxu0 %v10846_v10 }
 0x15b   :  { %2593 = vmatprep.mubr.bf16.mxu0 %v10450_v0  ;;  %2839 = vmatpush1.bf16.msra.mxu0 %v9745_v51  ;;  %v501_v0 = vld [vmem:[#allocation2 + $0x4a] sm:$0xff]  ;;  %v518_v51 = vld [vmem:[#allocation2 + $0x112] sm:$0xff] }
 0x15c   :  { %2840 = vmatprep.subr.bf16.mxu0 %v15634_v2  ;;  %v10870_v56 = vpack.c.bf16 %v502_v31, %v501_v0  ;;  %v10935_v42 = vpack.c.bf16 %v518_v51, %v517_v54  ;;  %v522_v0 = vld [vmem:[#allocation2 + $0x142] sm:$0xff]  ;;  %v540_v51 = vld [vmem:[#allocation2 + $0x24a] sm:$0xff] }
 0x15f   :  { %2841 = vmatpush1.bf16.msra.mxu0 %v9746_v1 }
 0x160   :  { %2842 = vmatprep.subr.bf16.mxu0 %v15634_v2 }
 0x162   :  { %2594 = vmatmul.mubr.bf16.gmra.mrb[8].mxu0 %v10858_v22 }
 0x163   :  { %2601 = vmatprep.mubr.bf16.mxu0 %v10478_v15  ;;  %2843 = vmatpush1.bf16.msra.mxu0 %v9747_v12  ;;  %v503_v15 = vld [vmem:[#allocation2 + $0x62] sm:$0xff]  ;;  %v521_v12 = vld [vmem:[#allocation2 + $0x13a] sm:$0xff] }
 0x164   :  { %2844 = vmatprep.subr.bf16.mxu0 %v15634_v2  ;;  %v10882_v25 = vpack.c.bf16 %v504_v50, %v503_v15  ;;  %v10947_v31 = vpack.c.bf16 %v522_v0, %v521_v12  ;;  %v654_v15 = vld [vmem:[#allocation2 + $0x188] sm:$0xff]  ;;  %v544_v12 = vld [vmem:[#allocation2 + $0x27a] sm:$0xff] }
 0x167   :  { %2845 = vmatpush1.bf16.msra.mxu0 %v9748_v19  ;;  %v524_v19 = vld [vmem:[#allocation2 + $0x15a] sm:$0xff] }
 0x168   :  { %2846 = vmatprep.subr.bf16.mxu0 %v15634_v2 }
 0x16a   :  { %2602 = vmatmul.mubr.bf16.gmra.mrb[12].mxu0 %v10870_v56 }
 0x16b   :  { %2609 = vmatprep.mubr.bf16.mxu0 %v10506_v17  ;;  %2847 = vmatpush1.bf16.msra.mxu0 %v9749_v62  ;;  %v505_v17 = vld [vmem:[#allocation2 + $0x7a] sm:$0xff] }
 0x16c   :  { %2848 = vmatprep.subr.bf16.mxu0 %v15634_v2  ;;  %v10894_v49 = vpack.c.bf16 %v506_v23, %v505_v17  ;;  %v653_v62 = vld [vmem:[#allocation2 + $0x180] sm:$0xff]  ;;  %v525_v17 = vld [vmem:[#allocation2 + $0x16a] sm:$0xff]  ;;  %v526_v23 = vld [vmem:[#allocation2 + $0x172] sm:$0xff] }
 0x16f   :  { %2849 = vmatpush1.bf16.msra.mxu0 %v9750_v24  ;;  %v10961_v24 = vld [vmem:[%s15621_s0 + $0x1f8] sm:$0xff] }
 0x170   :  { %2850 = vmatprep.subr.bf16.mxu0 %v15634_v2  ;;  %238 = vst [vmem:[#allocation2 + $0x339] sm:$0xff] %v10961_v24 }
 0x172   :  { %2610 = vmatmul.mubr.bf16.gmra.mrb[16].mxu0 %v10882_v25 }
 0x173   :  { %2617 = vmatprep.mubr.bf16.mxu0 %v10531_v11  ;;  %2851 = vmatpush1.bf16.msra.mxu0 %v9751_v58  ;;  %v507_v11 = vld [vmem:[#allocation2 + $0x92] sm:$0xff]  ;;  %v702_v58 = vpack.c.bf16 %v654_v15, %v653_v62  ;;  %v548_v62 = vld [vmem:[#allocation2 + $0x2aa] sm:$0xff] }
 0x174   :  { %2852 = vmatprep.subr.bf16.mxu0 %v15634_v2  ;;  %v10903_v3 = vpack.c.bf16 %v508_v27, %v507_v11  ;;  %v528_v11 = vld [vmem:[#allocation2 + $0x1ba] sm:$0xff] }
 0x177   :  { %2853 = vmatpush1.bf16.msra.mxu0 %v9752_v28  ;;  %v10970_v28 = vpack.c.bf16 %v526_v23, %v525_v17  ;;  %v552_v17 = vld [vmem:[#allocation2 + $0x2da] sm:$0xff] }
 0x178   :  { %2854 = vmatprep.subr.bf16.mxu0 %v15634_v2 }
 0x17a   :  { %2618 = vmatmul.mubr.bf16.gmra.mrb[20].mxu0 %v10894_v49 }
 0x17b   :  { %2625 = vmatprep.mubr.bf16.mxu0 %v10555_v21  ;;  %2855 = vmatpush1.bf16.msra.mxu0 %v9753_v26  ;;  %v10911_v21 = vpack.c.bf16 %v510_v9, %v509_v35  ;;  %v527_v26 = vld [vmem:[#allocation2 + $0x1b2] sm:$0xff] }
 0x17c   :  { %2856 = vmatprep.subr.bf16.mxu0 %v15634_v2  ;;  %v575_v27 = vpack.c.bf16 %v528_v11, %v527_v26  ;;  %v530_v35 = vld [vmem:[#allocation2 + $0x1d2] sm:$0xff] }
 0x17d   :  { %v554_v26 = vld [vmem:[#allocation2 + $0x2f2] sm:$0xff] }
 0x17f   :  { %2857 = vmatpush1.bf16.msra.mxu0 %v9754_v40  ;;  %v529_v40 = vld [vmem:[#allocation2 + $0x1ca] sm:$0xff] }
 0x180   :  { %2858 = vmatprep.subr.bf16.mxu0 %v15634_v2  ;;  %v10975_v9 = vpack.c.bf16 %v530_v35, %v529_v40 }
 0x182   :  { %2626 = vmatmul.mubr.bf16.gmra.mrb[24].mxu0 %v10903_v3 }
 0x183   :  { %2633 = vmatprep.mubr.bf16.mxu0 %v10575_v32  ;;  %v9755_v32 = vld [vmem:[%s15622_s1 + $0x160] sm:$0xff]  }
 0x184   :  { %2859 = vmatpush1.bf16.msra.mxu0 %v9755_v32  ;;  %v10979_v32 = vpack.c.bf16 %v532_v30, %v531_v43  ;;  %v557_v30 = vld [vmem:[#allocation2 + $0x31a] sm:$0xff] }
 0x185   :  { %2860 = vmatprep.subr.bf16.mxu0 %v15634_v2 }
 0x18a   :  { %2634 = vmatmul.mubr.bf16.gmra.mrb[28].mxu0 %v10911_v21 }
 0x18b   :  { %2641 = vmatprep.mubr.bf16.mxu0 %v10599_v34  ;;  %v515_v34 = vld [vmem:[#allocation2 + $0xf2] sm:$0xff] }
 0x18c   :  { %v10927_v44 = vpack.c.bf16 %v516_v48, %v515_v34  ;;  %v536_v34 = vld [vmem:[#allocation2 + $0x21a] sm:$0xff] }
 0x192   :  { %2642 = vmatmul.mubr.bf16.gmra.mrb[32].mxu0 %v10915_v57 }
 0x193   :  { %2649 = vmatprep.mubr.bf16.mxu0 %v10619_v38  ;;  %v9756_v38 = vld [vmem:[%s15622_s1 + $0x168] sm:$0xff]  }
 0x194   :  { %2861 = vmatpush1.bf16.msra.mxu0 %v9756_v38  ;;  %v538_v38 = vld [vmem:[#allocation2 + $0x232] sm:$0xff] }
 0x195   :  { %2862 = vmatprep.subr.bf16.mxu0 %v15634_v2 }
 0x19a   :  { %2650 = vmatmul.mubr.bf16.gmra.mrb[36].mxu0 %v10923_v14 }
 0x19b   :  { %2657 = vmatprep.mubr.bf16.mxu0 %v10643_v33  ;;  %v519_v33 = vld [vmem:[#allocation2 + $0x122] sm:$0xff] }
 0x19c   :  { %v10939_v1 = vpack.c.bf16 %v520_v16, %v519_v33  ;;  %v542_v16 = vld [vmem:[#allocation2 + $0x262] sm:$0xff] }
 0x1a2   :  { %2658 = vmatmul.mubr.bf16.gmra.mrb[40].mxu0 %v10927_v44 }
 0x1a3   :  { %2665 = vmatprep.mubr.bf16.mxu0 %v10663_v39  ;;  %v9757_v39 = vld [vmem:[%s15622_s1 + $0x170] sm:$0xff]  }
 0x1a4   :  { %2863 = vmatpush1.bf16.msra.mxu0 %v9757_v39 }
 0x1a5   :  { %2864 = vmatprep.subr.bf16.mxu0 %v15634_v2 }
 0x1aa   :  { %2666 = vmatmul.mubr.bf16.gmra.mrb[44].mxu0 %v10935_v42 }
 0x1ab   :  { %2673 = vmatprep.mubr.bf16.mxu0 %v10687_v45  ;;  %v523_v45 = vld [vmem:[#allocation2 + $0x152] sm:$0xff] }
 0x1ac   :  { %v10951_v50 = vpack.c.bf16 %v524_v19, %v523_v45  ;;  %v546_v45 = vld [vmem:[#allocation2 + $0x292] sm:$0xff] }
 0x1b2   :  { %2674 = vmatmul.mubr.bf16.gmra.mrb[48].mxu0 %v10939_v1 }
 0x1b3   :  { %2681 = vmatprep.mubr.bf16.mxu0 %v10707_v46  ;;  %v10956_v46 = vld [vmem:[%s15621_s0 + $0x1f0] sm:$0xff] }
 0x1b4   :  { %237 = vst [vmem:[#allocation2 + $0x331] sm:$0xff] %v10956_v46 }
 0x1ba   :  { %2682 = vmatmul.mubr.bf16.gmra.mrb[52].mxu0 %v10947_v31 }
 0x1bb   :  { %2689 = vmatprep.mubr.bf16.mxu0 %v10731_v37  ;;  %v9758_v37 = vld [vmem:[%s15622_s1 + $0x178] sm:$0xff]   ;;  %v685_v40 = vld [vmem:[#allocation2 + $0x330] sm:$0xff] }
 0x1bc   :  { %2865 = vmatpush1.bf16.msra.mxu0 %v9758_v37 }
 0x1bd   :  { %3123 = vmatprep.subr.bf16.mxu0 %v15634_v2 }
 0x1c2   :  { %2690 = vmatmul.mubr.bf16.gmra.mrb[56].mxu0 %v10951_v50 }
 0x1c3   :  { %2697 = vmatprep.mubr.bf16.mxu0 %v702_v58  ;;  %v550_v58 = vld [vmem:[#allocation2 + $0x2c2] sm:$0xff] }
 0x1ca   :  { %2698 = vmatmul.mubr.bf16.gmra.mrb[60].mxu0 %v10970_v28 }
 0x1cb   :  { %2705 = vmatprep.mubr.bf16.mxu0 %v10738_v61  ;;  %v533_v61 = vld [vmem:[#allocation2 + $0x1fa] sm:$0xff] }
 0x1cc   :  { %v10983_v5 = vpack.c.bf16 %v534_v63, %v533_v61  ;;  %v751_v63 = vld [vmem:[#allocation2 + $0x19] sm:$0xff] }
 0x1d2   :  { %2706 = vmatmul.mubr.bf16.gmra.mrb[64].mxu0 %v575_v27  ;;  %v556_v27 = vld [vmem:[#allocation2 + $0x30a] sm:$0xff] }
 0x1d3   :  { %2713 = vmatprep.mubr.bf16.mxu0 %v10744_v55  ;;  %v535_v55 = vld [vmem:[#allocation2 + $0x212] sm:$0xff] }
 0x1d4   :  { %v10987_v48 = vpack.c.bf16 %v536_v34, %v535_v55  ;;  %v9759_v34 = vld [vmem:[%s15622_s1 + $0x180] sm:$0xff]  }
 0x1da   :  { %2714 = vmatmul.mubr.bf16.gmra.mrb[68].mxu0 %v10975_v9 }
 0x1db   :  { %2721 = vmatprep.mubr.bf16.mxu0 %v10750_v7  ;;  %v537_v7 = vld [vmem:[#allocation2 + $0x22a] sm:$0xff] }
 0x1dc   :  { %v10991_v54 = vpack.c.bf16 %v538_v38, %v537_v7  ;;  %v753_v7 = vld [vmem:[#allocation2 + $0x31] sm:$0xff]  ;;  %v754_v38 = vld [vmem:[#allocation2 + $0x39] sm:$0xff] }
 0x1e2   :  { %2722 = vmatmul.mubr.bf16.gmra.mrb[72].mxu0 %v10979_v32 }
 0x1e3   :  { %2729 = vmatprep.mubr.bf16.mxu0 %v10756_v20  ;;  %v539_v20 = vld [vmem:[#allocation2 + $0x242] sm:$0xff] }
 0x1e4   :  { %v10995_v33 = vpack.c.bf16 %v540_v51, %v539_v20  ;;  %v9760_v20 = vld [vmem:[%s15622_s1 + $0x188] sm:$0xff]   ;;  %v9761_v51 = vld [vmem:[%s15622_s1 + $0x190] sm:$0xff]  }
 0x1ea   :  { %2730 = vmatmul.mubr.bf16.gmra.mrb[76].mxu0 %v10983_v5 }
 0x1eb   :  { %2737 = vmatprep.mubr.bf16.mxu0 %v10762_v60  ;;  %v541_v60 = vld [vmem:[#allocation2 + $0x25a] sm:$0xff] }
 0x1ec   :  { %v10999_v39 = vpack.c.bf16 %v542_v16, %v541_v60  ;;  %v756_v60 = vld [vmem:[#allocation2 + $0x51] sm:$0xff] }
 0x1ed   :  { %v9762_v16 = vld [vmem:[%s15622_s1 + $0x198] sm:$0xff]  }
 0x1f2   :  { %2738 = vmatmul.mubr.bf16.gmra.mrb[80].mxu0 %v10987_v48 }
 0x1f3   :  { %2745 = vmatprep.mubr.bf16.mxu0 %v10768_v6  ;;  %v543_v6 = vld [vmem:[#allocation2 + $0x272] sm:$0xff] }
 0x1f4   :  { %v11003_v0 = vpack.c.bf16 %v544_v12, %v543_v6  ;;  %v9763_v12 = vld [vmem:[%s15622_s1 + $0x1a0] sm:$0xff]  }
 0x1fa   :  { %2746 = vmatmul.mubr.bf16.gmra.mrb[84].mxu0 %v10991_v54 }
 0x1fb   :  { %2753 = vmatprep.mubr.bf16.mxu0 %v10774_v18  ;;  %v545_v18 = vld [vmem:[#allocation2 + $0x28a] sm:$0xff] }
 0x1fc   :  { %v11007_v19 = vpack.c.bf16 %v546_v45, %v545_v18  ;;  %v758_v18 = vld [vmem:[#allocation2 + $0x69] sm:$0xff] }
 0x1fd   :  { %v9764_v45 = vld [vmem:[%s15622_s1 + $0x1a8] sm:$0xff]  }
 0x202   :  { %2754 = vmatmul.mubr.bf16.gmra.mrb[88].mxu0 %v10995_v33 }
 0x203   :  { %2761 = vmatprep.mubr.bf16.mxu0 %v10780_v8  ;;  %v547_v8 = vld [vmem:[#allocation2 + $0x2a2] sm:$0xff] }
 0x204   :  { %v11011_v15 = vpack.c.bf16 %v548_v62, %v547_v8  ;;  %v9765_v62 = vld [vmem:[%s15622_s1 + $0x1b0] sm:$0xff]  }
 0x20a   :  { %2762 = vmatmul.mubr.bf16.gmra.mrb[92].mxu0 %v10999_v39 }
 0x20b   :  { %2769 = vmatprep.mubr.bf16.mxu0 %v10786_v29  ;;  %v549_v29 = vld [vmem:[#allocation2 + $0x2ba] sm:$0xff] }
 0x20c   :  { %v11015_v37 = vpack.c.bf16 %v550_v58, %v549_v29  ;;  %v760_v29 = vld [vmem:[#allocation2 + $0x81] sm:$0xff]  ;;  %v9766_v58 = vld [vmem:[%s15622_s1 + $0x1b8] sm:$0xff]  }
 0x212   :  { %2770 = vmatmul.mubr.bf16.gmra.mrb[96].mxu0 %v11003_v0 }
 0x213   :  { %2777 = vmatprep.mubr.bf16.mxu0 %v10792_v52  ;;  %v551_v52 = vld [vmem:[#allocation2 + $0x2d2] sm:$0xff] }
 0x214   :  { %v11019_v23 = vpack.c.bf16 %v552_v17, %v551_v52  ;;  %v9767_v17 = vld [vmem:[%s15622_s1 + $0x1c0] sm:$0xff]  }
 0x21a   :  { %2778 = vmatmul.mubr.bf16.gmra.mrb[100].mxu0 %v11007_v19 }
 0x21b   :  { %2785 = vmatprep.mubr.bf16.mxu0 %v10798_v59  ;;  %v553_v59 = vld [vmem:[#allocation2 + $0x2ea] sm:$0xff] }
 0x21c   :  { %v11023_v11 = vpack.c.bf16 %v554_v26, %v553_v59  ;;  %v762_v59 = vld [vmem:[#allocation2 + $0x99] sm:$0xff]  ;;  %v9768_v26 = vld [vmem:[%s15622_s1 + $0x1c8] sm:$0xff]  }
 0x222   :  { %2786 = vmatmul.mubr.bf16.gmra.mrb[104].mxu0 %v11011_v15 }
 0x223   :  { %2793 = vmatprep.mubr.bf16.mxu0 %v10804_v53  ;;  %v555_v53 = vld [vmem:[#allocation2 + $0x302] sm:$0xff] }
 0x224   :  { %v11027_v35 = vpack.c.bf16 %v556_v27, %v555_v53  ;;  %v9769_v27 = vld [vmem:[%s15622_s1 + $0x1d0] sm:$0xff]  }
 0x22a   :  { %2794 = vmatmul.mubr.bf16.gmra.mrb[108].mxu0 %v11015_v37 }
 0x22b   :  { %2801 = vmatprep.mubr.bf16.mxu0 %v10810_v4  ;;  %v686_v4 = vld [vmem:[#allocation2 + $0x338] sm:$0xff] }
 0x22c   :  { %v718_v43 = vpack.c.bf16 %v686_v4, %v685_v40  ;;  %v764_v40 = vld [vmem:[#allocation2 + $0xb1] sm:$0xff] }
 0x232   :  { %2802 = vmatmul.mubr.bf16.gmra.mrb[112].mxu0 %v11019_v23 }
 0x233   :  { %2809 = vmatprep.mubr.bf16.mxu0 %v10816_v13  ;;  %v558_v13 = vld [vmem:[#allocation2 + $0x322] sm:$0xff] }
 0x234   :  { %v11030_v61 = vpack.c.bf16 %v558_v13, %v557_v30  ;;  %v765_v30 = vld [vmem:[#allocation2 + $0xc1] sm:$0xff]  ;;  %v766_v13 = vld [vmem:[#allocation2 + $0xc9] sm:$0xff] }
 0x23a   :  { %2810 = vmatmul.mubr.bf16.gmra.mrb[116].mxu0 %v11023_v11 }
 0x23b   :  { %2817 = vmatprep.mubr.bf16.mxu0 %v10834_v47  ;;  %v752_v47 = vld [vmem:[#allocation2 + $0x21] sm:$0xff] }
 0x23c   :  { %v815_v55 = vpack.c.bf16 %v752_v47, %v751_v63  ;;  %v767_v63 = vld [vmem:[#allocation2 + $0xd9] sm:$0xff]  ;;  %v768_v47 = vld [vmem:[#allocation2 + $0xe1] sm:$0xff] }
 0x242   :  { %2818 = vmatmul.mubr.bf16.gmra.mrb[120].mxu0 %v11027_v35 }
 0x243   :  { %2825 = vmatprep.mubr.bf16.mxu0 %v718_v43  ;;  %v9770_v43 = vld [vmem:[%s15622_s1 + $0x1d8] sm:$0xff]  }
 0x24a   :  { %2826 = vmatmul.mubr.bf16.gmra.mrb[124].mxu0 %v11030_v61 }
 0x24b   :  { %2866 = vmatprep.mubr.bf16.mxu0 %v10846_v10  ;;  %v11042_v10 = vpack.c.bf16 %v754_v38, %v753_v7  ;;  %v770_v7 = vld [vmem:[#allocation2 + $0xf9] sm:$0xff] }
 0x252   :  { %2867 = vmatmul.mubr.bf16.vlgmr.msra.gmra.mrb[0].mxu0 %v815_v55  ;;  %v11111_v55 = vpack.c.bf16 %v768_v47, %v767_v63  ;;  %v9782_v63 = vld [vmem:[%s15622_s1 + $0x238] sm:$0xff]  }
 0x253   :  { %3124 = vmatpush1.bf16.msra.mxu0 %v9759_v34  ;;  %2874 = vmatprep.mubr.bf16.mxu0 %v10858_v22  ;;  %v755_v22 = vld [vmem:[#allocation2 + $0x49] sm:$0xff]  ;;  %v769_v34 = vld [vmem:[#allocation2 + $0xf1] sm:$0xff] }
 0x254   :  { %3125 = vmatprep.subr.bf16.mxu0 %v15634_v2  ;;  %v11054_v6 = vpack.c.bf16 %v756_v60, %v755_v22  ;;  %v11119_v38 = vpack.c.bf16 %v770_v7, %v769_v34  ;;  %v773_v22 = vld [vmem:[#allocation2 + $0x121] sm:$0xff]  ;;  %v774_v60 = vld [vmem:[#allocation2 + $0x129] sm:$0xff]  ;;  %v1264_v47 = vld [vmem:[#allocation2 + $0x32] sm:$0xff] }
 0x255   :  { %v784_v34 = vld [vmem:[#allocation2 + $0x1d1] sm:$0xff] }
 0x257   :  { %3126 = vmatpush1.bf16.msra.mxu0 %v9760_v20  ;;  %v772_v20 = vld [vmem:[#allocation2 + $0x111] sm:$0xff] }
 0x258   :  { %3127 = vmatprep.subr.bf16.mxu0 %v15634_v2 }
 0x25a   :  { %2875 = vmatmul.mubr.bf16.gmra.mrb[4].mxu0 %v11042_v10 }
 0x25b   :  { %2882 = vmatprep.mubr.bf16.mxu0 %v10870_v56  ;;  %3128 = vmatpush1.bf16.msra.mxu0 %v9761_v51  ;;  %v757_v56 = vld [vmem:[#allocation2 + $0x61] sm:$0xff] }
 0x25c   :  { %3129 = vmatprep.subr.bf16.mxu0 %v15634_v2  ;;  %v11066_v8 = vpack.c.bf16 %v758_v18, %v757_v56  ;;  %v9773_v56 = vld [vmem:[%s15622_s1 + $0x200] sm:$0xff]  }
 0x25d   :  { %8760 = vmatprep.subr.bf16.mxu1 %v9773_v56 }
 0x25e   :  { %8761 = vmatpush3.bf16.msra.mxu1 %v9773_v56  ;;  %v788_v56 = vld [vmem:[#allocation2 + $0x201] sm:$0xff] }
 0x25f   :  { %3130 = vmatpush1.bf16.msra.mxu0 %v9762_v16  ;;  %v11131_v16 = vpack.c.bf16 %v774_v60, %v773_v22  ;;  %v786_v22 = vld [vmem:[#allocation2 + $0x1e9] sm:$0xff] }
 0x260   :  { %3131 = vmatprep.subr.bf16.mxu0 %v15634_v2 }
 0x262   :  { %2883 = vmatmul.mubr.bf16.gmra.mrb[8].mxu0 %v11054_v6 }
 0x263   :  { %2890 = vmatprep.mubr.bf16.mxu0 %v10882_v25  ;;  %3132 = vmatpush1.bf16.msra.mxu0 %v9763_v12  ;;  %v759_v25 = vld [vmem:[#allocation2 + $0x79] sm:$0xff]  ;;  %v776_v12 = vld [vmem:[#allocation2 + $0x141] sm:$0xff] }
 0x264   :  { %3133 = vmatprep.subr.bf16.mxu0 %v15634_v2  ;;  %v11078_v52 = vpack.c.bf16 %v760_v29, %v759_v25  ;;  %v9776_v25 = vld [vmem:[%s15622_s1 + $0x210] sm:$0xff]  }
 0x267   :  { %3134 = vmatpush1.bf16.msra.mxu0 %v9764_v45  ;;  %v777_v45 = vld [vmem:[#allocation2 + $0x151] sm:$0xff] }
 0x268   :  { %3135 = vmatprep.subr.bf16.mxu0 %v15634_v2 }
 0x26a   :  { %2891 = vmatmul.mubr.bf16.gmra.mrb[12].mxu0 %v11066_v8 }
 0x26b   :  { %2898 = vmatprep.mubr.bf16.mxu0 %v10894_v49  ;;  %3136 = vmatpush1.bf16.msra.mxu0 %v9765_v62  ;;  %v761_v49 = vld [vmem:[#allocation2 + $0x91] sm:$0xff]  ;;  %v778_v62 = vld [vmem:[#allocation2 + $0x159] sm:$0xff] }
 0x26c   :  { %3137 = vmatprep.subr.bf16.mxu0 %v15634_v2  ;;  %v11090_v53 = vpack.c.bf16 %v762_v59, %v761_v49  ;;  %v11152_v29 = vpack.c.bf16 %v778_v62, %v777_v45  ;;  %v9778_v49 = vld [vmem:[%s15622_s1 + $0x220] sm:$0xff]  }
 0x26d   :  { %v909_v59 = vld [vmem:[#allocation2 + $0x182] sm:$0xff] }
 0x26e   :  { %v1271_v45 = vld [vmem:[#allocation2 + $0x82] sm:$0xff] }
 0x26f   :  { %3138 = vmatpush1.bf16.msra.mxu0 %v9766_v58  ;;  %v779_v58 = vld [vmem:[#allocation2 + $0x169] sm:$0xff] }
 0x270   :  { %3139 = vmatprep.subr.bf16.mxu0 %v15634_v2 }
 0x272   :  { %2899 = vmatmul.mubr.bf16.gmra.mrb[16].mxu0 %v11078_v52 }
 0x273   :  { %2906 = vmatprep.mubr.bf16.mxu0 %v10903_v3  ;;  %3140 = vmatpush1.bf16.msra.mxu0 %v9767_v17  ;;  %v763_v3 = vld [vmem:[#allocation2 + $0xa9] sm:$0xff]  ;;  %v780_v17 = vld [vmem:[#allocation2 + $0x171] sm:$0xff] }
 0x274   :  { %3141 = vmatprep.subr.bf16.mxu0 %v15634_v2  ;;  %v11099_v4 = vpack.c.bf16 %v764_v40, %v763_v3  ;;  %v9780_v40 = vld [vmem:[%s15622_s1 + $0x228] sm:$0xff]  }
 0x277   :  { %3142 = vmatpush1.bf16.msra.mxu0 %v9768_v26  ;;  %v910_v26 = vld [vmem:[#allocation2 + $0x18a] sm:$0xff] }
 0x278   :  { %3143 = vmatprep.subr.bf16.mxu0 %v15634_v2  ;;  %v11164_v3 = vpack.c.bf16 %v910_v26, %v909_v59  ;;  %v792_v59 = vld [vmem:[#allocation2 + $0x231] sm:$0xff] }
 0x27a   :  { %2907 = vmatmul.mubr.bf16.gmra.mrb[20].mxu0 %v11090_v53 }
 0x27b   :  { %2914 = vmatprep.mubr.bf16.mxu0 %v10911_v21  ;;  %3144 = vmatpush1.bf16.msra.mxu0 %v9769_v27  ;;  %v11107_v21 = vpack.c.bf16 %v766_v13, %v765_v30  ;;  %v11162_v27 = vpack.c.bf16 %v780_v17, %v779_v58  ;;  %v830_v30 = vpack.c.bf16 %v10826_v41, %v10821_v36  ;;  %v783_v13 = vld [vmem:[#allocation2 + $0x1c9] sm:$0xff]  ;;  %v785_v41 = vld [vmem:[#allocation2 + $0x1e1] sm:$0xff]  ;;  %v1272_v17 = vld [vmem:[#allocation2 + $0x92] sm:$0xff] }
 0x27c   :  { %3145 = vmatprep.subr.bf16.mxu0 %v15634_v2  ;;  %v831_v36 = vpack.c.bf16 %v784_v34, %v783_v13  ;;  %v11185_v60 = vpack.c.bf16 %v786_v22, %v785_v41  ;;  %v794_v13 = vld [vmem:[#allocation2 + $0x249] sm:$0xff]  ;;  %v796_v34 = vld [vmem:[#allocation2 + $0x261] sm:$0xff]  ;;  %v798_v41 = vld [vmem:[#allocation2 + $0x279] sm:$0xff] }
 0x27f   :  { %3146 = vmatpush1.bf16.msra.mxu0 %v9770_v43  ;;  %v9781_v43 = vld [vmem:[%s15622_s1 + $0x230] sm:$0xff]  }
 0x280   :  { %3147 = vmatprep.subr.bf16.mxu0 %v15634_v2 }
 0x282   :  { %2915 = vmatmul.mubr.bf16.gmra.mrb[24].mxu0 %v11099_v4 }
 0x283   :  { %2922 = vmatprep.mubr.bf16.mxu0 %v10915_v57  ;;  %v9771_v57 = vld [vmem:[%s15622_s1 + $0x1e0] sm:$0xff]  }
 0x284   :  { %3148 = vmatpush1.bf16.msra.mxu0 %v9771_v57  ;;  %v1265_v57 = vld [vmem:[#allocation2 + $0x3a] sm:$0xff] }
 0x285   :  { %3149 = vmatprep.subr.bf16.mxu0 %v15634_v2  ;;  %v1328_v7 = vpack.c.bf16 %v1265_v57, %v1264_v47  ;;  %v1276_v47 = vld [vmem:[#allocation2 + $0xc2] sm:$0xff]  ;;  %v1277_v57 = vld [vmem:[#allocation2 + $0xca] sm:$0xff] }
 0x287   :  { %8776 = vmatprep.mubr.bf16.mxu1 %v1328_v7  ;;  %v1334_v7 = vpack.c.bf16 %v1277_v57, %v1276_v47  ;;  %v1289_v47 = vld [vmem:[#allocation2 + $0x15a] sm:$0xff]  ;;  %v808_v57 = vld [vmem:[#allocation2 + $0x2f1] sm:$0xff] }
 0x28a   :  { %2923 = vmatmul.mubr.bf16.gmra.mrb[28].mxu0 %v11107_v21 }
 0x28b   :  { %2930 = vmatprep.mubr.bf16.mxu0 %v10923_v14  ;;  %v771_v14 = vld [vmem:[#allocation2 + $0x109] sm:$0xff] }
 0x28c   :  { %v11123_v51 = vpack.c.bf16 %v772_v20, %v771_v14  ;;  %v1266_v14 = vld [vmem:[#allocation2 + $0x4a] sm:$0xff]  ;;  %v1267_v20 = vld [vmem:[#allocation2 + $0x52] sm:$0xff] }
 0x292   :  { %2931 = vmatmul.mubr.bf16.gmra.mrb[32].mxu0 %v11111_v55 }
 0x293   :  { %2938 = vmatprep.mubr.bf16.mxu0 %v10927_v44  ;;  %v9772_v44 = vld [vmem:[%s15622_s1 + $0x1e8] sm:$0xff]  }
 0x294   :  { %3150 = vmatpush1.bf16.msra.mxu0 %v9772_v44  ;;  %v1329_v44 = vpack.c.bf16 %v1267_v20, %v1266_v14  ;;  %v1278_v14 = vld [vmem:[#allocation2 + $0xda] sm:$0xff]  ;;  %v1279_v20 = vld [vmem:[#allocation2 + $0xe2] sm:$0xff] }
 0x295   :  { %3151 = vmatprep.subr.bf16.mxu0 %v15634_v2 }
 0x29a   :  { %2939 = vmatmul.mubr.bf16.gmra.mrb[36].mxu0 %v11119_v38 }
 0x29b   :  { %2946 = vmatprep.mubr.bf16.mxu0 %v10935_v42  ;;  %v775_v42 = vld [vmem:[#allocation2 + $0x139] sm:$0xff] }
 0x29c   :  { %v11138_v18 = vpack.c.bf16 %v776_v12, %v775_v42  ;;  %v1268_v42 = vld [vmem:[#allocation2 + $0x62] sm:$0xff]  ;;  %v1269_v12 = vld [vmem:[#allocation2 + $0x6a] sm:$0xff] }
 0x2a2   :  { %2947 = vmatmul.mubr.bf16.gmra.mrb[40].mxu0 %v11123_v51 }
 0x2a3   :  { %2954 = vmatprep.mubr.bf16.mxu0 %v10939_v1  ;;  %v9774_v1 = vld [vmem:[%s15622_s1 + $0x1f0] sm:$0xff]  }
 0x2a4   :  { %3152 = vmatpush1.bf16.msra.mxu0 %v9774_v1  ;;  %v1330_v1 = vpack.c.bf16 %v1269_v12, %v1268_v42  ;;  %v1281_v42 = vld [vmem:[#allocation2 + $0xfa] sm:$0xff]  ;;  %v800_v12 = vld [vmem:[#allocation2 + $0x291] sm:$0xff] }
 0x2a5   :  { %3153 = vmatprep.subr.bf16.mxu0 %v15634_v2 }
 0x2aa   :  { %2955 = vmatmul.mubr.bf16.gmra.mrb[44].mxu0 %v11131_v16 }
 0x2ab   :  { %2962 = vmatprep.mubr.bf16.mxu0 %v10947_v31  ;;  %v9775_v31 = vld [vmem:[%s15622_s1 + $0x208] sm:$0xff]  }
 0x2ac   :  { %8762 = vmatprep.subr.bf16.mxu1 %v9775_v31 }
 0x2ad   :  { %8763 = vmatpush3.bf16.msra.mxu1 %v9775_v31  ;;  %v1270_v31 = vld [vmem:[#allocation2 + $0x7a] sm:$0xff] }
 0x2ae   :  { %8764 = vmatprep.subr.bf16.mxu1 %v9776_v25  ;;  %v1331_v62 = vpack.c.bf16 %v1271_v45, %v1270_v31  ;;  %v1283_v31 = vld [vmem:[#allocation2 + $0x112] sm:$0xff] }
 0x2b1   :  { %8765 = vmatpush3.bf16.msra.mxu1 %v9776_v25 }
 0x2b2   :  { %2963 = vmatmul.mubr.bf16.gmra.mrb[48].mxu0 %v11138_v18 }
 0x2b3   :  { %2970 = vmatprep.mubr.bf16.mxu0 %v10951_v50  ;;  %v9777_v50 = vld [vmem:[%s15622_s1 + $0x218] sm:$0xff]  }
 0x2b4   :  { %8766 = vmatprep.subr.bf16.mxu1 %v9777_v50 }
 0x2b5   :  { %8767 = vmatpush3.bf16.msra.mxu1 %v9777_v50  ;;  %v790_v50 = vld [vmem:[#allocation2 + $0x219] sm:$0xff] }
 0x2b6   :  { %8768 = vmatprep.subr.bf16.mxu1 %v9778_v49 }
 0x2b9   :  { %8769 = vmatpush3.bf16.msra.mxu1 %v9778_v49  ;;  %v1273_v49 = vld [vmem:[#allocation2 + $0x9a] sm:$0xff] }
 0x2ba   :  { %2971 = vmatmul.mubr.bf16.gmra.mrb[52].mxu0 %v11152_v29  ;;  %8770 = vmatprep.subr.bf16.mxu1 %v9780_v40  ;;  %v1332_v26 = vpack.c.bf16 %v1273_v49, %v1272_v17  ;;  %v1285_v17 = vld [vmem:[#allocation2 + $0x12a] sm:$0xff]  ;;  %v804_v49 = vld [vmem:[#allocation2 + $0x2c1] sm:$0xff] }
 0x2bb   :  { %2978 = vmatprep.mubr.bf16.mxu0 %v10970_v28  ;;  %v9779_v28 = vld [vmem:[%s15622_s1 + $0x1f8] sm:$0xff]   ;;  %s9897_s1 = smov [#allocation6]  }
 0x2bc   :  { %3154 = vmatpush1.bf16.msra.mxu0 %v9779_v28  ;;  %v1274_v28 = vld [vmem:[#allocation2 + $0xaa] sm:$0xff]  ;;  %s8523_s25 = sshll.u32 %s9897_s1, 4  ;;  %s8524_s25 = int_to_ptr.vmem [resolvable:$true] %s8523_s25 }
 0x2bd   :  { %8771 = vmatpush3.bf16.msra.mxu1 %v9780_v40  ;;  %v1275_v40 = vld [vmem:[#allocation2 + $0xb2] sm:$0xff]  ;;  %p9875_p1 = scmp.lt.s32.totalorder %s8524_s25, %s8524_s25 }
 0x2be   :  { %8772 = vmatprep.subr.bf16.mxu1 %v9781_v43 }
 0x2c1   :  { %8773 = vmatpush3.bf16.msra.mxu1 %v9781_v43  ;;  %v1333_v43 = vpack.c.bf16 %v1275_v40, %v1274_v28  ;;  %v1287_v28 = vld [vmem:[#allocation2 + $0x142] sm:$0xff] }
 0x2c2   :  { %2979 = vmatmul.mubr.bf16.gmra.mrb[56].mxu0 %v11162_v27  ;;  %8774 = vmatprep.subr.bf16.mxu1 %v9782_v63 }
 0x2c3   :  { %2986 = vmatprep.mubr.bf16.mxu0 %v11164_v3 }
 0x2c5   :  { %8775 = vmatpush3.bf16.msra.mxu1 %v9782_v63 }
 0x2c6   :  { %6468 = vmatprep.subr.bf16.mxu1 %v15634_v2 }
 0x2c8   :  { %8777 = vmatmul.mubr.bf16.vlgmr.msra.gmra.mrb[0].mxu1 %v1329_v44  ;;  %v1335_v44 = vpack.c.bf16 %v1279_v20, %v1278_v14  ;;  %v1291_v14 = vld [vmem:[#allocation2 + $0x172] sm:$0xff] }
 0x2c9   :  { %8780 = vmatprep.mubr.bf16.mxu1 %v1330_v1  ;;  %v1282_v1 = vld [vmem:[#allocation2 + $0x10a] sm:$0xff] }
 0x2ca   :  { %2987 = vmatmul.mubr.bf16.gmra.mrb[60].mxu0 %v830_v30  ;;  %v1337_v45 = vpack.c.bf16 %v1283_v31, %v1282_v1 }
 0x2cb   :  { %2994 = vmatprep.mubr.bf16.mxu0 %v10975_v9  ;;  %v787_v9 = vld [vmem:[#allocation2 + $0x1f9] sm:$0xff] }
 0x2cc   :  { %v11189_v25 = vpack.c.bf16 %v788_v56, %v787_v9  ;;  %v1280_v9 = vld [vmem:[#allocation2 + $0xf2] sm:$0xff] }
 0x2cd   :  { %v1336_v56 = vpack.c.bf16 %v1281_v42, %v1280_v9  ;;  %v1294_v9 = vld [vmem:[#allocation2 + $0x19a] sm:$0xff]  ;;  %v1295_v42 = vld [vmem:[#allocation2 + $0x1a2] sm:$0xff] }
 0x2ce   :  { %v1343_v1 = vpack.c.bf16 %v1295_v42, %v1294_v9 }
 0x2d0   :  { %8781 = vmatmul.mubr.bf16.gmra.mrb[4].mxu1 %v1331_v62 }
 0x2d1   :  { %8784 = vmatprep.mubr.bf16.mxu1 %v1332_v26  ;;  %v1286_v26 = vld [vmem:[#allocation2 + $0x13a] sm:$0xff] }
 0x2d2   :  { %2995 = vmatmul.mubr.bf16.gmra.mrb[64].mxu0 %v831_v36  ;;  %v1339_v40 = vpack.c.bf16 %v1287_v28, %v1286_v26  ;;  %v1010_v26 = vld [vmem:[#allocation2 + $0x48] sm:$0xff]  ;;  %v1011_v28 = vld [vmem:[#allocation2 + $0x50] sm:$0xff] }
 0x2d3   :  { %3002 = vmatprep.mubr.bf16.mxu0 %v10979_v32  ;;  %v789_v32 = vld [vmem:[#allocation2 + $0x211] sm:$0xff] }
 0x2d4   :  { %v11193_v58 = vpack.c.bf16 %v790_v50, %v789_v32  ;;  %v802_v32 = vld [vmem:[#allocation2 + $0x2a9] sm:$0xff] }
 0x2d8   :  { %8785 = vmatmul.mubr.bf16.gmra.mrb[8].mxu1 %v1333_v43 }
 0x2d9   :  { %8788 = vmatprep.mubr.bf16.mxu1 %v1334_v7  ;;  %v1290_v7 = vld [vmem:[#allocation2 + $0x16a] sm:$0xff] }
 0x2da   :  { %3003 = vmatmul.mubr.bf16.gmra.mrb[68].mxu0 %v11185_v60  ;;  %v1341_v20 = vpack.c.bf16 %v1291_v14, %v1290_v7  ;;  %v1016_v14 = vld [vmem:[#allocation2 + $0x90] sm:$0xff] }
 0x2db   :  { %3010 = vmatprep.mubr.bf16.mxu0 %v10983_v5  ;;  %v791_v5 = vld [vmem:[#allocation2 + $0x229] sm:$0xff] }
 0x2dc   :  { %v11197_v30 = vpack.c.bf16 %v792_v59, %v791_v5  ;;  %v1284_v5 = vld [vmem:[#allocation2 + $0x122] sm:$0xff] }
 0x2dd   :  { %v1338_v59 = vpack.c.bf16 %v1285_v17, %v1284_v5  ;;  %v1298_v5 = vld [vmem:[#allocation2 + $0x1fa] sm:$0xff]  ;;  %v1299_v17 = vld [vmem:[#allocation2 + $0x202] sm:$0xff] }
 0x2e0   :  { %8789 = vmatmul.mubr.bf16.gmra.mrb[12].mxu1 %v1335_v44 }
 0x2e1   :  { %8792 = vmatprep.mubr.bf16.mxu1 %v1336_v56  ;;  %v942_v56 = vld [vmem:[#allocation2 + $0x33a] sm:$0xff] }
 0x2e2   :  { %3011 = vmatmul.mubr.bf16.gmra.mrb[72].mxu0 %v11189_v25 }
 0x2e3   :  { %3018 = vmatprep.mubr.bf16.mxu0 %v10987_v48  ;;  %v793_v48 = vld [vmem:[#allocation2 + $0x241] sm:$0xff] }
 0x2e4   :  { %v11201_v63 = vpack.c.bf16 %v794_v13, %v793_v48  ;;  %v806_v48 = vld [vmem:[#allocation2 + $0x2d9] sm:$0xff] }
 0x2e8   :  { %8793 = vmatmul.mubr.bf16.gmra.mrb[16].mxu1 %v1337_v45  ;;  %v1296_v45 = vld [vmem:[#allocation2 + $0x1e2] sm:$0xff] }
 0x2e9   :  { %8796 = vmatprep.mubr.bf16.mxu1 %v1338_v59 }
 0x2ea   :  { %3019 = vmatmul.mubr.bf16.gmra.mrb[76].mxu0 %v11193_v58 }
 0x2eb   :  { %3026 = vmatprep.mubr.bf16.mxu0 %v10991_v54  ;;  %v795_v54 = vld [vmem:[#allocation2 + $0x259] sm:$0xff] }
 0x2ec   :  { %v11205_v36 = vpack.c.bf16 %v796_v34, %v795_v54  ;;  %v1288_v54 = vld [vmem:[#allocation2 + $0x152] sm:$0xff] }
 0x2ed   :  { %v1340_v34 = vpack.c.bf16 %v1289_v47, %v1288_v54  ;;  %v1303_v54 = vld [vmem:[#allocation2 + $0x232] sm:$0xff] }
 0x2f0   :  { %8797 = vmatmul.mubr.bf16.gmra.mrb[20].mxu1 %v1339_v40  ;;  %v1300_v40 = vld [vmem:[#allocation2 + $0x212] sm:$0xff] }
 0x2f1   :  { %8800 = vmatprep.mubr.bf16.mxu1 %v1340_v34  ;;  %v1015_v34 = vld [vmem:[#allocation2 + $0x80] sm:$0xff] }
 0x2f2   :  { %3027 = vmatmul.mubr.bf16.gmra.mrb[80].mxu0 %v11197_v30 }
 0x2f3   :  { %3034 = vmatprep.mubr.bf16.mxu0 %v10995_v33  ;;  %v797_v33 = vld [vmem:[#allocation2 + $0x271] sm:$0xff] }
 0x2f4   :  { %v11209_v22 = vpack.c.bf16 %v798_v41, %v797_v33  ;;  %v810_v33 = vld [vmem:[#allocation2 + $0x309] sm:$0xff] }
 0x2f8   :  { %8801 = vmatmul.mubr.bf16.gmra.mrb[24].mxu1 %v1341_v20  ;;  %v1304_v20 = vld [vmem:[#allocation2 + $0x242] sm:$0xff] }
 0x2f9   :  { %8804 = vmatprep.mubr.bf16.mxu1 %v11164_v3 }
 0x2fa   :  { %3035 = vmatmul.mubr.bf16.gmra.mrb[84].mxu0 %v11201_v63 }
 0x2fb   :  { %3042 = vmatprep.mubr.bf16.mxu0 %v10999_v39  ;;  %v799_v39 = vld [vmem:[#allocation2 + $0x289] sm:$0xff] }
 0x2fc   :  { %v11213_v62 = vpack.c.bf16 %v800_v12, %v799_v39  ;;  %v812_v39 = vld [vmem:[#allocation2 + $0x321] sm:$0xff]  ;;  %v941_v12 = vld [vmem:[#allocation2 + $0x332] sm:$0xff] }
 0x2fd   :  { %v11240_v31 = vpack.c.bf16 %v942_v56, %v941_v12  ;;  %v1019_v12 = vld [vmem:[#allocation2 + $0xb0] sm:$0xff] }
 0x300   :  { %8805 = vmatmul.mubr.bf16.gmra.mrb[28].mxu1 %v1343_v1  ;;  %v1020_v1 = vld [vmem:[#allocation2 + $0xc0] sm:$0xff] }
 0x302   :  { %3043 = vmatmul.mubr.bf16.gmra.mrb[88].mxu0 %v11205_v36 }
 0x303   :  { %3050 = vmatprep.mubr.bf16.mxu0 %v11003_v0  ;;  %v801_v0 = vld [vmem:[#allocation2 + $0x2a1] sm:$0xff] }
 0x304   :  { %v11217_v50 = vpack.c.bf16 %v802_v32, %v801_v0  ;;  %v1297_v0 = vld [vmem:[#allocation2 + $0x1ea] sm:$0xff]  ;;  %v1009_v32 = vld [vmem:[#allocation2 + $0x38] sm:$0xff] }
 0x30a   :  { %3051 = vmatmul.mubr.bf16.gmra.mrb[92].mxu0 %v11209_v22 }
 0x30b   :  { %3058 = vmatprep.mubr.bf16.mxu0 %v11007_v19  ;;  %v803_v19 = vld [vmem:[#allocation2 + $0x2b9] sm:$0xff] }
 0x30c   :  { %v11221_v43 = vpack.c.bf16 %v804_v49, %v803_v19  ;;  %v1344_v19 = vpack.c.bf16 %v1297_v0, %v1296_v45  ;;  %v1345_v49 = vpack.c.bf16 %v1299_v17, %v1298_v5  ;;  %v1310_v0 = vld [vmem:[#allocation2 + $0x28a] sm:$0xff]  ;;  %v1023_v17 = vld [vmem:[#allocation2 + $0xe0] sm:$0xff] }
 0x30e   :  { %8808 = vmatprep.mubr.bf16.mxu1 %v1344_v19 }
 0x30f   :  { %8809 = vmatmul.mubr.bf16.gmra.mrb[32].mxu1 %v1345_v49 }
 0x312   :  { %3059 = vmatmul.mubr.bf16.gmra.mrb[96].mxu0 %v11213_v62 }
 0x313   :  { %3066 = vmatprep.mubr.bf16.mxu0 %v11011_v15  ;;  %v805_v15 = vld [vmem:[#allocation2 + $0x2d1] sm:$0xff] }
 0x314   :  { %v11225_v13 = vpack.c.bf16 %v806_v48, %v805_v15  ;;  %v1301_v15 = vld [vmem:[#allocation2 + $0x21a] sm:$0xff] }
 0x315   :  { %v1346_v48 = vpack.c.bf16 %v1301_v15, %v1300_v40  ;;  %v1315_v40 = vld [vmem:[#allocation2 + $0x2c2] sm:$0xff] }
 0x317   :  { %8812 = vmatprep.mubr.bf16.mxu1 %v1346_v48  ;;  %v1027_v48 = vld [vmem:[#allocation2 + $0x110] sm:$0xff] }
 0x31a   :  { %3067 = vmatmul.mubr.bf16.gmra.mrb[100].mxu0 %v11217_v50 }
 0x31b   :  { %3074 = vmatprep.mubr.bf16.mxu0 %v11015_v37  ;;  %v807_v37 = vld [vmem:[#allocation2 + $0x2e9] sm:$0xff] }
 0x31c   :  { %v11229_v44 = vpack.c.bf16 %v808_v57, %v807_v37  ;;  %v1302_v37 = vld [vmem:[#allocation2 + $0x22a] sm:$0xff] }
 0x31d   :  { %v1347_v47 = vpack.c.bf16 %v1303_v54, %v1302_v37  ;;  %v1028_v54 = vld [vmem:[#allocation2 + $0x120] sm:$0xff] }
 0x31f   :  { %8813 = vmatmul.mubr.bf16.gmra.mrb[36].mxu1 %v1347_v47  ;;  %v1316_v47 = vld [vmem:[#allocation2 + $0x2d2] sm:$0xff] }
 0x322   :  { %3075 = vmatmul.mubr.bf16.gmra.mrb[104].mxu0 %v11221_v43 }
 0x323   :  { %3082 = vmatprep.mubr.bf16.mxu0 %v11019_v23  ;;  %v809_v23 = vld [vmem:[#allocation2 + $0x301] sm:$0xff] }
 0x324   :  { %v11234_v41 = vpack.c.bf16 %v810_v33, %v809_v23  ;;  %v1305_v23 = vld [vmem:[#allocation2 + $0x24a] sm:$0xff] }
 0x325   :  { %v1348_v33 = vpack.c.bf16 %v1305_v23, %v1304_v20  ;;  %v1031_v23 = vld [vmem:[#allocation2 + $0x140] sm:$0xff] }
 0x327   :  { %8816 = vmatprep.mubr.bf16.mxu1 %v1348_v33 }
 0x32a   :  { %3083 = vmatmul.mubr.bf16.gmra.mrb[108].mxu0 %v11225_v13 }
 0x32b   :  { %3090 = vmatprep.mubr.bf16.mxu0 %v11023_v11  ;;  %v811_v11 = vld [vmem:[#allocation2 + $0x319] sm:$0xff] }
 0x32c   :  { %v11238_v3 = vpack.c.bf16 %v812_v39, %v811_v11  ;;  %v1306_v11 = vld [vmem:[#allocation2 + $0x25a] sm:$0xff]  ;;  %v1307_v39 = vld [vmem:[#allocation2 + $0x262] sm:$0xff] }
 0x32d   :  { %v1349_v9 = vpack.c.bf16 %v1307_v39, %v1306_v11 }
 0x32f   :  { %8817 = vmatmul.mubr.bf16.gmra.mrb[40].mxu1 %v1349_v9  ;;  %v1032_v9 = vld [vmem:[#allocation2 + $0x150] sm:$0xff] }
 0x332   :  { %3091 = vmatmul.mubr.bf16.gmra.mrb[112].mxu0 %v11229_v44 }
 0x333   :  { %3098 = vmatprep.mubr.bf16.mxu0 %v11027_v35  ;;  %v846_v35 = vpack.c.bf16 %v10961_v24, %v10956_v46  ;;  %v1073_v46 = vpack.c.bf16 %v1011_v28, %v1010_v26  ;;  %v1012_v24 = vld [vmem:[#allocation2 + $0x60] sm:$0xff]  ;;  %v1313_v28 = vld [vmem:[#allocation2 + $0x2aa] sm:$0xff] }
 0x334   :  { %v1312_v26 = vld [vmem:[#allocation2 + $0x2a2] sm:$0xff] }
 0x33a   :  { %3099 = vmatmul.mubr.bf16.gmra.mrb[116].mxu0 %v11234_v41 }
 0x33b   :  { %3106 = vmatprep.mubr.bf16.mxu0 %v11030_v61  ;;  %v1008_v61 = vld [vmem:[#allocation2 + $0x30] sm:$0xff] }
 0x33c   :  { %v1072_v59 = vpack.c.bf16 %v1009_v32, %v1008_v61  ;;  %v1309_v61 = vld [vmem:[#allocation2 + $0x27a] sm:$0xff]  ;;  %v1311_v32 = vld [vmem:[#allocation2 + $0x292] sm:$0xff] }
 0x33d   :  { %v1351_v19 = vpack.c.bf16 %v1311_v32, %v1310_v0  ;;  %v1164_v0 = vld [vmem:[#allocation2 + $0x181] sm:$0xff] }
 0x342   :  { %3107 = vmatmul.mubr.bf16.gmra.mrb[120].mxu0 %v11238_v3 }
 0x343   :  { %3114 = vmatprep.mubr.bf16.mxu0 %v11240_v31 }
 0x34a   :  { %3115 = vmatmul.mubr.bf16.gmra.mrb[124].mxu0 %v846_v35  ;;  %v1308_v35 = vld [vmem:[#allocation2 + $0x272] sm:$0xff] }
 0x34b   :  { %3155 = vmatprep.mubr.bf16.mxu0 %v11042_v10  ;;  %v1013_v10 = vld [vmem:[#allocation2 + $0x68] sm:$0xff]  ;;  %v1350_v45 = vpack.c.bf16 %v1309_v61, %v1308_v35 }
 0x34c   :  { %v1074_v57 = vpack.c.bf16 %v1013_v10, %v1012_v24  ;;  %v1314_v24 = vld [vmem:[#allocation2 + $0x2ba] sm:$0xff]  ;;  %v1323_v35 = vld [vmem:[#allocation2 + $0x322] sm:$0xff] }
 0x34d   :  { %8820 = vmatprep.mubr.bf16.mxu1 %v1350_v45  ;;  %v1353_v15 = vpack.c.bf16 %v1315_v40, %v1314_v24  ;;  %v1035_v45 = vld [vmem:[#allocation2 + $0x170] sm:$0xff] }
 0x34e   :  { %8821 = vmatmul.mubr.bf16.gmra.mrb[44].mxu1 %v1351_v19  ;;  %v1327_v24 = vld [vmem:[#allocation2 + $0x352] sm:$0xff] }
 0x352   :  { %3156 = vmatmul.mubr.bf16.vlgmr.msra.gmra.mrb[0].mxu0 %v1072_v59  ;;  %v1024_v59 = vld [vmem:[#allocation2 + $0xf0] sm:$0xff] }
 0x353   :  { %3163 = vmatprep.mubr.bf16.mxu0 %v11054_v6  ;;  %v1014_v6 = vld [vmem:[#allocation2 + $0x78] sm:$0xff] }
 0x354   :  { %v1075_v7 = vpack.c.bf16 %v1015_v34, %v1014_v6  ;;  %v1318_v34 = vld [vmem:[#allocation2 + $0x2ea] sm:$0xff] }
 0x35a   :  { %3164 = vmatmul.mubr.bf16.gmra.mrb[4].mxu0 %v1073_v46  ;;  %v1352_v46 = vpack.c.bf16 %v1313_v28, %v1312_v26  ;;  %v1166_v26 = vld [vmem:[#allocation2 + $0x199] sm:$0xff] }
 0x35b   :  { %3171 = vmatprep.mubr.bf16.mxu0 %v11066_v8  ;;  %v1017_v8 = vld [vmem:[#allocation2 + $0x98] sm:$0xff] }
 0x35c   :  { %v1076_v42 = vpack.c.bf16 %v1017_v8, %v1016_v14  ;;  %8824 = vmatprep.mubr.bf16.mxu1 %v1352_v46 }
 0x35d   :  { %8825 = vmatmul.mubr.bf16.gmra.mrb[48].mxu1 %v1353_v15 }
 0x362   :  { %3172 = vmatmul.mubr.bf16.gmra.mrb[8].mxu0 %v1074_v57  ;;  %v1317_v57 = vld [vmem:[#allocation2 + $0x2da] sm:$0xff] }
 0x363   :  { %3179 = vmatprep.mubr.bf16.mxu0 %v11078_v52  ;;  %v1018_v52 = vld [vmem:[#allocation2 + $0xa8] sm:$0xff]  ;;  %v1354_v6 = vpack.c.bf16 %v1317_v57, %v1316_v47  ;;  %v1040_v47 = vld [vmem:[#allocation2 + $0x1e0] sm:$0xff] }
 0x364   :  { %v1077_v56 = vpack.c.bf16 %v1019_v12, %v1018_v52  ;;  %v1320_v52 = vld [vmem:[#allocation2 + $0x302] sm:$0xff]  ;;  %v1321_v12 = vld [vmem:[#allocation2 + $0x30a] sm:$0xff] }
 0x365   :  { %8828 = vmatprep.mubr.bf16.mxu1 %v1354_v6  ;;  %v1041_v57 = vld [vmem:[#allocation2 + $0x1e8] sm:$0xff]  ;;  %v1042_v6 = vld [vmem:[#allocation2 + $0x1f8] sm:$0xff] }
 0x36a   :  { %3180 = vmatmul.mubr.bf16.gmra.mrb[12].mxu0 %v1075_v7  ;;  %v1319_v7 = vld [vmem:[#allocation2 + $0x2f2] sm:$0xff] }
 0x36b   :  { %3187 = vmatprep.mubr.bf16.mxu0 %v11090_v53  ;;  %v1021_v53 = vld [vmem:[#allocation2 + $0xc8] sm:$0xff]  ;;  %v1355_v14 = vpack.c.bf16 %v1319_v7, %v1318_v34  ;;  %v1043_v34 = vld [vmem:[#allocation2 + $0x200] sm:$0xff] }
 0x36c   :  { %v1078_v5 = vpack.c.bf16 %v1021_v53, %v1020_v1  ;;  %v1322_v1 = vld [vmem:[#allocation2 + $0x31a] sm:$0xff]  ;;  %v1034_v53 = vld [vmem:[#allocation2 + $0x168] sm:$0xff] }
 0x36d   :  { %8829 = vmatmul.mubr.bf16.gmra.mrb[52].mxu1 %v1355_v14  ;;  %v1357_v61 = vpack.c.bf16 %v1323_v35, %v1322_v1  ;;  %v1049_v35 = vld [vmem:[#allocation2 + $0x248] sm:$0xff] }
 0x372   :  { %3188 = vmatmul.mubr.bf16.gmra.mrb[16].mxu0 %v1076_v42  ;;  %v1033_v42 = vld [vmem:[#allocation2 + $0x158] sm:$0xff] }
 0x373   :  { %3195 = vmatprep.mubr.bf16.mxu0 %v11099_v4  ;;  %v1022_v4 = vld [vmem:[#allocation2 + $0xd8] sm:$0xff] }
 0x374   :  { %v1079_v49 = vpack.c.bf16 %v1023_v17, %v1022_v4 }
 0x37a   :  { %3196 = vmatmul.mubr.bf16.gmra.mrb[20].mxu0 %v1077_v56  ;;  %v1084_v56 = vpack.c.bf16 %v1033_v42, %v1032_v9  ;;  %v1047_v42 = vld [vmem:[#allocation2 + $0x230] sm:$0xff] }
 0x37b   :  { %3203 = vmatprep.mubr.bf16.mxu0 %v11107_v21  ;;  %v1025_v21 = vld [vmem:[#allocation2 + $0xf8] sm:$0xff] }
 0x37c   :  { %v1080_v10 = vpack.c.bf16 %v1025_v21, %v1024_v59  ;;  %v1036_v59 = vld [vmem:[#allocation2 + $0x180] sm:$0xff]  ;;  %v1326_v21 = vld [vmem:[#allocation2 + $0x34a] sm:$0xff] }
 0x37d   :  { %v1359_v40 = vpack.c.bf16 %v1327_v24, %v1326_v21 }
 0x382   :  { %3204 = vmatmul.mubr.bf16.gmra.mrb[24].mxu0 %v1078_v5  ;;  %v1085_v5 = vpack.c.bf16 %v1035_v45, %v1034_v53  ;;  %v1051_v53 = vld [vmem:[#allocation2 + $0x260] sm:$0xff] }
 0x383   :  { %3211 = vmatprep.mubr.bf16.mxu0 %v11111_v55  ;;  %v1026_v55 = vld [vmem:[#allocation2 + $0x108] sm:$0xff] }
 0x384   :  { %v1081_v37 = vpack.c.bf16 %v1027_v48, %v1026_v55  ;;  %v9859_v55 = vld [vmem:[#allocation2] sm:$0xff] }
 0x385   :  { %v11281_v48 = vpack.c.bf16 %v9859_v55, %v9859_v55 }
 0x38a   :  { %3212 = vmatmul.mubr.bf16.gmra.mrb[28].mxu0 %v1079_v49 }
 0x38b   :  { %3219 = vmatprep.mubr.bf16.mxu0 %v11119_v38  ;;  %v1029_v38 = vld [vmem:[#allocation2 + $0x128] sm:$0xff] }
 0x38c   :  { %v1082_v20 = vpack.c.bf16 %v1029_v38, %v1028_v54  ;;  %v1088_v38 = vpack.c.bf16 %v1041_v57, %v1040_v47  ;;  %v1059_v47 = vld [vmem:[#allocation2 + $0x2c0] sm:$0xff] }
 0x392   :  { %3220 = vmatmul.mubr.bf16.gmra.mrb[32].mxu0 %v1080_v10 }
 0x393   :  { %3227 = vmatprep.mubr.bf16.mxu0 %v11123_v51  ;;  %v1030_v51 = vld [vmem:[#allocation2 + $0x138] sm:$0xff] }
 0x394   :  { %v1083_v11 = vpack.c.bf16 %v1031_v23, %v1030_v51 }
 0x39a   :  { %3228 = vmatmul.mubr.bf16.gmra.mrb[36].mxu0 %v1081_v37 }
 0x39b   :  { %3235 = vmatprep.mubr.bf16.mxu0 %v11131_v16  ;;  %v11258_v8 = vpop.f32.mrb[0].mxu1 }
 0x39c   :  { %v11260_v33 = vpop.f32.mrb[1].mxu1 }
 0x39d   :  { %v11262_v39 = vpop.f32.mrb[2].mxu1 }
 0x39e   :  { %v11264_v16 = vpop.f32.mrb[3].mxu1 }
 0x3a2   :  { %3236 = vmatmul.mubr.bf16.gmra.mrb[40].mxu0 %v1082_v20  ;;  %v1089_v20 = vpack.c.bf16 %v1043_v34, %v1042_v6 }
 0x3a3   :  { %3243 = vmatprep.mubr.bf16.mxu0 %v11138_v18  ;;  %v1356_v18 = vpack.c.bf16 %v1321_v12, %v1320_v52  ;;  %v11269_v32 = vpop.f32.mrb[4].mxu1 }
 0x3a4   :  { %v11271_v19 = vpop.f32.mrb[5].mxu1 }
 0x3a5   :  { %8832 = vmatprep.mubr.bf16.mxu1 %v1356_v18  ;;  %v11273_v4 = vpop.f32.mrb[6].mxu1 }
 0x3a6   :  { %8833 = vmatmul.mubr.bf16.gmra.mrb[56].mxu1 %v1357_v61  ;;  %v11275_v49 = vpop.f32.mrb[7].mxu1 }
 0x3a7   :  { %8836 = vmatprep.mubr.bf16.mxu1 %v11240_v31  ;;  %v1037_v31 = vld [vmem:[#allocation2 + $0x188] sm:$0xff] }
 0x3a8   :  { %v1086_v28 = vpack.c.bf16 %v1037_v31, %v1036_v59  ;;  %v1053_v59 = vld [vmem:[#allocation2 + $0x278] sm:$0xff] }
 0x3aa   :  { %3244 = vmatmul.mubr.bf16.gmra.mrb[44].mxu0 %v1083_v11  ;;  %v1045_v11 = vld [vmem:[#allocation2 + $0x218] sm:$0xff] }
 0x3ab   :  { %3251 = vmatprep.mubr.bf16.mxu0 %v11152_v29  ;;  %v1165_v29 = vld [vmem:[#allocation2 + $0x189] sm:$0xff]  ;;  %v11277_v15 = vpop.f32.mrb[8].mxu1 }
 0x3ac   :  { %v1214_v17 = vpack.c.bf16 %v1165_v29, %v1164_v0  ;;  %v11279_v10 = vpop.f32.mrb[9].mxu1 }
 0x3ad   :  { %v11283_v37 = vpop.f32.mrb[10].mxu1 }
 0x3ae   :  { %8837 = vmatmul.mubr.bf16.gmra.mrb[60].mxu1 %v1359_v40  ;;  %v11285_v54 = vpop.f32.mrb[11].mxu1  ;;  %v1057_v40 = vld [vmem:[#allocation2 + $0x2a8] sm:$0xff] }
 0x3b2   :  { %3252 = vmatmul.mubr.bf16.gmra.mrb[48].mxu0 %v1084_v56 }
 0x3b3   :  { %3259 = vmatprep.mubr.bf16.mxu0 %v11162_v27  ;;  %v1167_v27 = vld [vmem:[#allocation2 + $0x1a1] sm:$0xff]  ;;  %v11290_v7 = vpop.f32.mrb[12].mxu1 }
 0x3b4   :  { %v1215_v46 = vpack.c.bf16 %v1167_v27, %v1166_v26  ;;  %v11292_v14 = vpop.f32.mrb[13].mxu1  ;;  %v1055_v26 = vld [vmem:[#allocation2 + $0x290] sm:$0xff] }
 0x3b5   :  { %v11294_v51 = vpop.f32.mrb[14].mxu1 }
 0x3b6   :  { %v11296_v23 = vpop.f32.mrb[15].mxu1 }
 0x3ba   :  { %3260 = vmatmul.mubr.bf16.gmra.mrb[52].mxu0 %v1085_v5 }
 0x3bb   :  { %3267 = vmatprep.mubr.bf16.mxu0 %v1214_v17  ;;  %v11300_v52 = vpop.f32.mrb[16].mxu1 }
 0x3bc   :  { %v11302_v12 = vpop.f32.mrb[17].mxu1 }
 0x3bd   :  { %v11304_v18 = vpop.f32.mrb[18].mxu1 }
 0x3be   :  { %v11306_v1 = vpop.f32.mrb[19].mxu1 }
 0x3c2   :  { %3268 = vmatmul.mubr.bf16.gmra.mrb[56].mxu0 %v1086_v28 }
 0x3c3   :  { %3275 = vmatprep.mubr.bf16.mxu0 %v1215_v46  ;;  %v11310_v45 = vpop.f32.mrb[20].mxu1 }
 0x3c4   :  { %v11312_v0 = vpop.f32.mrb[21].mxu1 }
 0x3c5   :  { %v11314_v5 = vpop.f32.mrb[22].mxu1 }
 0x3c6   :  { %v11316_v17 = vpop.f32.mrb[23].mxu1 }
 0x3ca   :  { %3276 = vmatmul.mubr.bf16.gmra.mrb[60].mxu0 %v11281_v48 }
 0x3cb   :  { %3283 = vmatprep.mubr.bf16.mxu0 %v11185_v60  ;;  %v1044_v60 = vld [vmem:[#allocation2 + $0x210] sm:$0xff]  ;;  %v11320_v27 = vpop.f32.mrb[24].mxu1 }
 0x3cc   :  { %v1090_v9 = vpack.c.bf16 %v1045_v11, %v1044_v60  ;;  %v11322_v28 = vpop.f32.mrb[25].mxu1  ;;  %v1061_v60 = vld [vmem:[#allocation2 + $0x2d8] sm:$0xff] }
 0x3cd   :  { %v11324_v46 = vpop.f32.mrb[26].mxu1 }
 0x3ce   :  { %v11326_v24 = vpop.f32.mrb[27].mxu1 }
 0x3d2   :  { %3284 = vmatmul.mubr.bf16.gmra.mrb[64].mxu0 %v1088_v38 }
 0x3d3   :  { %3291 = vmatprep.mubr.bf16.mxu0 %v11189_v25  ;;  %v1046_v25 = vld [vmem:[#allocation2 + $0x228] sm:$0xff]  ;;  %v11330_v57 = vpop.f32.mrb[28].mxu1 }
 0x3d4   :  { %v1091_v56 = vpack.c.bf16 %v1047_v42, %v1046_v25  ;;  %v11332_v38 = vpop.f32.mrb[29].mxu1 }
 0x3d5   :  { %v11334_v34 = vpop.f32.mrb[30].mxu1 }
 0x3da   :  { %3292 = vmatmul.mubr.bf16.gmra.mrb[68].mxu0 %v1089_v20  ;;  %v11336_v20 = vpop.f32.mrb[31].mxu1 }
 0x3db   :  { %3299 = vmatprep.mubr.bf16.mxu0 %v11193_v58  ;;  %v1048_v58 = vld [vmem:[#allocation2 + $0x240] sm:$0xff] }
 0x3dc   :  { %v1092_v61 = vpack.c.bf16 %v1049_v35, %v1048_v58 }
 0x3e2   :  { %3300 = vmatmul.mubr.bf16.gmra.mrb[72].mxu0 %v1090_v9  ;;  %v1063_v9 = vld [vmem:[#allocation2 + $0x2f0] sm:$0xff]  ;;  %v11340_v25 = vpop.f32.mrb[32].mxu1 }
 0x3e3   :  { %3307 = vmatprep.mubr.bf16.mxu0 %v11197_v30  ;;  %v1050_v30 = vld [vmem:[#allocation2 + $0x258] sm:$0xff] }
 0x3e4   :  { %v1093_v29 = vpack.c.bf16 %v1051_v53, %v1050_v30 }
 0x3ea   :  { %3308 = vmatmul.mubr.bf16.gmra.mrb[76].mxu0 %v1091_v56  ;;  %v11342_v56 = vpop.f32.mrb[33].mxu1 }
 0x3eb   :  { %3315 = vmatprep.mubr.bf16.mxu0 %v11201_v63  ;;  %v1052_v63 = vld [vmem:[#allocation2 + $0x270] sm:$0xff]  ;;  %v11347_v30 = vpop.f32.mrb[34].mxu1 }
 0x3ec   :  { %v1094_v31 = vpack.c.bf16 %v1053_v59, %v1052_v63  ;;  %v11349_v53 = vpop.f32.mrb[35].mxu1  ;;  %v1064_v63 = vld [vmem:[#allocation2 + $0x300] sm:$0xff]  ;;  %v1065_v59 = vld [vmem:[#allocation2 + $0x308] sm:$0xff] }
 0x3f2   :  { %3316 = vmatmul.mubr.bf16.gmra.mrb[80].mxu0 %v1092_v61 }
 0x3f3   :  { %3323 = vmatprep.mubr.bf16.mxu0 %v11205_v36  ;;  %v1054_v36 = vld [vmem:[#allocation2 + $0x288] sm:$0xff] }
 0x3f4   :  { %v1095_v21 = vpack.c.bf16 %v1055_v26, %v1054_v36  ;;  %v1100_v26 = vpack.c.bf16 %v1065_v59, %v1064_v63  ;;  %v1199_v63 = vld [vmem:[#allocation2 + $0x351] sm:$0xff] }
 0x3fa   :  { %3324 = vmatmul.mubr.bf16.gmra.mrb[84].mxu0 %v1093_v29 }
 0x3fb   :  { %3331 = vmatprep.mubr.bf16.mxu0 %v11209_v22  ;;  %v1056_v22 = vld [vmem:[#allocation2 + $0x2a0] sm:$0xff] }
 0x3fc   :  { %v1096_v55 = vpack.c.bf16 %v1057_v40, %v1056_v22 }
 0x402   :  { %3332 = vmatmul.mubr.bf16.gmra.mrb[88].mxu0 %v1094_v31 }
 0x403   :  { %3339 = vmatprep.mubr.bf16.mxu0 %v11213_v62  ;;  %v1058_v62 = vld [vmem:[#allocation2 + $0x2b8] sm:$0xff] }
 0x404   :  { %v1097_v6 = vpack.c.bf16 %v1059_v47, %v1058_v62  ;;  %v1196_v62 = vld [vmem:[#allocation2 + $0x331] sm:$0xff]  ;;  %v11362_v47 = vpop.f32.mrb[36].mxu1 }
 0x40a   :  { %3340 = vmatmul.mubr.bf16.gmra.mrb[92].mxu0 %v1095_v21 }
 0x40b   :  { %3347 = vmatprep.mubr.bf16.mxu0 %v11217_v50  ;;  %v1060_v50 = vld [vmem:[#allocation2 + $0x2d0] sm:$0xff] }
 0x40c   :  { %v1098_v11 = vpack.c.bf16 %v1061_v60, %v1060_v50  ;;  %v11364_v50 = vpop.f32.mrb[37].mxu1 }
 0x412   :  { %3348 = vmatmul.mubr.bf16.gmra.mrb[96].mxu0 %v1096_v55  ;;  %v1067_v55 = vld [vmem:[#allocation2 + $0x320] sm:$0xff] }
 0x413   :  { %3355 = vmatprep.mubr.bf16.mxu0 %v11221_v43  ;;  %v1062_v43 = vld [vmem:[#allocation2 + $0x2e8] sm:$0xff] }
 0x414   :  { %v1099_v61 = vpack.c.bf16 %v1063_v9, %v1062_v43 }
 0x41a   :  { %3356 = vmatmul.mubr.bf16.gmra.mrb[100].mxu0 %v1097_v6 }
 0x41b   :  { %3363 = vmatprep.mubr.bf16.mxu0 %v11225_v13 }
 0x422   :  { %3364 = vmatmul.mubr.bf16.gmra.mrb[104].mxu0 %v1098_v11 }
 0x423   :  { %3371 = vmatprep.mubr.bf16.mxu0 %v11229_v44 }
 0x425   :  { %v3157_v42 = vpop.f32.mrb[0].mxu0 }
 0x426   :  { %v11345_v58 = vadd.f32 %v11260_v33, %v3157_v42  ;;  %v3159_v35 = vpop.f32.mrb[1].mxu0 }
 0x427   :  { %v3160_v13 = vpop.f32.mrb[2].mxu0 }
 0x428   :  { %15788 = vst [vmem:[#allocation9_spill] sm:$0xff] %v11345_v58  ;;  %v11352_v29 = vadd.f32 %v11264_v16, %v3160_v13  ;;  %v3162_v44 = vpop.f32.mrb[3].mxu0  ;;  %v1066_v16 = vld [vmem:[#allocation2 + $0x318] sm:$0xff] }
 0x429   :  { %v1101_v11 = vpack.c.bf16 %v1067_v55, %v1066_v16  ;;  %v1069_v13 = vld [vmem:[#allocation2 + $0x338] sm:$0xff]  ;;  %v1198_v44 = vld [vmem:[#allocation2 + $0x349] sm:$0xff] }
 0x42a   :  { %15789 = vst [vmem:[#allocation10_spill] sm:$0xff] %v11352_v29  ;;  %3372 = vmatmul.mubr.bf16.gmra.mrb[108].mxu0 %v1099_v61  ;;  %v1068_v61 = vld [vmem:[#allocation2 + $0x330] sm:$0xff] }
 0x42b   :  { %3379 = vmatprep.mubr.bf16.mxu0 %v11234_v41  ;;  %v1197_v41 = vld [vmem:[#allocation2 + $0x339] sm:$0xff] }
 0x42c   :  { %v1230_v9 = vpack.c.bf16 %v1197_v41, %v1196_v62 }
 0x42d   :  { %v3165_v31 = vpop.f32.mrb[4].mxu0 }
 0x42e   :  { %v11356_v33 = vadd.f32 %v11258_v8, %v3165_v31  ;;  %v3167_v36 = vpop.f32.mrb[5].mxu0 }
 0x42f   :  { %v3168_v21 = vpop.f32.mrb[6].mxu0  ;;  %v1102_v36 = vpack.c.bf16 %v1069_v13, %v1068_v61 }
 0x430   :  { %v11359_v22 = vadd.f32 %v11262_v39, %v3168_v21  ;;  %v3170_v40 = vpop.f32.mrb[7].mxu0  ;;  %v11369_v39 = vpop.f32.mrb[38].mxu1  ;;  %v1231_v21 = vpack.c.bf16 %v1199_v63, %v1198_v44  ;;  %v9783_v63 = vld [vmem:[%s15626_s5] sm:$0xff]  }
 0x431   :  { %v11371_v42 = vpop.f32.mrb[39].mxu1  ;;  %6469 = vmatpush1.bf16.msra.mxu1 %v9783_v63  ;;  %v9785_v63 = vld [vmem:[%s15626_s5 + $0x10] sm:$0xff]  }
 0x432   :  { %15790 = vst [vmem:[#allocation11_spill] sm:$0xff] %v11359_v22  ;;  %3380 = vmatmul.mubr.bf16.gmra.mrb[112].mxu0 %v1100_v26  ;;  %v11382_v16 = vpop.f32.mrb[40].mxu1  ;;  %6470 = vmatprep.subr.bf16.mxu1 %v15634_v2 }
 0x433   :  { %3387 = vmatprep.mubr.bf16.mxu0 %v11238_v3  ;;  %v11384_v62 = vpop.f32.mrb[41].mxu1 }
 0x435   :  { %v3173_v6 = vpop.f32.mrb[8].mxu0 }
 0x436   :  { %v11367_v8 = vadd.f32 %v11271_v19, %v3173_v6  ;;  %v3175_v60 = vpop.f32.mrb[9].mxu0  ;;  %v11389_v6 = vpop.f32.mrb[42].mxu1 }
 0x437   :  { %v3176_v43 = vpop.f32.mrb[10].mxu0 }
 0x438   :  { %15791 = vst [vmem:[#allocation12_spill] sm:$0xff] %v11367_v8  ;;  %v11374_v3 = vadd.f32 %v11275_v49, %v3176_v43  ;;  %v3178_v35 = vpop.f32.mrb[11].mxu0 }
 0x43a   :  { %15792 = vst [vmem:[#allocation13_spill] sm:$0xff] %v11374_v3  ;;  %3388 = vmatmul.mubr.bf16.gmra.mrb[116].mxu0 %v1101_v11  ;;  %v11391_v11 = vpop.f32.mrb[43].mxu1 }
 0x43b   :  { %3395 = vmatprep.mubr.bf16.mxu0 %v1230_v9 }
 0x43d   :  { %v3181_v19 = vpop.f32.mrb[12].mxu0 }
 0x43e   :  { %v11377_v59 = vadd.f32 %v11269_v32, %v3181_v19  ;;  %v3183_v31 = vpop.f32.mrb[13].mxu0  ;;  %v11406_v19 = vpop.f32.mrb[44].mxu1 }
 0x43f   :  { %v3184_v26 = vpop.f32.mrb[14].mxu0  ;;  %v11408_v31 = vpop.f32.mrb[45].mxu1 }
 0x440   :  { %15793 = vst [vmem:[#allocation14_spill] sm:$0xff] %v11377_v59  ;;  %v11380_v40 = vadd.f32 %v11273_v4, %v3184_v26  ;;  %v3186_v49 = vpop.f32.mrb[15].mxu0 }
 0x442   :  { %15794 = vst [vmem:[#allocation15_spill] sm:$0xff] %v11380_v40  ;;  %3396 = vmatmul.mubr.bf16.gmra.mrb[120].mxu0 %v1102_v36  ;;  %v11413_v36 = vpop.f32.mrb[46].mxu1 }
 0x443   :  { %3403 = vmatprep.mubr.bf16.mxu0 %v1231_v21 }
 0x445   :  { %v3189_v55 = vpop.f32.mrb[16].mxu0 }
 0x446   :  { %v11387_v41 = vadd.f32 %v11279_v10, %v3189_v55  ;;  %v3191_v32 = vpop.f32.mrb[17].mxu0  ;;  %v9784_v55 = vld [vmem:[%s15626_s5 + $0x8] sm:$0xff]  }
 0x447   :  { %v3192_v60 = vpop.f32.mrb[18].mxu0  ;;  %6471 = vmatpush1.bf16.msra.mxu1 %v9784_v55 }
 0x448   :  { %15795 = vst [vmem:[#allocation16_spill] sm:$0xff] %v11387_v41  ;;  %v11394_v4 = vadd.f32 %v11285_v54, %v3192_v60  ;;  %v3194_v43 = vpop.f32.mrb[19].mxu0  ;;  %6472 = vmatprep.subr.bf16.mxu1 %v15634_v2 }
 0x44a   :  { %15796 = vst [vmem:[#allocation17_spill] sm:$0xff] %v11394_v4  ;;  %3404 = vmatmul.mubr.bf16.gmra.mrb[124].mxu0 %v11281_v48 }
 0x44b   :  { %6473 = vmatpush1.bf16.msra.mxu1 %v9785_v63 }
 0x44c   :  { %6474 = vmatprep.subr.bf16.mxu1 %v15634_v2  ;;  %v3777_v2 = vmul.f32 %v11374_v3, %v11374_v3 }
 0x44d   :  { %v3197_v9 = vpop.f32.mrb[20].mxu0 }
 0x44e   :  { %v11398_v35 = vadd.f32 %v11277_v15, %v3197_v9  ;;  %v3199_v61 = vpop.f32.mrb[21].mxu0 }
 0x44f   :  { %v3200_v13 = vpop.f32.mrb[22].mxu0 }
 0x450   :  { %15797 = vst [vmem:[#allocation18_spill] sm:$0xff] %v11398_v35  ;;  %v11401_v10 = vadd.f32 %v11283_v37, %v3200_v13  ;;  %v3202_v44 = vpop.f32.mrb[23].mxu0  ;;  %v11415_v37 = vpop.f32.mrb[47].mxu1  ;;  %v3772_v13 = vmul.f32 %v11345_v58, %v11345_v58 }
 0x451   :  { %v3703_v44 = vadd.f32 %v11352_v29, %v11345_v58  ;;  %v3775_v58 = vmul.f32 %v11359_v22, %v11359_v22 }
 0x452   :  { %15798 = vst [vmem:[#allocation19_spill] sm:$0xff] %v11401_v10 }
 0x455   :  { %v3205_v54 = vpop.f32.mrb[24].mxu0 }
 0x456   :  { %v11411_v48 = vadd.f32 %v11292_v14, %v3205_v54  ;;  %v3207_v15 = vpop.f32.mrb[25].mxu0  ;;  %v11442_v54 = vpop.f32.mrb[48].mxu1 }
 0x457   :  { %v3208_v26 = vpop.f32.mrb[26].mxu0  ;;  %v11444_v15 = vpop.f32.mrb[49].mxu1 }
 0x458   :  { %15799 = vst [vmem:[#allocation20_spill] sm:$0xff] %v11411_v48  ;;  %v11419_v21 = vadd.f32 %v11296_v23, %v3208_v26  ;;  %v3210_v49 = vpop.f32.mrb[27].mxu0  ;;  %v3773_v23 = vmul.f32 %v11352_v29, %v11352_v29 }
 0x459   :  { %v3704_v49 = vadd.f32 %v3703_v44, %v11356_v33  ;;  %v3776_v44 = vmul.f32 %v11367_v8, %v11367_v8 }
 0x45a   :  { %15800 = vst [vmem:[#allocation21_spill] sm:$0xff] %v11419_v21  ;;  %v3836_v26 = vadd.f32 %v3773_v23, %v3772_v13 }
 0x45d   :  { %v3213_v32 = vpop.f32.mrb[28].mxu0 }
 0x45e   :  { %v11425_v14 = vadd.f32 %v11290_v7, %v3213_v32  ;;  %v3215_v60 = vpop.f32.mrb[29].mxu0  ;;  %v3774_v7 = vmul.f32 %v11356_v33, %v11356_v33 }
 0x45f   :  { %v3216_v43 = vpop.f32.mrb[30].mxu0  ;;  %v11450_v60 = vpop.f32.mrb[50].mxu1 }
 0x460   :  { %15801 = vst [vmem:[#allocation22_spill] sm:$0xff] %v11425_v14  ;;  %v11429_v9 = vadd.f32 %v11294_v51, %v3216_v43  ;;  %v3218_v61 = vpop.f32.mrb[31].mxu0  ;;  %v3837_v29 = vadd.f32 %v3836_v26, %v3774_v7 }
 0x461   :  { %v11452_v61 = vpop.f32.mrb[51].mxu1 }
 0x462   :  { %15802 = vst [vmem:[#allocation23_spill] sm:$0xff] %v11429_v9  ;;  %v3838_v63 = vadd.f32 %v3837_v29, %v3775_v58  ;;  %v3778_v29 = vmul.f32 %v11377_v59, %v11377_v59 }
 0x464   :  { %v3839_v26 = vadd.f32 %v3838_v63, %v3776_v44 }
 0x465   :  { %v3221_v51 = vpop.f32.mrb[32].mxu0 }
 0x466   :  { %v11448_v55 = vadd.f32 %v11302_v12, %v3221_v51  ;;  %v3223_v32 = vpop.f32.mrb[33].mxu0  ;;  %v3705_v12 = vadd.f32 %v3704_v49, %v11359_v22  ;;  %v3840_v63 = vadd.f32 %v3839_v26, %v3777_v2  ;;  %v3780_v2 = vmul.f32 %v11387_v41, %v11387_v41 }
 0x467   :  { %v3224_v43 = vpop.f32.mrb[34].mxu0  ;;  %v9786_v32 = vld [vmem:[%s15626_s5 + $0x18] sm:$0xff]  }
 0x468   :  { %v11458_v23 = vadd.f32 %v11306_v1, %v3224_v43  ;;  %v3226_v13 = vpop.f32.mrb[35].mxu0  ;;  %v3706_v51 = vadd.f32 %v3705_v12, %v11367_v8  ;;  %6475 = vmatpush1.bf16.msra.mxu1 %v9786_v32  ;;  %v3841_v22 = vadd.f32 %v3840_v63, %v3778_v29  ;;  %v9787_v32 = vld [vmem:[%s15626_s5 + $0x20] sm:$0xff]  }
 0x469   :  { %v15805_v13 = vmov 0  }
 0x46a   :  { %15803 = vst [vmem:[#allocation24_spill] sm:$0xff] %v11458_v23  ;;  %6476 = vmatprep.subr.bf16.mxu1 %v15805_v13  ;;  %v3707_v58 = vadd.f32 %v3706_v51, %v11374_v3 }
 0x46c   :  { %v3708_v8 = vadd.f32 %v3707_v58, %v11377_v59  ;;  %6477 = vmatpush1.bf16.msra.mxu1 %v9787_v32 }
 0x46d   :  { %v3229_v7 = vpop.f32.mrb[36].mxu0  ;;  %6478 = vmatprep.subr.bf16.mxu1 %v15805_v13 }
 0x46e   :  { %v11470_v1 = vadd.f32 %v11300_v52, %v3229_v7  ;;  %v3231_v43 = vpop.f32.mrb[37].mxu0  ;;  %v3779_v52 = vmul.f32 %v11380_v40, %v11380_v40  ;;  %v11485_v7 = vpop.f32.mrb[52].mxu1 }
 0x46f   :  { %v3232_v49 = vpop.f32.mrb[38].mxu0  ;;  %v11487_v43 = vpop.f32.mrb[53].mxu1 }
 0x470   :  { %15804 = vst [vmem:[#allocation25_spill] sm:$0xff] %v11470_v1  ;;  %v11477_v12 = vadd.f32 %v11304_v18, %v3232_v49  ;;  %v3234_v44 = vpop.f32.mrb[39].mxu0  ;;  %v3709_v18 = vadd.f32 %v3708_v8, %v11380_v40  ;;  %v11495_v58 = vpop.f32.mrb[54].mxu1  ;;  %v3842_v63 = vadd.f32 %v3841_v22, %v3779_v52 }
 0x471   :  { %v11497_v44 = vpop.f32.mrb[55].mxu1 }
 0x472   :  { %v3710_v59 = vadd.f32 %v3709_v18, %v11387_v41  ;;  %v3843_v3 = vadd.f32 %v3842_v63, %v3780_v2 }
 0x474   :  { %v3711_v32 = vadd.f32 %v3710_v59, %v11394_v4 }
 0x475   :  { %v3237_v51 = vpop.f32.mrb[40].mxu0 }
 0x476   :  { %v11493_v26 = vadd.f32 %v11312_v0, %v3237_v51  ;;  %v3239_v49 = vpop.f32.mrb[41].mxu0  ;;  %v3781_v0 = vmul.f32 %v11394_v4, %v11394_v4  ;;  %v3782_v51 = vmul.f32 %v11398_v35, %v11398_v35  ;;  %v3712_v18 = vadd.f32 %v3711_v32, %v11398_v35 }
 0x477   :  { %v3240_v29 = vpop.f32.mrb[42].mxu0  ;;  %v9788_v49 = vld [vmem:[%s15626_s5 + $0x28] sm:$0xff]  }
 0x478   :  { %15806 = vst [vmem:[#allocation26_spill] sm:$0xff] %v11493_v26  ;;  %v11502_v8 = vadd.f32 %v11316_v17, %v3240_v29  ;;  %v3242_v40 = vpop.f32.mrb[43].mxu0  ;;  %v3844_v52 = vadd.f32 %v3843_v3, %v3781_v0  ;;  %6479 = vmatpush1.bf16.msra.mxu1 %v9788_v49  ;;  %v3783_v29 = vmul.f32 %v11401_v10, %v11401_v10  ;;  %v9789_v49 = vld [vmem:[%s15626_s5 + $0x30] sm:$0xff]  }
 0x479   :  { %6480 = vmatprep.subr.bf16.mxu1 %v15805_v13  ;;  %v3713_v3 = vadd.f32 %v3712_v18, %v11401_v10  ;;  %v3784_v0 = vmul.f32 %v11411_v48, %v11411_v48  ;;  %v9790_v10 = vld [vmem:[%s15626_s5 + $0x38] sm:$0xff]  }
 0x47a   :  { %15807 = vst [vmem:[#allocation27_spill] sm:$0xff] %v11502_v8  ;;  %v3845_v59 = vadd.f32 %v3844_v52, %v3782_v51  ;;  %v11529_v51 = vpop.f32.mrb[56].mxu1 }
 0x47b   :  { %v3714_v32 = vadd.f32 %v3713_v3, %v11411_v48  ;;  %v11531_v52 = vpop.f32.mrb[57].mxu1 }
 0x47c   :  { %6481 = vmatpush1.bf16.msra.mxu1 %v9789_v49 }
 0x47d   :  { %v3245_v22 = vpop.f32.mrb[44].mxu0  ;;  %6482 = vmatprep.subr.bf16.mxu1 %v15805_v13  ;;  %v3715_v3 = vadd.f32 %v3714_v32, %v11419_v21 }
 0x47e   :  { %v11514_v17 = vadd.f32 %v11310_v45, %v3245_v22  ;;  %v3247_v40 = vpop.f32.mrb[45].mxu0  ;;  %v3846_v45 = vadd.f32 %v3845_v59, %v3783_v29 }
 0x47f   :  { %v3248_v2 = vpop.f32.mrb[46].mxu0 }
 0x480   :  { %v11520_v63 = vadd.f32 %v11314_v5, %v3248_v2  ;;  %v3250_v4 = vpop.f32.mrb[47].mxu0  ;;  %v3847_v5 = vadd.f32 %v3846_v45, %v3784_v0  ;;  %v11538_v2 = vpop.f32.mrb[58].mxu1  ;;  %v3786_v0 = vmul.f32 %v11425_v14, %v11425_v14  ;;  %6483 = vmatpush1.bf16.msra.mxu1 %v9790_v10 }
 0x481   :  { %v3785_v4 = vmul.f32 %v11419_v21, %v11419_v21  ;;  %v11540_v29 = vpop.f32.mrb[59].mxu1  ;;  %v3788_v21 = vmul.f32 %v11448_v55, %v11448_v55  ;;  %6484 = vmatprep.subr.bf16.mxu1 %v15805_v13 }
 0x485   :  { %v3253_v22 = vpop.f32.mrb[48].mxu0 }
 0x486   :  { %v11536_v18 = vadd.f32 %v11322_v28, %v3253_v22  ;;  %v3255_v40 = vpop.f32.mrb[49].mxu0  ;;  %v3848_v28 = vadd.f32 %v3847_v5, %v3785_v4  ;;  %v3716_v22 = vadd.f32 %v3715_v3, %v11425_v14  ;;  %v3701_v14 = vld [vmem:[%s15623_s2] sm:$0x1] }
 0x487   :  { %v3256_v59 = vpop.f32.mrb[50].mxu0  ;;  %v3787_v40 = vmul.f32 %v11429_v9, %v11429_v9 }
 0x488   :  { %v11547_v45 = vadd.f32 %v11326_v24, %v3256_v59  ;;  %v3258_v48 = vpop.f32.mrb[51].mxu0  ;;  %v3849_v49 = vadd.f32 %v3848_v28, %v3786_v0  ;;  %v3717_v32 = vadd.f32 %v3716_v22, %v11429_v9  ;;  %v3789_v22 = vmul.f32 %v11458_v23, %v11458_v23 }
 0x48a   :  { %v3850_v4 = vadd.f32 %v3849_v49, %v3787_v40  ;;  %v3718_v59 = vadd.f32 %v3717_v32, %v11448_v55  ;;  %v11574_v49 = vpop.f32.mrb[60].mxu1 }
 0x48c   :  { %v3851_v28 = vadd.f32 %v3850_v4, %v3788_v21  ;;  %v3719_v9 = vadd.f32 %v3718_v59, %v11458_v23  ;;  %v4114_v59 = vld [vmem:[#allocation5] sm:$0x1]  ;;  %v3791_v23 = vmul.f32 %v11477_v12, %v11477_v12 }
 0x48d   :  { %v3261_v35 = vpop.f32.mrb[52].mxu0  ;;  %9704 = vpush %v4114_v59 }
 0x48e   :  { %v11559_v24 = vadd.f32 %v11320_v27, %v3261_v35  ;;  %v3263_v48 = vpop.f32.mrb[53].mxu0  ;;  %v3790_v27 = vmul.f32 %v11470_v1, %v11470_v1  ;;  %v9791_v35 = vld [vmem:[%s15626_s5 + $0x40] sm:$0xff]   ;;  %v3852_v40 = vadd.f32 %v3851_v28, %v3789_v22 }
 0x48f   :  { %v3264_v5 = vpop.f32.mrb[54].mxu0  ;;  %6485 = vmatpush1.bf16.msra.mxu1 %v9791_v35  ;;  %v11580_v48 = vpop.f32.mrb[61].mxu1  ;;  %v3792_v35 = vmul.f32 %v11493_v26, %v11493_v26 }
 0x490   :  { %v11564_v3 = vadd.f32 %v11324_v46, %v3264_v5  ;;  %v3266_v0 = vpop.f32.mrb[55].mxu0  ;;  %v3720_v46 = vadd.f32 %v3719_v9, %v11470_v1  ;;  %v11582_v4 = vpop.f32.mrb[62].mxu1  ;;  %6486 = vmatprep.subr.bf16.mxu1 %v15805_v13 }
 0x491   :  { %v3853_v0 = vadd.f32 %v3852_v40, %v3790_v27  ;;  %v9792_v27 = vld [vmem:[%s15626_s5 + $0x48] sm:$0xff]  }
 0x492   :  { %v3721_v22 = vadd.f32 %v3720_v46, %v11477_v12 }
 0x493   :  { %6487 = vmatpush1.bf16.msra.mxu1 %v9792_v27 }
 0x494   :  { %6488 = vmatprep.subr.bf16.mxu1 %v15805_v13 }
 0x495   :  { %v3269_v10 = vpop.f32.mrb[56].mxu0 }
 0x496   :  { %v11578_v21 = vadd.f32 %v11332_v38, %v3269_v10  ;;  %v3271_v32 = vpop.f32.mrb[57].mxu0  ;;  %v11590_v38 = vpop.f32.mrb[63].mxu1  ;;  %v3854_v10 = vadd.f32 %v3853_v0, %v3791_v23  ;;  %v3794_v0 = vmul.f32 %v11514_v17, %v11514_v17 }
 0x497   :  { %v3272_v5 = vpop.f32.mrb[58].mxu0  ;;  %v3722_v32 = vadd.f32 %v3721_v22, %v11493_v26 }
 0x498   :  { %v11588_v28 = vadd.f32 %v11336_v20, %v3272_v5  ;;  %v3274_v9 = vpop.f32.mrb[59].mxu0  ;;  %v3855_v1 = vadd.f32 %v3854_v10, %v3792_v35  ;;  %v3793_v20 = vmul.f32 %v11502_v8, %v11502_v8 }
 0x499   :  { %v3723_v23 = vadd.f32 %v3722_v32, %v11502_v8  ;;  %v3796_v32 = vmul.f32 %v11536_v18, %v11536_v18 }
 0x49a   :  { %v3856_v35 = vadd.f32 %v3855_v1, %v3793_v20 }
 0x49b   :  { %v3724_v10 = vadd.f32 %v3723_v23, %v11514_v17 }
 0x49c   :  { %v3857_v26 = vadd.f32 %v3856_v35, %v3794_v0 }
 0x49d   :  { %v3277_v40 = vpop.f32.mrb[60].mxu0 }
 0x49e   :  { %v11602_v5 = vadd.f32 %v11330_v57, %v3277_v40  ;;  %v3279_v59 = vpop.f32.mrb[61].mxu0  ;;  %v3795_v57 = vmul.f32 %v11520_v63, %v11520_v63  ;;  %v3725_v40 = vadd.f32 %v3724_v10, %v11520_v63  ;;  %v3798_v10 = vmul.f32 %v11559_v24, %v11559_v24 }
 0x49f   :  { %v3280_v46 = vpop.f32.mrb[62].mxu0 }
 0x4a0   :  { %v11609_v9 = vadd.f32 %v11334_v34, %v3280_v46  ;;  %v3282_v22 = vpop.f32.mrb[63].mxu0  ;;  %v3858_v46 = vadd.f32 %v3857_v26, %v3795_v57  ;;  %v3726_v1 = vadd.f32 %v3725_v40, %v11536_v18 }
 0x4a1   :  { %v3797_v22 = vmul.f32 %v11547_v45, %v11547_v45 }
 0x4a2   :  { %v3859_v0 = vadd.f32 %v3858_v46, %v3796_v32  ;;  %v3727_v35 = vadd.f32 %v3726_v1, %v11547_v45  ;;  %v3799_v32 = vmul.f32 %v11564_v3, %v11564_v3 }
 0x4a5   :  { %v3285_v27 = vpop.f32.mrb[64].mxu0 }
 0x4a6   :  { %v11618_v59 = vadd.f32 %v11342_v56, %v3285_v27  ;;  %v3287_v8 = vpop.f32.mrb[65].mxu0  ;;  %v3860_v27 = vadd.f32 %v3859_v0, %v3797_v22 }
 0x4a7   :  { %v3288_v34 = vpop.f32.mrb[66].mxu0  ;;  %v3728_v8 = vadd.f32 %v3727_v35, %v11559_v24 }
 0x4a8   :  { %v11622_v20 = vadd.f32 %v11349_v53, %v3288_v34  ;;  %v3290_v23 = vpop.f32.mrb[67].mxu0  ;;  %v3861_v40 = vadd.f32 %v3860_v27, %v3798_v10  ;;  %v3801_v10 = vmul.f32 %v11588_v28, %v11588_v28 }
 0x4a9   :  { %v3729_v1 = vadd.f32 %v3728_v8, %v11564_v3  ;;  %v3800_v23 = vmul.f32 %v11578_v21, %v11578_v21  ;;  %v3802_v8 = vmul.f32 %v11602_v5, %v11602_v5 }
 0x4aa   :  { %v3862_v0 = vadd.f32 %v3861_v40, %v3799_v32 }
 0x4ab   :  { %v3730_v22 = vadd.f32 %v3729_v1, %v11578_v21 }
 0x4ac   :  { %v3863_v35 = vadd.f32 %v3862_v0, %v3800_v23  ;;  %v3803_v23 = vmul.f32 %v11609_v9, %v11609_v9 }
 0x4ad   :  { %v3293_v56 = vpop.f32.mrb[68].mxu0 }
 0x4ae   :  { %v11631_v26 = vadd.f32 %v11340_v25, %v3293_v56  ;;  %v3295_v57 = vpop.f32.mrb[69].mxu0  ;;  %v3864_v32 = vadd.f32 %v3863_v35, %v3801_v10 }
 0x4af   :  { %v3296_v53 = vpop.f32.mrb[70].mxu0  ;;  %v3731_v57 = vadd.f32 %v3730_v22, %v11588_v28  ;;  %v3804_v22 = vmul.f32 %v11618_v59, %v11618_v59 }
 0x4b0   :  { %15808 = vst [vmem:[#allocation28_spill] sm:$0xff] %v11631_v26  ;;  %v11636_v34 = vadd.f32 %v11347_v30, %v3296_v53  ;;  %v3298_v46 = vpop.f32.mrb[71].mxu0  ;;  %v3865_v1 = vadd.f32 %v3864_v32, %v3802_v8 }
 0x4b1   :  { %v3732_v46 = vadd.f32 %v3731_v57, %v11602_v5 }
 0x4b2   :  { %15809 = vst [vmem:[#allocation29_spill] sm:$0xff] %v11636_v34 }
 0x4b3   :  { %v3733_v0 = vadd.f32 %v3732_v46, %v11609_v9  ;;  %v3806_v46 = vmul.f32 %v11631_v26, %v11631_v26 }
 0x4b5   :  { %v3301_v25 = vpop.f32.mrb[72].mxu0  ;;  %v3734_v35 = vadd.f32 %v3733_v0, %v11618_v59 }
 0x4b6   :  { %v11645_v56 = vadd.f32 %v11364_v50, %v3301_v25  ;;  %v3303_v27 = vpop.f32.mrb[73].mxu0 }
 0x4b7   :  { %v3304_v30 = vpop.f32.mrb[74].mxu0  ;;  %v3735_v32 = vadd.f32 %v3734_v35, %v11622_v20 }
 0x4b8   :  { %v11651_v53 = vadd.f32 %v11371_v42, %v3304_v30  ;;  %v3306_v40 = vpop.f32.mrb[75].mxu0  ;;  %v3866_v30 = vadd.f32 %v3865_v1, %v3803_v23 }
 0x4b9   :  { %v3805_v40 = vmul.f32 %v11622_v20, %v11622_v20 }
 0x4ba   :  { %v3867_v8 = vadd.f32 %v3866_v30, %v3804_v22  ;;  %v3807_v22 = vmul.f32 %v11636_v34, %v11636_v34 }
 0x4bd   :  { %v3309_v50 = vpop.f32.mrb[76].mxu0 }
 0x4be   :  { %v11660_v25 = vadd.f32 %v11362_v47, %v3309_v50  ;;  %v3311_v27 = vpop.f32.mrb[77].mxu0  ;;  %v3868_v50 = vadd.f32 %v3867_v8, %v3805_v40  ;;  %s9705_s12 = spop %9704 }
 0x4bf   :  { %v3312_v42 = vpop.f32.mrb[78].mxu0  ;;  %v3736_v27 = vadd.f32 %v3735_v32, %v11631_v26 }
 0x4c0   :  { %v11664_v10 = vadd.f32 %v11369_v39, %v3312_v42  ;;  %v3314_v57 = vpop.f32.mrb[79].mxu0  ;;  %v3869_v0 = vadd.f32 %v3868_v50, %v3806_v46  ;;  %v3809_v46 = vmul.f32 %v11651_v53, %v11651_v53 }
 0x4c1   :  { %v3737_v35 = vadd.f32 %v3736_v27, %v11636_v34  ;;  %v3808_v57 = vmul.f32 %v11645_v56, %v11645_v56  ;;  %v3810_v27 = vmul.f32 %v11660_v25, %v11660_v25 }
 0x4c2   :  { %v3870_v8 = vadd.f32 %v3869_v0, %v3807_v22 }
 0x4c3   :  { %v3738_v40 = vadd.f32 %v3737_v35, %v11645_v56 }
 0x4c4   :  { %v3871_v32 = vadd.f32 %v3870_v8, %v3808_v57  ;;  %v3811_v57 = vmul.f32 %v11664_v10, %v11664_v10 }
 0x4c5   :  { %v3317_v47 = vpop.f32.mrb[80].mxu0 }
 0x4c6   :  { %v11673_v1 = vadd.f32 %v11384_v62, %v3317_v47  ;;  %v3319_v23 = vpop.f32.mrb[81].mxu0  ;;  %v3872_v22 = vadd.f32 %v3871_v32, %v3809_v46 }
 0x4c7   :  { %v3320_v39 = vpop.f32.mrb[82].mxu0  ;;  %v3739_v23 = vadd.f32 %v3738_v40, %v11651_v53 }
 0x4c8   :  { %v11678_v42 = vadd.f32 %v11391_v11, %v3320_v39  ;;  %v3322_v30 = vpop.f32.mrb[83].mxu0  ;;  %v3873_v35 = vadd.f32 %v3872_v22, %v3810_v27  ;;  %v3812_v40 = vmul.f32 %v11673_v1, %v11673_v1 }
 0x4c9   :  { %v3740_v30 = vadd.f32 %v3739_v23, %v11660_v25 }
 0x4cb   :  { %v3741_v8 = vadd.f32 %v3740_v30, %v11664_v10 }
 0x4cd   :  { %v3325_v62 = vpop.f32.mrb[84].mxu0  ;;  %v3742_v32 = vadd.f32 %v3741_v8, %v11673_v1 }
 0x4ce   :  { %v11687_v47 = vadd.f32 %v11382_v16, %v3325_v62  ;;  %v3327_v50 = vpop.f32.mrb[85].mxu0 }
 0x4cf   :  { %v3328_v11 = vpop.f32.mrb[86].mxu0  ;;  %v3743_v22 = vadd.f32 %v3742_v32, %v11678_v42  ;;  %v9793_v32 = vld [vmem:[%s15626_s5 + $0x50] sm:$0xff]  }
 0x4d0   :  { %v11693_v39 = vadd.f32 %v11389_v6, %v3328_v11  ;;  %v3330_v0 = vpop.f32.mrb[87].mxu0  ;;  %v3874_v11 = vadd.f32 %v3873_v35, %v3811_v57  ;;  %v3814_v30 = vmul.f32 %v11687_v47, %v11687_v47  ;;  %6489 = vmatpush1.bf16.msra.mxu1 %v9793_v32 }
 0x4d1   :  { %v3813_v0 = vmul.f32 %v11678_v42, %v11678_v42  ;;  %6490 = vmatprep.subr.bf16.mxu1 %v15805_v13 }
 0x4d2   :  { %v3875_v27 = vadd.f32 %v3874_v11, %v3812_v40  ;;  %v3815_v40 = vmul.f32 %v11693_v39, %v11693_v39 }
 0x4d5   :  { %v3333_v16 = vpop.f32.mrb[88].mxu0 }
 0x4d6   :  { %v11702_v62 = vadd.f32 %v11408_v31, %v3333_v16  ;;  %v3335_v50 = vpop.f32.mrb[89].mxu0  ;;  %v3876_v16 = vadd.f32 %v3875_v27, %v3813_v0  ;;  %v9796_v27 = vld [vmem:[%s15626_s5 + $0x200] sm:$0xff]  }
 0x4d7   :  { %v3336_v6 = vpop.f32.mrb[90].mxu0  ;;  %v3744_v50 = vadd.f32 %v3743_v22, %v11687_v47  ;;  %8840 = vmatprep.subr.bf16.mxu0 %v9796_v27 }
 0x4d8   :  { %v11706_v46 = vadd.f32 %v11415_v37, %v3336_v6  ;;  %v3338_v23 = vpop.f32.mrb[91].mxu0  ;;  %v3877_v8 = vadd.f32 %v3876_v16, %v3814_v30  ;;  %v9794_v30 = vld [vmem:[%s15626_s5 + $0x58] sm:$0xff]   ;;  %8841 = vmatpush3.bf16.msra.mxu0 %v9796_v27 }
 0x4d9   :  { %v3745_v23 = vadd.f32 %v3744_v50, %v11693_v39  ;;  %6491 = vmatpush1.bf16.msra.mxu1 %v9794_v30  ;;  %v9797_v30 = vld [vmem:[%s15626_s5 + $0x68] sm:$0xff]  }
 0x4da   :  { %v3878_v0 = vadd.f32 %v3877_v8, %v3815_v40  ;;  %v3817_v16 = vmul.f32 %v11706_v46, %v11706_v46  ;;  %6492 = vmatprep.subr.bf16.mxu1 %v15805_v13 }
 0x4db   :  { %v3746_v22 = vadd.f32 %v3745_v23, %v11702_v62 }
 0x4dd   :  { %v3341_v31 = vpop.f32.mrb[92].mxu0  ;;  %v3747_v40 = vadd.f32 %v3746_v22, %v11706_v46 }
 0x4de   :  { %v11715_v35 = vadd.f32 %v11406_v19, %v3341_v31  ;;  %v3343_v57 = vpop.f32.mrb[93].mxu0  ;;  %v3816_v19 = vmul.f32 %v11702_v62, %v11702_v62 }
 0x4df   :  { %v3344_v37 = vpop.f32.mrb[94].mxu0 }
 0x4e0   :  { %v11720_v6 = vadd.f32 %v11413_v36, %v3344_v37  ;;  %v3346_v11 = vpop.f32.mrb[95].mxu0  ;;  %v3879_v31 = vadd.f32 %v3878_v0, %v3816_v19  ;;  %v9798_v37 = vld [vmem:[%s15626_s5 + $0x208] sm:$0xff]   ;;  %v3748_v27 = vadd.f32 %v3747_v40, %v11715_v35  ;;  %v9799_v0 = vld [vmem:[%s15626_s5 + $0x210] sm:$0xff]  }
 0x4e1   :  { %v3818_v11 = vmul.f32 %v11715_v35, %v11715_v35  ;;  %8842 = vmatprep.subr.bf16.mxu0 %v9798_v37 }
 0x4e2   :  { %8843 = vmatpush3.bf16.msra.mxu0 %v9798_v37  ;;  %v3880_v19 = vadd.f32 %v3879_v31, %v3817_v16  ;;  %v3749_v31 = vadd.f32 %v3748_v27, %v11720_v6 }
 0x4e3   :  { %8844 = vmatprep.subr.bf16.mxu0 %v9799_v0 }
 0x4e4   :  { %v3881_v22 = vadd.f32 %v3880_v19, %v3818_v11 }
 0x4e5   :  { %v3349_v36 = vpop.f32.mrb[96].mxu0 }
 0x4e6   :  { %v11739_v50 = vadd.f32 %v11444_v15, %v3349_v36  ;;  %v3351_v57 = vpop.f32.mrb[97].mxu0  ;;  %v9795_v15 = vld [vmem:[%s15626_s5 + $0x60] sm:$0xff]   ;;  %8845 = vmatpush3.bf16.msra.mxu0 %v9799_v0 }
 0x4e7   :  { %v3352_v8 = vpop.f32.mrb[98].mxu0  ;;  %6493 = vmatpush1.bf16.msra.mxu1 %v9795_v15 }
 0x4e8   :  { %v11748_v32 = vadd.f32 %v11452_v61, %v3352_v8  ;;  %v3354_v23 = vpop.f32.mrb[99].mxu0  ;;  %v3819_v61 = vmul.f32 %v11720_v6, %v11720_v6  ;;  %6494 = vmatprep.subr.bf16.mxu1 %v15805_v13  ;;  %v3820_v16 = vmul.f32 %v11739_v50, %v11739_v50  ;;  %v9801_v8 = vld [vmem:[%s15626_s5 + $0x218] sm:$0xff]  }
 0x4e9   :  { %v3750_v23 = vadd.f32 %v3749_v31, %v11739_v50  ;;  %8846 = vmatprep.subr.bf16.mxu0 %v9801_v8 }
 0x4ea   :  { %v3882_v11 = vadd.f32 %v3881_v22, %v3819_v61  ;;  %8847 = vmatpush3.bf16.msra.mxu0 %v9801_v8  ;;  %v3821_v0 = vmul.f32 %v11748_v32, %v11748_v32 }
 0x4eb   :  { %6495 = vmatpush1.bf16.msra.mxu1 %v9797_v30  ;;  %v3751_v22 = vadd.f32 %v3750_v23, %v11748_v32 }
 0x4ec   :  { %6496 = vmatprep.subr.bf16.mxu1 %v15805_v13  ;;  %v3883_v27 = vadd.f32 %v3882_v11, %v3820_v16 }
 0x4ed   :  { %v3357_v36 = vpop.f32.mrb[100].mxu0 }
 0x4ee   :  { %v11768_v57 = vadd.f32 %v11442_v54, %v3357_v36  ;;  %v3359_v37 = vpop.f32.mrb[101].mxu0  ;;  %v9800_v54 = vld [vmem:[%s15626_s5 + $0x70] sm:$0xff]   ;;  %v3884_v36 = vadd.f32 %v3883_v27, %v3821_v0 }
 0x4ef   :  { %v3360_v40 = vpop.f32.mrb[102].mxu0  ;;  %6497 = vmatpush1.bf16.msra.mxu1 %v9800_v54 }
 0x4f0   :  { %v11775_v15 = vadd.f32 %v11450_v60, %v3360_v40  ;;  %v3362_v19 = vpop.f32.mrb[103].mxu0  ;;  %v3822_v60 = vmul.f32 %v11768_v57, %v11768_v57  ;;  %6498 = vmatprep.subr.bf16.mxu1 %v15805_v13  ;;  %v3752_v30 = vadd.f32 %v3751_v22, %v11768_v57 }
 0x4f2   :  { %15810 = vst [vmem:[#allocation30_spill] sm:$0xff] %v11775_v15  ;;  %v3885_v8 = vadd.f32 %v3884_v36, %v3822_v60  ;;  %v3823_v40 = vmul.f32 %v11775_v15, %v11775_v15  ;;  %v3753_v19 = vadd.f32 %v3752_v30, %v11775_v15 }
 0x4f4   :  { %v3886_v27 = vadd.f32 %v3885_v8, %v3823_v40 }
 0x4f5   :  { %v3365_v61 = vpop.f32.mrb[104].mxu0 }
 0x4f6   :  { %v11789_v31 = vadd.f32 %v11487_v43, %v3365_v61  ;;  %v3367_v37 = vpop.f32.mrb[105].mxu0 }
 0x4f7   :  { %v3368_v16 = vpop.f32.mrb[106].mxu0 }
 0x4f8   :  { %15811 = vst [vmem:[#allocation31_spill] sm:$0xff] %v11789_v31  ;;  %v11794_v11 = vadd.f32 %v11497_v44, %v3368_v16  ;;  %v3370_v23 = vpop.f32.mrb[107].mxu0  ;;  %v3824_v54 = vmul.f32 %v11789_v31, %v11789_v31  ;;  %v3754_v0 = vadd.f32 %v3753_v19, %v11789_v31 }
 0x4fa   :  { %15812 = vst [vmem:[#allocation32_spill] sm:$0xff] %v11794_v11  ;;  %v3887_v22 = vadd.f32 %v3886_v27, %v3824_v54  ;;  %v3825_v60 = vmul.f32 %v11794_v11, %v11794_v11  ;;  %v3755_v37 = vadd.f32 %v3754_v0, %v11794_v11 }
 0x4fc   :  { %v3888_v40 = vadd.f32 %v3887_v22, %v3825_v60 }
 0x4fd   :  { %v3373_v43 = vpop.f32.mrb[108].mxu0 }
 0x4fe   :  { %v11803_v61 = vadd.f32 %v11485_v7, %v3373_v43  ;;  %v3375_v36 = vpop.f32.mrb[109].mxu0 }
 0x4ff   :  { %v3376_v44 = vpop.f32.mrb[110].mxu0 }
 0x500   :  { %15813 = vst [vmem:[#allocation33_spill] sm:$0xff] %v11803_v61  ;;  %v3826_v30 = vmul.f32 %v11803_v61, %v11803_v61  ;;  %v11809_v16 = vadd.f32 %v11495_v58, %v3376_v44  ;;  %v3378_v8 = vpop.f32.mrb[111].mxu0  ;;  %v3756_v23 = vadd.f32 %v3755_v37, %v11803_v61 }
 0x502   :  { %v3889_v19 = vadd.f32 %v3888_v40, %v3826_v30  ;;  %v3827_v54 = vmul.f32 %v11809_v16, %v11809_v16  ;;  %v3757_v27 = vadd.f32 %v3756_v23, %v11809_v16 }
 0x504   :  { %v3890_v11 = vadd.f32 %v3889_v19, %v3827_v54 }
 0x505   :  { %v3381_v7 = vpop.f32.mrb[112].mxu0 }
 0x506   :  { %v11816_v43 = vadd.f32 %v11531_v52, %v3381_v7  ;;  %v3383_v0 = vpop.f32.mrb[113].mxu0 }
 0x507   :  { %v3384_v36 = vpop.f32.mrb[114].mxu0  ;;  %v9802_v0 = vld [vmem:[%s15626_s5 + $0x220] sm:$0xff]  }
 0x508   :  { %v3758_v58 = vadd.f32 %v3757_v27, %v11816_v43  ;;  %v3828_v22 = vmul.f32 %v11816_v43, %v11816_v43  ;;  %v11822_v60 = vadd.f32 %v11540_v29, %v3384_v36  ;;  %v3386_v44 = vpop.f32.mrb[115].mxu0  ;;  %8848 = vmatprep.subr.bf16.mxu0 %v9802_v0 }
 0x509   :  { %8849 = vmatpush3.bf16.msra.mxu0 %v9802_v0  ;;  %v9806_v0 = vld [vmem:[%s15626_s5 + $0x80] sm:$0xff]  }
 0x50a   :  { %15814 = vst [vmem:[#allocation34_spill] sm:$0xff] %v11822_v60  ;;  %v3891_v37 = vadd.f32 %v3890_v11, %v3828_v22  ;;  %v3759_v30 = vadd.f32 %v3758_v58, %v11822_v60  ;;  %v3829_v8 = vmul.f32 %v11822_v60, %v11822_v60  ;;  %v9803_v22 = vld [vmem:[%s15626_s5 + $0x78] sm:$0xff]  }
 0x50b   :  { %6499 = vmatpush1.bf16.msra.mxu1 %v9803_v22 }
 0x50c   :  { %v3892_v52 = vadd.f32 %v3891_v37, %v3829_v8  ;;  %v4579_v37 = vld [vmem:[#allocation3 + $0x1] sm:$0xff]  ;;  %6757 = vmatprep.subr.bf16.mxu1 %v15805_v13 }
 0x50d   :  { %v3389_v40 = vpop.f32.mrb[116].mxu0 }
 0x50e   :  { %v11828_v23 = vadd.f32 %v11529_v51, %v3389_v40  ;;  %v3391_v19 = vpop.f32.mrb[117].mxu0 }
 0x50f   :  { %v3392_v54 = vpop.f32.mrb[118].mxu0 }
 0x510   :  { %v3760_v7 = vadd.f32 %v3759_v30, %v11828_v23  ;;  %v3830_v29 = vmul.f32 %v11828_v23, %v11828_v23  ;;  %v11834_v27 = vadd.f32 %v11538_v2, %v3392_v54  ;;  %v3394_v11 = vpop.f32.mrb[119].mxu0  ;;  %v9804_v2 = vld [vmem:[%s15626_s5 + $0x228] sm:$0xff]   ;;  %v9860_v54 = vld [vmem:[#allocation2] sm:$0xff] }
 0x511   :  { %v4580_v30 = vld [vmem:[#allocation3 + $0x9] sm:$0xff]  ;;  %8850 = vmatprep.subr.bf16.mxu0 %v9804_v2 }
 0x512   :  { %v3893_v36 = vadd.f32 %v3892_v52, %v3830_v29  ;;  %v3761_v58 = vadd.f32 %v3760_v7, %v11834_v27  ;;  %v3831_v51 = vmul.f32 %v11834_v27, %v11834_v27  ;;  %v4643_v52 = vpack.c.bf16 %v4580_v30, %v4579_v37  ;;  %8851 = vmatpush3.bf16.msra.mxu0 %v9804_v2  ;;  %v9805_v11 = vld [vmem:[%s15626_s5 + $0x230] sm:$0xff]   ;;  %v9807_v2 = vld [vmem:[%s15626_s5 + $0x238] sm:$0xff]  }
 0x513   :  { %v11851_v7 = vpack.c.bf16 %v9860_v54, %v9860_v54  ;;  %8852 = vmatprep.subr.bf16.mxu0 %v9805_v11 }
 0x514   :  { %v3894_v44 = vadd.f32 %v3893_v36, %v3831_v51  ;;  %6500 = vmatprep.mubr.bf16.mxu1 %v4643_v52 }
 0x515   :  { %v3397_v8 = vpop.f32.mrb[120].mxu0  ;;  %15815 = vst [vmem:[#allocation35_spill] sm:$0xff] %v11851_v7  ;;  %6501 = vmatmul.mubr.bf16.vlgmr.msra.gmra.mrb[64].mxu1 %v11851_v7  ;;  %v3976_v7 = vlaneseq }
 0x516   :  { %v11849_v40 = vadd.f32 %v11580_v48, %v3397_v8  ;;  %v3399_v19 = vpop.f32.mrb[121].mxu0  ;;  %6758 = vmatpush1.bf16.msra.mxu1 %v9806_v0  ;;  %8853 = vmatpush3.bf16.msra.mxu0 %v9805_v11 }
 0x517   :  { %v3400_v29 = vpop.f32.mrb[122].mxu0  ;;  %6759 = vmatprep.subr.bf16.mxu1 %v15805_v13  ;;  %8854 = vmatprep.subr.bf16.mxu0 %v9807_v2 }
 0x518   :  { %v3762_v48 = vadd.f32 %v3761_v58, %v11849_v40  ;;  %v3832_v36 = vmul.f32 %v11849_v40, %v11849_v40  ;;  %v11864_v51 = vadd.f32 %v11590_v38, %v3400_v29  ;;  %v3402_v22 = vpop.f32.mrb[123].mxu0 }
 0x51a   :  { %v3895_v37 = vadd.f32 %v3894_v44, %v3832_v36  ;;  %v3763_v30 = vadd.f32 %v3762_v48, %v11864_v51  ;;  %v3833_v58 = vmul.f32 %v11864_v51, %v11864_v51  ;;  %8855 = vmatpush3.bf16.msra.mxu0 %v9807_v2 }
 0x51c   :  { %v3896_v38 = vadd.f32 %v3895_v37, %v3833_v58 }
 0x51d   :  { %v3405_v8 = vpop.f32.mrb[124].mxu0 }
 0x51e   :  { %v11875_v52 = vadd.f32 %v11574_v49, %v3405_v8  ;;  %v3407_v19 = vpop.f32.mrb[125].mxu0  ;;  %v9808_v49 = vld [vmem:[%s15626_s5 + $0x88] sm:$0xff]  }
 0x51f   :  { %v3408_v54 = vpop.f32.mrb[126].mxu0  ;;  %6760 = vmatpush1.bf16.msra.mxu1 %v9808_v49  ;;  %v9809_v49 = vld [vmem:[%s15626_s5 + $0x90] sm:$0xff]  }
 0x520   :  { %v3764_v29 = vadd.f32 %v3763_v30, %v11875_v52  ;;  %v3834_v44 = vmul.f32 %v11875_v52, %v11875_v52  ;;  %v11881_v0 = vadd.f32 %v11582_v4, %v3408_v54  ;;  %v3410_v48 = vpop.f32.mrb[127].mxu0  ;;  %6761 = vmatprep.subr.bf16.mxu1 %v15805_v13 }
 0x522   :  { %v3897_v36 = vadd.f32 %v3896_v38, %v3834_v44  ;;  %v3765_v11 = vadd.f32 %v3764_v29, %v11881_v0  ;;  %v3835_v22 = vmul.f32 %v11881_v0, %v11881_v0 }
 0x523   :  { %6762 = vmatpush1.bf16.msra.mxu1 %v9809_v49  ;;  %v15823_v49 = vld [vmem:[#allocation15_spill] sm:$0xff] }
 0x524   :  { %v3766_v2 = vrot.slane %v3765_v11, 4  ;;  %v3898_v37 = vadd.f32 %v3897_v36, %v3835_v22  ;;  %v11896_v22 = vshrl.u32 %v3976_v7, 7  ;;  %6763 = vmatprep.subr.bf16.mxu1 %v15805_v13  ;;  %v15824_v7 = vld [vmem:[#allocation17_spill] sm:$0xff] }
 0x526   :  { %v3767_v30 = vadd.f32 %v3766_v2, %v3765_v11  ;;  %v3899_v58 = vrot.slane %v3898_v37, 4  ;;  %15816 = vst [vmem:[#allocation36_spill] sm:$0xff] %v11896_v22  ;;  %v15831_v11 = vld [vmem:[#allocation25_spill] sm:$0xff] }
 0x528   :  { %v3768_v4 = vrot.slane %v3767_v30, 2  ;;  %v3900_v8 = vadd.f32 %v3899_v58, %v3898_v37 }
 0x52a   :  { %v3769_v19 = vadd.f32 %v3768_v4, %v3767_v30  ;;  %v3901_v38 = vrot.slane %v3900_v8, 2  ;;  %v15818_v4 = vld [vmem:[#allocation10_spill] sm:$0xff] }
 0x52c   :  { %v3770_v54 = vrot.slane %v3769_v19, 1  ;;  %v3902_v29 = vadd.f32 %v3901_v38, %v3900_v8  ;;  %v15829_v8 = vld [vmem:[#allocation23_spill] sm:$0xff]  ;;  %v15830_v38 = vld [vmem:[#allocation24_spill] sm:$0xff] }
 0x52e   :  { %v3771_v44 = vadd.f32 %v3770_v54, %v3769_v19  ;;  %v3903_v48 = vrot.slane %v3902_v29, 1  ;;  %v15819_v19 = vld [vmem:[#allocation11_spill] sm:$0xff] }
 0x530   :  { %v3904_v61 = vadd.f32 %v3903_v48, %v3902_v29  ;;  %v11890_v31 = vmul.f32 0.001953125, %v3771_v44  ;;  %v15821_v29 = vld [vmem:[#allocation13_spill] sm:$0xff]  ;;  %v15827_v44 = vld [vmem:[#allocation20_spill] sm:$0xff]  ;;  %v15832_v48 = vld [vmem:[#allocation26_spill] sm:$0xff] }
 0x532   :  { %v3906_v15 = vmul.f32 0.001953125, %v3904_v61  ;;  %v3907_v36 = vmul.f32 %v11890_v31, %v11890_v31  ;;  %v15817_v61 = vld [vmem:[#allocation9_spill] sm:$0xff]  ;;  %v3952_v26 = vsub.f32 %v11673_v1, %v11890_v31  ;;  %v3953_v41 = vsub.f32 %v11678_v42, %v11890_v31 }
 0x533   :  { %v3954_v54 = vsub.f32 %v11687_v47, %v11890_v31  ;;  %v3955_v30 = vsub.f32 %v11693_v39, %v11890_v31  ;;  %v15834_v1 = vsub.s32 0, %v11896_v22  ;;  %v3958_v60 = vsub.f32 %v11715_v35, %v11890_v31 }
 0x534   :  { %v3908_v2 = vsub.f32 %v3906_v15, %v3907_v36  ;;  %v15820_v15 = vld [vmem:[#allocation12_spill] sm:$0xff]  ;;  %v3959_v58 = vsub.f32 %v11720_v6, %v11890_v31  ;;  %v3960_v47 = vsub.f32 %v11739_v50, %v11890_v31  ;;  %v3961_v39 = vsub.f32 %v11748_v32, %v11890_v31 }
 0x535   :  { %v15837_v35 = vsub.f32 %v11881_v0, %v11890_v31  ;;  %v15838_v50 = vsub.f32 %v15817_v61, %v11890_v31 }
 0x536   :  { %v3909_v37 = vadd.f32 0.8, %v3908_v2  ;;  %v15833_v2 = vld [vmem:[#allocation27_spill] sm:$0xff] }
 0x538   :  { %9855 = vrsqrt.f32 %v3909_v37  ;;  %v9810_v37 = vld [vmem:[%s15626_s5 + $0x98] sm:$0xff]  }
 0x539   :  { %6764 = vmatpush1.bf16.msra.mxu1 %v9810_v37 }
 0x53a   :  { %6765 = vmatprep.subr.bf16.mxu1 %v15805_v13 }
 0x542   :  { %v9856_v34 = vpop.eup %9855 }
 0x543   :  { %v3911_v36 = vmul.f32 %v9856_v34, %v3701_v14  ;;  %v3956_v14 = vsub.f32 %v11702_v62, %v11890_v31  ;;  %v3957_v34 = vsub.f32 %v11706_v46, %v11890_v31  ;;  %v3962_v62 = vsub.f32 %v11768_v57, %v11890_v31  ;;  %v15835_v46 = vld [vmem:[#allocation30_spill] sm:$0xff] }
 0x544   :  { %v15839_v57 = vsub.f32 %v15818_v4, %v11890_v31 }
 0x545   :  { %v12019_v42 = vrot.slane %v3911_v36, %v15834_v1  ;;  %v3963_v36 = vsub.f32 %v15835_v46, %v11890_v31  ;;  %v15836_v1 = vld [vmem:[#allocation31_spill] sm:$0xff]  ;;  %v15840_v46 = vsub.f32 %v11356_v33, %v11890_v31 }
 0x546   :  { %v3964_v22 = vsub.f32 %v15836_v1, %v11890_v31  ;;  %v15841_v1 = vsub.f32 %v15819_v19, %v11890_v31 }
 0x547   :  { %v12040_v6 = vmul.f32 %v12019_v42, %v15837_v35  ;;  %v12046_v32 = vmul.f32 %v12019_v42, %v15838_v50  ;;  %v12052_v37 = vmul.f32 %v12019_v42, %v15839_v57  ;;  %v12058_v0 = vmul.f32 %v12019_v42, %v15840_v46  ;;  %v15846_v57 = vld [vmem:[#allocation14_spill] sm:$0xff] }
 0x548   :  { %v12064_v61 = vmul.f32 %v12019_v42, %v15841_v1  ;;  %v15843_v35 = vsub.f32 %v15820_v15, %v11890_v31  ;;  %v15845_v50 = vsub.f32 %v15821_v29, %v11890_v31  ;;  %v15847_v46 = vsub.f32 %v15846_v57, %v11890_v31  ;;  %v15849_v1 = vld [vmem:[#allocation32_spill] sm:$0xff] }
 0x549   :  { %v15850_v15 = vsub.f32 %v15823_v49, %v11890_v31  ;;  %v15855_v57 = vsub.f32 %v15824_v7, %v11890_v31 }
 0x54a   :  { %15842 = vst [vmem:[#allocation9_spill] sm:$0xff] %v12064_v61  ;;  %v12070_v4 = vmul.f32 %v12019_v42, %v15843_v35  ;;  %v12076_v33 = vmul.f32 %v12019_v42, %v15845_v50  ;;  %v12082_v19 = vmul.f32 %v12019_v42, %v15847_v46  ;;  %v3965_v61 = vsub.f32 %v15849_v1, %v11890_v31 }
 0x54b   :  { %v12090_v35 = vmul.f32 %v12019_v42, %v15850_v15  ;;  %v12102_v46 = vmul.f32 %v12019_v42, %v15855_v57  ;;  %v15860_v15 = vld [vmem:[#allocation19_spill] sm:$0xff]  ;;  %v15863_v57 = vld [vmem:[#allocation21_spill] sm:$0xff] }
 0x54c   :  { %15844 = vst [vmem:[#allocation10_spill] sm:$0xff] %v12070_v4  ;;  %15848 = vst [vmem:[#allocation11_spill] sm:$0xff] %v12082_v19  ;;  %v15852_v4 = vld [vmem:[#allocation16_spill] sm:$0xff]  ;;  %v15857_v19 = vld [vmem:[#allocation18_spill] sm:$0xff] }
 0x54d   :  { %15851 = vst [vmem:[#allocation12_spill] sm:$0xff] %v12090_v35  ;;  %v15853_v29 = vsub.f32 %v15852_v4, %v11890_v31  ;;  %15856 = vst [vmem:[#allocation15_spill] sm:$0xff] %v12102_v46  ;;  %v15858_v1 = vsub.f32 %v15857_v19, %v11890_v31  ;;  %v15861_v35 = vsub.f32 %v15860_v15, %v11890_v31 }
 0x54e   :  { %v15864_v46 = vsub.f32 %v15863_v57, %v11890_v31  ;;  %v15869_v57 = vsub.f32 %v11448_v55, %v11890_v31 }
 0x54f   :  { %v12096_v50 = vmul.f32 %v12019_v42, %v15853_v29  ;;  %v12108_v49 = vmul.f32 %v12019_v42, %v15858_v1  ;;  %v12114_v4 = vmul.f32 %v12019_v42, %v15861_v35  ;;  %v15862_v29 = vsub.f32 %v15827_v44, %v11890_v31  ;;  %v15865_v1 = vld [vmem:[#allocation33_spill] sm:$0xff] }
 0x550   :  { %v12126_v19 = vmul.f32 %v12019_v42, %v15864_v46  ;;  %v15868_v44 = vsub.f32 %v15829_v8, %v11890_v31  ;;  %v12146_v46 = vmul.f32 %v12019_v42, %v15869_v57  ;;  %v15873_v57 = vsub.f32 %v15832_v48, %v11890_v31 }
 0x551   :  { %15854 = vst [vmem:[#allocation13_spill] sm:$0xff] %v12096_v50  ;;  %15859 = vst [vmem:[#allocation17_spill] sm:$0xff] %v12108_v49  ;;  %v12120_v7 = vmul.f32 %v12019_v42, %v15862_v29  ;;  %v3966_v49 = vsub.f32 %v15865_v1, %v11890_v31  ;;  %v15866_v50 = vld [vmem:[#allocation22_spill] sm:$0xff]  ;;  %v15870_v1 = vsub.f32 %v15830_v38, %v11890_v31 }
 0x552   :  { %v15867_v15 = vsub.f32 %v15866_v50, %v11890_v31  ;;  %v12140_v29 = vmul.f32 %v12019_v42, %v15868_v44  ;;  %v15872_v44 = vsub.f32 %v11477_v12, %v11890_v31  ;;  %v12170_v38 = vmul.f32 %v12019_v42, %v15873_v57 }
 0x553   :  { %v12152_v50 = vmul.f32 %v12019_v42, %v15870_v1  ;;  %v15874_v1 = vsub.f32 %v15833_v2, %v11890_v31  ;;  %v15877_v57 = vsub.f32 %v11536_v18, %v11890_v31 }
 0x554   :  { %v12134_v35 = vmul.f32 %v12019_v42, %v15867_v15  ;;  %v15871_v15 = vsub.f32 %v15831_v11, %v11890_v31  ;;  %v12164_v55 = vmul.f32 %v12019_v42, %v15872_v44  ;;  %v15876_v44 = vsub.f32 %v11520_v63, %v11890_v31 }
 0x555   :  { %v12176_v11 = vmul.f32 %v12019_v42, %v15874_v1  ;;  %v12194_v2 = vmul.f32 %v12019_v42, %v15877_v57  ;;  %v15878_v1 = vsub.f32 %v11547_v45, %v11890_v31  ;;  %v15881_v57 = vsub.f32 %v11578_v21, %v11890_v31 }
 0x556   :  { %v12158_v8 = vmul.f32 %v12019_v42, %v15871_v15  ;;  %v15875_v15 = vsub.f32 %v11514_v17, %v11890_v31  ;;  %v12188_v48 = vmul.f32 %v12019_v42, %v15876_v44  ;;  %v15880_v44 = vsub.f32 %v11564_v3, %v11890_v31 }
 0x557   :  { %v12200_v17 = vmul.f32 %v12019_v42, %v15878_v1  ;;  %v12218_v45 = vmul.f32 %v12019_v42, %v15881_v57  ;;  %v15882_v1 = vsub.f32 %v11588_v28, %v11890_v31  ;;  %v15887_v57 = vsub.f32 %v11618_v59, %v11890_v31 }
 0x558   :  { %v12182_v12 = vmul.f32 %v12019_v42, %v15875_v15  ;;  %v15879_v15 = vsub.f32 %v11559_v24, %v11890_v31  ;;  %v12212_v18 = vmul.f32 %v12019_v42, %v15880_v44  ;;  %v15885_v44 = vsub.f32 %v11609_v9, %v11890_v31 }
 0x559   :  { %v12224_v24 = vmul.f32 %v12019_v42, %v15882_v1  ;;  %v12242_v28 = vmul.f32 %v12019_v42, %v15887_v57  ;;  %v15888_v1 = vsub.f32 %v11622_v20, %v11890_v31  ;;  %v15893_v57 = vsub.f32 %v11645_v56, %v11890_v31 }
 0x55a   :  { %v12206_v63 = vmul.f32 %v12019_v42, %v15879_v15  ;;  %v15883_v15 = vsub.f32 %v11602_v5, %v11890_v31  ;;  %v12236_v21 = vmul.f32 %v12019_v42, %v15885_v44  ;;  %v15891_v44 = vld [vmem:[#allocation29_spill] sm:$0xff] }
 0x55b   :  { %v12248_v5 = vmul.f32 %v12019_v42, %v15888_v1  ;;  %v12266_v20 = vmul.f32 %v12019_v42, %v15893_v57  ;;  %v15894_v1 = vsub.f32 %v11651_v53, %v11890_v31  ;;  %v12287_v57 = vmul.f32 %v12019_v42, %v3952_v26 }
 0x55c   :  { %v12230_v3 = vmul.f32 %v12019_v42, %v15883_v15  ;;  %15886 = vst [vmem:[#allocation23_spill] sm:$0xff] %v12236_v21  ;;  %v15889_v15 = vld [vmem:[#allocation28_spill] sm:$0xff]  ;;  %v15892_v21 = vsub.f32 %v15891_v44, %v11890_v31  ;;  %v12290_v53 = vmul.f32 %v12019_v42, %v3953_v41  ;;  %v12308_v26 = vmul.f32 %v12019_v42, %v3959_v58 }
 0x55d   :  { %v12311_v41 = vmul.f32 %v12019_v42, %v3960_v47  ;;  %v12329_v58 = vmul.f32 %v12019_v42, %v3965_v61  ;;  %v12332_v47 = vmul.f32 %v12019_v42, %v3966_v49  ;;  %v15903_v49 = vsub.f32 %v11828_v23, %v11890_v31 }
 0x55e   :  { %15884 = vst [vmem:[#allocation20_spill] sm:$0xff] %v12230_v3  ;;  %v15890_v3 = vsub.f32 %v15889_v15, %v11890_v31  ;;  %v12260_v59 = vmul.f32 %v12019_v42, %v15892_v21  ;;  %v12272_v15 = vmul.f32 %v12019_v42, %v15894_v1  ;;  %v15896_v21 = vsub.f32 %v11664_v10, %v11890_v31 }
 0x55f   :  { %v12293_v1 = vmul.f32 %v12019_v42, %v3954_v54  ;;  %v12302_v10 = vmul.f32 %v12019_v42, %v3957_v34  ;;  %15897 = vst [vmem:[#allocation24_spill] sm:$0xff] %v12311_v41  ;;  %v12317_v54 = vmul.f32 %v12019_v42, %v3961_v39  ;;  %v12323_v34 = vmul.f32 %v12019_v42, %v3963_v36 }
 0x560   :  { %v12254_v9 = vmul.f32 %v12019_v42, %v15890_v3  ;;  %v15895_v3 = vsub.f32 %v11660_v25, %v11890_v31  ;;  %v12284_v56 = vmul.f32 %v12019_v42, %v15896_v21  ;;  %v12296_v25 = vmul.f32 %v12019_v42, %v3955_v30  ;;  %v9811_v30 = vld [vmem:[%s15626_s5 + $0xa0] sm:$0xff]   ;;  %15898 = vst [vmem:[#allocation25_spill] sm:$0xff] %v12329_v58 }
 0x561   :  { %v12305_v21 = vmul.f32 %v12019_v42, %v3958_v60  ;;  %v12326_v60 = vmul.f32 %v12019_v42, %v3964_v22  ;;  %v15899_v41 = vsub.f32 %v11809_v16, %v11890_v31  ;;  %6766 = vmatpush1.bf16.msra.mxu1 %v9811_v30  ;;  %v15901_v22 = vld [vmem:[#allocation34_spill] sm:$0xff]  ;;  %v12356_v16 = vmul.f32 %v12019_v42, %v15903_v49  ;;  %v12389_v49 = vld [vmem:[%s15624_s3] ss:$0 sm:$0xff] }
 0x562   :  { %v12278_v44 = vmul.f32 %v12019_v42, %v15895_v3  ;;  %v12299_v3 = vmul.f32 %v12019_v42, %v3956_v14  ;;  %v12320_v14 = vmul.f32 %v12019_v42, %v3962_v62  ;;  %v15900_v62 = vsub.f32 %v11816_v43, %v11890_v31  ;;  %6767 = vmatprep.subr.bf16.mxu1 %v15805_v13 }
 0x563   :  { %v12338_v39 = vmul.f32 %v12019_v42, %v15899_v41  ;;  %v15902_v61 = vsub.f32 %v15901_v22, %v11890_v31  ;;  %v15904_v41 = vsub.f32 %v11834_v27, %v11890_v31  ;;  %v15905_v30 = vsub.f32 %v11849_v40, %v11890_v31  ;;  %v9812_v40 = vld [vmem:[%s15626_s5 + $0xa8] sm:$0xff]  }
 0x564   :  { %v12344_v36 = vmul.f32 %v12019_v42, %v15900_v62  ;;  %v15906_v23 = vsub.f32 %v11864_v51, %v11890_v31  ;;  %v15907_v27 = vsub.f32 %v11875_v52, %v11890_v31  ;;  %v12391_v51 = vstv %s9705_s12 }
 0x565   :  { %v12350_v58 = vmul.f32 %v12019_v42, %v15902_v61  ;;  %v12362_v43 = vmul.f32 %v12019_v42, %v15904_v41  ;;  %v12368_v62 = vmul.f32 %v12019_v42, %v15905_v30  ;;  %6768 = vmatpush1.bf16.msra.mxu1 %v9812_v40  ;;  %v12396_v31 = vadd.f32 %v12389_v49, %v12040_v6  ;;  %v15910_v30 = vld [vmem:[#allocation9_spill] sm:$0xff]  ;;  %v15914_v40 = vld [vmem:[#allocation11_spill] sm:$0xff] }
 0x566   :  { %v12375_v22 = vmul.f32 %v12019_v42, %v15906_v23  ;;  %v12381_v61 = vmul.f32 %v12019_v42, %v15907_v27  ;;  %6769 = vmatprep.subr.bf16.mxu1 %v15805_v13  ;;  %v12400_v52 = vadd.f32 %v12389_v49, %v12046_v32  ;;  %v12404_v42 = vadd.f32 %v12389_v49, %v12052_v37  ;;  %v15912_v27 = vld [vmem:[#allocation10_spill] sm:$0xff] }
 0x567   :  { %15908 = vst [vmem:[#allocation26_spill] sm:$0xff] %v12396_v31  ;;  %v12408_v41 = vadd.f32 %v12389_v49, %v12058_v0  ;;  %v12412_v23 = vadd.f32 %v12389_v49, %v15910_v30  ;;  %v12416_v6 = vadd.f32 %v12389_v49, %v15912_v27  ;;  %v12420_v32 = vadd.f32 %v12389_v49, %v12076_v33  ;;  %v15915_v31 = vld [vmem:[#allocation12_spill] sm:$0xff] }
 0x568   :  { %v12424_v37 = vadd.f32 %v12389_v49, %v15914_v40  ;;  %v12428_v0 = vadd.f32 %v12389_v49, %v15915_v31  ;;  %v12444_v40 = vadd.f32 %v12389_v49, %v12114_v4  ;;  %v12448_v31 = vadd.f32 %v12389_v49, %v12120_v7 }
 0x569   :  { %15909 = vst [vmem:[#allocation27_spill] sm:$0xff] %v12408_v41  ;;  %15911 = vst [vmem:[#allocation30_spill] sm:$0xff] %v12412_v23  ;;  %v15916_v41 = vld [vmem:[#allocation13_spill] sm:$0xff]  ;;  %v15917_v23 = vld [vmem:[#allocation15_spill] sm:$0xff]  ;;  %v12464_v4 = vadd.f32 %v12389_v49, %v12146_v46  ;;  %v12468_v7 = vadd.f32 %v12389_v49, %v12152_v50  ;;  %v12484_v46 = vadd.f32 %v12389_v49, %v12176_v11  ;;  %vm4116_vm0 = vcmp.gt.f32.partialorder %v12400_v52, 0.0 }
 0x56a   :  { %15913 = vst [vmem:[#allocation31_spill] sm:$0xff] %v12416_v6  ;;  %v12432_v30 = vadd.f32 %v12389_v49, %v15916_v41  ;;  %v12436_v27 = vadd.f32 %v12389_v49, %v15917_v23  ;;  %v15918_v6 = vld [vmem:[#allocation17_spill] sm:$0xff]  ;;  %v12452_v41 = vadd.f32 %v12389_v49, %v12126_v19  ;;  %v12456_v23 = vadd.f32 %v12389_v49, %v12134_v35 }
 0x56b   :  { %v12440_v33 = vadd.f32 %v12389_v49, %v15918_v6  ;;  %v12460_v6 = vadd.f32 %v12389_v49, %v12140_v29  ;;  %v12472_v19 = vadd.f32 %v12389_v49, %v12158_v8  ;;  %v12476_v35 = vadd.f32 %v12389_v49, %v12164_v55 }
 0x56c   :  { %v12480_v29 = vadd.f32 %v12389_v49, %v12170_v38  ;;  %v12488_v50 = vadd.f32 %v12389_v49, %v12182_v12  ;;  %v12492_v8 = vadd.f32 %v12389_v49, %v12188_v48  ;;  %v12496_v55 = vadd.f32 %v12389_v49, %v12194_v2 }
 0x56d   :  { %15919 = vst [vmem:[#allocation14_spill] sm:$0xff] %v12476_v35  ;;  %v12500_v38 = vadd.f32 %v12389_v49, %v12200_v17  ;;  %v12504_v11 = vadd.f32 %v12389_v49, %v12206_v63  ;;  %v12508_v12 = vadd.f32 %v12389_v49, %v12212_v18  ;;  %v12512_v48 = vadd.f32 %v12389_v49, %v12218_v45 }
 0x56e   :  { %15920 = vst [vmem:[#allocation32_spill] sm:$0xff] %v12496_v55  ;;  %v12516_v2 = vadd.f32 %v12389_v49, %v12224_v24  ;;  %v15924_v55 = vld [vmem:[#allocation20_spill] sm:$0xff]  ;;  %v12528_v18 = vadd.f32 %v12389_v49, %v12242_v28  ;;  %v12532_v45 = vadd.f32 %v12389_v49, %v12248_v5  ;;  %v12536_v24 = vadd.f32 %v12389_v49, %v12254_v9 }
 0x56f   :  { %15921 = vst [vmem:[#allocation16_spill] sm:$0xff] %v12500_v38  ;;  %15922 = vst [vmem:[#allocation18_spill] sm:$0xff] %v12504_v11  ;;  %v12520_v17 = vadd.f32 %v12389_v49, %v15924_v55  ;;  %v15925_v38 = vld [vmem:[#allocation23_spill] sm:$0xff]  ;;  %v12540_v55 = vadd.f32 %v12389_v49, %v12260_v59  ;;  %v12548_v28 = vadd.f32 %v12389_v49, %v12272_v15  ;;  %vm4117_vm1 = vcmp.gt.f32.partialorder %v12404_v42, 0.0 }
 0x570   :  { %15923 = vst [vmem:[#allocation19_spill] sm:$0xff] %v12508_v12  ;;  %v12524_v63 = vadd.f32 %v12389_v49, %v15925_v38  ;;  %v12544_v38 = vadd.f32 %v12389_v49, %v12266_v20  ;;  %v12552_v5 = vadd.f32 %v12389_v49, %v12278_v44  ;;  %v12556_v9 = vadd.f32 %v12389_v49, %v12284_v56 }
 0x571   :  { %v12560_v59 = vadd.f32 %v12389_v49, %v12287_v57  ;;  %v12564_v20 = vadd.f32 %v12389_v49, %v12290_v53  ;;  %v12568_v15 = vadd.f32 %v12389_v49, %v12293_v1  ;;  %v12572_v44 = vadd.f32 %v12389_v49, %v12296_v25 }
 0x572   :  { %15926 = vst [vmem:[#allocation21_spill] sm:$0xff] %v12524_v63  ;;  %v12576_v56 = vadd.f32 %v12389_v49, %v12299_v3  ;;  %v12580_v57 = vadd.f32 %v12389_v49, %v12302_v10  ;;  %v12584_v53 = vadd.f32 %v12389_v49, %v12305_v21  ;;  %v12588_v1 = vadd.f32 %v12389_v49, %v12308_v26  ;;  %v9813_v21 = vld [vmem:[%s15626_s5 + $0xb0] sm:$0xff]  }
 0x573   :  { %15927 = vst [vmem:[#allocation33_spill] sm:$0xff] %v12560_v59  ;;  %15928 = vst [vmem:[#allocation22_spill] sm:$0xff] %v12564_v20  ;;  %v12596_v3 = vadd.f32 %v12389_v49, %v12317_v54  ;;  %v12600_v10 = vadd.f32 %v12389_v49, %v12320_v14  ;;  %v12607_v26 = vadd.f32 %v12389_v49, %v12323_v34  ;;  %6770 = vmatpush1.bf16.msra.mxu1 %v9813_v21 }
 0x574   :  { %15929 = vst [vmem:[#allocation28_spill] sm:$0xff] %v12568_v15  ;;  %15930 = vst [vmem:[#allocation29_spill] sm:$0xff] %v12584_v53  ;;  %v15932_v15 = vld [vmem:[#allocation24_spill] sm:$0xff]  ;;  %v12619_v14 = vadd.f32 %v12389_v49, %v12332_v47  ;;  %v12627_v34 = vadd.f32 %v12389_v49, %v12344_v36  ;;  %v12639_v47 = vadd.f32 %v12389_v49, %v12362_v43  ;;  %6771 = vmatprep.subr.bf16.mxu1 %v15805_v13 }
 0x575   :  { %15931 = vst [vmem:[#allocation34_spill] sm:$0xff] %v12588_v1  ;;  %v12592_v25 = vadd.f32 %v12389_v49, %v15932_v15  ;;  %15934 = vst [vmem:[#allocation10_spill] sm:$0xff] %v12600_v10  ;;  %v12611_v15 = vadd.f32 %v12389_v49, %v12326_v60  ;;  %v12623_v10 = vadd.f32 %v12389_v49, %v12338_v39  ;;  %vm4121_vm5 = vcmp.gt.f32.partialorder %v12420_v32, 0.0 }
 0x576   :  { %v12631_v60 = vadd.f32 %v12389_v49, %v12350_v58  ;;  %v12643_v39 = vadd.f32 %v12389_v49, %v12368_v62  ;;  %v12647_v36 = vadd.f32 %v12389_v49, %v12375_v22  ;;  %v12651_v58 = vadd.f32 %v12389_v49, %v12381_v61  ;;  %v15939_v62 = vld [vmem:[#allocation27_spill] sm:$0xff]  ;;  %v15941_v22 = vld [vmem:[#allocation30_spill] sm:$0xff] }
 0x577   :  { %15933 = vst [vmem:[#allocation9_spill] sm:$0xff] %v12592_v25  ;;  %v15935_v25 = vld [vmem:[#allocation25_spill] sm:$0xff]  ;;  %v12660_v43 = vmul.f32 %v12391_v51, %v12404_v42  ;;  %v12664_v21 = vmul.f32 %v12391_v51, %v15939_v62  ;;  %v15943_v61 = vld [vmem:[#allocation31_spill] sm:$0xff]  ;;  %v12676_v13 = vmul.f32 %v12391_v51, %v12420_v32  ;;  %vm4118_vm2 = vcmp.gt.f32.partialorder %v15939_v62, 0.0 }
 0x578   :  { %v12615_v54 = vadd.f32 %v12389_v49, %v15935_v25  ;;  %v12635_v25 = vadd.f32 %v12389_v49, %v12356_v16  ;;  %15936 = vst [vmem:[#allocation11_spill] sm:$0xff] %v12647_v36  ;;  %v12656_v16 = vmul.f32 %v12391_v51, %v12400_v52  ;;  %v12668_v36 = vmul.f32 %v12391_v51, %v15941_v22 }
 0x579   :  { %15938 = vst [vmem:[#allocation13_spill] sm:$0xff] %v12660_v43  ;;  %15940 = vst [vmem:[#allocation15_spill] sm:$0xff] %v12664_v21  ;;  %v12672_v49 = vmul.f32 %v12391_v51, %v15943_v61  ;;  %v12684_v43 = vmul.f32 %v12391_v51, %v12428_v0  ;;  %v12688_v21 = vmul.f32 %v12391_v51, %v12432_v30  ;;  %vm4119_vm3 = vcmp.gt.f32.partialorder %v15941_v22, 0.0 }
 0x57a   :  { %15937 = vst [vmem:[#allocation12_spill] sm:$0xff] %v12656_v16  ;;  %15942 = vst [vmem:[#allocation17_spill] sm:$0xff] %v12668_v36  ;;  %v12680_v16 = vmul.f32 %v12391_v51, %v12424_v37  ;;  %v12692_v36 = vmul.f32 %v12391_v51, %v12436_v27  ;;  %vm4120_vm4 = vcmp.gt.f32.partialorder %v15943_v61, 0.0  ;;  %vm4122_vm6 = vcmp.gt.f32.partialorder %v12424_v37, 0.0 }
 0x57b   :  { %15944 = vst [vmem:[#allocation20_spill] sm:$0xff] %v12672_v49  ;;  %15945 = vst [vmem:[#allocation23_spill] sm:$0xff] %v12676_v13  ;;  %v12696_v49 = vmul.f32 %v12391_v51, %v12440_v33  ;;  %v12700_v13 = vmul.f32 %v12391_v51, %v12444_v40  ;;  %vm4123_vm7 = vcmp.gt.f32.partialorder %v12428_v0, 0.0  ;;  %vm4124_vm8 = vcmp.gt.f32.partialorder %v12432_v30, 0.0 }
 0x57c   :  { %15946 = vst [vmem:[#allocation24_spill] sm:$0xff] %v12680_v16  ;;  %15947 = vst [vmem:[#allocation25_spill] sm:$0xff] %v12684_v43  ;;  %v12704_v16 = vmul.f32 %v12391_v51, %v12448_v31  ;;  %v12708_v43 = vmul.f32 %v12391_v51, %v12452_v41  ;;  %vm4125_vm9 = vcmp.gt.f32.partialorder %v12436_v27, 0.0  ;;  %vm4126_vm10 = vcmp.gt.f32.partialorder %v12440_v33, 0.0 }
 0x57d   :  { %15948 = vst [vmem:[#allocation27_spill] sm:$0xff] %v12688_v21  ;;  %15949 = vst [vmem:[#allocation30_spill] sm:$0xff] %v12692_v36  ;;  %v12712_v21 = vmul.f32 %v12391_v51, %v12456_v23  ;;  %v12716_v36 = vmul.f32 %v12391_v51, %v12460_v6  ;;  %vm4127_vm11 = vcmp.gt.f32.partialorder %v12444_v40, 0.0  ;;  %vm4160_vm13 = vcmp.gt.f32.partialorder %v12576_v56, 0.0 }
 0x57e   :  { %15950 = vst [vmem:[#allocation31_spill] sm:$0xff] %v12696_v49  ;;  %15951 = vst [vmem:[#allocation37_spill] sm:$0xff] %v12700_v13  ;;  %v12720_v49 = vmul.f32 %v12391_v51, %v12464_v4  ;;  %v12724_v13 = vmul.f32 %v12391_v51, %v12468_v7  ;;  %vm4161_vm12 = vcmp.gt.f32.partialorder %v12580_v57, 0.0  ;;  %vm4165_vm14 = vcmp.gt.f32.partialorder %v12596_v3, 0.0 }
 0x57f   :  { %15952 = vst [vmem:[#allocation38_spill] sm:$0xff] %v12704_v16  ;;  %15953 = vst [vmem:[#allocation39_spill] sm:$0xff] %v12708_v43  ;;  %v12728_v16 = vmul.f32 %v12391_v51, %v12472_v19  ;;  %v12732_v43 = vmul.f32 %v12391_v51, %v12476_v35 }
 0x580   :  { %15954 = vst [vmem:[#allocation40_spill] sm:$0xff] %v12712_v21  ;;  %15955 = vst [vmem:[#allocation41_spill] sm:$0xff] %v12716_v36 }
 0x581   :  { %15956 = vst [vmem:[#allocation42_spill] sm:$0xff] %v12720_v49  ;;  %15957 = vst [vmem:[#allocation43_spill] sm:$0xff] %v12724_v13  ;;  %v12740_v49 = vmul.f32 %v12391_v51, %v12480_v29  ;;  %v12744_v13 = vmul.f32 %v12391_v51, %v12484_v46 }
 0x582   :  { %15958 = vst [vmem:[#allocation44_spill] sm:$0xff] %v12728_v16  ;;  %15959 = vst [vmem:[#allocation45_spill] sm:$0xff] %v12732_v43  ;;  %v12748_v16 = vmul.f32 %v12391_v51, %v12488_v50  ;;  %v12752_v43 = vmul.f32 %v12391_v51, %v12492_v8 }
 0x583   :  { %15960 = vst [vmem:[#allocation46_spill] sm:$0xff] %v12740_v49  ;;  %15961 = vst [vmem:[#allocation47_spill] sm:$0xff] %v12744_v13  ;;  %v15964_v49 = vld [vmem:[#allocation32_spill] sm:$0xff] }
 0x584   :  { %15962 = vst [vmem:[#allocation48_spill] sm:$0xff] %v12748_v16  ;;  %15963 = vst [vmem:[#allocation49_spill] sm:$0xff] %v12752_v43  ;;  %v12760_v36 = vmul.f32 %v12391_v51, %v15964_v49  ;;  %v15966_v13 = vld [vmem:[#allocation16_spill] sm:$0xff]  ;;  %v12768_v16 = vmul.f32 %v12391_v51, %v12504_v11  ;;  %v12772_v43 = vmul.f32 %v12391_v51, %v12508_v12 }
 0x585   :  { %v12764_v21 = vmul.f32 %v12391_v51, %v15966_v13 }
 0x586   :  { %15965 = vst [vmem:[#allocation32_spill] sm:$0xff] %v12760_v36  ;;  %15968 = vst [vmem:[#allocation50_spill] sm:$0xff] %v12768_v16  ;;  %v12780_v36 = vmul.f32 %v12391_v51, %v12512_v48  ;;  %v12788_v16 = vmul.f32 %v12391_v51, %v12520_v17 }
 0x587   :  { %15967 = vst [vmem:[#allocation16_spill] sm:$0xff] %v12764_v21  ;;  %15969 = vst [vmem:[#allocation51_spill] sm:$0xff] %v12772_v43  ;;  %v12784_v21 = vmul.f32 %v12391_v51, %v12516_v2  ;;  %v12792_v43 = vmul.f32 %v12391_v51, %v12524_v63  ;;  %v9814_v63 = vld [vmem:[%s15626_s5 + $0xb8] sm:$0xff]  }
 0x588   :  { %15970 = vst [vmem:[#allocation52_spill] sm:$0xff] %v12780_v36  ;;  %15972 = vst [vmem:[#allocation54_spill] sm:$0xff] %v12788_v16  ;;  %v12800_v36 = vmul.f32 %v12391_v51, %v12528_v18  ;;  %v12808_v16 = vmul.f32 %v12391_v51, %v12536_v24  ;;  %6772 = vmatpush1.bf16.msra.mxu1 %v9814_v63  ;;  %v16009_v63 = vld [vmem:[#allocation26_spill] sm:$0xff] }
 0x589   :  { %15971 = vst [vmem:[#allocation53_spill] sm:$0xff] %v12784_v21  ;;  %15973 = vst [vmem:[#allocation55_spill] sm:$0xff] %v12792_v43  ;;  %v12804_v21 = vmul.f32 %v12391_v51, %v12532_v45  ;;  %v12812_v43 = vmul.f32 %v12391_v51, %v12540_v55 }
 0x58a   :  { %15974 = vst [vmem:[#allocation56_spill] sm:$0xff] %v12800_v36  ;;  %15976 = vst [vmem:[#allocation58_spill] sm:$0xff] %v12808_v16  ;;  %v12820_v36 = vmul.f32 %v12391_v51, %v12544_v38  ;;  %v12828_v16 = vmul.f32 %v12391_v51, %v12552_v5 }
 0x58b   :  { %15975 = vst [vmem:[#allocation57_spill] sm:$0xff] %v12804_v21  ;;  %15977 = vst [vmem:[#allocation59_spill] sm:$0xff] %v12812_v43  ;;  %v12824_v21 = vmul.f32 %v12391_v51, %v12548_v28  ;;  %v12832_v43 = vmul.f32 %v12391_v51, %v12556_v9 }
 0x58c   :  { %15978 = vst [vmem:[#allocation60_spill] sm:$0xff] %v12820_v36  ;;  %15980 = vst [vmem:[#allocation62_spill] sm:$0xff] %v12828_v16  ;;  %v12840_v36 = vmul.f32 %v12391_v51, %v12560_v59  ;;  %v15984_v16 = vld [vmem:[#allocation28_spill] sm:$0xff]  ;;  %v12955_v59 = vmul.f32 %v12391_v51, %v16009_v63 }
 0x58d   :  { %15979 = vst [vmem:[#allocation61_spill] sm:$0xff] %v12824_v21  ;;  %15981 = vst [vmem:[#allocation63_spill] sm:$0xff] %v12832_v43  ;;  %v12844_v21 = vmul.f32 %v12391_v51, %v12564_v20  ;;  %v12848_v35 = vmul.f32 %v12391_v51, %v15984_v16  ;;  %v12852_v43 = vmul.f32 %v12391_v51, %v12572_v44  ;;  %v16011_v20 = vmov 0  }
 0x58e   :  { %15982 = vst [vmem:[#allocation64_spill] sm:$0xff] %v12840_v36  ;;  %v12860_v36 = vmul.f32 %v12391_v51, %v12576_v56  ;;  %16010 = vst [vmem:[#allocation26_spill] sm:$0xff] %v12955_v59  ;;  %6773 = vmatprep.subr.bf16.mxu1 %v16011_v20  ;;  %v16014_v20 = vld [vmem:[#allocation15_spill] sm:$0xff] }
 0x58f   :  { %15983 = vst [vmem:[#allocation65_spill] sm:$0xff] %v12844_v21  ;;  %15985 = vst [vmem:[#allocation28_spill] sm:$0xff] %v12848_v35  ;;  %v12864_v21 = vmul.f32 %v12391_v51, %v12580_v57  ;;  %v12868_v35 = vmul.f32 %v12391_v51, %v12584_v53  ;;  %v12978_v59 = vsel %vm4118_vm2, %v15939_v62, %v16014_v20  ;;  %v16015_v53 = vld [vmem:[#allocation17_spill] sm:$0xff]  ;;  %v16018_v20 = vld [vmem:[#allocation24_spill] sm:$0xff]  ;;  %vm4168_vm2 = vcmp.gt.f32.partialorder %v12611_v15, 0.0 }
 0x590   :  { %15986 = vst [vmem:[#allocation66_spill] sm:$0xff] %v12852_v43  ;;  %15987 = vst [vmem:[#allocation67_spill] sm:$0xff] %v12860_v36  ;;  %v12872_v43 = vmul.f32 %v12391_v51, %v12588_v1  ;;  %v15991_v36 = vld [vmem:[#allocation9_spill] sm:$0xff]  ;;  %v12984_v1 = vsel %vm4119_vm3, %v15941_v22, %v16015_v53  ;;  %v13006_v53 = vsel %vm4122_vm6, %v12424_v37, %v16018_v20  ;;  %vm4169_vm3 = vcmp.gt.f32.partialorder %v12615_v54, 0.0 }
 0x591   :  { %15988 = vst [vmem:[#allocation68_spill] sm:$0xff] %v12864_v21  ;;  %15989 = vst [vmem:[#allocation69_spill] sm:$0xff] %v12868_v35  ;;  %v12880_v12 = vmul.f32 %v12391_v51, %v15991_v36  ;;  %v12884_v21 = vmul.f32 %v12391_v51, %v12596_v3  ;;  %v15994_v35 = vld [vmem:[#allocation10_spill] sm:$0xff]  ;;  %v16019_v62 = vld [vmem:[#allocation25_spill] sm:$0xff]  ;;  %vm16036_vm6 = vcmp.gt.f32.partialorder %v12468_v7, 0.0 }
 0x592   :  { %15990 = vst [vmem:[#allocation70_spill] sm:$0xff] %v12872_v43  ;;  %v12888_v11 = vmul.f32 %v12391_v51, %v15994_v35  ;;  %v12892_v43 = vmul.f32 %v12391_v51, %v12607_v26  ;;  %vm4166_vm15 = vcmp.gt.f32.partialorder %v15994_v35, 0.0  ;;  %v13012_v22 = vsel %vm4123_vm7, %v12428_v0, %v16019_v62  ;;  %4389 = vst [vmem:[#allocation3 + $0x31] sm:$0xff] %v12978_v59  ;;  %v16021_v0 = vld [vmem:[#allocation30_spill] sm:$0xff]  ;;  %v16023_v20 = vld [vmem:[#allocation37_spill] sm:$0xff] }
 0x593   :  { %15992 = vst [vmem:[#allocation9_spill] sm:$0xff] %v12880_v12  ;;  %15993 = vst [vmem:[#allocation71_spill] sm:$0xff] %v12884_v21  ;;  %v12903_v21 = vmul.f32 %v12391_v51, %v12611_v15  ;;  %v12915_v12 = vmul.f32 %v12391_v51, %v12623_v10  ;;  %v13044_v62 = vsel %vm4127_vm11, %v12444_v40, %v16023_v20  ;;  %vm16028_vm11 = vcmp.gt.f32.partialorder %v12452_v41, 0.0 }
 0x594   :  { %15995 = vst [vmem:[#allocation10_spill] sm:$0xff] %v12888_v11  ;;  %15996 = vst [vmem:[#allocation72_spill] sm:$0xff] %v12892_v43  ;;  %v12907_v11 = vmul.f32 %v12391_v51, %v12615_v54  ;;  %v12911_v43 = vmul.f32 %v12391_v51, %v12619_v14  ;;  %vm16030_vm7 = vcmp.gt.f32.partialorder %v12456_v23, 0.0 }
 0x595   :  { %15997 = vst [vmem:[#allocation73_spill] sm:$0xff] %v12903_v21  ;;  %16000 = vst [vmem:[#allocation76_spill] sm:$0xff] %v12915_v12  ;;  %v12923_v21 = vmul.f32 %v12391_v51, %v12627_v34  ;;  %v12935_v12 = vmul.f32 %v12391_v51, %v12639_v47 }
 0x596   :  { %15998 = vst [vmem:[#allocation74_spill] sm:$0xff] %v12907_v11  ;;  %15999 = vst [vmem:[#allocation75_spill] sm:$0xff] %v12911_v43  ;;  %v12927_v11 = vmul.f32 %v12391_v51, %v12631_v60  ;;  %v12931_v43 = vmul.f32 %v12391_v51, %v12635_v25 }
 0x597   :  { %16001 = vst [vmem:[#allocation77_spill] sm:$0xff] %v12923_v21  ;;  %16004 = vst [vmem:[#allocation80_spill] sm:$0xff] %v12935_v12  ;;  %v16006_v21 = vld [vmem:[#allocation11_spill] sm:$0xff]  ;;  %v12951_v12 = vmul.f32 %v12391_v51, %v12651_v58 }
 0x598   :  { %16002 = vst [vmem:[#allocation78_spill] sm:$0xff] %v12927_v11  ;;  %16003 = vst [vmem:[#allocation79_spill] sm:$0xff] %v12931_v43  ;;  %v12943_v11 = vmul.f32 %v12391_v51, %v12643_v39  ;;  %v12947_v43 = vmul.f32 %v12391_v51, %v16006_v21 }
 0x599   :  { %16008 = vst [vmem:[#allocation82_spill] sm:$0xff] %v12951_v12  ;;  %v16013_v12 = vld [vmem:[#allocation13_spill] sm:$0xff]  ;;  %4390 = vst [vmem:[#allocation3 + $0x39] sm:$0xff] %v12984_v1 }
 0x59a   :  { %16005 = vst [vmem:[#allocation81_spill] sm:$0xff] %v12943_v11  ;;  %16007 = vst [vmem:[#allocation11_spill] sm:$0xff] %v12947_v43  ;;  %v16012_v11 = vld [vmem:[#allocation12_spill] sm:$0xff]  ;;  %v12972_v51 = vsel %vm4117_vm1, %v12404_v42, %v16013_v12  ;;  %vm4167_vm1 = vcmp.gt.f32.partialorder %v12607_v26, 0.0 }
 0x59b   :  { %v12966_v43 = vsel %vm4116_vm0, %v12400_v52, %v16012_v11  ;;  %vm4164_vm0 = vcmp.gt.f32.partialorder %v15991_v36, 0.0  ;;  %v16016_v52 = vld [vmem:[#allocation20_spill] sm:$0xff]  ;;  %v16017_v11 = vld [vmem:[#allocation23_spill] sm:$0xff]  ;;  %4388 = vst [vmem:[#allocation3 + $0x21] sm:$0xff] %v12972_v51  ;;  %16024 = vst [vmem:[#allocation12_spill] sm:$0xff] %v13044_v62 }
 0x59c   :  { %v12994_v42 = vsel %vm4120_vm4, %v15943_v61, %v16016_v52  ;;  %v13000_v12 = vsel %vm4121_vm5, %v12420_v32, %v16017_v11  ;;  %4387 = vst [vmem:[#allocation3 + $0x19] sm:$0xff] %v12966_v43  ;;  %vm4170_vm4 = vcmp.gt.f32.partialorder %v12619_v14, 0.0  ;;  %vm4171_vm5 = vcmp.gt.f32.partialorder %v12623_v10, 0.0  ;;  %v16020_v32 = vld [vmem:[#allocation27_spill] sm:$0xff]  ;;  %4393 = vst [vmem:[#allocation3 + $0x61] sm:$0xff] %v13006_v53 }
 0x59d   :  { %v13026_v37 = vsel %vm4124_vm8, %v12432_v30, %v16020_v32  ;;  %v13032_v61 = vsel %vm4125_vm9, %v12436_v27, %v16021_v0  ;;  %v16022_v52 = vld [vmem:[#allocation31_spill] sm:$0xff]  ;;  %4391 = vst [vmem:[#allocation3 + $0x49] sm:$0xff] %v12994_v42  ;;  %4392 = vst [vmem:[#allocation3 + $0x51] sm:$0xff] %v13000_v12  ;;  %v16025_v30 = vld [vmem:[#allocation38_spill] sm:$0xff]  ;;  %vm16032_vm9 = vcmp.gt.f32.partialorder %v12460_v6, 0.0 }
 0x59e   :  { %v13038_v11 = vsel %vm4126_vm10, %v12440_v33, %v16022_v52  ;;  %4394 = vst [vmem:[#allocation3 + $0x69] sm:$0xff] %v13012_v22  ;;  %vm16026_vm10 = vcmp.gt.f32.partialorder %v12448_v31, 0.0  ;;  %v16027_v33 = vld [vmem:[#allocation39_spill] sm:$0xff]  ;;  %v16029_v32 = vld [vmem:[#allocation40_spill] sm:$0xff]  ;;  %v16031_v52 = vld [vmem:[#allocation41_spill] sm:$0xff] }
 0x59f   :  { %v13058_v27 = vsel %vm16026_vm10, %v12448_v31, %v16025_v30  ;;  %v13064_v40 = vsel %vm16028_vm11, %v12452_v41, %v16027_v33  ;;  %v13070_v0 = vsel %vm16030_vm7, %v12456_v23, %v16029_v32  ;;  %v13076_v20 = vsel %vm16032_vm9, %v12460_v6, %v16031_v52  ;;  %4395 = vst [vmem:[#allocation3 + $0x79] sm:$0xff] %v13026_v37  ;;  %v16033_v31 = vld [vmem:[#allocation42_spill] sm:$0xff]  ;;  %v16035_v23 = vld [vmem:[#allocation43_spill] sm:$0xff]  ;;  %v16037_v30 = vld [vmem:[#allocation44_spill] sm:$0xff] }
 0x5a0   :  { %4396 = vst [vmem:[#allocation3 + $0x81] sm:$0xff] %v13032_v61  ;;  %4397 = vst [vmem:[#allocation3 + $0x91] sm:$0xff] %v13038_v11  ;;  %vm4176_vm11 = vcmp.gt.f32.partialorder %v12643_v39, 0.0  ;;  %vm4177_vm7 = vcmp.gt.f32.partialorder %v16006_v21, 0.0  ;;  %vm16034_vm9 = vcmp.gt.f32.partialorder %v12464_v4, 0.0  ;;  %v13096_v6 = vsel %vm16036_vm6, %v12468_v7, %v16035_v23  ;;  %v16040_v32 = vld [vmem:[#allocation45_spill] sm:$0xff] }
 0x5a1   :  { %4398 = vst [vmem:[#allocation3 + $0x99] sm:$0xff] %v13044_v62  ;;  %v13090_v41 = vsel %vm16034_vm9, %v12464_v4, %v16033_v31  ;;  %vm16038_vm10 = vcmp.gt.f32.partialorder %v12472_v19, 0.0  ;;  %v16041_v52 = vld [vmem:[#allocation14_spill] sm:$0xff]  ;;  %4399 = vst [vmem:[#allocation3 + $0xa9] sm:$0xff] %v13058_v27  ;;  %vm16045_vm6 = vcmp.gt.f32.partialorder %v12480_v29, 0.0  ;;  %v16048_v23 = vld [vmem:[#allocation48_spill] sm:$0xff] }
 0x5a2   :  { %v13102_v33 = vsel %vm16038_vm10, %v12472_v19, %v16037_v30  ;;  %vm16042_vm8 = vcmp.gt.f32.partialorder %v16041_v52, 0.0  ;;  %4400 = vst [vmem:[#allocation3 + $0xb1] sm:$0xff] %v13064_v40  ;;  %4401 = vst [vmem:[#allocation3 + $0xc1] sm:$0xff] %v13070_v0  ;;  %v16044_v4 = vld [vmem:[#allocation46_spill] sm:$0xff]  ;;  %v16046_v19 = vld [vmem:[#allocation47_spill] sm:$0xff]  ;;  %vm16047_vm10 = vcmp.gt.f32.partialorder %v12484_v46, 0.0 }
 0x5a3   :  { %16039 = vst [vmem:[#allocation13_spill] sm:$0xff] %v13102_v33  ;;  %v13108_v62 = vsel %vm16042_vm8, %v16041_v52, %v16040_v32  ;;  %4402 = vst [vmem:[#allocation3 + $0xc9] sm:$0xff] %v13076_v20  ;;  %v13118_v7 = vsel %vm16045_vm6, %v12480_v29, %v16044_v4  ;;  %v13124_v31 = vsel %vm16047_vm10, %v12484_v46, %v16046_v19  ;;  %vm16049_vm8 = vcmp.gt.f32.partialorder %v12488_v50, 0.0  ;;  %v16050_v32 = vld [vmem:[#allocation49_spill] sm:$0xff]  ;;  %v16053_v29 = vld [vmem:[#allocation32_spill] sm:$0xff] }
 0x5a4   :  { %16043 = vst [vmem:[#allocation15_spill] sm:$0xff] %v13108_v62  ;;  %v13130_v30 = vsel %vm16049_vm8, %v12488_v50, %v16048_v23  ;;  %vm16051_vm9 = vcmp.gt.f32.partialorder %v12492_v8, 0.0  ;;  %4403 = vst [vmem:[#allocation3 + $0xd9] sm:$0xff] %v13090_v41  ;;  %vm16054_vm6 = vcmp.gt.f32.partialorder %v15964_v49, 0.0  ;;  %v16055_v50 = vld [vmem:[#allocation16_spill] sm:$0xff]  ;;  %vm16056_vm10 = vcmp.gt.f32.partialorder %v15966_v13, 0.0 }
 0x5a5   :  { %v13136_v52 = vsel %vm16051_vm9, %v12492_v8, %v16050_v32  ;;  %4404 = vst [vmem:[#allocation3 + $0xe1] sm:$0xff] %v13096_v6  ;;  %4405 = vst [vmem:[#allocation3 + $0xf1] sm:$0xff] %v13102_v33  ;;  %v13146_v46 = vsel %vm16054_vm6, %v15964_v49, %v16053_v29  ;;  %v13152_v8 = vsel %vm16056_vm10, %v15966_v13, %v16055_v50  ;;  %v16057_v4 = vld [vmem:[#allocation50_spill] sm:$0xff]  ;;  %v16060_v32 = vld [vmem:[#allocation51_spill] sm:$0xff]  ;;  %vm16064_vm6 = vcmp.gt.f32.partialorder %v12512_v48, 0.0 }
 0x5a6   :  { %16052 = vst [vmem:[#allocation17_spill] sm:$0xff] %v13136_v52  ;;  %4406 = vst [vmem:[#allocation3 + $0xf9] sm:$0xff] %v13108_v62  ;;  %v16058_v19 = vld [vmem:[#allocation18_spill] sm:$0xff]  ;;  %v16061_v62 = vld [vmem:[#allocation19_spill] sm:$0xff]  ;;  %vm16066_vm10 = vcmp.gt.f32.partialorder %v12516_v2, 0.0 }
 0x5a7   :  { %vm16059_vm8 = vcmp.gt.f32.partialorder %v16058_v19, 0.0  ;;  %vm16062_vm9 = vcmp.gt.f32.partialorder %v16061_v62, 0.0  ;;  %4407 = vst [vmem:[#allocation3 + $0x109] sm:$0xff] %v13118_v7  ;;  %4408 = vst [vmem:[#allocation3 + $0x111] sm:$0xff] %v13124_v31  ;;  %v16063_v13 = vld [vmem:[#allocation52_spill] sm:$0xff]  ;;  %v16065_v29 = vld [vmem:[#allocation53_spill] sm:$0xff] }
 0x5a8   :  { %v13158_v23 = vsel %vm16059_vm8, %v16058_v19, %v16057_v4  ;;  %v13164_v33 = vsel %vm16062_vm9, %v16061_v62, %v16060_v32  ;;  %4409 = vst [vmem:[#allocation3 + $0x121] sm:$0xff] %v13130_v30  ;;  %4410 = vst [vmem:[#allocation3 + $0x129] sm:$0xff] %v13136_v52  ;;  %v13174_v49 = vsel %vm16064_vm6, %v12512_v48, %v16063_v13  ;;  %v16067_v50 = vld [vmem:[#allocation54_spill] sm:$0xff]  ;;  %vm16068_vm8 = vcmp.gt.f32.partialorder %v12520_v17, 0.0  ;;  %v16069_v19 = vld [vmem:[#allocation55_spill] sm:$0xff] }
 0x5a9   :  { %v13180_v62 = vsel %vm16066_vm10, %v12516_v2, %v16065_v29  ;;  %v4275_v4 = vsel %vm16068_vm8, %v12520_v17, %v16067_v50  ;;  %v16070_v32 = vld [vmem:[#allocation21_spill] sm:$0xff]  ;;  %4411 = vst [vmem:[#allocation3 + $0x139] sm:$0xff] %v13146_v46  ;;  %4412 = vst [vmem:[#allocation3 + $0x141] sm:$0xff] %v13152_v8  ;;  %v16072_v48 = vld [vmem:[#allocation56_spill] sm:$0xff]  ;;  %vm16073_vm6 = vcmp.gt.f32.partialorder %v12528_v18, 0.0  ;;  %vm16075_vm10 = vcmp.gt.f32.partialorder %v12532_v45, 0.0 }
 0x5aa   :  { %vm16071_vm9 = vcmp.gt.f32.partialorder %v16070_v32, 0.0  ;;  %4413 = vst [vmem:[#allocation3 + $0x151] sm:$0xff] %v13158_v23  ;;  %4414 = vst [vmem:[#allocation3 + $0x159] sm:$0xff] %v13164_v33  ;;  %v13198_v2 = vsel %vm16073_vm6, %v12528_v18, %v16072_v48  ;;  %v16074_v17 = vld [vmem:[#allocation57_spill] sm:$0xff]  ;;  %v16076_v29 = vld [vmem:[#allocation58_spill] sm:$0xff]  ;;  %vm16077_vm8 = vcmp.gt.f32.partialorder %v12536_v24, 0.0 }
 0x5ab   :  { %v4276_v52 = vsel %vm16071_vm9, %v16070_v32, %v16069_v19  ;;  %v13204_v13 = vsel %vm16075_vm10, %v12532_v45, %v16074_v17  ;;  %v13210_v50 = vsel %vm16077_vm8, %v12536_v24, %v16076_v29  ;;  %v16078_v19 = vld [vmem:[#allocation59_spill] sm:$0xff]  ;;  %vm16079_vm9 = vcmp.gt.f32.partialorder %v12540_v55, 0.0  ;;  %4415 = vst [vmem:[#allocation3 + $0x169] sm:$0xff] %v13174_v49  ;;  %4416 = vst [vmem:[#allocation3 + $0x171] sm:$0xff] %v13180_v62  ;;  %v16080_v18 = vld [vmem:[#allocation60_spill] sm:$0xff] }
 0x5ac   :  { %v13216_v32 = vsel %vm16079_vm9, %v12540_v55, %v16078_v19  ;;  %4417 = vst [vmem:[#allocation3 + $0x181] sm:$0xff] %v4275_v4  ;;  %4418 = vst [vmem:[#allocation3 + $0x189] sm:$0xff] %v4276_v52  ;;  %vm16081_vm6 = vcmp.gt.f32.partialorder %v12544_v38, 0.0  ;;  %v16082_v24 = vld [vmem:[#allocation61_spill] sm:$0xff]  ;;  %vm16083_vm10 = vcmp.gt.f32.partialorder %v12548_v28, 0.0  ;;  %v16084_v55 = vld [vmem:[#allocation62_spill] sm:$0xff] }
 0x5ad   :  { %v13224_v45 = vsel %vm16081_vm6, %v12544_v38, %v16080_v18  ;;  %v13230_v48 = vsel %vm16083_vm10, %v12548_v28, %v16082_v24  ;;  %vm16085_vm8 = vcmp.gt.f32.partialorder %v12552_v5, 0.0  ;;  %v16087_v4 = vld [vmem:[#allocation63_spill] sm:$0xff]  ;;  %vm16088_vm9 = vcmp.gt.f32.partialorder %v12556_v9, 0.0  ;;  %4419 = vst [vmem:[#allocation3 + $0x1c9] sm:$0xff] %v13198_v2  ;;  %4420 = vst [vmem:[#allocation3 + $0x1d1] sm:$0xff] %v13204_v13  ;;  %v16090_v38 = vld [vmem:[#allocation64_spill] sm:$0xff] }
 0x5ae   :  { %v13236_v17 = vsel %vm16085_vm8, %v12552_v5, %v16084_v55  ;;  %v13242_v52 = vsel %vm16088_vm9, %v12556_v9, %v16087_v4  ;;  %4421 = vst [vmem:[#allocation3 + $0x1e1] sm:$0xff] %v13210_v50  ;;  %4422 = vst [vmem:[#allocation3 + $0x1e9] sm:$0xff] %v13216_v32  ;;  %v16091_v28 = vld [vmem:[#allocation33_spill] sm:$0xff]  ;;  %v16095_v19 = vld [vmem:[#allocation22_spill] sm:$0xff]  ;;  %vm16098_vm8 = vcmp.gt.f32.partialorder %v15984_v16, 0.0  ;;  %vm16100_vm9 = vcmp.gt.f32.partialorder %v12572_v44, 0.0 }
 0x5af   :  { %16086 = vst [vmem:[#allocation20_spill] sm:$0xff] %v13236_v17  ;;  %16089 = vst [vmem:[#allocation23_spill] sm:$0xff] %v13242_v52  ;;  %vm16092_vm6 = vcmp.gt.f32.partialorder %v16091_v28, 0.0  ;;  %v16094_v29 = vld [vmem:[#allocation65_spill] sm:$0xff]  ;;  %vm16096_vm10 = vcmp.gt.f32.partialorder %v16095_v19, 0.0  ;;  %v16097_v18 = vld [vmem:[#allocation28_spill] sm:$0xff] }
 0x5b0   :  { %v13252_v5 = vsel %vm16092_vm6, %v16091_v28, %v16090_v38  ;;  %v13258_v9 = vsel %vm16096_vm10, %v16095_v19, %v16094_v29  ;;  %v13264_v24 = vsel %vm16098_vm8, %v15984_v16, %v16097_v18  ;;  %v16099_v55 = vld [vmem:[#allocation66_spill] sm:$0xff]  ;;  %4423 = vst [vmem:[#allocation3 + $0x1f9] sm:$0xff] %v13224_v45  ;;  %4424 = vst [vmem:[#allocation3 + $0x201] sm:$0xff] %v13230_v48  ;;  %v16101_v38 = vld [vmem:[#allocation67_spill] sm:$0xff] }
 0x5b1   :  { %16093 = vst [vmem:[#allocation24_spill] sm:$0xff] %v13252_v5  ;;  %v13270_v4 = vsel %vm16100_vm9, %v12572_v44, %v16099_v55  ;;  %4425 = vst [vmem:[#allocation3 + $0x211] sm:$0xff] %v13236_v17  ;;  %v13280_v16 = vsel %vm4160_vm13, %v12576_v56, %v16101_v38  ;;  %v16103_v28 = vld [vmem:[#allocation68_spill] sm:$0xff]  ;;  %v16105_v29 = vld [vmem:[#allocation69_spill] sm:$0xff]  ;;  %vm16127_vm13 = vcmp.gt.f32.partialorder %v12631_v60, 0.0 }
 0x5b2   :  { %4426 = vst [vmem:[#allocation3 + $0x219] sm:$0xff] %v13242_v52  ;;  %16102 = vst [vmem:[#allocation25_spill] sm:$0xff] %v13280_v16  ;;  %v13286_v44 = vsel %vm4161_vm12, %v12580_v57, %v16103_v28  ;;  %v16106_v19 = vld [vmem:[#allocation29_spill] sm:$0xff]  ;;  %v16109_v55 = vld [vmem:[#allocation70_spill] sm:$0xff]  ;;  %vm16125_vm12 = vcmp.gt.f32.partialorder %v12627_v34, 0.0 }
 0x5b3   :  { %16104 = vst [vmem:[#allocation27_spill] sm:$0xff] %v13286_v44  ;;  %vm16107_vm6 = vcmp.gt.f32.partialorder %v16106_v19, 0.0  ;;  %v16110_v52 = vld [vmem:[#allocation34_spill] sm:$0xff]  ;;  %4427 = vst [vmem:[#allocation3 + $0x229] sm:$0xff] %v13252_v5  ;;  %v16113_v56 = vld [vmem:[#allocation9_spill] sm:$0xff] }
 0x5b4   :  { %v13292_v18 = vsel %vm16107_vm6, %v16106_v19, %v16105_v29  ;;  %vm16111_vm10 = vcmp.gt.f32.partialorder %v16110_v52, 0.0  ;;  %4428 = vst [vmem:[#allocation3 + $0x231] sm:$0xff] %v13258_v9  ;;  %4429 = vst [vmem:[#allocation3 + $0x241] sm:$0xff] %v13264_v24  ;;  %v13308_v57 = vsel %vm4164_vm0, %v15991_v36, %v16113_v56  ;;  %v16114_v38 = vld [vmem:[#allocation71_spill] sm:$0xff]  ;;  %v16116_v28 = vld [vmem:[#allocation10_spill] sm:$0xff]  ;;  %vm16135_vm0 = vcmp.gt.f32.partialorder %v12651_v58, 0.0 }
 0x5b5   :  { %16108 = vst [vmem:[#allocation30_spill] sm:$0xff] %v13292_v18  ;;  %v13298_v17 = vsel %vm16111_vm10, %v16110_v52, %v16109_v55  ;;  %4430 = vst [vmem:[#allocation3 + $0x249] sm:$0xff] %v13270_v4  ;;  %v13314_v52 = vsel %vm4165_vm14, %v12596_v3, %v16114_v38  ;;  %v13320_v29 = vsel %vm4166_vm15, %v15994_v35, %v16116_v28  ;;  %v16118_v19 = vld [vmem:[#allocation72_spill] sm:$0xff]  ;;  %v16120_v38 = vld [vmem:[#allocation73_spill] sm:$0xff]  ;;  %vm16129_vm14 = vcmp.gt.f32.partialorder %v12635_v25, 0.0 }
 0x5b6   :  { %16112 = vst [vmem:[#allocation31_spill] sm:$0xff] %v13298_v17  ;;  %16115 = vst [vmem:[#allocation37_spill] sm:$0xff] %v13314_v52  ;;  %v13326_v55 = vsel %vm4167_vm1, %v12607_v26, %v16118_v19  ;;  %v5476_v3 = vld [vmem:[#allocation3 + $0x32] sm:$0xff]  ;;  %v5477_v36 = vld [vmem:[#allocation3 + $0x3a] sm:$0xff]  ;;  %v13336_v35 = vsel %vm4168_vm2, %v12611_v15, %v16120_v38  ;;  %vm16131_vm15 = vcmp.gt.f32.partialorder %v12639_v47, 0.0  ;;  %vm16137_vm1 = vcmp.gt.f32.partialorder %v16009_v63, 0.0 }
 0x5b7   :  { %16117 = vst [vmem:[#allocation38_spill] sm:$0xff] %v13320_v29  ;;  %16119 = vst [vmem:[#allocation39_spill] sm:$0xff] %v13326_v55  ;;  %v4453_v56 = vld [vmem:[#allocation3 + $0x18] sm:$0xff]  ;;  %v16121_v28 = vld [vmem:[#allocation74_spill] sm:$0xff] }
 0x5b8   :  { %4431 = vst [vmem:[#allocation3 + $0x259] sm:$0xff] %v13280_v16  ;;  %4432 = vst [vmem:[#allocation3 + $0x261] sm:$0xff] %v13286_v44  ;;  %v13342_v26 = vsel %vm4169_vm3, %v12615_v54, %v16121_v28  ;;  %v16122_v19 = vld [vmem:[#allocation75_spill] sm:$0xff]  ;;  %v4454_v15 = vld [vmem:[#allocation3 + $0x20] sm:$0xff] }
 0x5b9   :  { %4433 = vst [vmem:[#allocation3 + $0x271] sm:$0xff] %v13292_v18  ;;  %4434 = vst [vmem:[#allocation3 + $0x279] sm:$0xff] %v13298_v17  ;;  %v13348_v17 = vsel %vm4170_vm4, %v12619_v14, %v16122_v19  ;;  %v16123_v18 = vld [vmem:[#allocation76_spill] sm:$0xff]  ;;  %v5478_v54 = vld [vmem:[#allocation3 + $0x4a] sm:$0xff] }
 0x5ba   :  { %v13354_v44 = vsel %vm4171_vm5, %v12623_v10, %v16123_v18  ;;  %4435 = vst [vmem:[#allocation3 + $0x289] sm:$0xff] %v13308_v57  ;;  %4436 = vst [vmem:[#allocation3 + $0x291] sm:$0xff] %v13314_v52  ;;  %v5479_v38 = vld [vmem:[#allocation3 + $0x52] sm:$0xff]  ;;  %v16124_v28 = vld [vmem:[#allocation77_spill] sm:$0xff] }
 0x5bb   :  { %4437 = vst [vmem:[#allocation3 + $0x2a1] sm:$0xff] %v13320_v29  ;;  %4438 = vst [vmem:[#allocation3 + $0x2a9] sm:$0xff] %v13326_v55  ;;  %v13364_v14 = vsel %vm16125_vm12, %v12627_v34, %v16124_v28  ;;  %v16126_v19 = vld [vmem:[#allocation78_spill] sm:$0xff]  ;;  %v16128_v18 = vld [vmem:[#allocation79_spill] sm:$0xff] }
 0x5bc   :  { %v13370_v10 = vsel %vm16127_vm13, %v12631_v60, %v16126_v19  ;;  %v13376_v55 = vsel %vm16129_vm14, %v12635_v25, %v16128_v18  ;;  %v16130_v29 = vld [vmem:[#allocation80_spill] sm:$0xff]  ;;  %4439 = vst [vmem:[#allocation3 + $0x2b9] sm:$0xff] %v13336_v35  ;;  %4440 = vst [vmem:[#allocation3 + $0x2c1] sm:$0xff] %v13342_v26  ;;  %v16132_v34 = vld [vmem:[#allocation81_spill] sm:$0xff] }
 0x5bd   :  { %v13382_v52 = vsel %vm16131_vm15, %v12639_v47, %v16130_v29  ;;  %4441 = vst [vmem:[#allocation3 + $0x2d1] sm:$0xff] %v13348_v17  ;;  %4442 = vst [vmem:[#allocation3 + $0x2d9] sm:$0xff] %v13354_v44  ;;  %v13392_v60 = vsel %vm4176_vm11, %v12643_v39, %v16132_v34  ;;  %v16133_v25 = vld [vmem:[#allocation11_spill] sm:$0xff]  ;;  %v16134_v29 = vld [vmem:[#allocation82_spill] sm:$0xff]  ;;  %v13418_v34 = vpack.c.bf16 %v4454_v15, %v4453_v56 }
 0x5be   :  { %v13398_v47 = vsel %vm4177_vm7, %v16006_v21, %v16133_v25  ;;  %v4307_v28 = vsel %vm16135_vm0, %v12651_v58, %v16134_v29  ;;  %v16136_v19 = vld [vmem:[#allocation26_spill] sm:$0xff]  ;;  %4443 = vst [vmem:[#allocation3 + $0x2e9] sm:$0xff] %v13364_v14  ;;  %4444 = vst [vmem:[#allocation3 + $0x2f1] sm:$0xff] %v13370_v10  ;;  %v4644_v58 = vpack.c.bf16 %v12972_v51, %v12966_v43  ;;  %v16142_v51 = vld [vmem:[#allocation12_spill] sm:$0xff] }
 0x5bf   :  { %v4308_v18 = vsel %vm16137_vm1, %v16009_v63, %v16136_v19  ;;  %4445 = vst [vmem:[#allocation3 + $0x301] sm:$0xff] %v13376_v55  ;;  %4446 = vst [vmem:[#allocation3 + $0x309] sm:$0xff] %v13382_v52  ;;  %v5480_v39 = vld [vmem:[#allocation3 + $0x62] sm:$0xff]  ;;  %v5481_v21 = vld [vmem:[#allocation3 + $0x6a] sm:$0xff]  ;;  %v13416_v63 = vpack.c.bf16 %v5477_v36, %v5476_v3  ;;  %v13420_v25 = vpack.c.bf16 %v5479_v38, %v5478_v54 }
 0x5c0   :  { %4447 = vst [vmem:[#allocation3 + $0x319] sm:$0xff] %v13392_v60  ;;  %4448 = vst [vmem:[#allocation3 + $0x321] sm:$0xff] %v13398_v47  ;;  %v4645_v29 = vpack.c.bf16 %v12984_v1, %v12978_v59  ;;  %6508 = vmatprep.mubr.bf16.mxu1 %v4644_v58  ;;  %v13425_v19 = vpack.c.bf16 %v5481_v21, %v5480_v39  ;;  %v4647_v43 = vpack.c.bf16 %v13012_v22, %v13006_v53  ;;  %v4455_v1 = vld [vmem:[#allocation3 + $0x30] sm:$0xff]  ;;  %v4456_v36 = vld [vmem:[#allocation3 + $0x38] sm:$0xff] }
 0x5c1   :  { %4449 = vst [vmem:[#allocation3 + $0x331] sm:$0xff] %v4307_v28  ;;  %4450 = vst [vmem:[#allocation3 + $0x339] sm:$0xff] %v4308_v18  ;;  %8856 = vmatprep.mubr.bf16.mxu0 %v13416_v63  ;;  %v4646_v28 = vpack.c.bf16 %v13000_v12, %v12994_v42  ;;  %6509 = vmatmul.mubr.bf16.gmra.mrb[68].mxu1 %v13418_v34  ;;  %v5482_v56 = vld [vmem:[#allocation3 + $0x7a] sm:$0xff]  ;;  %v5483_v42 = vld [vmem:[#allocation3 + $0x82] sm:$0xff]  ;;  %v13444_v38 = vpack.c.bf16 %v4456_v36, %v4455_v1 }
 0x5c2   :  { %16138 = vst [vmem:[#allocation40_spill] sm:$0xff] %v13416_v63  ;;  %16139 = vst [vmem:[#allocation41_spill] sm:$0xff] %v13418_v34  ;;  %8857 = vmatmul.mubr.bf16.vlgmr.msra.gmra.mrb[128].mxu0 %v13420_v25  ;;  %6516 = vmatprep.mubr.bf16.mxu1 %v4645_v29  ;;  %v5484_v15 = vld [vmem:[#allocation3 + $0x92] sm:$0xff]  ;;  %v5485_v54 = vld [vmem:[#allocation3 + $0x9a] sm:$0xff]  ;;  %v13446_v18 = vpack.c.bf16 %v5483_v42, %v5482_v56  ;;  %v16160_v58 = vpack.c.bf16 %v13032_v61, %v13026_v37 }
 0x5c3   :  { %16140 = vst [vmem:[#allocation42_spill] sm:$0xff] %v13420_v25  ;;  %16141 = vst [vmem:[#allocation43_spill] sm:$0xff] %v13425_v19  ;;  %8860 = vmatprep.mubr.bf16.mxu0 %v13425_v19  ;;  %v16145_v39 = vld [vmem:[#allocation13_spill] sm:$0xff]  ;;  %v16146_v21 = vld [vmem:[#allocation15_spill] sm:$0xff]  ;;  %v13452_v3 = vpack.c.bf16 %v5485_v54, %v5484_v15 }
 0x5c4   :  { %16143 = vst [vmem:[#allocation44_spill] sm:$0xff] %v13444_v38  ;;  %16144 = vst [vmem:[#allocation45_spill] sm:$0xff] %v13446_v18  ;;  %v16148_v12 = vld [vmem:[#allocation17_spill] sm:$0xff]  ;;  %v4458_v42 = vld [vmem:[#allocation3 + $0x50] sm:$0xff] }
 0x5c5   :  { %16147 = vst [vmem:[#allocation14_spill] sm:$0xff] %v13452_v3  ;;  %v4457_v56 = vld [vmem:[#allocation3 + $0x48] sm:$0xff]  ;;  %v5487_v29 = vld [vmem:[#allocation3 + $0xb2] sm:$0xff]  ;;  %v5490_v5 = vld [vmem:[#allocation3 + $0xda] sm:$0xff] }
 0x5c6   :  { %v5486_v59 = vld [vmem:[#allocation3 + $0xaa] sm:$0xff]  ;;  %v5488_v36 = vld [vmem:[#allocation3 + $0xc2] sm:$0xff]  ;;  %v13481_v53 = vpack.c.bf16 %v4458_v42, %v4457_v56  ;;  %v5493_v42 = vld [vmem:[#allocation3 + $0xfa] sm:$0xff]  ;;  %v16158_v56 = vmov 0  }
 0x5c7   :  { %v16151_v15 = vld [vmem:[#allocation27_spill] sm:$0xff]  ;;  %v16152_v54 = vld [vmem:[#allocation30_spill] sm:$0xff] }
 0x5c8   :  { %v16153_v25 = vld [vmem:[#allocation31_spill] sm:$0xff]  ;;  %16154 = vst [vmem:[#allocation46_spill] sm:$0xff] %v13481_v53  ;;  %v16156_v22 = vld [vmem:[#allocation38_spill] sm:$0xff] }
 0x5c9   :  { %6517 = vmatmul.mubr.bf16.gmra.mrb[72].mxu1 %v13444_v38  ;;  %v16155_v38 = vld [vmem:[#allocation37_spill] sm:$0xff]  ;;  %v16157_v1 = vld [vmem:[#allocation39_spill] sm:$0xff] }
 0x5ca   :  { %8861 = vmatmul.mubr.bf16.gmra.mrb[132].mxu0 %v13446_v18  ;;  %6524 = vmatprep.mubr.bf16.mxu1 %v4646_v28  ;;  %v5545_v28 = vpack.c.bf16 %v5487_v29, %v5486_v59  ;;  %v9815_v59 = vld [vmem:[%s15626_s5 + $0xc0] sm:$0xff]   ;;  %v4460_v18 = vld [vmem:[#allocation3 + $0x68] sm:$0xff]  ;;  %v4461_v34 = vld [vmem:[#allocation3 + $0x78] sm:$0xff] }
 0x5cb   :  { %8864 = vmatprep.mubr.bf16.mxu0 %v13452_v3  ;;  %v5489_v3 = vld [vmem:[#allocation3 + $0xca] sm:$0xff]  ;;  %v4459_v29 = vld [vmem:[#allocation3 + $0x60] sm:$0xff]  ;;  %6774 = vmatpush1.bf16.msra.mxu1 %v9815_v59  ;;  %v5500_v63 = vld [vmem:[#allocation3 + $0x152] sm:$0xff] }
 0x5cc   :  { %v5546_v16 = vpack.c.bf16 %v5489_v3, %v5488_v36  ;;  %v5491_v19 = vld [vmem:[#allocation3 + $0xe2] sm:$0xff]  ;;  %v5492_v36 = vld [vmem:[#allocation3 + $0xf2] sm:$0xff]  ;;  %6775 = vmatprep.subr.bf16.mxu1 %v16158_v56 }
 0x5cd   :  { %v9816_v3 = vld [vmem:[%s15626_s5 + $0xc8] sm:$0xff]   ;;  %v9817_v59 = vld [vmem:[%s15626_s5 + $0xd0] sm:$0xff]  }
 0x5cf   :  { %6776 = vmatpush1.bf16.msra.mxu1 %v9816_v3 }
 0x5d0   :  { %6777 = vmatprep.subr.bf16.mxu1 %v16158_v56 }
 0x5d1   :  { %6525 = vmatmul.mubr.bf16.gmra.mrb[76].mxu1 %v13481_v53 }
 0x5d2   :  { %8865 = vmatmul.mubr.bf16.gmra.mrb[136].mxu0 %v5545_v28  ;;  %6532 = vmatprep.mubr.bf16.mxu1 %v4647_v43  ;;  %v13505_v28 = vpack.c.bf16 %v4460_v18, %v4459_v29  ;;  %v5548_v43 = vpack.c.bf16 %v5493_v42, %v5492_v36  ;;  %v4462_v18 = vld [vmem:[#allocation3 + $0x80] sm:$0xff]  ;;  %v5494_v29 = vld [vmem:[#allocation3 + $0x10a] sm:$0xff] }
 0x5d3   :  { %8868 = vmatprep.mubr.bf16.mxu0 %v5546_v16  ;;  %v5547_v16 = vpack.c.bf16 %v5491_v19, %v5490_v5  ;;  %v5495_v5 = vld [vmem:[#allocation3 + $0x112] sm:$0xff]  ;;  %6778 = vmatpush1.bf16.msra.mxu1 %v9817_v59  ;;  %v5496_v19 = vld [vmem:[#allocation3 + $0x122] sm:$0xff]  ;;  %v5497_v42 = vld [vmem:[#allocation3 + $0x12a] sm:$0xff]  ;;  %v13516_v3 = vpack.c.bf16 %v4462_v18, %v4461_v34 }
 0x5d4   :  { %16159 = vst [vmem:[#allocation47_spill] sm:$0xff] %v13505_v28  ;;  %6779 = vmatprep.subr.bf16.mxu1 %v16158_v56  ;;  %v5549_v37 = vpack.c.bf16 %v5495_v5, %v5494_v29  ;;  %v5550_v61 = vpack.c.bf16 %v5497_v42, %v5496_v19  ;;  %v4463_v36 = vld [vmem:[#allocation3 + $0x90] sm:$0xff]  ;;  %v5499_v59 = vld [vmem:[#allocation3 + $0x142] sm:$0xff]  ;;  %v16162_v29 = vpack.c.bf16 %v13064_v40, %v13058_v27  ;;  %v5506_v40 = vld [vmem:[#allocation3 + $0x19a] sm:$0xff] }
 0x5d5   :  { %v4466_v5 = vld [vmem:[#allocation3 + $0xb0] sm:$0xff]  ;;  %v16163_v27 = vpack.c.bf16 %v13076_v20, %v13070_v0  ;;  %v9819_v0 = vld [vmem:[%s15626_s5 + $0xe0] sm:$0xff]   ;;  %v4469_v20 = vld [vmem:[#allocation3 + $0xd8] sm:$0xff] }
 0x5d6   :  { %v5502_v19 = vld [vmem:[#allocation3 + $0x16a] sm:$0xff]  ;;  %v5503_v42 = vld [vmem:[#allocation3 + $0x172] sm:$0xff] }
 0x5d9   :  { %6533 = vmatmul.mubr.bf16.gmra.mrb[80].mxu1 %v13505_v28  ;;  %v5501_v28 = vld [vmem:[#allocation3 + $0x15a] sm:$0xff] }
 0x5da   :  { %8869 = vmatmul.mubr.bf16.gmra.mrb[140].mxu0 %v5547_v16  ;;  %6540 = vmatprep.mubr.bf16.mxu1 %v16160_v58  ;;  %v16161_v58 = vpack.c.bf16 %v16142_v51, %v13038_v11  ;;  %v4464_v16 = vld [vmem:[#allocation3 + $0x98] sm:$0xff]  ;;  %v5552_v18 = vpack.c.bf16 %v5501_v28, %v5500_v63  ;;  %v4465_v51 = vld [vmem:[#allocation3 + $0xa8] sm:$0xff]  ;;  %v5553_v28 = vpack.c.bf16 %v5503_v42, %v5502_v19 }
 0x5db   :  { %8872 = vmatprep.mubr.bf16.mxu0 %v5548_v43  ;;  %v5498_v43 = vld [vmem:[#allocation3 + $0x13a] sm:$0xff]  ;;  %v13522_v53 = vpack.c.bf16 %v4464_v16, %v4463_v36  ;;  %v13532_v63 = vpack.c.bf16 %v4466_v5, %v4465_v51  ;;  %v5507_v36 = vld [vmem:[#allocation3 + $0x1a2] sm:$0xff]  ;;  %v16164_v51 = vpack.c.bf16 %v13096_v6, %v13090_v41  ;;  %v16165_v41 = vpack.c.bf16 %v16146_v21, %v16145_v39  ;;  %v4471_v6 = vld [vmem:[#allocation3 + $0xf0] sm:$0xff] }
 0x5dc   :  { %v5551_v34 = vpack.c.bf16 %v5499_v59, %v5498_v43  ;;  %v9818_v11 = vld [vmem:[%s15626_s5 + $0xd8] sm:$0xff]   ;;  %v4467_v16 = vld [vmem:[#allocation3 + $0xc0] sm:$0xff]  ;;  %v4468_v43 = vld [vmem:[#allocation3 + $0xc8] sm:$0xff]  ;;  %v5555_v59 = vpack.c.bf16 %v5507_v36, %v5506_v40 }
 0x5dd   :  { %6780 = vmatpush1.bf16.msra.mxu1 %v9818_v11  ;;  %v4470_v5 = vld [vmem:[#allocation3 + $0xe0] sm:$0xff]  ;;  %v4472_v40 = vld [vmem:[#allocation3 + $0xf8] sm:$0xff]  ;;  %v5514_v36 = vld [vmem:[#allocation3 + $0x22a] sm:$0xff] }
 0x5de   :  { %6781 = vmatprep.subr.bf16.mxu1 %v16158_v56  ;;  %v5510_v19 = vld [vmem:[#allocation3 + $0x1fa] sm:$0xff]  ;;  %v5511_v42 = vld [vmem:[#allocation3 + $0x202] sm:$0xff] }
 0x5df   :  { %v9820_v39 = vld [vmem:[%s15626_s5 + $0xe8] sm:$0xff]  }
 0x5e0   :  { %v4473_v21 = vld [vmem:[#allocation3 + $0x108] sm:$0xff] }
 0x5e1   :  { %6541 = vmatmul.mubr.bf16.gmra.mrb[84].mxu1 %v13516_v3 }
 0x5e2   :  { %8873 = vmatmul.mubr.bf16.gmra.mrb[144].mxu0 %v5549_v37  ;;  %6548 = vmatprep.mubr.bf16.mxu1 %v16161_v58  ;;  %v5504_v37 = vld [vmem:[#allocation3 + $0x182] sm:$0xff] }
 0x5e3   :  { %8876 = vmatprep.mubr.bf16.mxu0 %v5550_v61  ;;  %v5505_v61 = vld [vmem:[#allocation3 + $0x18a] sm:$0xff]  ;;  %6782 = vmatpush1.bf16.msra.mxu1 %v9819_v0 }
 0x5e4   :  { %v5554_v58 = vpack.c.bf16 %v5505_v61, %v5504_v37  ;;  %v5512_v37 = vld [vmem:[#allocation3 + $0x212] sm:$0xff]  ;;  %v5513_v61 = vld [vmem:[#allocation3 + $0x21a] sm:$0xff]  ;;  %6783 = vmatprep.subr.bf16.mxu1 %v16158_v56 }
 0x5e5   :  { %v4474_v0 = vld [vmem:[#allocation3 + $0x110] sm:$0xff] }
 0x5e7   :  { %6784 = vmatpush1.bf16.msra.mxu1 %v9820_v39  ;;  %v5527_v39 = vld [vmem:[#allocation3 + $0x2c2] sm:$0xff] }
 0x5e8   :  { %6785 = vmatprep.subr.bf16.mxu1 %v16158_v56 }
 0x5e9   :  { %6549 = vmatmul.mubr.bf16.gmra.mrb[88].mxu1 %v13522_v53 }
 0x5ea   :  { %8877 = vmatmul.mubr.bf16.gmra.mrb[148].mxu0 %v5551_v34  ;;  %6556 = vmatprep.mubr.bf16.mxu1 %v16162_v29  ;;  %v5508_v34 = vld [vmem:[#allocation3 + $0x1e2] sm:$0xff]  ;;  %v13538_v29 = vpack.c.bf16 %v4468_v43, %v4467_v16  ;;  %v5515_v16 = vld [vmem:[#allocation3 + $0x232] sm:$0xff] }
 0x5eb   :  { %8880 = vmatprep.mubr.bf16.mxu0 %v5552_v18  ;;  %v5509_v18 = vld [vmem:[#allocation3 + $0x1ea] sm:$0xff]  ;;  %v5516_v43 = vld [vmem:[#allocation3 + $0x242] sm:$0xff] }
 0x5ec   :  { %v5556_v11 = vpack.c.bf16 %v5509_v18, %v5508_v34  ;;  %v13554_v34 = vpack.c.bf16 %v4472_v40, %v4471_v6  ;;  %v5559_v18 = vpack.c.bf16 %v5515_v16, %v5514_v36  ;;  %v5523_v6 = vld [vmem:[#allocation3 + $0x292] sm:$0xff]  ;;  %v5524_v40 = vld [vmem:[#allocation3 + $0x2a2] sm:$0xff]  ;;  %v5525_v36 = vld [vmem:[#allocation3 + $0x2aa] sm:$0xff] }
 0x5f1   :  { %6557 = vmatmul.mubr.bf16.gmra.mrb[92].mxu1 %v13532_v63 }
 0x5f2   :  { %8881 = vmatmul.mubr.bf16.gmra.mrb[152].mxu0 %v5553_v28  ;;  %6564 = vmatprep.mubr.bf16.mxu1 %v16163_v27  ;;  %v13548_v28 = vpack.c.bf16 %v4470_v5, %v4469_v20  ;;  %v5558_v27 = vpack.c.bf16 %v5513_v61, %v5512_v37  ;;  %v5518_v20 = vld [vmem:[#allocation3 + $0x25a] sm:$0xff]  ;;  %v5519_v5 = vld [vmem:[#allocation3 + $0x262] sm:$0xff]  ;;  %v13564_v37 = vpack.c.bf16 %v4474_v0, %v4473_v21  ;;  %v5528_v21 = vld [vmem:[#allocation3 + $0x2d2] sm:$0xff] }
 0x5f3   :  { %8884 = vmatprep.mubr.bf16.mxu0 %v5554_v58  ;;  %v5557_v58 = vpack.c.bf16 %v5511_v42, %v5510_v19  ;;  %v5520_v19 = vld [vmem:[#allocation3 + $0x272] sm:$0xff]  ;;  %v5521_v42 = vld [vmem:[#allocation3 + $0x27a] sm:$0xff]  ;;  %v5561_v61 = vpack.c.bf16 %v5519_v5, %v5518_v20 }
 0x5f4   :  { %v5529_v0 = vld [vmem:[#allocation3 + $0x2da] sm:$0xff] }
 0x5f9   :  { %6565 = vmatmul.mubr.bf16.gmra.mrb[96].mxu1 %v13538_v29 }
 0x5fa   :  { %8885 = vmatmul.mubr.bf16.gmra.mrb[156].mxu0 %v5555_v59  ;;  %6572 = vmatprep.mubr.bf16.mxu1 %v16164_v51  ;;  %v5517_v59 = vld [vmem:[#allocation3 + $0x24a] sm:$0xff]  ;;  %v16166_v51 = vpack.c.bf16 %v13124_v31, %v13118_v7  ;;  %v16167_v7 = vpack.c.bf16 %v16148_v12, %v13130_v30  ;;  %v4475_v31 = vld [vmem:[#allocation3 + $0x120] sm:$0xff]  ;;  %v4477_v12 = vld [vmem:[#allocation3 + $0x138] sm:$0xff] }
 0x5fb   :  { %8888 = vmatprep.mubr.bf16.mxu0 %v5556_v11  ;;  %v5560_v11 = vpack.c.bf16 %v5517_v59, %v5516_v43  ;;  %v5564_v59 = vpack.c.bf16 %v5525_v36, %v5524_v40  ;;  %v9821_v30 = vld [vmem:[%s15626_s5 + $0xf0] sm:$0xff]  }
 0x5fc   :  { %6786 = vmatpush1.bf16.msra.mxu1 %v9821_v30  ;;  %v4482_v40 = vld [vmem:[#allocation3 + $0x170] sm:$0xff] }
 0x5fd   :  { %6787 = vmatprep.subr.bf16.mxu1 %v16158_v56 }
 0x601   :  { %6573 = vmatmul.mubr.bf16.gmra.mrb[100].mxu1 %v13548_v28 }
 0x602   :  { %8889 = vmatmul.mubr.bf16.gmra.mrb[160].mxu0 %v5557_v58  ;;  %6580 = vmatprep.mubr.bf16.mxu1 %v16165_v41  ;;  %v5562_v58 = vpack.c.bf16 %v5521_v42, %v5520_v19  ;;  %v5522_v41 = vld [vmem:[#allocation3 + $0x28a] sm:$0xff]  ;;  %v5566_v19 = vpack.c.bf16 %v5529_v0, %v5528_v21  ;;  %v4480_v42 = vld [vmem:[#allocation3 + $0x158] sm:$0xff]  ;;  %v4490_v21 = vld [vmem:[#allocation3 + $0x200] sm:$0xff] }
 0x603   :  { %8892 = vmatprep.mubr.bf16.mxu0 %v5558_v27  ;;  %v4476_v27 = vld [vmem:[#allocation3 + $0x128] sm:$0xff]  ;;  %v5563_v43 = vpack.c.bf16 %v5523_v6, %v5522_v41  ;;  %v4612_v41 = vld [vmem:[#allocation3 + $0x1b9] sm:$0xff] }
 0x604   :  { %v13570_v16 = vpack.c.bf16 %v4476_v27, %v4475_v31  ;;  %v16170_v27 = vpack.c.bf16 %v13180_v62, %v13174_v49  ;;  %v4481_v6 = vld [vmem:[#allocation3 + $0x168] sm:$0xff]  ;;  %v16172_v49 = vpack.c.bf16 %v13204_v13, %v13198_v2  ;;  %v16174_v2 = vpack.c.bf16 %v13230_v48, %v13224_v45  ;;  %v4489_v13 = vld [vmem:[#allocation3 + $0x1f8] sm:$0xff] }
 0x605   :  { %v4485_v62 = vld [vmem:[#allocation3 + $0x1c8] sm:$0xff]  ;;  %v13615_v0 = vpack.c.bf16 %v4490_v21, %v4489_v13  ;;  %v4507_v21 = vld [vmem:[#allocation3 + $0x2d0] sm:$0xff] }
 0x606   :  { %v4493_v48 = vld [vmem:[#allocation3 + $0x228] sm:$0xff] }
 0x609   :  { %6581 = vmatmul.mubr.bf16.gmra.mrb[104].mxu1 %v13554_v34 }
 0x60a   :  { %8893 = vmatmul.mubr.bf16.gmra.mrb[164].mxu0 %v5559_v18  ;;  %6588 = vmatprep.mubr.bf16.mxu1 %v16166_v51  ;;  %v16168_v18 = vpack.c.bf16 %v13152_v8, %v13146_v46  ;;  %v5526_v51 = vld [vmem:[#allocation3 + $0x2ba] sm:$0xff]  ;;  %v16169_v46 = vpack.c.bf16 %v13164_v33, %v13158_v23  ;;  %v4479_v8 = vld [vmem:[#allocation3 + $0x150] sm:$0xff] }
 0x60b   :  { %8896 = vmatprep.mubr.bf16.mxu0 %v5560_v11  ;;  %v4478_v11 = vld [vmem:[#allocation3 + $0x140] sm:$0xff]  ;;  %v5565_v5 = vpack.c.bf16 %v5527_v39, %v5526_v51  ;;  %v9822_v33 = vld [vmem:[%s15626_s5 + $0xf8] sm:$0xff]   ;;  %v4488_v51 = vld [vmem:[#allocation3 + $0x1e8] sm:$0xff] }
 0x60c   :  { %v13580_v20 = vpack.c.bf16 %v4478_v11, %v4477_v12  ;;  %v4611_v23 = vld [vmem:[#allocation3 + $0x1b1] sm:$0xff]  ;;  %6788 = vmatpush1.bf16.msra.mxu1 %v9822_v33  ;;  %v16173_v12 = vpack.c.bf16 %v13216_v32, %v13210_v50  ;;  %v4487_v11 = vld [vmem:[#allocation3 + $0x1e0] sm:$0xff]  ;;  %v4496_v33 = vld [vmem:[#allocation3 + $0x248] sm:$0xff] }
 0x60d   :  { %7046 = vmatprep.subr.bf16.mxu1 %v16158_v56  ;;  %v4659_v36 = vpack.c.bf16 %v4612_v41, %v4611_v23  ;;  %v13609_v39 = vpack.c.bf16 %v4488_v51, %v4487_v11  ;;  %v4491_v32 = vld [vmem:[#allocation3 + $0x210] sm:$0xff]  ;;  %v16181_v41 = vld [vmem:[#allocation25_spill] sm:$0xff] }
 0x60e   :  { %v4504_v11 = vld [vmem:[#allocation3 + $0x2a8] sm:$0xff] }
 0x611   :  { %6589 = vmatmul.mubr.bf16.gmra.mrb[108].mxu1 %v13564_v37 }
 0x612   :  { %8897 = vmatmul.mubr.bf16.gmra.mrb[168].mxu0 %v5561_v61  ;;  %6596 = vmatprep.mubr.bf16.mxu1 %v16167_v7  ;;  %v5530_v61 = vld [vmem:[#allocation3 + $0x2ea] sm:$0xff]  ;;  %v13586_v7 = vpack.c.bf16 %v4480_v42, %v4479_v8  ;;  %v16178_v42 = vld [vmem:[#allocation24_spill] sm:$0xff] }
 0x613   :  { %8900 = vmatprep.mubr.bf16.mxu0 %v5562_v58  ;;  %v5531_v58 = vld [vmem:[#allocation3 + $0x2f2] sm:$0xff]  ;;  %v16179_v45 = vpack.c.bf16 %v13258_v9, %v16178_v42  ;;  %v16182_v9 = vpack.c.bf16 %v16151_v15, %v16181_v41  ;;  %v16184_v15 = vpack.c.bf16 %v16155_v38, %v13308_v57  ;;  %v16186_v57 = vpack.c.bf16 %v13342_v26, %v13336_v35 }
 0x614   :  { %v5567_v31 = vpack.c.bf16 %v5531_v58, %v5530_v61  ;;  %v4494_v61 = vld [vmem:[#allocation3 + $0x230] sm:$0xff]  ;;  %v4505_v38 = vld [vmem:[#allocation3 + $0x2b8] sm:$0xff] }
 0x615   :  { %v13627_v58 = vpack.c.bf16 %v4494_v61, %v4493_v48 }
 0x619   :  { %6597 = vmatmul.mubr.bf16.gmra.mrb[112].mxu1 %v13570_v16 }
 0x61a   :  { %8901 = vmatmul.mubr.bf16.gmra.mrb[172].mxu0 %v5563_v43  ;;  %6604 = vmatprep.mubr.bf16.mxu1 %v16168_v18  ;;  %v13596_v43 = vpack.c.bf16 %v4482_v40, %v4481_v6  ;;  %v4486_v18 = vld [vmem:[#allocation3 + $0x1d0] sm:$0xff]  ;;  %v4497_v6 = vld [vmem:[#allocation3 + $0x258] sm:$0xff]  ;;  %v4498_v40 = vld [vmem:[#allocation3 + $0x260] sm:$0xff] }
 0x61b   :  { %8904 = vmatprep.mubr.bf16.mxu0 %v5564_v59  ;;  %v16171_v59 = vld [vmem:[#allocation35_spill] sm:$0xff]  ;;  %v13603_v30 = vpack.c.bf16 %v4486_v18, %v4485_v62  ;;  %v4501_v62 = vld [vmem:[#allocation3 + $0x288] sm:$0xff] }
 0x61c   :  { %v4502_v18 = vld [vmem:[#allocation3 + $0x290] sm:$0xff] }
 0x621   :  { %6605 = vmatmul.mubr.bf16.gmra.mrb[116].mxu1 %v13580_v20 }
 0x622   :  { %8905 = vmatmul.mubr.bf16.gmra.mrb[176].mxu0 %v5565_v5  ;;  %6612 = vmatprep.mubr.bf16.mxu1 %v16169_v46  ;;  %v16175_v5 = vld [vmem:[#allocation23_spill] sm:$0xff] }
 0x623   :  { %8908 = vmatprep.mubr.bf16.mxu0 %v5566_v19  ;;  %v16176_v19 = vld [vmem:[#allocation20_spill] sm:$0xff] }
 0x624   :  { %v16177_v50 = vpack.c.bf16 %v16175_v5, %v16176_v19  ;;  %v4492_v46 = vld [vmem:[#allocation3 + $0x218] sm:$0xff] }
 0x625   :  { %v13621_v8 = vpack.c.bf16 %v4492_v46, %v4491_v32  ;;  %v4508_v5 = vld [vmem:[#allocation3 + $0x2d8] sm:$0xff]  ;;  %v16188_v32 = vpack.c.bf16 %v13370_v10, %v13364_v14  ;;  %v4510_v46 = vld [vmem:[#allocation3 + $0x2f0] sm:$0xff]  ;;  %v4511_v10 = vld [vmem:[#allocation3 + $0x300] sm:$0xff] }
 0x626   :  { %v13677_v26 = vpack.c.bf16 %v4508_v5, %v4507_v21  ;;  %v9824_v21 = vld [vmem:[%s15626_s5 + $0x108] sm:$0xff]  }
 0x629   :  { %6613 = vmatmul.mubr.bf16.gmra.mrb[120].mxu1 %v13586_v7 }
 0x62a   :  { %8909 = vmatmul.mubr.bf16.gmra.mrb[180].mxu0 %v5567_v31  ;;  %6620 = vmatprep.mubr.bf16.mxu1 %v16170_v27  ;;  %v16180_v31 = vpack.c.bf16 %v13270_v4, %v13264_v24  ;;  %v4495_v27 = vld [vmem:[#allocation3 + $0x240] sm:$0xff]  ;;  %v16183_v24 = vpack.c.bf16 %v16153_v25, %v16152_v54  ;;  %v4499_v4 = vld [vmem:[#allocation3 + $0x270] sm:$0xff]  ;;  %v16185_v25 = vpack.c.bf16 %v16157_v1, %v16156_v22 }
 0x62b   :  { %v13633_v23 = vpack.c.bf16 %v4496_v33, %v4495_v27  ;;  %v4503_v54 = vld [vmem:[#allocation3 + $0x2a0] sm:$0xff]  ;;  %v16187_v22 = vpack.c.bf16 %v13354_v44, %v13348_v17  ;;  %v4509_v44 = vld [vmem:[#allocation3 + $0x2e8] sm:$0xff] }
 0x62c   :  { %v13657_v51 = vpack.c.bf16 %v4504_v11, %v4503_v54  ;;  %v13691_v61 = vpack.c.bf16 %v4510_v46, %v4509_v44  ;;  %v4512_v27 = vld [vmem:[#allocation3 + $0x308] sm:$0xff] }
 0x62d   :  { %v4708_v54 = vld [vmem:[#allocation3 + $0xa] sm:$0xff]  ;;  %v4710_v44 = vld [vmem:[#allocation3 + $0x22] sm:$0xff] }
 0x631   :  { %6621 = vmatmul.mubr.bf16.gmra.mrb[124].mxu1 %v13596_v43 }
 0x632   :  { %6628 = vmatprep.mubr.bf16.mxu1 %v4659_v36  ;;  %v13639_v36 = vpack.c.bf16 %v4498_v40, %v4497_v6  ;;  %v13705_v6 = vpack.c.bf16 %v4512_v27, %v4511_v10  ;;  %v16190_v40 = vpack.c.bf16 %v13398_v47, %v13392_v60  ;;  %v9825_v10 = vld [vmem:[%s15626_s5 + $0x110] sm:$0xff]  }
 0x639   :  { %6629 = vmatmul.mubr.bf16.gmra.mrb[128].mxu1 %v16171_v59  ;;  %v4500_v59 = vld [vmem:[#allocation3 + $0x278] sm:$0xff] }
 0x63a   :  { %6636 = vmatprep.mubr.bf16.mxu1 %v16172_v49  ;;  %v13645_v49 = vpack.c.bf16 %v4500_v59, %v4499_v4 }
 0x641   :  { %6637 = vmatmul.mubr.bf16.gmra.mrb[132].mxu1 %v13603_v30 }
 0x642   :  { %6644 = vmatprep.mubr.bf16.mxu1 %v16173_v12  ;;  %v13651_v12 = vpack.c.bf16 %v4502_v18, %v4501_v62  ;;  %v16191_v18 = vld [vmem:[#allocation41_spill] sm:$0xff] }
 0x649   :  { %6645 = vmatmul.mubr.bf16.gmra.mrb[136].mxu1 %v13609_v39 }
 0x64a   :  { %6652 = vmatprep.mubr.bf16.mxu1 %v16174_v2  ;;  %v4506_v2 = vld [vmem:[#allocation3 + $0x2c0] sm:$0xff] }
 0x64b   :  { %v13663_v13 = vpack.c.bf16 %v4506_v2, %v4505_v38  ;;  %v9823_v38 = vld [vmem:[%s15626_s5 + $0x100] sm:$0xff]  }
 0x651   :  { %6653 = vmatmul.mubr.bf16.gmra.mrb[140].mxu1 %v13615_v0 }
 0x652   :  { %6660 = vmatprep.mubr.bf16.mxu1 %v16177_v50 }
 0x659   :  { %6661 = vmatmul.mubr.bf16.gmra.mrb[144].mxu1 %v13621_v8 }
 0x65a   :  { %6668 = vmatprep.mubr.bf16.mxu1 %v16179_v45 }
 0x661   :  { %6669 = vmatmul.mubr.bf16.gmra.mrb[148].mxu1 %v13627_v58 }
 0x662   :  { %6676 = vmatprep.mubr.bf16.mxu1 %v16180_v31  ;;  %v16189_v31 = vpack.c.bf16 %v13382_v52, %v13376_v55  ;;  %v4513_v55 = vld [vmem:[#allocation3 + $0x318] sm:$0xff] }
 0x669   :  { %6677 = vmatmul.mubr.bf16.gmra.mrb[152].mxu1 %v13633_v23 }
 0x66a   :  { %6684 = vmatprep.mubr.bf16.mxu1 %v16182_v9 }
 0x671   :  { %6685 = vmatmul.mubr.bf16.gmra.mrb[156].mxu1 %v13639_v36 }
 0x672   :  { %6692 = vmatprep.mubr.bf16.mxu1 %v16183_v24  ;;  %v4514_v24 = vld [vmem:[#allocation3 + $0x320] sm:$0xff] }
 0x673   :  { %v13719_v62 = vpack.c.bf16 %v4514_v24, %v4513_v55  ;;  %v16194_v55 = vld [vmem:[#allocation46_spill] sm:$0xff]  ;;  %v9826_v24 = vld [vmem:[%s15626_s5 + $0x118] sm:$0xff]  }
 0x679   :  { %6693 = vmatmul.mubr.bf16.gmra.mrb[160].mxu1 %v13645_v49 }
 0x67a   :  { %6700 = vmatprep.mubr.bf16.mxu1 %v16184_v15 }
 0x681   :  { %6701 = vmatmul.mubr.bf16.gmra.mrb[164].mxu1 %v13651_v12 }
 0x682   :  { %6708 = vmatprep.mubr.bf16.mxu1 %v16185_v25  ;;  %v4707_v25 = vld [vmem:[#allocation3 + $0x2] sm:$0xff] }
 0x683   :  { %v4771_v11 = vpack.c.bf16 %v4708_v54, %v4707_v25 }
 0x689   :  { %6709 = vmatmul.mubr.bf16.gmra.mrb[168].mxu1 %v13657_v51 }
 0x68a   :  { %6716 = vmatprep.mubr.bf16.mxu1 %v16186_v57 }
 0x691   :  { %6717 = vmatmul.mubr.bf16.gmra.mrb[172].mxu1 %v13663_v13 }
 0x692   :  { %6724 = vmatprep.mubr.bf16.mxu1 %v16187_v22  ;;  %v16192_v22 = vld [vmem:[#allocation44_spill] sm:$0xff] }
 0x695   :  { %v13669_v1 = vpop.f32.mrb[128].mxu0 }
 0x696   :  { %v13671_v19 = vpop.f32.mrb[129].mxu0 }
 0x697   :  { %v13673_v50 = vpop.f32.mrb[130].mxu0 }
 0x698   :  { %v13675_v35 = vpop.f32.mrb[131].mxu0 }
 0x699   :  { %6725 = vmatmul.mubr.bf16.gmra.mrb[176].mxu1 %v13677_v26 }
 0x69a   :  { %6732 = vmatprep.mubr.bf16.mxu1 %v16188_v32  ;;  %v4709_v32 = vld [vmem:[#allocation3 + $0x1a] sm:$0xff] }
 0x69d   :  { %v13683_v17 = vpop.f32.mrb[132].mxu0 }
 0x69e   :  { %v13685_v42 = vpop.f32.mrb[133].mxu0 }
 0x69f   :  { %v13687_v45 = vpop.f32.mrb[134].mxu0 }
 0x6a0   :  { %v13689_v48 = vpop.f32.mrb[135].mxu0 }
 0x6a1   :  { %6733 = vmatmul.mubr.bf16.gmra.mrb[180].mxu1 %v13691_v61 }
 0x6a2   :  { %6740 = vmatprep.mubr.bf16.mxu1 %v16189_v31 }
 0x6a5   :  { %v13697_v14 = vpop.f32.mrb[136].mxu0 }
 0x6a6   :  { %v13699_v33 = vpop.f32.mrb[137].mxu0 }
 0x6a7   :  { %v13701_v41 = vpop.f32.mrb[138].mxu0 }
 0x6a8   :  { %v13703_v9 = vpop.f32.mrb[139].mxu0 }
 0x6a9   :  { %6741 = vmatmul.mubr.bf16.gmra.mrb[184].mxu1 %v13705_v6 }
 0x6aa   :  { %6748 = vmatprep.mubr.bf16.mxu1 %v16190_v40  ;;  %v13750_v40 = vpack.c.bf16 %v4710_v44, %v4709_v32  ;;  %v9828_v32 = vld [vmem:[%s15626_s5 + $0x128] sm:$0xff]  }
 0x6ad   :  { %v13711_v52 = vpop.f32.mrb[140].mxu0 }
 0x6ae   :  { %v13713_v4 = vpop.f32.mrb[141].mxu0 }
 0x6af   :  { %v13715_v59 = vpop.f32.mrb[142].mxu0 }
 0x6b0   :  { %v13717_v15 = vpop.f32.mrb[143].mxu0 }
 0x6b1   :  { %6749 = vmatmul.mubr.bf16.gmra.mrb[188].mxu1 %v13719_v62 }
 0x6b2   :  { %6789 = vmatprep.mubr.bf16.mxu1 %v16191_v18 }
 0x6b5   :  { %v13723_v60 = vpop.f32.mrb[144].mxu0 }
 0x6b6   :  { %v13725_v47 = vpop.f32.mrb[145].mxu0 }
 0x6b7   :  { %v13727_v57 = vpop.f32.mrb[146].mxu0 }
 0x6b8   :  { %v13732_v2 = vpop.f32.mrb[147].mxu0 }
 0x6b9   :  { %6790 = vmatmul.mubr.bf16.vlgmr.msra.gmra.mrb[64].mxu1 %v4771_v11  ;;  %v9827_v11 = vld [vmem:[%s15626_s5 + $0x120] sm:$0xff]  }
 0x6ba   :  { %6797 = vmatprep.mubr.bf16.mxu1 %v16192_v22  ;;  %7047 = vmatpush1.bf16.msra.mxu1 %v9823_v38  ;;  %v16199_v22 = vld [vmem:[#allocation40_spill] sm:$0xff] }
 0x6bb   :  { %7048 = vmatprep.subr.bf16.mxu1 %v16158_v56 }
 0x6bd   :  { %v13739_v5 = vpop.f32.mrb[148].mxu0 }
 0x6be   :  { %v13741_v46 = vpop.f32.mrb[149].mxu0  ;;  %7049 = vmatpush1.bf16.msra.mxu1 %v9824_v21  ;;  %v16200_v21 = vld [vmem:[#allocation47_spill] sm:$0xff] }
 0x6bf   :  { %v13743_v31 = vpop.f32.mrb[150].mxu0  ;;  %7050 = vmatprep.subr.bf16.mxu1 %v16158_v56 }
 0x6c0   :  { %16193 = vst [vmem:[#allocation48_spill] sm:$0xff] %v13743_v31  ;;  %v13748_v27 = vpop.f32.mrb[151].mxu0 }
 0x6c1   :  { %6798 = vmatmul.mubr.bf16.gmra.mrb[68].mxu1 %v13750_v40 }
 0x6c2   :  { %6805 = vmatprep.mubr.bf16.mxu1 %v16194_v55  ;;  %7051 = vmatpush1.bf16.msra.mxu1 %v9825_v10 }
 0x6c3   :  { %7052 = vmatprep.subr.bf16.mxu1 %v16158_v56 }
 0x6c5   :  { %v13759_v18 = vpop.f32.mrb[152].mxu0 }
 0x6c6   :  { %16195 = vst [vmem:[#allocation49_spill] sm:$0xff] %v13759_v18  ;;  %v13761_v25 = vpop.f32.mrb[153].mxu0  ;;  %7053 = vmatpush1.bf16.msra.mxu1 %v9826_v24  ;;  %v9829_v24 = vld [vmem:[%s15626_s5 + $0x130] sm:$0xff]  }
 0x6c7   :  { %16196 = vst [vmem:[#allocation32_spill] sm:$0xff] %v13761_v25  ;;  %v13763_v54 = vpop.f32.mrb[154].mxu0  ;;  %7054 = vmatprep.subr.bf16.mxu1 %v16158_v56  ;;  %v9841_v18 = vld [vmem:[%s15626_s5 + $0x190] sm:$0xff]  }
 0x6c8   :  { %16197 = vst [vmem:[#allocation16_spill] sm:$0xff] %v13763_v54  ;;  %v13768_v38 = vpop.f32.mrb[155].mxu0  ;;  %v5094_v54 = vld [vmem:[#allocation3 + $0x3a] sm:$0xff] }
 0x6c9   :  { %16198 = vst [vmem:[#allocation50_spill] sm:$0xff] %v13768_v38  ;;  %6806 = vmatmul.mubr.bf16.gmra.mrb[72].mxu1 %v16199_v22  ;;  %v5102_v38 = vld [vmem:[#allocation3 + $0x9a] sm:$0xff] }
 0x6ca   :  { %6813 = vmatprep.mubr.bf16.mxu1 %v16200_v21  ;;  %7055 = vmatpush1.bf16.msra.mxu1 %v9827_v11  ;;  %v16205_v11 = vld [vmem:[#allocation42_spill] sm:$0xff]  ;;  %v9830_v21 = vld [vmem:[%s15626_s5 + $0x138] sm:$0xff]  }
 0x6cb   :  { %7056 = vmatprep.subr.bf16.mxu1 %v16158_v56 }
 0x6cd   :  { %v13777_v44 = vpop.f32.mrb[156].mxu0 }
 0x6ce   :  { %16201 = vst [vmem:[#allocation18_spill] sm:$0xff] %v13777_v44  ;;  %v13779_v10 = vpop.f32.mrb[157].mxu0  ;;  %7057 = vmatpush1.bf16.msra.mxu1 %v9828_v32 }
 0x6cf   :  { %16202 = vst [vmem:[#allocation51_spill] sm:$0xff] %v13779_v10  ;;  %v13781_v55 = vpop.f32.mrb[158].mxu0  ;;  %7058 = vmatprep.subr.bf16.mxu1 %v16158_v56 }
 0x6d0   :  { %16203 = vst [vmem:[#allocation19_spill] sm:$0xff] %v13781_v55  ;;  %v13786_v22 = vpop.f32.mrb[159].mxu0 }
 0x6d1   :  { %16204 = vst [vmem:[#allocation52_spill] sm:$0xff] %v13786_v22  ;;  %6814 = vmatmul.mubr.bf16.gmra.mrb[76].mxu1 %v16205_v11  ;;  %v9831_v11 = vld [vmem:[%s15626_s5 + $0x140] sm:$0xff]  }
 0x6d2   :  { %6821 = vmatprep.mubr.bf16.mxu1 %v13516_v3  ;;  %7059 = vmatpush1.bf16.msra.mxu1 %v9829_v24  ;;  %v16210_v3 = vld [vmem:[#allocation43_spill] sm:$0xff]  ;;  %v9832_v24 = vld [vmem:[%s15626_s5 + $0x148] sm:$0xff]  }
 0x6d3   :  { %7060 = vmatprep.subr.bf16.mxu1 %v16158_v56 }
 0x6d5   :  { %v13795_v32 = vpop.f32.mrb[160].mxu0 }
 0x6d6   :  { %16206 = vst [vmem:[#allocation53_spill] sm:$0xff] %v13795_v32  ;;  %v13797_v55 = vpop.f32.mrb[161].mxu0  ;;  %7061 = vmatpush1.bf16.msra.mxu1 %v9830_v21 }
 0x6d7   :  { %16207 = vst [vmem:[#allocation54_spill] sm:$0xff] %v13797_v55  ;;  %v13799_v44 = vpop.f32.mrb[162].mxu0  ;;  %7062 = vmatprep.subr.bf16.mxu1 %v16158_v56 }
 0x6d8   :  { %16208 = vst [vmem:[#allocation55_spill] sm:$0xff] %v13799_v44  ;;  %v13804_v22 = vpop.f32.mrb[163].mxu0 }
 0x6d9   :  { %16209 = vst [vmem:[#allocation21_spill] sm:$0xff] %v13804_v22  ;;  %6822 = vmatmul.mubr.bf16.gmra.mrb[80].mxu1 %v16210_v3  ;;  %v9833_v3 = vld [vmem:[%s15626_s5 + $0x150] sm:$0xff]  }
 0x6da   :  { %6829 = vmatprep.mubr.bf16.mxu1 %v13522_v53  ;;  %7063 = vmatpush1.bf16.msra.mxu1 %v9831_v11  ;;  %v16215_v53 = vld [vmem:[#allocation45_spill] sm:$0xff] }
 0x6db   :  { %7064 = vmatprep.subr.bf16.mxu1 %v16158_v56 }
 0x6dd   :  { %v13813_v21 = vpop.f32.mrb[164].mxu0 }
 0x6de   :  { %16211 = vst [vmem:[#allocation56_spill] sm:$0xff] %v13813_v21  ;;  %v13815_v44 = vpop.f32.mrb[165].mxu0  ;;  %7065 = vmatpush1.bf16.msra.mxu1 %v9832_v24 }
 0x6df   :  { %16212 = vst [vmem:[#allocation57_spill] sm:$0xff] %v13815_v44  ;;  %v13817_v32 = vpop.f32.mrb[166].mxu0  ;;  %7066 = vmatprep.subr.bf16.mxu1 %v16158_v56  ;;  %v16220_v44 = vld [vmem:[#allocation14_spill] sm:$0xff] }
 0x6e0   :  { %16213 = vst [vmem:[#allocation58_spill] sm:$0xff] %v13817_v32  ;;  %v13822_v22 = vpop.f32.mrb[167].mxu0 }
 0x6e1   :  { %16214 = vst [vmem:[#allocation59_spill] sm:$0xff] %v13822_v22  ;;  %6830 = vmatmul.mubr.bf16.gmra.mrb[84].mxu1 %v16215_v53  ;;  %v9834_v53 = vld [vmem:[%s15626_s5 + $0x158] sm:$0xff]  }
 0x6e2   :  { %6837 = vmatprep.mubr.bf16.mxu1 %v13532_v63  ;;  %7067 = vmatpush1.bf16.msra.mxu1 %v9833_v3  ;;  %v4721_v3 = vld [vmem:[#allocation3 + $0xaa] sm:$0xff]  ;;  %v4722_v22 = vld [vmem:[#allocation3 + $0xb2] sm:$0xff] }
 0x6e3   :  { %7068 = vmatprep.subr.bf16.mxu1 %v16158_v56 }
 0x6e5   :  { %v13828_v11 = vpop.f32.mrb[168].mxu0 }
 0x6e6   :  { %16216 = vst [vmem:[#allocation60_spill] sm:$0xff] %v13828_v11  ;;  %v13830_v21 = vpop.f32.mrb[169].mxu0  ;;  %7069 = vmatpush1.bf16.msra.mxu1 %v9834_v53 }
 0x6e7   :  { %16217 = vst [vmem:[#allocation61_spill] sm:$0xff] %v13830_v21  ;;  %v13832_v24 = vpop.f32.mrb[170].mxu0  ;;  %7070 = vmatprep.subr.bf16.mxu1 %v16158_v56  ;;  %v4724_v21 = vld [vmem:[#allocation3 + $0xca] sm:$0xff] }
 0x6e8   :  { %16218 = vst [vmem:[#allocation62_spill] sm:$0xff] %v13832_v24  ;;  %v13834_v32 = vpop.f32.mrb[171].mxu0 }
 0x6e9   :  { %16219 = vst [vmem:[#allocation63_spill] sm:$0xff] %v13834_v32  ;;  %6838 = vmatmul.mubr.bf16.gmra.mrb[88].mxu1 %v16220_v44  ;;  %v13850_v44 = vpack.c.bf16 %v4722_v22, %v4721_v3  ;;  %v4725_v3 = vld [vmem:[#allocation3 + $0xda] sm:$0xff] }
 0x6ea   :  { %6845 = vmatprep.mubr.bf16.mxu1 %v13538_v29 }
 0x6ed   :  { %v13841_v63 = vpop.f32.mrb[172].mxu0 }
 0x6ee   :  { %16221 = vst [vmem:[#allocation64_spill] sm:$0xff] %v13841_v63  ;;  %v13843_v11 = vpop.f32.mrb[173].mxu0  ;;  %v4723_v63 = vld [vmem:[#allocation3 + $0xc2] sm:$0xff] }
 0x6ef   :  { %16222 = vst [vmem:[#allocation33_spill] sm:$0xff] %v13843_v11  ;;  %v13846_v24 = vpop.f32.mrb[174].mxu0  ;;  %v13862_v10 = vpack.c.bf16 %v4724_v21, %v4723_v63 }
 0x6f0   :  { %16223 = vst [vmem:[#allocation65_spill] sm:$0xff] %v13846_v24  ;;  %v13848_v32 = vpop.f32.mrb[175].mxu0 }
 0x6f1   :  { %16224 = vst [vmem:[#allocation22_spill] sm:$0xff] %v13848_v32  ;;  %6846 = vmatmul.mubr.bf16.gmra.mrb[92].mxu1 %v13850_v44 }
 0x6f2   :  { %6853 = vmatprep.mubr.bf16.mxu1 %v13548_v28  ;;  %v9835_v28 = vld [vmem:[%s15626_s5 + $0x160] sm:$0xff]  }
 0x6f3   :  { %7071 = vmatpush1.bf16.msra.mxu1 %v9835_v28  ;;  %v9836_v28 = vld [vmem:[%s15626_s5 + $0x168] sm:$0xff]  }
 0x6f4   :  { %7072 = vmatprep.subr.bf16.mxu1 %v16158_v56 }
 0x6f5   :  { %v13854_v29 = vpop.f32.mrb[176].mxu0 }
 0x6f6   :  { %16225 = vst [vmem:[#allocation28_spill] sm:$0xff] %v13854_v29  ;;  %v13856_v55 = vpop.f32.mrb[177].mxu0  ;;  %v4726_v29 = vld [vmem:[#allocation3 + $0xe2] sm:$0xff] }
 0x6f7   :  { %16226 = vst [vmem:[#allocation66_spill] sm:$0xff] %v13856_v55  ;;  %v13858_v53 = vpop.f32.mrb[178].mxu0  ;;  %v13878_v63 = vpack.c.bf16 %v4726_v29, %v4725_v3  ;;  %7073 = vmatpush1.bf16.msra.mxu1 %v9836_v28  ;;  %v4734_v28 = vld [vmem:[#allocation3 + $0x142] sm:$0xff] }
 0x6f8   :  { %16227 = vst [vmem:[#allocation67_spill] sm:$0xff] %v13858_v53  ;;  %v13860_v11 = vpop.f32.mrb[179].mxu0  ;;  %7074 = vmatprep.subr.bf16.mxu1 %v16158_v56 }
 0x6f9   :  { %16228 = vst [vmem:[#allocation68_spill] sm:$0xff] %v13860_v11  ;;  %6854 = vmatmul.mubr.bf16.gmra.mrb[96].mxu1 %v13862_v10  ;;  %v4728_v11 = vld [vmem:[#allocation3 + $0xfa] sm:$0xff] }
 0x6fa   :  { %6861 = vmatprep.mubr.bf16.mxu1 %v13554_v34  ;;  %v4727_v34 = vld [vmem:[#allocation3 + $0xf2] sm:$0xff] }
 0x6fd   :  { %v13869_v22 = vpop.f32.mrb[180].mxu0 }
 0x6fe   :  { %16229 = vst [vmem:[#allocation69_spill] sm:$0xff] %v13869_v22  ;;  %v13871_v55 = vpop.f32.mrb[181].mxu0  ;;  %v13882_v22 = vpack.c.bf16 %v4728_v11, %v4727_v34  ;;  %v4732_v11 = vld [vmem:[#allocation3 + $0x12a] sm:$0xff]  ;;  %v4733_v34 = vld [vmem:[#allocation3 + $0x13a] sm:$0xff] }
 0x6ff   :  { %16230 = vst [vmem:[#allocation29_spill] sm:$0xff] %v13871_v55  ;;  %v13874_v53 = vpop.f32.mrb[182].mxu0 }
 0x700   :  { %16231 = vst [vmem:[#allocation70_spill] sm:$0xff] %v13874_v53  ;;  %v13876_v21 = vpop.f32.mrb[183].mxu0  ;;  %v4729_v53 = vld [vmem:[#allocation3 + $0x10a] sm:$0xff] }
 0x701   :  { %16232 = vst [vmem:[#allocation34_spill] sm:$0xff] %v13876_v21  ;;  %6862 = vmatmul.mubr.bf16.gmra.mrb[100].mxu1 %v13878_v63  ;;  %v4730_v21 = vld [vmem:[#allocation3 + $0x112] sm:$0xff] }
 0x702   :  { %6869 = vmatprep.mubr.bf16.mxu1 %v13564_v37  ;;  %v13890_v29 = vpack.c.bf16 %v4730_v21, %v4729_v53  ;;  %v4731_v37 = vld [vmem:[#allocation3 + $0x122] sm:$0xff]  ;;  %v13902_v53 = vpack.c.bf16 %v4734_v28, %v4733_v34  ;;  %v4736_v21 = vld [vmem:[#allocation3 + $0x15a] sm:$0xff]  ;;  %v4737_v34 = vld [vmem:[#allocation3 + $0x16a] sm:$0xff] }
 0x703   :  { %v13894_v3 = vpack.c.bf16 %v4732_v11, %v4731_v37  ;;  %v4865_v37 = vld [vmem:[#allocation3 + $0x180] sm:$0xff]  ;;  %v4866_v11 = vld [vmem:[#allocation3 + $0x188] sm:$0xff]  ;;  %v4738_v28 = vld [vmem:[#allocation3 + $0x172] sm:$0xff] }
 0x704   :  { %v4914_v55 = vpack.c.bf16 %v4866_v11, %v4865_v37  ;;  %v4742_v11 = vld [vmem:[#allocation3 + $0x1d2] sm:$0xff] }
 0x709   :  { %6870 = vmatmul.mubr.bf16.gmra.mrb[104].mxu1 %v13882_v22 }
 0x70a   :  { %6877 = vmatprep.mubr.bf16.mxu1 %v13570_v16  ;;  %v9837_v16 = vld [vmem:[%s15626_s5 + $0x170] sm:$0xff]  }
 0x70b   :  { %7075 = vmatpush1.bf16.msra.mxu1 %v9837_v16  ;;  %v9838_v16 = vld [vmem:[%s15626_s5 + $0x178] sm:$0xff]  }
 0x70c   :  { %7076 = vmatprep.subr.bf16.mxu1 %v16158_v56 }
 0x70f   :  { %7077 = vmatpush1.bf16.msra.mxu1 %v9838_v16  ;;  %v4743_v16 = vld [vmem:[#allocation3 + $0x1e2] sm:$0xff] }
 0x710   :  { %7335 = vmatprep.subr.bf16.mxu1 %v16158_v56 }
 0x711   :  { %6878 = vmatmul.mubr.bf16.gmra.mrb[108].mxu1 %v13890_v29 }
 0x712   :  { %6885 = vmatprep.mubr.bf16.mxu1 %v13580_v20  ;;  %v4735_v20 = vld [vmem:[#allocation3 + $0x152] sm:$0xff] }
 0x719   :  { %6886 = vmatmul.mubr.bf16.gmra.mrb[112].mxu1 %v13894_v3 }
 0x71a   :  { %6893 = vmatprep.mubr.bf16.mxu1 %v13586_v7  ;;  %v13906_v7 = vpack.c.bf16 %v4736_v21, %v4735_v20  ;;  %v4739_v20 = vld [vmem:[#allocation3 + $0x1b2] sm:$0xff]  ;;  %v4740_v21 = vld [vmem:[#allocation3 + $0x1ba] sm:$0xff] }
 0x71b   :  { %v4787_v37 = vpack.c.bf16 %v4740_v21, %v4739_v20  ;;  %v4746_v20 = vld [vmem:[#allocation3 + $0x202] sm:$0xff] }
 0x721   :  { %6894 = vmatmul.mubr.bf16.gmra.mrb[116].mxu1 %v13902_v53 }
 0x722   :  { %6901 = vmatprep.mubr.bf16.mxu1 %v13596_v43  ;;  %v13913_v43 = vpack.c.bf16 %v4738_v28, %v4737_v34  ;;  %v4744_v34 = vld [vmem:[#allocation3 + $0x1ea] sm:$0xff] }
 0x723   :  { %v13922_v28 = vpack.c.bf16 %v4744_v34, %v4743_v16  ;;  %v4752_v34 = vld [vmem:[#allocation3 + $0x24a] sm:$0xff] }
 0x729   :  { %6902 = vmatmul.mubr.bf16.gmra.mrb[120].mxu1 %v13906_v7 }
 0x72a   :  { %6909 = vmatprep.mubr.bf16.mxu1 %v4914_v55  ;;  %v4741_v55 = vld [vmem:[#allocation3 + $0x1ca] sm:$0xff] }
 0x72b   :  { %v13918_v24 = vpack.c.bf16 %v4742_v11, %v4741_v55  ;;  %v4750_v11 = vld [vmem:[#allocation3 + $0x232] sm:$0xff] }
 0x731   :  { %6910 = vmatmul.mubr.bf16.gmra.mrb[124].mxu1 %v13913_v43 }
 0x732   :  { %6917 = vmatprep.mubr.bf16.mxu1 %v13603_v30  ;;  %v4745_v30 = vld [vmem:[#allocation3 + $0x1fa] sm:$0xff] }
 0x733   :  { %v13926_v21 = vpack.c.bf16 %v4746_v20, %v4745_v30  ;;  %v4754_v20 = vld [vmem:[#allocation3 + $0x262] sm:$0xff] }
 0x739   :  { %6918 = vmatmul.mubr.bf16.gmra.mrb[128].mxu1 %v4787_v37  ;;  %v4748_v37 = vld [vmem:[#allocation3 + $0x21a] sm:$0xff] }
 0x73a   :  { %6925 = vmatprep.mubr.bf16.mxu1 %v13609_v39  ;;  %v4747_v39 = vld [vmem:[#allocation3 + $0x212] sm:$0xff] }
 0x73b   :  { %v13930_v55 = vpack.c.bf16 %v4748_v37, %v4747_v39  ;;  %v4756_v37 = vld [vmem:[#allocation3 + $0x27a] sm:$0xff] }
 0x741   :  { %6926 = vmatmul.mubr.bf16.gmra.mrb[132].mxu1 %v13918_v24 }
 0x742   :  { %6933 = vmatprep.mubr.bf16.mxu1 %v13615_v0  ;;  %v4749_v0 = vld [vmem:[#allocation3 + $0x22a] sm:$0xff] }
 0x743   :  { %v13934_v16 = vpack.c.bf16 %v4750_v11, %v4749_v0  ;;  %v4758_v11 = vld [vmem:[#allocation3 + $0x292] sm:$0xff] }
 0x749   :  { %6934 = vmatmul.mubr.bf16.gmra.mrb[136].mxu1 %v13922_v28 }
 0x74a   :  { %6941 = vmatprep.mubr.bf16.mxu1 %v13621_v8  ;;  %v4751_v8 = vld [vmem:[#allocation3 + $0x242] sm:$0xff] }
 0x74b   :  { %v13938_v30 = vpack.c.bf16 %v4752_v34, %v4751_v8  ;;  %v4760_v34 = vld [vmem:[#allocation3 + $0x2aa] sm:$0xff] }
 0x751   :  { %6942 = vmatmul.mubr.bf16.gmra.mrb[140].mxu1 %v13926_v21 }
 0x752   :  { %6949 = vmatprep.mubr.bf16.mxu1 %v13627_v58  ;;  %v4753_v58 = vld [vmem:[#allocation3 + $0x25a] sm:$0xff] }
 0x753   :  { %v13942_v39 = vpack.c.bf16 %v4754_v20, %v4753_v58  ;;  %v4762_v20 = vld [vmem:[#allocation3 + $0x2c2] sm:$0xff] }
 0x759   :  { %6950 = vmatmul.mubr.bf16.gmra.mrb[144].mxu1 %v13930_v55 }
 0x75a   :  { %6957 = vmatprep.mubr.bf16.mxu1 %v13633_v23  ;;  %v4755_v23 = vld [vmem:[#allocation3 + $0x272] sm:$0xff] }
 0x75b   :  { %v13946_v0 = vpack.c.bf16 %v4756_v37, %v4755_v23  ;;  %v4764_v37 = vld [vmem:[#allocation3 + $0x2da] sm:$0xff] }
 0x761   :  { %6958 = vmatmul.mubr.bf16.gmra.mrb[148].mxu1 %v13934_v16 }
 0x762   :  { %6965 = vmatprep.mubr.bf16.mxu1 %v13639_v36  ;;  %v4757_v36 = vld [vmem:[#allocation3 + $0x28a] sm:$0xff] }
 0x763   :  { %v13950_v8 = vpack.c.bf16 %v4758_v11, %v4757_v36  ;;  %v4766_v11 = vld [vmem:[#allocation3 + $0x2f2] sm:$0xff] }
 0x769   :  { %6966 = vmatmul.mubr.bf16.gmra.mrb[152].mxu1 %v13938_v30 }
 0x76a   :  { %6973 = vmatprep.mubr.bf16.mxu1 %v13645_v49  ;;  %v4759_v49 = vld [vmem:[#allocation3 + $0x2a2] sm:$0xff] }
 0x76b   :  { %v13954_v58 = vpack.c.bf16 %v4760_v34, %v4759_v49  ;;  %v4768_v34 = vld [vmem:[#allocation3 + $0x30a] sm:$0xff] }
 0x771   :  { %6974 = vmatmul.mubr.bf16.gmra.mrb[156].mxu1 %v13942_v39 }
 0x772   :  { %6981 = vmatprep.mubr.bf16.mxu1 %v13651_v12  ;;  %v4761_v12 = vld [vmem:[#allocation3 + $0x2ba] sm:$0xff] }
 0x773   :  { %v13958_v23 = vpack.c.bf16 %v4762_v20, %v4761_v12  ;;  %v4897_v12 = vld [vmem:[#allocation3 + $0x330] sm:$0xff] }
 0x779   :  { %6982 = vmatmul.mubr.bf16.gmra.mrb[160].mxu1 %v13946_v0 }
 0x77a   :  { %6989 = vmatprep.mubr.bf16.mxu1 %v13657_v51  ;;  %v4763_v51 = vld [vmem:[#allocation3 + $0x2d2] sm:$0xff] }
 0x77b   :  { %v13962_v36 = vpack.c.bf16 %v4764_v37, %v4763_v51  ;;  %v4769_v37 = vld [vmem:[#allocation3 + $0x31a] sm:$0xff] }
 0x781   :  { %6990 = vmatmul.mubr.bf16.gmra.mrb[164].mxu1 %v13950_v8 }
 0x782   :  { %6997 = vmatprep.mubr.bf16.mxu1 %v13663_v13  ;;  %v4765_v13 = vld [vmem:[#allocation3 + $0x2ea] sm:$0xff] }
 0x783   :  { %v13966_v49 = vpack.c.bf16 %v4766_v11, %v4765_v13  ;;  %v4963_v13 = vld [vmem:[#allocation3 + $0x19] sm:$0xff] }
 0x784   :  { %v5093_v11 = vld [vmem:[#allocation3 + $0x32] sm:$0xff] }
 0x789   :  { %6998 = vmatmul.mubr.bf16.gmra.mrb[168].mxu1 %v13954_v58 }
 0x78a   :  { %7005 = vmatprep.mubr.bf16.mxu1 %v13677_v26  ;;  %v4767_v26 = vld [vmem:[#allocation3 + $0x302] sm:$0xff] }
 0x78b   :  { %v13970_v20 = vpack.c.bf16 %v4768_v34, %v4767_v26  ;;  %v9839_v26 = vld [vmem:[%s15626_s5 + $0x180] sm:$0xff]  }
 0x791   :  { %7006 = vmatmul.mubr.bf16.gmra.mrb[172].mxu1 %v13958_v23 }
 0x792   :  { %7013 = vmatprep.mubr.bf16.mxu1 %v13691_v61  ;;  %v4898_v61 = vld [vmem:[#allocation3 + $0x338] sm:$0xff] }
 0x793   :  { %v4930_v51 = vpack.c.bf16 %v4898_v61, %v4897_v12  ;;  %v5156_v12 = vpack.c.bf16 %v5094_v54, %v5093_v11  ;;  %v9840_v61 = vld [vmem:[%s15626_s5 + $0x188] sm:$0xff]  }
 0x794   :  { %v4967_v11 = vld [vmem:[#allocation3 + $0x49] sm:$0xff] }
 0x799   :  { %7014 = vmatmul.mubr.bf16.gmra.mrb[176].mxu1 %v13962_v36 }
 0x79a   :  { %7021 = vmatprep.mubr.bf16.mxu1 %v13705_v6  ;;  %v4770_v6 = vld [vmem:[#allocation3 + $0x322] sm:$0xff] }
 0x79b   :  { %v13973_v32 = vpack.c.bf16 %v4770_v6, %v4769_v37  ;;  %v5095_v37 = vld [vmem:[#allocation3 + $0x4a] sm:$0xff]  ;;  %v5096_v6 = vld [vmem:[#allocation3 + $0x52] sm:$0xff] }
 0x79c   :  { %v5157_v54 = vpack.c.bf16 %v5096_v6, %v5095_v37  ;;  %v4969_v37 = vld [vmem:[#allocation3 + $0x61] sm:$0xff]  ;;  %v4970_v6 = vld [vmem:[#allocation3 + $0x69] sm:$0xff] }
 0x7a1   :  { %7022 = vmatmul.mubr.bf16.gmra.mrb[180].mxu1 %v13966_v49 }
 0x7a2   :  { %7029 = vmatprep.mubr.bf16.mxu1 %v13719_v62  ;;  %v4964_v62 = vld [vmem:[#allocation3 + $0x21] sm:$0xff] }
 0x7a3   :  { %v5027_v34 = vpack.c.bf16 %v4964_v62, %v4963_v13  ;;  %v9842_v62 = vld [vmem:[%s15626_s5 + $0x198] sm:$0xff]  }
 0x7a9   :  { %7030 = vmatmul.mubr.bf16.gmra.mrb[184].mxu1 %v13970_v20 }
 0x7aa   :  { %7037 = vmatprep.mubr.bf16.mxu1 %v4930_v51  ;;  %v4966_v51 = vld [vmem:[#allocation3 + $0x39] sm:$0xff] }
 0x7b1   :  { %7038 = vmatmul.mubr.bf16.gmra.mrb[188].mxu1 %v13973_v32 }
 0x7b2   :  { %7078 = vmatprep.mubr.bf16.mxu1 %v13750_v40  ;;  %v4965_v40 = vld [vmem:[#allocation3 + $0x31] sm:$0xff] }
 0x7b3   :  { %v13987_v13 = vpack.c.bf16 %v4966_v51, %v4965_v40  ;;  %v9844_v51 = vld [vmem:[%s15626_s5 + $0x1a8] sm:$0xff]  }
 0x7b9   :  { %7079 = vmatmul.mubr.bf16.vlgmr.msra.gmra.mrb[64].mxu1 %v5027_v34  ;;  %v5097_v34 = vld [vmem:[#allocation3 + $0x62] sm:$0xff] }
 0x7ba   :  { %7086 = vmatprep.mubr.bf16.mxu1 %v5156_v12  ;;  %7336 = vmatpush1.bf16.msra.mxu1 %v9839_v26  ;;  %v4968_v26 = vld [vmem:[#allocation3 + $0x51] sm:$0xff] }
 0x7bb   :  { %7337 = vmatprep.subr.bf16.mxu1 %v16158_v56  ;;  %v5098_v12 = vld [vmem:[#allocation3 + $0x6a] sm:$0xff]  ;;  %v13998_v40 = vpack.c.bf16 %v4968_v26, %v4967_v11  ;;  %v14009_v26 = vpack.c.bf16 %v4970_v6, %v4969_v37  ;;  %v9847_v37 = vld [vmem:[%s15626_s5 + $0x1c0] sm:$0xff]  }
 0x7bc   :  { %v9845_v11 = vld [vmem:[%s15626_s5 + $0x1b0] sm:$0xff]  }
 0x7be   :  { %7338 = vmatpush1.bf16.msra.mxu1 %v9840_v61  ;;  %v9843_v61 = vld [vmem:[%s15626_s5 + $0x1a0] sm:$0xff]  }
 0x7bf   :  { %7339 = vmatprep.subr.bf16.mxu1 %v16158_v56 }
 0x7c1   :  { %7087 = vmatmul.mubr.bf16.gmra.mrb[68].mxu1 %v13987_v13 }
 0x7c2   :  { %7094 = vmatprep.mubr.bf16.mxu1 %v5157_v54  ;;  %7340 = vmatpush1.bf16.msra.mxu1 %v9841_v18  ;;  %v5158_v18 = vpack.c.bf16 %v5098_v12, %v5097_v34  ;;  %v5099_v54 = vld [vmem:[#allocation3 + $0x7a] sm:$0xff] }
 0x7c3   :  { %7341 = vmatprep.subr.bf16.mxu1 %v16158_v56  ;;  %v9846_v12 = vld [vmem:[%s15626_s5 + $0x1b8] sm:$0xff]  }
 0x7c6   :  { %7342 = vmatpush1.bf16.msra.mxu1 %v9842_v62  ;;  %v5100_v62 = vld [vmem:[#allocation3 + $0x82] sm:$0xff] }
 0x7c7   :  { %7343 = vmatprep.subr.bf16.mxu1 %v16158_v56  ;;  %v5159_v34 = vpack.c.bf16 %v5100_v62, %v5099_v54  ;;  %v9848_v62 = vld [vmem:[%s15626_s5 + $0x1c8] sm:$0xff]  }
 0x7c9   :  { %7095 = vmatmul.mubr.bf16.gmra.mrb[72].mxu1 %v13998_v40 }
 0x7ca   :  { %7102 = vmatprep.mubr.bf16.mxu1 %v5158_v18  ;;  %7344 = vmatpush1.bf16.msra.mxu1 %v9843_v61  ;;  %v4971_v61 = vld [vmem:[#allocation3 + $0x79] sm:$0xff]  ;;  %v4972_v18 = vld [vmem:[#allocation3 + $0x81] sm:$0xff] }
 0x7cb   :  { %7345 = vmatprep.subr.bf16.mxu1 %v16158_v56  ;;  %v14020_v6 = vpack.c.bf16 %v4972_v18, %v4971_v61  ;;  %v4976_v18 = vld [vmem:[#allocation3 + $0xb1] sm:$0xff] }
 0x7ce   :  { %7346 = vmatpush1.bf16.msra.mxu1 %v9844_v51  ;;  %v5101_v51 = vld [vmem:[#allocation3 + $0x92] sm:$0xff] }
 0x7cf   :  { %7347 = vmatprep.subr.bf16.mxu1 %v16158_v56  ;;  %v5160_v54 = vpack.c.bf16 %v5102_v38, %v5101_v51  ;;  %v4975_v38 = vld [vmem:[#allocation3 + $0xa9] sm:$0xff] }
 0x7d0   :  { %v14037_v51 = vpack.c.bf16 %v4976_v18, %v4975_v38  ;;  %v4981_v38 = vld [vmem:[#allocation3 + $0xf1] sm:$0xff]  ;;  %v4982_v18 = vld [vmem:[#allocation3 + $0xf9] sm:$0xff] }
 0x7d1   :  { %7103 = vmatmul.mubr.bf16.gmra.mrb[76].mxu1 %v14009_v26 }
 0x7d2   :  { %7110 = vmatprep.mubr.bf16.mxu1 %v5159_v34  ;;  %7348 = vmatpush1.bf16.msra.mxu1 %v9845_v11  ;;  %v4973_v11 = vld [vmem:[#allocation3 + $0x91] sm:$0xff]  ;;  %v4974_v34 = vld [vmem:[#allocation3 + $0x99] sm:$0xff] }
 0x7d3   :  { %7349 = vmatprep.subr.bf16.mxu1 %v16158_v56  ;;  %v14031_v61 = vpack.c.bf16 %v4974_v34, %v4973_v11  ;;  %v4979_v11 = vld [vmem:[#allocation3 + $0xd9] sm:$0xff]  ;;  %v4980_v34 = vld [vmem:[#allocation3 + $0xe1] sm:$0xff] }
 0x7d6   :  { %7350 = vmatpush1.bf16.msra.mxu1 %v9846_v12  ;;  %v9849_v12 = vld [vmem:[%s15626_s5 + $0x1d0] sm:$0xff]  }
 0x7d7   :  { %7351 = vmatprep.subr.bf16.mxu1 %v16158_v56 }
 0x7d9   :  { %7111 = vmatmul.mubr.bf16.gmra.mrb[80].mxu1 %v14020_v6 }
 0x7da   :  { %7118 = vmatprep.mubr.bf16.mxu1 %v5160_v54  ;;  %7352 = vmatpush1.bf16.msra.mxu1 %v9847_v37  ;;  %v9850_v37 = vld [vmem:[%s15626_s5 + $0x1d8] sm:$0xff]   ;;  %v4977_v54 = vld [vmem:[#allocation3 + $0xc1] sm:$0xff] }
 0x7db   :  { %7353 = vmatprep.subr.bf16.mxu1 %v16158_v56 }
 0x7de   :  { %7354 = vmatpush1.bf16.msra.mxu1 %v9848_v62  ;;  %v4978_v62 = vld [vmem:[#allocation3 + $0xc9] sm:$0xff] }
 0x7df   :  { %7355 = vmatprep.subr.bf16.mxu1 %v16158_v56 }
 0x7e1   :  { %7119 = vmatmul.mubr.bf16.gmra.mrb[84].mxu1 %v14031_v61 }
 0x7e2   :  { %7126 = vmatprep.mubr.bf16.mxu1 %v13850_v44  ;;  %7356 = vmatpush1.bf16.msra.mxu1 %v9849_v12  ;;  %v14045_v44 = vpack.c.bf16 %v4978_v62, %v4977_v54  ;;  %v14049_v12 = vpack.c.bf16 %v4980_v34, %v4979_v11  ;;  %v4984_v54 = vld [vmem:[#allocation3 + $0x111] sm:$0xff]  ;;  %v4985_v11 = vld [vmem:[#allocation3 + $0x121] sm:$0xff]  ;;  %v4986_v34 = vld [vmem:[#allocation3 + $0x129] sm:$0xff] }
 0x7e3   :  { %7357 = vmatprep.subr.bf16.mxu1 %v16158_v56 }
 0x7e6   :  { %7358 = vmatpush1.bf16.msra.mxu1 %v9850_v37  ;;  %v14057_v37 = vpack.c.bf16 %v4982_v18, %v4981_v38  ;;  %v4988_v38 = vld [vmem:[#allocation3 + $0x141] sm:$0xff] }
 0x7e7   :  { %7359 = vmatprep.subr.bf16.mxu1 %v16158_v56 }
 0x7e9   :  { %7127 = vmatmul.mubr.bf16.gmra.mrb[88].mxu1 %v14037_v51 }
 0x7ea   :  { %7134 = vmatprep.mubr.bf16.mxu1 %v13862_v10  ;;  %v9851_v10 = vld [vmem:[%s15626_s5 + $0x1e0] sm:$0xff]  }
 0x7eb   :  { %7360 = vmatpush1.bf16.msra.mxu1 %v9851_v10  ;;  %v14069_v10 = vpack.c.bf16 %v4986_v34, %v4985_v11  ;;  %v4992_v11 = vld [vmem:[#allocation3 + $0x171] sm:$0xff]  ;;  %v5121_v34 = vld [vmem:[#allocation3 + $0x182] sm:$0xff] }
 0x7ec   :  { %7361 = vmatprep.subr.bf16.mxu1 %v16158_v56 }
 0x7f1   :  { %7135 = vmatmul.mubr.bf16.gmra.mrb[92].mxu1 %v14045_v44 }
 0x7f2   :  { %7142 = vmatprep.mubr.bf16.mxu1 %v13878_v63  ;;  %v4983_v63 = vld [vmem:[#allocation3 + $0x109] sm:$0xff] }
 0x7f3   :  { %v14061_v62 = vpack.c.bf16 %v4984_v54, %v4983_v63  ;;  %v4989_v63 = vld [vmem:[#allocation3 + $0x151] sm:$0xff]  ;;  %v4990_v54 = vld [vmem:[#allocation3 + $0x159] sm:$0xff] }
 0x7f9   :  { %7143 = vmatmul.mubr.bf16.gmra.mrb[96].mxu1 %v14049_v12 }
 0x7fa   :  { %7150 = vmatprep.mubr.bf16.mxu1 %v13882_v22  ;;  %v9852_v22 = vld [vmem:[%s15626_s5 + $0x1e8] sm:$0xff]  }
 0x7fb   :  { %7362 = vmatpush1.bf16.msra.mxu1 %v9852_v22  ;;  %v14081_v22 = vpack.c.bf16 %v4990_v54, %v4989_v63  ;;  %v4994_v63 = vld [vmem:[#allocation3 + $0x189] sm:$0xff] }
 0x7fc   :  { %7363 = vmatprep.subr.bf16.mxu1 %v16158_v56 }
 0x801   :  { %7151 = vmatmul.mubr.bf16.gmra.mrb[100].mxu1 %v14057_v37 }
 0x802   :  { %7158 = vmatprep.mubr.bf16.mxu1 %v13890_v29  ;;  %v4987_v29 = vld [vmem:[#allocation3 + $0x139] sm:$0xff] }
 0x803   :  { %v14073_v18 = vpack.c.bf16 %v4988_v38, %v4987_v29  ;;  %v5122_v29 = vld [vmem:[#allocation3 + $0x18a] sm:$0xff] }
 0x804   :  { %v5170_v38 = vpack.c.bf16 %v5122_v29, %v5121_v34  ;;  %v4997_v29 = vld [vmem:[#allocation3 + $0x1e1] sm:$0xff] }
 0x809   :  { %7159 = vmatmul.mubr.bf16.gmra.mrb[104].mxu1 %v14061_v62 }
 0x80a   :  { %7166 = vmatprep.mubr.bf16.mxu1 %v13894_v3  ;;  %v9853_v3 = vld [vmem:[%s15626_s5 + $0x1f0] sm:$0xff]  }
 0x80b   :  { %7364 = vmatpush1.bf16.msra.mxu1 %v9853_v3  ;;  %v4993_v3 = vld [vmem:[#allocation3 + $0x181] sm:$0xff] }
 0x80c   :  { %7365 = vmatprep.subr.bf16.mxu1 %v16158_v56  ;;  %v9854_v56 = vld [vmem:[%s15626_s5 + $0x1f8] sm:$0xff]   ;;  %v14097_v54 = vpack.c.bf16 %v4994_v63, %v4993_v3  ;;  %v5000_v63 = vld [vmem:[#allocation3 + $0x201] sm:$0xff] }
 0x80d   :  { %v4999_v3 = vld [vmem:[#allocation3 + $0x1f9] sm:$0xff] }
 0x80e   :  { %v14106_v25 = vpack.c.bf16 %v5000_v63, %v4999_v3  ;;  %v5008_v63 = vld [vmem:[#allocation3 + $0x261] sm:$0xff] }
 0x80f   :  { %7366 = vmatpush1.bf16.msra.mxu1 %v9854_v56 }
 0x811   :  { %7167 = vmatmul.mubr.bf16.gmra.mrb[108].mxu1 %v14069_v10 }
 0x812   :  { %7174 = vmatprep.mubr.bf16.mxu1 %v13902_v53  ;;  %v4991_v53 = vld [vmem:[#allocation3 + $0x169] sm:$0xff] }
 0x819   :  { %7175 = vmatmul.mubr.bf16.gmra.mrb[112].mxu1 %v14073_v18 }
 0x81a   :  { %7182 = vmatprep.mubr.bf16.mxu1 %v13906_v7  ;;  %v14085_v7 = vpack.c.bf16 %v4992_v11, %v4991_v53  ;;  %v4995_v53 = vld [vmem:[#allocation3 + $0x1c9] sm:$0xff]  ;;  %v4996_v11 = vld [vmem:[#allocation3 + $0x1d1] sm:$0xff] }
 0x81b   :  { %v5043_v34 = vpack.c.bf16 %v4996_v11, %v4995_v53  ;;  %v5002_v53 = vld [vmem:[#allocation3 + $0x219] sm:$0xff] }
 0x821   :  { %7183 = vmatmul.mubr.bf16.gmra.mrb[116].mxu1 %v14081_v22 }
 0x822   :  { %7190 = vmatprep.mubr.bf16.mxu1 %v13913_v43  ;;  %v14094_v43 = vld [vmem:[%s15626_s5 + $0x200] sm:$0xff]  }
 0x823   :  { %8920 = vmatprep.subr.bf16.mxu1 %v14094_v43 }
 0x829   :  { %7191 = vmatmul.mubr.bf16.gmra.mrb[120].mxu1 %v14085_v7 }
 0x82a   :  { %7198 = vmatprep.mubr.bf16.mxu1 %v5170_v38  ;;  %v4998_v38 = vld [vmem:[#allocation3 + $0x1e9] sm:$0xff] }
 0x82b   :  { %v14102_v56 = vpack.c.bf16 %v4998_v38, %v4997_v29  ;;  %v5006_v38 = vld [vmem:[#allocation3 + $0x249] sm:$0xff] }
 0x831   :  { %7199 = vmatmul.mubr.bf16.gmra.mrb[124].mxu1 %v14097_v54 }
 0x832   :  { %7206 = vmatprep.mubr.bf16.mxu1 %v13918_v24  ;;  %v5001_v24 = vld [vmem:[#allocation3 + $0x211] sm:$0xff] }
 0x833   :  { %v14110_v11 = vpack.c.bf16 %v5002_v53, %v5001_v24  ;;  %v5010_v53 = vld [vmem:[#allocation3 + $0x279] sm:$0xff] }
 0x839   :  { %7207 = vmatmul.mubr.bf16.gmra.mrb[128].mxu1 %v5043_v34  ;;  %v5004_v34 = vld [vmem:[#allocation3 + $0x231] sm:$0xff] }
 0x83a   :  { %7214 = vmatprep.mubr.bf16.mxu1 %v13922_v28  ;;  %v5003_v28 = vld [vmem:[#allocation3 + $0x229] sm:$0xff] }
 0x83b   :  { %v14114_v29 = vpack.c.bf16 %v5004_v34, %v5003_v28  ;;  %v5012_v34 = vld [vmem:[#allocation3 + $0x291] sm:$0xff] }
 0x841   :  { %7215 = vmatmul.mubr.bf16.gmra.mrb[132].mxu1 %v14102_v56 }
 0x842   :  { %7222 = vmatprep.mubr.bf16.mxu1 %v13926_v21  ;;  %v5005_v21 = vld [vmem:[#allocation3 + $0x241] sm:$0xff] }
 0x843   :  { %v14118_v3 = vpack.c.bf16 %v5006_v38, %v5005_v21  ;;  %v5014_v38 = vld [vmem:[#allocation3 + $0x2a9] sm:$0xff] }
 0x849   :  { %7223 = vmatmul.mubr.bf16.gmra.mrb[136].mxu1 %v14106_v25 }
 0x84a   :  { %7230 = vmatprep.mubr.bf16.mxu1 %v13930_v55  ;;  %v5007_v55 = vld [vmem:[#allocation3 + $0x259] sm:$0xff] }
 0x84b   :  { %v14122_v24 = vpack.c.bf16 %v5008_v63, %v5007_v55  ;;  %v5016_v63 = vld [vmem:[#allocation3 + $0x2c1] sm:$0xff] }
 0x851   :  { %7231 = vmatmul.mubr.bf16.gmra.mrb[140].mxu1 %v14110_v11 }
 0x852   :  { %7238 = vmatprep.mubr.bf16.mxu1 %v13934_v16  ;;  %v5009_v16 = vld [vmem:[#allocation3 + $0x271] sm:$0xff] }
 0x853   :  { %v14126_v28 = vpack.c.bf16 %v5010_v53, %v5009_v16  ;;  %v5018_v53 = vld [vmem:[#allocation3 + $0x2d9] sm:$0xff] }
 0x859   :  { %7239 = vmatmul.mubr.bf16.gmra.mrb[144].mxu1 %v14114_v29 }
 0x85a   :  { %7246 = vmatprep.mubr.bf16.mxu1 %v13938_v30  ;;  %v5011_v30 = vld [vmem:[#allocation3 + $0x289] sm:$0xff] }
 0x85b   :  { %v14130_v21 = vpack.c.bf16 %v5012_v34, %v5011_v30  ;;  %v5020_v34 = vld [vmem:[#allocation3 + $0x2f1] sm:$0xff] }
 0x861   :  { %7247 = vmatmul.mubr.bf16.gmra.mrb[148].mxu1 %v14118_v3 }
 0x862   :  { %7254 = vmatprep.mubr.bf16.mxu1 %v13942_v39  ;;  %v5013_v39 = vld [vmem:[#allocation3 + $0x2a1] sm:$0xff] }
 0x863   :  { %v14134_v55 = vpack.c.bf16 %v5014_v38, %v5013_v39  ;;  %v5022_v38 = vld [vmem:[#allocation3 + $0x309] sm:$0xff] }
 0x869   :  { %7255 = vmatmul.mubr.bf16.gmra.mrb[152].mxu1 %v14122_v24 }
 0x86a   :  { %7262 = vmatprep.mubr.bf16.mxu1 %v13946_v0  ;;  %v5015_v0 = vld [vmem:[#allocation3 + $0x2b9] sm:$0xff] }
 0x86b   :  { %v14138_v16 = vpack.c.bf16 %v5016_v63, %v5015_v0  ;;  %v5024_v63 = vld [vmem:[#allocation3 + $0x321] sm:$0xff] }
 0x871   :  { %7263 = vmatmul.mubr.bf16.gmra.mrb[156].mxu1 %v14126_v28 }
 0x872   :  { %7270 = vmatprep.mubr.bf16.mxu1 %v13950_v8  ;;  %v5017_v8 = vld [vmem:[#allocation3 + $0x2d1] sm:$0xff] }
 0x873   :  { %v14142_v30 = vpack.c.bf16 %v5018_v53, %v5017_v8  ;;  %v5153_v8 = vld [vmem:[#allocation3 + $0x332] sm:$0xff] }
 0x879   :  { %7271 = vmatmul.mubr.bf16.gmra.mrb[160].mxu1 %v14130_v21 }
 0x87a   :  { %7278 = vmatprep.mubr.bf16.mxu1 %v13954_v58  ;;  %v5019_v58 = vld [vmem:[#allocation3 + $0x2e9] sm:$0xff] }
 0x87b   :  { %v14146_v39 = vpack.c.bf16 %v5020_v34, %v5019_v58  ;;  %v5026_v34 = vld [vmem:[#allocation3 + $0x339] sm:$0xff] }
 0x881   :  { %7279 = vmatmul.mubr.bf16.gmra.mrb[164].mxu1 %v14134_v55 }
 0x882   :  { %7286 = vmatprep.mubr.bf16.mxu1 %v13958_v23  ;;  %v5021_v23 = vld [vmem:[#allocation3 + $0x301] sm:$0xff] }
 0x883   :  { %v14150_v0 = vpack.c.bf16 %v5022_v38, %v5021_v23  ;;  %v5221_v38 = vld [vmem:[#allocation3 + $0x38] sm:$0xff] }
 0x889   :  { %7287 = vmatmul.mubr.bf16.gmra.mrb[168].mxu1 %v14138_v16 }
 0x88a   :  { %7294 = vmatprep.mubr.bf16.mxu1 %v13962_v36  ;;  %v5023_v36 = vld [vmem:[#allocation3 + $0x319] sm:$0xff] }
 0x88b   :  { %v14154_v53 = vpack.c.bf16 %v5024_v63, %v5023_v36  ;;  %v9862_v36 = vld [vmem:[%s15626_s5 + $0x208] sm:$0xff]  }
 0x88c   :  { %v5222_v63 = vld [vmem:[#allocation3 + $0x48] sm:$0xff] }
 0x891   :  { %7295 = vmatmul.mubr.bf16.gmra.mrb[172].mxu1 %v14142_v30 }
 0x892   :  { %7302 = vmatprep.mubr.bf16.mxu1 %v13966_v49  ;;  %v5154_v49 = vld [vmem:[#allocation3 + $0x33a] sm:$0xff] }
 0x893   :  { %v14156_v58 = vpack.c.bf16 %v5154_v49, %v5153_v8  ;;  %v5223_v8 = vld [vmem:[#allocation3 + $0x50] sm:$0xff] }
 0x894   :  { %v5285_v49 = vpack.c.bf16 %v5223_v8, %v5222_v63  ;;  %v9867_v63 = vld [vmem:[%s15626_s5 + $0x230] sm:$0xff]  }
 0x895   :  { %v5228_v8 = vld [vmem:[#allocation3 + $0x90] sm:$0xff] }
 0x899   :  { %7303 = vmatmul.mubr.bf16.gmra.mrb[176].mxu1 %v14146_v39 }
 0x89a   :  { %7310 = vmatprep.mubr.bf16.mxu1 %v13970_v20  ;;  %v5025_v20 = vld [vmem:[#allocation3 + $0x331] sm:$0xff] }
 0x89b   :  { %v14160_v23 = vpack.c.bf16 %v5026_v34, %v5025_v20  ;;  %v9865_v34 = vld [vmem:[%s15626_s5 + $0x220] sm:$0xff]  }
 0x8a1   :  { %7311 = vmatmul.mubr.bf16.gmra.mrb[180].mxu1 %v14150_v0 }
 0x8a2   :  { %7318 = vmatprep.mubr.bf16.mxu1 %v13973_v32  ;;  %v5220_v32 = vld [vmem:[#allocation3 + $0x30] sm:$0xff] }
 0x8a3   :  { %v5284_v31 = vpack.c.bf16 %v5221_v38, %v5220_v32  ;;  %v5226_v32 = vld [vmem:[#allocation3 + $0x78] sm:$0xff]  ;;  %v5227_v38 = vld [vmem:[#allocation3 + $0x80] sm:$0xff] }
 0x8a9   :  { %7319 = vmatmul.mubr.bf16.gmra.mrb[184].mxu1 %v14154_v53 }
 0x8aa   :  { %7326 = vmatprep.mubr.bf16.mxu1 %v14156_v58 }
 0x8b1   :  { %7327 = vmatmul.mubr.bf16.gmra.mrb[188].mxu1 %v14160_v23 }
 0x8b2   :  { %7367 = vmatprep.mubr.bf16.mxu1 %v13987_v13  ;;  %v9863_v13 = vld [vmem:[%s15626_s5 + $0x210] sm:$0xff]  }
 0x8b9   :  { %7368 = vmatmul.mubr.bf16.vlgmr.msra.gmra.mrb[64].mxu1 %v5284_v31  ;;  %v9864_v31 = vld [vmem:[%s15626_s5 + $0x218] sm:$0xff]  }
 0x8ba   :  { %7375 = vmatprep.mubr.bf16.mxu1 %v13998_v40  ;;  %8928 = vmatpush3.bf16.msra.mxu1 %v14094_v43  ;;  %v5224_v40 = vld [vmem:[#allocation3 + $0x60] sm:$0xff]  ;;  %v5225_v43 = vld [vmem:[#allocation3 + $0x68] sm:$0xff] }
 0x8bb   :  { %8921 = vmatprep.subr.bf16.mxu1 %v9862_v36  ;;  %v5286_v20 = vpack.c.bf16 %v5225_v43, %v5224_v40  ;;  %v5231_v40 = vld [vmem:[#allocation3 + $0xb0] sm:$0xff] }
 0x8be   :  { %8929 = vmatpush3.bf16.msra.mxu1 %v9862_v36  ;;  %v5287_v36 = vpack.c.bf16 %v5227_v38, %v5226_v32  ;;  %v5235_v32 = vld [vmem:[#allocation3 + $0xe0] sm:$0xff] }
 0x8bf   :  { %8922 = vmatprep.subr.bf16.mxu1 %v9863_v13 }
 0x8c1   :  { %7376 = vmatmul.mubr.bf16.gmra.mrb[68].mxu1 %v5285_v49  ;;  %v5229_v49 = vld [vmem:[#allocation3 + $0x98] sm:$0xff] }
 0x8c2   :  { %7383 = vmatprep.mubr.bf16.mxu1 %v14009_v26  ;;  %8930 = vmatpush3.bf16.msra.mxu1 %v9863_v13  ;;  %v9866_v26 = vld [vmem:[%s15626_s5 + $0x228] sm:$0xff]   ;;  %v5288_v13 = vpack.c.bf16 %v5229_v49, %v5228_v8  ;;  %v5240_v49 = vld [vmem:[#allocation3 + $0x120] sm:$0xff] }
 0x8c3   :  { %8923 = vmatprep.subr.bf16.mxu1 %v9864_v31 }
 0x8c6   :  { %8931 = vmatpush3.bf16.msra.mxu1 %v9864_v31  ;;  %v5230_v31 = vld [vmem:[#allocation3 + $0xa8] sm:$0xff] }
 0x8c7   :  { %8924 = vmatprep.subr.bf16.mxu1 %v9865_v34  ;;  %v5289_v43 = vpack.c.bf16 %v5231_v40, %v5230_v31  ;;  %v5242_v31 = vld [vmem:[#allocation3 + $0x138] sm:$0xff] }
 0x8c9   :  { %7384 = vmatmul.mubr.bf16.gmra.mrb[72].mxu1 %v5286_v20  ;;  %v5233_v20 = vld [vmem:[#allocation3 + $0xc8] sm:$0xff] }
 0x8ca   :  { %7391 = vmatprep.mubr.bf16.mxu1 %v14020_v6  ;;  %8932 = vmatpush3.bf16.msra.mxu1 %v9865_v34  ;;  %v9868_v6 = vld [vmem:[%s15626_s5 + $0x238] sm:$0xff]  }
 0x8cb   :  { %8925 = vmatprep.subr.bf16.mxu1 %v9866_v26 }
 0x8ce   :  { %8933 = vmatpush3.bf16.msra.mxu1 %v9866_v26  ;;  %v5234_v26 = vld [vmem:[#allocation3 + $0xd8] sm:$0xff] }
 0x8cf   :  { %8926 = vmatprep.subr.bf16.mxu1 %v9867_v63  ;;  %v5291_v38 = vpack.c.bf16 %v5235_v32, %v5234_v26  ;;  %v5378_v26 = vld [vmem:[#allocation3 + $0x199] sm:$0xff] }
 0x8d0   :  { %v5248_v32 = vld [vmem:[#allocation3 + $0x180] sm:$0xff] }
 0x8d1   :  { %7392 = vmatmul.mubr.bf16.gmra.mrb[76].mxu1 %v5287_v36  ;;  %v5236_v36 = vld [vmem:[#allocation3 + $0xf0] sm:$0xff] }
 0x8d2   :  { %7399 = vmatprep.mubr.bf16.mxu1 %v14031_v61  ;;  %8934 = vmatpush3.bf16.msra.mxu1 %v9867_v63  ;;  %v5232_v61 = vld [vmem:[#allocation3 + $0xc0] sm:$0xff] }
 0x8d3   :  { %8927 = vmatprep.subr.bf16.mxu1 %v9868_v6  ;;  %v5290_v34 = vpack.c.bf16 %v5233_v20, %v5232_v61  ;;  %v5246_v20 = vld [vmem:[#allocation3 + $0x168] sm:$0xff] }
 0x8d6   :  { %8935 = vmatpush3.bf16.msra.mxu1 %v9868_v6  ;;  %v5238_v6 = vld [vmem:[#allocation3 + $0x108] sm:$0xff] }
 0x8d9   :  { %7400 = vmatmul.mubr.bf16.gmra.mrb[80].mxu1 %v5288_v13 }
 0x8da   :  { %7407 = vmatprep.mubr.bf16.mxu1 %v14037_v51  ;;  %v5237_v51 = vld [vmem:[#allocation3 + $0xf8] sm:$0xff] }
 0x8db   :  { %v5292_v63 = vpack.c.bf16 %v5237_v51, %v5236_v36 }
 0x8e1   :  { %7408 = vmatmul.mubr.bf16.gmra.mrb[84].mxu1 %v5289_v43  ;;  %v5244_v43 = vld [vmem:[#allocation3 + $0x150] sm:$0xff] }
 0x8e2   :  { %7415 = vmatprep.mubr.bf16.mxu1 %v14045_v44  ;;  %v5239_v44 = vld [vmem:[#allocation3 + $0x110] sm:$0xff] }
 0x8e3   :  { %v5293_v8 = vpack.c.bf16 %v5239_v44, %v5238_v6  ;;  %v5253_v6 = vld [vmem:[#allocation3 + $0x1e8] sm:$0xff] }
 0x8e9   :  { %7416 = vmatmul.mubr.bf16.gmra.mrb[88].mxu1 %v5290_v34 }
 0x8ea   :  { %7423 = vmatprep.mubr.bf16.mxu1 %v14049_v12  ;;  %v5241_v12 = vld [vmem:[#allocation3 + $0x128] sm:$0xff] }
 0x8eb   :  { %v5294_v13 = vpack.c.bf16 %v5241_v12, %v5240_v49  ;;  %v5256_v12 = vld [vmem:[#allocation3 + $0x210] sm:$0xff] }
 0x8f1   :  { %7424 = vmatmul.mubr.bf16.gmra.mrb[92].mxu1 %v5291_v38  ;;  %v5249_v38 = vld [vmem:[#allocation3 + $0x188] sm:$0xff] }
 0x8f2   :  { %7431 = vmatprep.mubr.bf16.mxu1 %v14057_v37  ;;  %v5243_v37 = vld [vmem:[#allocation3 + $0x140] sm:$0xff]  ;;  %v5298_v51 = vpack.c.bf16 %v5249_v38, %v5248_v32 }
 0x8f3   :  { %v5295_v40 = vpack.c.bf16 %v5243_v37, %v5242_v31  ;;  %v5258_v37 = vld [vmem:[#allocation3 + $0x228] sm:$0xff]  ;;  %v5268_v32 = vld [vmem:[#allocation3 + $0x2a0] sm:$0xff] }
 0x8f9   :  { %7432 = vmatmul.mubr.bf16.gmra.mrb[96].mxu1 %v5292_v63 }
 0x8fa   :  { %7439 = vmatprep.mubr.bf16.mxu1 %v14061_v62  ;;  %v5245_v62 = vld [vmem:[#allocation3 + $0x158] sm:$0xff] }
 0x8fb   :  { %v5296_v61 = vpack.c.bf16 %v5245_v62, %v5244_v43  ;;  %v5260_v43 = vld [vmem:[#allocation3 + $0x240] sm:$0xff] }
 0x901   :  { %7440 = vmatmul.mubr.bf16.gmra.mrb[100].mxu1 %v5293_v8  ;;  %v5255_v8 = vld [vmem:[#allocation3 + $0x200] sm:$0xff] }
 0x902   :  { %7447 = vmatprep.mubr.bf16.mxu1 %v14069_v10  ;;  %v5247_v10 = vld [vmem:[#allocation3 + $0x170] sm:$0xff] }
 0x903   :  { %v5297_v34 = vpack.c.bf16 %v5247_v10, %v5246_v20  ;;  %v5264_v10 = vld [vmem:[#allocation3 + $0x270] sm:$0xff] }
 0x909   :  { %7448 = vmatmul.mubr.bf16.gmra.mrb[104].mxu1 %v5294_v13  ;;  %v5257_v13 = vld [vmem:[#allocation3 + $0x218] sm:$0xff] }
 0x90a   :  { %7455 = vmatprep.mubr.bf16.mxu1 %v14073_v18  ;;  %v5379_v18 = vld [vmem:[#allocation3 + $0x1a1] sm:$0xff]  ;;  %v5302_v31 = vpack.c.bf16 %v5257_v13, %v5256_v12 }
 0x90b   :  { %v5427_v36 = vpack.c.bf16 %v5379_v18, %v5378_v26  ;;  %v5266_v26 = vld [vmem:[#allocation3 + $0x288] sm:$0xff] }
 0x911   :  { %7456 = vmatmul.mubr.bf16.gmra.mrb[108].mxu1 %v5295_v40 }
 0x912   :  { %7463 = vmatprep.mubr.bf16.mxu1 %v14081_v22  ;;  %v9869_v22 = vld [vmem:[#allocation2] sm:$0xff] }
 0x913   :  { %v14200_v63 = vpack.c.bf16 %v9869_v22, %v9869_v22  ;;  %v5272_v22 = vld [vmem:[#allocation3 + $0x2d0] sm:$0xff] }
 0x919   :  { %7464 = vmatmul.mubr.bf16.gmra.mrb[112].mxu1 %v5296_v61  ;;  %v5262_v61 = vld [vmem:[#allocation3 + $0x258] sm:$0xff] }
 0x91a   :  { %7471 = vmatprep.mubr.bf16.mxu1 %v14085_v7  ;;  %v5252_v7 = vld [vmem:[#allocation3 + $0x1e0] sm:$0xff] }
 0x91b   :  { %v5300_v44 = vpack.c.bf16 %v5253_v6, %v5252_v7 }
 0x921   :  { %7472 = vmatmul.mubr.bf16.gmra.mrb[116].mxu1 %v5297_v34 }
 0x922   :  { %7479 = vmatprep.mubr.bf16.mxu1 %v14097_v54  ;;  %v5254_v54 = vld [vmem:[#allocation3 + $0x1f8] sm:$0xff] }
 0x923   :  { %v5301_v49 = vpack.c.bf16 %v5255_v8, %v5254_v54 }
 0x929   :  { %7480 = vmatmul.mubr.bf16.gmra.mrb[120].mxu1 %v5298_v51 }
 0x92a   :  { %7487 = vmatprep.mubr.bf16.mxu1 %v5427_v36  ;;  %v5270_v36 = vld [vmem:[#allocation3 + $0x2b8] sm:$0xff] }
 0x931   :  { %7488 = vmatmul.mubr.bf16.gmra.mrb[124].mxu1 %v14200_v63 }
 0x932   :  { %7495 = vmatprep.mubr.bf16.mxu1 %v14102_v56  ;;  %v5259_v56 = vld [vmem:[#allocation3 + $0x230] sm:$0xff] }
 0x933   :  { %v5303_v40 = vpack.c.bf16 %v5259_v56, %v5258_v37  ;;  %v5277_v37 = vld [vmem:[#allocation3 + $0x308] sm:$0xff] }
 0x939   :  { %7496 = vmatmul.mubr.bf16.gmra.mrb[128].mxu1 %v5300_v44  ;;  %v5275_v44 = vld [vmem:[#allocation3 + $0x2f0] sm:$0xff] }
 0x93a   :  { %7503 = vmatprep.mubr.bf16.mxu1 %v14106_v25  ;;  %v5261_v25 = vld [vmem:[#allocation3 + $0x248] sm:$0xff] }
 0x93b   :  { %v5304_v62 = vpack.c.bf16 %v5261_v25, %v5260_v43 }
 0x941   :  { %7504 = vmatmul.mubr.bf16.gmra.mrb[132].mxu1 %v5301_v49 }
 0x942   :  { %7511 = vmatprep.mubr.bf16.mxu1 %v14110_v11  ;;  %v5263_v11 = vld [vmem:[#allocation3 + $0x260] sm:$0xff] }
 0x943   :  { %v5305_v20 = vpack.c.bf16 %v5263_v11, %v5262_v61  ;;  %v5279_v61 = vld [vmem:[#allocation3 + $0x320] sm:$0xff] }
 0x949   :  { %7512 = vmatmul.mubr.bf16.gmra.mrb[136].mxu1 %v5302_v31  ;;  %v5276_v31 = vld [vmem:[#allocation3 + $0x300] sm:$0xff] }
 0x94a   :  { %7519 = vmatprep.mubr.bf16.mxu1 %v14114_v29  ;;  %v5265_v29 = vld [vmem:[#allocation3 + $0x278] sm:$0xff]  ;;  %v5312_v25 = vpack.c.bf16 %v5277_v37, %v5276_v31 }
 0x94b   :  { %v5306_v34 = vpack.c.bf16 %v5265_v29, %v5264_v10  ;;  %v5539_v37 = vld [vmem:[#allocation3 + $0x352] sm:$0xff] }
 0x951   :  { %7520 = vmatmul.mubr.bf16.gmra.mrb[140].mxu1 %v5303_v40 }
 0x952   :  { %7527 = vmatprep.mubr.bf16.mxu1 %v14118_v3  ;;  %v5267_v3 = vld [vmem:[#allocation3 + $0x290] sm:$0xff] }
 0x953   :  { %v5307_v18 = vpack.c.bf16 %v5267_v3, %v5266_v26  ;;  %v5281_v3 = vld [vmem:[#allocation3 + $0x338] sm:$0xff] }
 0x959   :  { %7528 = vmatmul.mubr.bf16.gmra.mrb[144].mxu1 %v5304_v62  ;;  %v5278_v62 = vld [vmem:[#allocation3 + $0x318] sm:$0xff] }
 0x95a   :  { %7535 = vmatprep.mubr.bf16.mxu1 %v14122_v24  ;;  %v5269_v24 = vld [vmem:[#allocation3 + $0x2a8] sm:$0xff]  ;;  %v5313_v29 = vpack.c.bf16 %v5279_v61, %v5278_v62 }
 0x95b   :  { %v5308_v38 = vpack.c.bf16 %v5269_v24, %v5268_v32 }
 0x961   :  { %7536 = vmatmul.mubr.bf16.gmra.mrb[148].mxu1 %v5305_v20 }
 0x962   :  { %7543 = vmatprep.mubr.bf16.mxu1 %v14126_v28  ;;  %v5271_v28 = vld [vmem:[#allocation3 + $0x2c0] sm:$0xff] }
 0x963   :  { %v5309_v51 = vpack.c.bf16 %v5271_v28, %v5270_v36 }
 0x969   :  { %7544 = vmatmul.mubr.bf16.gmra.mrb[152].mxu1 %v5306_v34  ;;  %v5411_v34 = vld [vmem:[#allocation3 + $0x351] sm:$0xff] }
 0x96a   :  { %7551 = vmatprep.mubr.bf16.mxu1 %v14130_v21  ;;  %v5273_v21 = vld [vmem:[#allocation3 + $0x2d8] sm:$0xff] }
 0x96b   :  { %v5310_v7 = vpack.c.bf16 %v5273_v21, %v5272_v22  ;;  %v5532_v22 = vld [vmem:[#allocation3 + $0x302] sm:$0xff]  ;;  %v5533_v21 = vld [vmem:[#allocation3 + $0x30a] sm:$0xff] }
 0x971   :  { %7552 = vmatmul.mubr.bf16.gmra.mrb[156].mxu1 %v5307_v18 }
 0x972   :  { %7559 = vmatprep.mubr.bf16.mxu1 %v14134_v55  ;;  %v5274_v55 = vld [vmem:[#allocation3 + $0x2e8] sm:$0xff] }
 0x973   :  { %v5311_v13 = vpack.c.bf16 %v5275_v44, %v5274_v55  ;;  %v5568_v55 = vpack.c.bf16 %v5533_v21, %v5532_v22  ;;  %v5534_v44 = vld [vmem:[#allocation3 + $0x31a] sm:$0xff] }
 0x974   :  { %v16233_v21 = vld [vmem:[#allocation48_spill] sm:$0xff] }
 0x979   :  { %7560 = vmatmul.mubr.bf16.gmra.mrb[160].mxu1 %v5308_v38 }
 0x97a   :  { %7567 = vmatprep.mubr.bf16.mxu1 %v14138_v16 }
 0x981   :  { %7568 = vmatmul.mubr.bf16.gmra.mrb[164].mxu1 %v5309_v51 }
 0x982   :  { %7575 = vmatprep.mubr.bf16.mxu1 %v14142_v30 }
 0x989   :  { %7576 = vmatmul.mubr.bf16.gmra.mrb[168].mxu1 %v5310_v7 }
 0x98a   :  { %7583 = vmatprep.mubr.bf16.mxu1 %v14146_v39 }
 0x98c   :  { %v7369_v6 = vpop.f32.mrb[64].mxu1 }
 0x98d   :  { %v14216_v54 = vadd.f32 %v13671_v19, %v7369_v6  ;;  %v7371_v8 = vpop.f32.mrb[65].mxu1 }
 0x98e   :  { %v7372_v16 = vpop.f32.mrb[66].mxu1  ;;  %v5535_v8 = vld [vmem:[#allocation3 + $0x322] sm:$0xff] }
 0x98f   :  { %v14219_v49 = vadd.f32 %v13675_v35, %v7372_v16  ;;  %v7374_v12 = vpop.f32.mrb[67].mxu1  ;;  %v5569_v31 = vpack.c.bf16 %v5535_v8, %v5534_v44 }
 0x991   :  { %7584 = vmatmul.mubr.bf16.gmra.mrb[172].mxu1 %v5311_v13 }
 0x992   :  { %7591 = vmatprep.mubr.bf16.mxu1 %v14150_v0 }
 0x994   :  { %v7377_v30 = vpop.f32.mrb[68].mxu1 }
 0x995   :  { %v14223_v39 = vadd.f32 %v13669_v1, %v7377_v30  ;;  %v7379_v56 = vpop.f32.mrb[69].mxu1 }
 0x996   :  { %v7380_v40 = vpop.f32.mrb[70].mxu1 }
 0x997   :  { %v14226_v19 = vadd.f32 %v13673_v50, %v7380_v40  ;;  %v7382_v43 = vpop.f32.mrb[71].mxu1  ;;  %v5410_v50 = vld [vmem:[#allocation3 + $0x349] sm:$0xff] }
 0x998   :  { %v5443_v24 = vpack.c.bf16 %v5411_v34, %v5410_v50 }
 0x999   :  { %7592 = vmatmul.mubr.bf16.gmra.mrb[176].mxu1 %v5312_v25 }
 0x99a   :  { %7599 = vmatprep.mubr.bf16.mxu1 %v14154_v53  ;;  %v5280_v53 = vld [vmem:[#allocation3 + $0x330] sm:$0xff] }
 0x99b   :  { %v5314_v36 = vpack.c.bf16 %v5281_v3, %v5280_v53 }
 0x99c   :  { %v7385_v35 = vpop.f32.mrb[72].mxu1 }
 0x99d   :  { %v14230_v0 = vadd.f32 %v13685_v42, %v7385_v35  ;;  %v7387_v11 = vpop.f32.mrb[73].mxu1 }
 0x99e   :  { %v7388_v20 = vpop.f32.mrb[74].mxu1 }
 0x99f   :  { %v14233_v1 = vadd.f32 %v13689_v48, %v7388_v20  ;;  %v7390_v10 = vpop.f32.mrb[75].mxu1 }
 0x9a1   :  { %7600 = vmatmul.mubr.bf16.gmra.mrb[180].mxu1 %v5313_v29 }
 0x9a2   :  { %7607 = vmatprep.mubr.bf16.mxu1 %v14160_v23 }
 0x9a4   :  { %v7393_v26 = vpop.f32.mrb[76].mxu1 }
 0x9a5   :  { %v14237_v18 = vadd.f32 %v13683_v17, %v7393_v26  ;;  %v7395_v42 = vpop.f32.mrb[77].mxu1 }
 0x9a6   :  { %v7396_v32 = vpop.f32.mrb[78].mxu1 }
 0x9a7   :  { %v14240_v38 = vadd.f32 %v13687_v45, %v7396_v32  ;;  %v7398_v48 = vpop.f32.mrb[79].mxu1 }
 0x9a9   :  { %7608 = vmatmul.mubr.bf16.gmra.mrb[184].mxu1 %v5314_v36 }
 0x9aa   :  { %7615 = vmatprep.mubr.bf16.mxu1 %v5443_v24 }
 0x9ac   :  { %v7401_v28 = vpop.f32.mrb[80].mxu1 }
 0x9ad   :  { %v14243_v23 = vadd.f32 %v13699_v33, %v7401_v28  ;;  %v7403_v51 = vpop.f32.mrb[81].mxu1 }
 0x9ae   :  { %v7404_v7 = vpop.f32.mrb[82].mxu1 }
 0x9af   :  { %v14246_v17 = vadd.f32 %v13703_v9, %v7404_v7  ;;  %v7406_v6 = vpop.f32.mrb[83].mxu1  ;;  %v5538_v9 = vld [vmem:[#allocation3 + $0x34a] sm:$0xff] }
 0x9b0   :  { %v5571_v43 = vpack.c.bf16 %v5539_v37, %v5538_v9  ;;  %v7984_v6 = vmul.f32 %v14216_v54, %v14216_v54 }
 0x9b1   :  { %7616 = vmatmul.mubr.bf16.gmra.mrb[188].mxu1 %v14200_v63 }
 0x9b2   :  { %8912 = vmatprep.mubr.bf16.mxu1 %v5568_v55  ;;  %v7986_v55 = vmul.f32 %v14223_v39, %v14223_v39 }
 0x9b4   :  { %v7409_v45 = vpop.f32.mrb[84].mxu1 }
 0x9b5   :  { %v14250_v16 = vadd.f32 %v13697_v14, %v7409_v45  ;;  %v7411_v33 = vpop.f32.mrb[85].mxu1  ;;  %v16234_v45 = vld [vmem:[#allocation32_spill] sm:$0xff] }
 0x9b6   :  { %v7412_v12 = vpop.f32.mrb[86].mxu1 }
 0x9b7   :  { %v14253_v13 = vadd.f32 %v13701_v41, %v7412_v12  ;;  %v7414_v30 = vpop.f32.mrb[87].mxu1 }
 0x9b9   :  { %8913 = vmatmul.mubr.bf16.vlgmr.msra.gmra.mrb[192].mxu1 %v5569_v31  ;;  %v16235_v31 = vld [vmem:[#allocation50_spill] sm:$0xff] }
 0x9ba   :  { %8916 = vmatprep.mubr.bf16.mxu1 %v14156_v58 }
 0x9bc   :  { %v7417_v63 = vpop.f32.mrb[88].mxu1 }
 0x9bd   :  { %v14257_v56 = vadd.f32 %v13713_v4, %v7417_v63  ;;  %v7419_v40 = vpop.f32.mrb[89].mxu1 }
 0x9be   :  { %v7420_v14 = vpop.f32.mrb[90].mxu1  ;;  %v7987_v40 = vmul.f32 %v14226_v19, %v14226_v19 }
 0x9bf   :  { %v14260_v25 = vadd.f32 %v13717_v15, %v7420_v14  ;;  %v7422_v35 = vpop.f32.mrb[91].mxu1  ;;  %v7988_v14 = vmul.f32 %v14230_v0, %v14230_v0 }
 0x9c1   :  { %8917 = vmatmul.mubr.bf16.gmra.mrb[196].mxu1 %v5571_v43 }
 0x9c4   :  { %v7425_v41 = vpop.f32.mrb[92].mxu1 }
 0x9c5   :  { %v14263_v62 = vadd.f32 %v13711_v52, %v7425_v41  ;;  %v7427_v61 = vpop.f32.mrb[93].mxu1 }
 0x9c6   :  { %v7428_v58 = vpop.f32.mrb[94].mxu1 }
 0x9c7   :  { %v14266_v11 = vadd.f32 %v13715_v59, %v7428_v58  ;;  %v7430_v20 = vpop.f32.mrb[95].mxu1  ;;  %v16236_v58 = vld [vmem:[#allocation49_spill] sm:$0xff] }
 0x9cc   :  { %v7433_v4 = vpop.f32.mrb[96].mxu1 }
 0x9cd   :  { %v14269_v10 = vadd.f32 %v13725_v47, %v7433_v4  ;;  %v7435_v29 = vpop.f32.mrb[97].mxu1 }
 0x9ce   :  { %v7436_v50 = vpop.f32.mrb[98].mxu1 }
 0x9cf   :  { %v14272_v15 = vadd.f32 %v13732_v2, %v7436_v50  ;;  %v7438_v34 = vpop.f32.mrb[99].mxu1  ;;  %v7989_v50 = vmul.f32 %v14233_v1, %v14233_v1 }
 0x9d4   :  { %v7441_v26 = vpop.f32.mrb[100].mxu1 }
 0x9d5   :  { %v14275_v52 = vadd.f32 %v13723_v60, %v7441_v26  ;;  %v7443_v53 = vpop.f32.mrb[101].mxu1  ;;  %v16237_v26 = vld [vmem:[#allocation16_spill] sm:$0xff] }
 0x9d6   :  { %v7444_v3 = vpop.f32.mrb[102].mxu1 }
 0x9d7   :  { %v14278_v59 = vadd.f32 %v13727_v57, %v7444_v3  ;;  %v7446_v42 = vpop.f32.mrb[103].mxu1 }
 0x9dc   :  { %v7449_v32 = vpop.f32.mrb[104].mxu1 }
 0x9dd   :  { %v14281_v47 = vadd.f32 %v13741_v46, %v7449_v32  ;;  %v7451_v24 = vpop.f32.mrb[105].mxu1  ;;  %v7985_v46 = vmul.f32 %v14219_v49, %v14219_v49  ;;  %v7990_v32 = vmul.f32 %v14237_v18, %v14237_v18 }
 0x9de   :  { %v7452_v48 = vpop.f32.mrb[106].mxu1 }
 0x9df   :  { %v14284_v2 = vadd.f32 %v13748_v27, %v7452_v48  ;;  %v7454_v36 = vpop.f32.mrb[107].mxu1  ;;  %v7915_v27 = vadd.f32 %v14219_v49, %v14216_v54  ;;  %v8048_v33 = vadd.f32 %v7985_v46, %v7984_v6  ;;  %v7992_v6 = vmul.f32 %v14243_v23, %v14243_v23 }
 0x9e1   :  { %v7916_v12 = vadd.f32 %v7915_v27, %v14223_v39  ;;  %v8049_v63 = vadd.f32 %v8048_v33, %v7986_v55  ;;  %v16239_v55 = vld [vmem:[#allocation52_spill] sm:$0xff] }
 0x9e3   :  { %v7917_v43 = vadd.f32 %v7916_v12, %v14226_v19  ;;  %v8050_v35 = vadd.f32 %v8049_v63, %v7987_v40  ;;  %v16240_v40 = vld [vmem:[#allocation18_spill] sm:$0xff] }
 0x9e4   :  { %v7457_v28 = vpop.f32.mrb[108].mxu1 }
 0x9e5   :  { %v14287_v60 = vadd.f32 %v13739_v5, %v7457_v28  ;;  %v7459_v51 = vpop.f32.mrb[109].mxu1  ;;  %v7918_v41 = vadd.f32 %v7917_v43, %v14230_v0  ;;  %v8051_v29 = vadd.f32 %v8050_v35, %v7988_v14  ;;  %v7991_v28 = vmul.f32 %v14240_v38, %v14240_v38 }
 0x9e6   :  { %v7460_v22 = vpop.f32.mrb[110].mxu1 }
 0x9e7   :  { %v14290_v57 = vadd.f32 %v16233_v21, %v7460_v22  ;;  %v7462_v7 = vpop.f32.mrb[111].mxu1  ;;  %v7919_v42 = vadd.f32 %v7918_v41, %v14233_v1  ;;  %v8052_v24 = vadd.f32 %v8051_v29, %v7989_v50  ;;  %v16238_v22 = vld [vmem:[#allocation51_spill] sm:$0xff] }
 0x9e9   :  { %v7920_v48 = vadd.f32 %v7919_v42, %v14237_v18  ;;  %v8053_v36 = vadd.f32 %v8052_v24, %v7990_v32 }
 0x9eb   :  { %v7921_v46 = vadd.f32 %v7920_v48, %v14240_v38  ;;  %v16243_v48 = vld [vmem:[#allocation54_spill] sm:$0xff] }
 0x9ec   :  { %v7465_v5 = vpop.f32.mrb[112].mxu1 }
 0x9ed   :  { %v14301_v44 = vadd.f32 %v16234_v45, %v7465_v5  ;;  %v7467_v8 = vpop.f32.mrb[113].mxu1  ;;  %v7922_v33 = vadd.f32 %v7921_v46, %v14243_v23  ;;  %v16244_v46 = vld [vmem:[#allocation21_spill] sm:$0xff] }
 0x9ee   :  { %v7468_v30 = vpop.f32.mrb[114].mxu1  ;;  %v8054_v8 = vadd.f32 %v8053_v36, %v7991_v28 }
 0x9ef   :  { %v14305_v9 = vadd.f32 %v16235_v31, %v7468_v30  ;;  %v7470_v37 = vpop.f32.mrb[115].mxu1  ;;  %v7993_v30 = vmul.f32 %v14246_v17, %v14246_v17  ;;  %v7923_v31 = vadd.f32 %v7922_v33, %v14246_v17 }
 0x9f0   :  { %v8055_v12 = vadd.f32 %v8054_v8, %v7992_v6  ;;  %v7994_v37 = vmul.f32 %v14250_v16, %v14250_v16 }
 0x9f1   :  { %v7924_v41 = vadd.f32 %v7923_v31, %v14250_v16 }
 0x9f2   :  { %v8056_v35 = vadd.f32 %v8055_v12, %v7993_v30  ;;  %v7999_v30 = vmul.f32 %v14266_v11, %v14266_v11 }
 0x9f4   :  { %v7473_v61 = vpop.f32.mrb[116].mxu1  ;;  %v8057_v50 = vadd.f32 %v8056_v35, %v7994_v37  ;;  %v16246_v37 = vld [vmem:[#allocation53_spill] sm:$0xff]  ;;  %v8000_v35 = vmul.f32 %v14269_v10, %v14269_v10 }
 0x9f5   :  { %v14314_v20 = vadd.f32 %v16236_v58, %v7473_v61  ;;  %v7475_v4 = vpop.f32.mrb[117].mxu1  ;;  %v16241_v58 = vld [vmem:[#allocation19_spill] sm:$0xff] }
 0x9f6   :  { %v7476_v34 = vpop.f32.mrb[118].mxu1 }
 0x9f7   :  { %v14319_v53 = vadd.f32 %v16237_v26, %v7476_v34  ;;  %v7478_v3 = vpop.f32.mrb[119].mxu1  ;;  %v7995_v34 = vmul.f32 %v14253_v13, %v14253_v13  ;;  %v7925_v26 = vadd.f32 %v7924_v41, %v14253_v13 }
 0x9f8   :  { %v7996_v3 = vmul.f32 %v14257_v56, %v14257_v56 }
 0x9f9   :  { %v8058_v42 = vadd.f32 %v8057_v50, %v7995_v34  ;;  %v7926_v32 = vadd.f32 %v7925_v26, %v14257_v56 }
 0x9fc   :  { %v7481_v51 = vpop.f32.mrb[120].mxu1 }
 0x9fd   :  { %v14328_v21 = vadd.f32 %v16238_v22, %v7481_v51  ;;  %v7483_v7 = vpop.f32.mrb[121].mxu1  ;;  %v8059_v51 = vadd.f32 %v8058_v42, %v7996_v3  ;;  %v7997_v22 = vmul.f32 %v14260_v25, %v14260_v25  ;;  %v8001_v3 = vmul.f32 %v14272_v15, %v14272_v15 }
 0x9fe   :  { %v7484_v27 = vpop.f32.mrb[122].mxu1 }
 0x9ff   :  { %v14334_v5 = vadd.f32 %v16239_v55, %v7484_v27  ;;  %v7486_v45 = vpop.f32.mrb[123].mxu1  ;;  %v7927_v55 = vadd.f32 %v7926_v32, %v14260_v25  ;;  %v8060_v8 = vadd.f32 %v8059_v51, %v7997_v22  ;;  %v8002_v32 = vmul.f32 %v14275_v52, %v14275_v52 }
 0xa00   :  { %v7998_v45 = vmul.f32 %v14263_v62, %v14263_v62 }
 0xa01   :  { %v7928_v33 = vadd.f32 %v7927_v55, %v14263_v62 }
 0xa02   :  { %v8061_v12 = vadd.f32 %v8060_v8, %v7998_v45 }
 0xa04   :  { %v7489_v63 = vpop.f32.mrb[124].mxu1  ;;  %v8062_v50 = vadd.f32 %v8061_v12, %v7999_v30  ;;  %v8004_v30 = vmul.f32 %v14281_v47, %v14281_v47 }
 0xa05   :  { %v14343_v43 = vadd.f32 %v16240_v40, %v7489_v63  ;;  %v7491_v14 = vpop.f32.mrb[125].mxu1 }
 0xa06   :  { %v7492_v61 = vpop.f32.mrb[126].mxu1  ;;  %v7929_v14 = vadd.f32 %v7928_v33, %v14266_v11  ;;  %v8063_v26 = vadd.f32 %v8062_v50, %v8000_v35  ;;  %v8003_v33 = vmul.f32 %v14278_v59, %v14278_v59 }
 0xa07   :  { %v14347_v4 = vadd.f32 %v16241_v58, %v7492_v61  ;;  %v7494_v29 = vpop.f32.mrb[127].mxu1  ;;  %v16247_v61 = vld [vmem:[#allocation55_spill] sm:$0xff] }
 0xa08   :  { %v7930_v34 = vadd.f32 %v7929_v14, %v14269_v10  ;;  %v8064_v22 = vadd.f32 %v8063_v26, %v8001_v3  ;;  %v16253_v14 = vld [vmem:[#allocation56_spill] sm:$0xff] }
 0xa09   :  { %16242 = vst [vmem:[#allocation9_spill] sm:$0xff] %v14347_v4 }
 0xa0a   :  { %v7931_v42 = vadd.f32 %v7930_v34, %v14272_v15  ;;  %v8065_v8 = vadd.f32 %v8064_v22, %v8002_v32  ;;  %v16255_v34 = vld [vmem:[#allocation58_spill] sm:$0xff]  ;;  %v8006_v32 = vmul.f32 %v14287_v60, %v14287_v60  ;;  %v8007_v22 = vmul.f32 %v14290_v57, %v14290_v57 }
 0xa0c   :  { %v7497_v24 = vpop.f32.mrb[128].mxu1 }
 0xa0d   :  { %v14356_v36 = vadd.f32 %v16243_v48, %v7497_v24  ;;  %v7499_v28 = vpop.f32.mrb[129].mxu1  ;;  %v16249_v48 = vld [vmem:[#allocation57_spill] sm:$0xff] }
 0xa0e   :  { %v7500_v7 = vpop.f32.mrb[130].mxu1 }
 0xa0f   :  { %v14361_v6 = vadd.f32 %v16244_v46, %v7500_v7  ;;  %v7502_v27 = vpop.f32.mrb[131].mxu1  ;;  %v7932_v7 = vadd.f32 %v7931_v42, %v14275_v52 }
 0xa10   :  { %v16251_v27 = vld [vmem:[#allocation59_spill] sm:$0xff] }
 0xa11   :  { %16245 = vst [vmem:[#allocation71_spill] sm:$0xff] %v14361_v6  ;;  %v7933_v12 = vadd.f32 %v7932_v7, %v14278_v59 }
 0xa14   :  { %v7505_v31 = vpop.f32.mrb[132].mxu1 }
 0xa15   :  { %v14370_v63 = vadd.f32 %v16246_v37, %v7505_v31  ;;  %v7507_v40 = vpop.f32.mrb[133].mxu1  ;;  %v8066_v31 = vadd.f32 %v8065_v8, %v8003_v33  ;;  %v7934_v37 = vadd.f32 %v7933_v12, %v14281_v47  ;;  %v8008_v33 = vmul.f32 %v14301_v44, %v14301_v44 }
 0xa16   :  { %v7508_v41 = vpop.f32.mrb[134].mxu1 }
 0xa17   :  { %v14376_v58 = vadd.f32 %v16247_v61, %v7508_v41  ;;  %v7510_v29 = vpop.f32.mrb[135].mxu1  ;;  %v8067_v61 = vadd.f32 %v8066_v31, %v8004_v30  ;;  %v7935_v42 = vadd.f32 %v7934_v37, %v14284_v2  ;;  %v16258_v30 = vld [vmem:[#allocation63_spill] sm:$0xff] }
 0xa18   :  { %v8005_v29 = vmul.f32 %v14284_v2, %v14284_v2 }
 0xa19   :  { %16248 = vst [vmem:[#allocation10_spill] sm:$0xff] %v14376_v58 }
 0xa1c   :  { %v7513_v24 = vpop.f32.mrb[136].mxu1 }
 0xa1d   :  { %v14385_v28 = vadd.f32 %v16249_v48, %v7513_v24  ;;  %v7515_v51 = vpop.f32.mrb[137].mxu1  ;;  %v8068_v24 = vadd.f32 %v8067_v61, %v8005_v29  ;;  %v7936_v48 = vadd.f32 %v7935_v42, %v14287_v60  ;;  %v8009_v61 = vmul.f32 %v14305_v9, %v14305_v9 }
 0xa1e   :  { %v7516_v46 = vpop.f32.mrb[138].mxu1 }
 0xa1f   :  { %16250 = vst [vmem:[#allocation72_spill] sm:$0xff] %v14385_v28  ;;  %v14389_v55 = vadd.f32 %v16251_v27, %v7516_v46  ;;  %v7518_v45 = vpop.f32.mrb[139].mxu1  ;;  %v8069_v51 = vadd.f32 %v8068_v24, %v8006_v32  ;;  %v16257_v46 = vld [vmem:[#allocation61_spill] sm:$0xff]  ;;  %v7937_v8 = vadd.f32 %v7936_v48, %v14290_v57 }
 0xa21   :  { %16252 = vst [vmem:[#allocation73_spill] sm:$0xff] %v14389_v55 }
 0xa24   :  { %v7521_v40 = vpop.f32.mrb[140].mxu1 }
 0xa25   :  { %v14398_v35 = vadd.f32 %v16253_v14, %v7521_v40  ;;  %v7523_v41 = vpop.f32.mrb[141].mxu1  ;;  %v8070_v40 = vadd.f32 %v8069_v51, %v8007_v22  ;;  %v7938_v14 = vadd.f32 %v7937_v8, %v14301_v44  ;;  %v16261_v22 = vld [vmem:[#allocation62_spill] sm:$0xff]  ;;  %v8011_v8 = vmul.f32 %v14319_v53, %v14319_v53 }
 0xa26   :  { %v7524_v50 = vpop.f32.mrb[142].mxu1 }
 0xa27   :  { %16254 = vst [vmem:[#allocation74_spill] sm:$0xff] %v14398_v35  ;;  %v14403_v26 = vadd.f32 %v16255_v34, %v7524_v50  ;;  %v7526_v3 = vpop.f32.mrb[143].mxu1  ;;  %v8071_v41 = vadd.f32 %v8070_v40, %v8008_v33  ;;  %v7939_v29 = vadd.f32 %v7938_v14, %v14305_v9  ;;  %v8010_v50 = vmul.f32 %v14314_v20, %v14314_v20  ;;  %v16263_v14 = vld [vmem:[#allocation33_spill] sm:$0xff] }
 0xa28   :  { %v16260_v3 = vld [vmem:[#allocation60_spill] sm:$0xff] }
 0xa29   :  { %16256 = vst [vmem:[#allocation75_spill] sm:$0xff] %v14403_v26  ;;  %v8072_v24 = vadd.f32 %v8071_v41, %v8009_v61  ;;  %v7940_v48 = vadd.f32 %v7939_v29, %v14314_v20 }
 0xa2b   :  { %v7941_v33 = vadd.f32 %v7940_v48, %v14319_v53 }
 0xa2c   :  { %v7529_v7 = vpop.f32.mrb[144].mxu1 }
 0xa2d   :  { %v14412_v27 = vadd.f32 %v16257_v46, %v7529_v7  ;;  %v7531_v45 = vpop.f32.mrb[145].mxu1 }
 0xa2e   :  { %v7532_v12 = vpop.f32.mrb[146].mxu1  ;;  %v8073_v45 = vadd.f32 %v8072_v24, %v8010_v50  ;;  %v8013_v50 = vmul.f32 %v14334_v5, %v14334_v5 }
 0xa2f   :  { %v14418_v31 = vadd.f32 %v16258_v30, %v7532_v12  ;;  %v7534_v37 = vpop.f32.mrb[147].mxu1  ;;  %v8012_v12 = vmul.f32 %v14328_v21, %v14328_v21 }
 0xa30   :  { %v8074_v30 = vadd.f32 %v8073_v45, %v8011_v8  ;;  %v7942_v37 = vadd.f32 %v7941_v33, %v14328_v21  ;;  %v8015_v8 = vmul.f32 %v14347_v4, %v14347_v4 }
 0xa31   :  { %16259 = vst [vmem:[#allocation76_spill] sm:$0xff] %v14418_v31 }
 0xa32   :  { %v8075_v29 = vadd.f32 %v8074_v30, %v8012_v12  ;;  %v7943_v48 = vadd.f32 %v7942_v37, %v14334_v5  ;;  %v16267_v12 = vld [vmem:[#allocation64_spill] sm:$0xff]  ;;  %v8016_v37 = vmul.f32 %v14356_v36, %v14356_v36 }
 0xa34   :  { %v7537_v34 = vpop.f32.mrb[148].mxu1 }
 0xa35   :  { %v14427_v42 = vadd.f32 %v16260_v3, %v7537_v34  ;;  %v7539_v32 = vpop.f32.mrb[149].mxu1  ;;  %v16265_v3 = vld [vmem:[#allocation22_spill] sm:$0xff] }
 0xa36   :  { %v7540_v51 = vpop.f32.mrb[150].mxu1 }
 0xa37   :  { %v14431_v7 = vadd.f32 %v16261_v22, %v7540_v51  ;;  %v7542_v46 = vpop.f32.mrb[151].mxu1  ;;  %v8014_v51 = vmul.f32 %v14343_v43, %v14343_v43  ;;  %v8076_v22 = vadd.f32 %v8075_v29, %v8013_v50 }
 0xa38   :  { %v7944_v46 = vadd.f32 %v7943_v48, %v14343_v43 }
 0xa39   :  { %16262 = vst [vmem:[#allocation77_spill] sm:$0xff] %v14431_v7  ;;  %v8077_v45 = vadd.f32 %v8076_v22, %v8014_v51  ;;  %v8017_v51 = vmul.f32 %v14361_v6, %v14361_v6 }
 0xa3b   :  { %v8078_v50 = vadd.f32 %v8077_v45, %v8015_v8  ;;  %v16273_v8 = vld [vmem:[#allocation68_spill] sm:$0xff] }
 0xa3c   :  { %v7545_v40 = vpop.f32.mrb[152].mxu1 }
 0xa3d   :  { %v14440_v41 = vadd.f32 %v16263_v14, %v7545_v40  ;;  %v7547_v61 = vpop.f32.mrb[153].mxu1  ;;  %v7945_v14 = vadd.f32 %v7944_v46, %v14347_v4  ;;  %v8079_v48 = vadd.f32 %v8078_v50, %v8016_v37  ;;  %v8018_v46 = vmul.f32 %v14370_v63, %v14370_v63 }
 0xa3e   :  { %v7548_v34 = vpop.f32.mrb[154].mxu1  ;;  %v8019_v50 = vmul.f32 %v14376_v58, %v14376_v58 }
 0xa3f   :  { %16264 = vst [vmem:[#allocation78_spill] sm:$0xff] %v14440_v41  ;;  %v14445_v32 = vadd.f32 %v16265_v3, %v7548_v34  ;;  %v7550_v24 = vpop.f32.mrb[155].mxu1  ;;  %v16269_v34 = vld [vmem:[#allocation65_spill] sm:$0xff] }
 0xa40   :  { %v7946_v24 = vadd.f32 %v7945_v14, %v14356_v36 }
 0xa41   :  { %16266 = vst [vmem:[#allocation79_spill] sm:$0xff] %v14445_v32 }
 0xa42   :  { %v7947_v22 = vadd.f32 %v7946_v24, %v14361_v6  ;;  %v8020_v6 = vmul.f32 %v14385_v28, %v14385_v28 }
 0xa44   :  { %v7553_v33 = vpop.f32.mrb[156].mxu1 }
 0xa45   :  { %v14454_v30 = vadd.f32 %v16267_v12, %v7553_v33  ;;  %v7555_v40 = vpop.f32.mrb[157].mxu1  ;;  %v16271_v12 = vld [vmem:[#allocation66_spill] sm:$0xff] }
 0xa46   :  { %v7556_v61 = vpop.f32.mrb[158].mxu1 }
 0xa47   :  { %16268 = vst [vmem:[#allocation80_spill] sm:$0xff] %v14454_v30  ;;  %v14460_v3 = vadd.f32 %v16269_v34, %v7556_v61  ;;  %v7558_v29 = vpop.f32.mrb[159].mxu1  ;;  %v8080_v61 = vadd.f32 %v8079_v48, %v8017_v51  ;;  %v7948_v34 = vadd.f32 %v7947_v22, %v14370_v63  ;;  %v16275_v51 = vld [vmem:[#allocation28_spill] sm:$0xff] }
 0xa49   :  { %16270 = vst [vmem:[#allocation81_spill] sm:$0xff] %v14460_v3  ;;  %v8081_v29 = vadd.f32 %v8080_v61, %v8018_v46  ;;  %v7949_v24 = vadd.f32 %v7948_v34, %v14376_v58  ;;  %v8021_v46 = vmul.f32 %v14389_v55, %v14389_v55 }
 0xa4c   :  { %v7561_v33 = vpop.f32.mrb[160].mxu1 }
 0xa4d   :  { %v14469_v40 = vadd.f32 %v16271_v12, %v7561_v33  ;;  %v7563_v4 = vpop.f32.mrb[161].mxu1  ;;  %v8082_v33 = vadd.f32 %v8081_v29, %v8019_v50  ;;  %v8022_v29 = vmul.f32 %v14398_v35, %v14398_v35 }
 0xa4e   :  { %v7564_v45 = vpop.f32.mrb[162].mxu1  ;;  %v7950_v4 = vadd.f32 %v7949_v24, %v14385_v28 }
 0xa4f   :  { %16272 = vst [vmem:[#allocation11_spill] sm:$0xff] %v14469_v40  ;;  %v14473_v14 = vadd.f32 %v16273_v8, %v7564_v45  ;;  %v7566_v37 = vpop.f32.mrb[163].mxu1  ;;  %v8083_v45 = vadd.f32 %v8082_v33, %v8020_v6  ;;  %v16277_v8 = vld [vmem:[#allocation67_spill] sm:$0xff]  ;;  %v8023_v6 = vmul.f32 %v14403_v26, %v14403_v26 }
 0xa50   :  { %v7951_v58 = vadd.f32 %v7950_v4, %v14389_v55  ;;  %v8024_v4 = vmul.f32 %v14412_v27, %v14412_v27 }
 0xa51   :  { %16274 = vst [vmem:[#allocation82_spill] sm:$0xff] %v14473_v14  ;;  %v8084_v50 = vadd.f32 %v8083_v45, %v8021_v46 }
 0xa52   :  { %v7952_v24 = vadd.f32 %v7951_v58, %v14398_v35 }
 0xa54   :  { %v7569_v48 = vpop.f32.mrb[164].mxu1 }
 0xa55   :  { %v14482_v22 = vadd.f32 %v16275_v51, %v7569_v48  ;;  %v7571_v12 = vpop.f32.mrb[165].mxu1  ;;  %v8085_v48 = vadd.f32 %v8084_v50, %v8022_v29  ;;  %v16279_v51 = vld [vmem:[#allocation29_spill] sm:$0xff]  ;;  %v8025_v50 = vmul.f32 %v14418_v31, %v14418_v31 }
 0xa56   :  { %v7572_v61 = vpop.f32.mrb[166].mxu1 }
 0xa57   :  { %16276 = vst [vmem:[#allocation26_spill] sm:$0xff] %v14482_v22  ;;  %v14487_v37 = vadd.f32 %v16277_v8, %v7572_v61  ;;  %v7574_v34 = vpop.f32.mrb[167].mxu1  ;;  %v7953_v61 = vadd.f32 %v7952_v24, %v14403_v26  ;;  %v8086_v58 = vadd.f32 %v8085_v48, %v8023_v6  ;;  %v16285_v6 = vld [vmem:[#allocation70_spill] sm:$0xff] }
 0xa58   :  { %v16281_v34 = vld [vmem:[#allocation34_spill] sm:$0xff] }
 0xa59   :  { %16278 = vst [vmem:[#allocation12_spill] sm:$0xff] %v14487_v37  ;;  %v7954_v46 = vadd.f32 %v7953_v61, %v14412_v27  ;;  %v8087_v29 = vadd.f32 %v8086_v58, %v8024_v4  ;;  %v8027_v58 = vmul.f32 %v14431_v7, %v14431_v7 }
 0xa5c   :  { %v7577_v33 = vpop.f32.mrb[168].mxu1 }
 0xa5d   :  { %v14496_v12 = vadd.f32 %v16279_v51, %v7577_v33  ;;  %v7579_v28 = vpop.f32.mrb[169].mxu1  ;;  %v7955_v33 = vadd.f32 %v7954_v46, %v14418_v31  ;;  %v16283_v51 = vld [vmem:[#allocation69_spill] sm:$0xff]  ;;  %v8028_v31 = vmul.f32 %v14440_v41, %v14440_v41 }
 0xa5e   :  { %v7580_v8 = vpop.f32.mrb[170].mxu1  ;;  %v8026_v28 = vmul.f32 %v14427_v42, %v14427_v42 }
 0xa5f   :  { %16280 = vst [vmem:[#allocation13_spill] sm:$0xff] %v14496_v12  ;;  %v14502_v55 = vadd.f32 %v16281_v34, %v7580_v8  ;;  %v7582_v45 = vpop.f32.mrb[171].mxu1  ;;  %v8088_v8 = vadd.f32 %v8087_v29, %v8025_v50  ;;  %v7956_v34 = vadd.f32 %v7955_v33, %v14427_v42 }
 0xa61   :  { %16282 = vst [vmem:[#allocation15_spill] sm:$0xff] %v14502_v55  ;;  %v8089_v45 = vadd.f32 %v8088_v8, %v8026_v28  ;;  %v7957_v46 = vadd.f32 %v7956_v34, %v14431_v7  ;;  %v8030_v8 = vmul.f32 %v14454_v30, %v14454_v30 }
 0xa64   :  { %v7585_v24 = vpop.f32.mrb[172].mxu1 }
 0xa65   :  { %v14511_v26 = vadd.f32 %v16283_v51, %v7585_v24  ;;  %v7587_v35 = vpop.f32.mrb[173].mxu1  ;;  %v8090_v24 = vadd.f32 %v8089_v45, %v8027_v58  ;;  %v8029_v51 = vmul.f32 %v14445_v32, %v14445_v32  ;;  %v8031_v45 = vmul.f32 %v14460_v3, %v14460_v3 }
 0xa66   :  { %v7588_v48 = vpop.f32.mrb[174].mxu1  ;;  %v7958_v35 = vadd.f32 %v7957_v46, %v14440_v41 }
 0xa67   :  { %16284 = vst [vmem:[#allocation17_spill] sm:$0xff] %v14511_v26  ;;  %v14515_v61 = vadd.f32 %v16285_v6, %v7588_v48  ;;  %v7590_v4 = vpop.f32.mrb[175].mxu1  ;;  %v8091_v33 = vadd.f32 %v8090_v24, %v8028_v31  ;;  %v8032_v24 = vmul.f32 %v14469_v40, %v14469_v40 }
 0xa68   :  { %v7959_v28 = vadd.f32 %v7958_v35, %v14445_v32 }
 0xa69   :  { %16286 = vst [vmem:[#allocation27_spill] sm:$0xff] %v14515_v61  ;;  %v8092_v34 = vadd.f32 %v8091_v33, %v8029_v51  ;;  %v8033_v33 = vmul.f32 %v14473_v14, %v14473_v14 }
 0xa6a   :  { %v7960_v4 = vadd.f32 %v7959_v28, %v14454_v30  ;;  %v8034_v28 = vmul.f32 %v14482_v22, %v14482_v22 }
 0xa6b   :  { %v8093_v7 = vadd.f32 %v8092_v34, %v8030_v8 }
 0xa6c   :  { %v7593_v29 = vpop.f32.mrb[176].mxu1  ;;  %v7961_v31 = vadd.f32 %v7960_v4, %v14460_v3 }
 0xa6d   :  { %v7595_v50 = vpop.f32.mrb[177].mxu1  ;;  %v8094_v35 = vadd.f32 %v8093_v7, %v8031_v45  ;;  %v8035_v7 = vmul.f32 %v14487_v37, %v14487_v37 }
 0xa6e   :  { %v7596_v48 = vpop.f32.mrb[178].mxu1  ;;  %v7962_v32 = vadd.f32 %v7961_v31, %v14469_v40  ;;  %v8036_v31 = vmul.f32 %v14496_v12, %v14496_v12 }
 0xa6f   :  { %v7598_v6 = vpop.f32.mrb[179].mxu1  ;;  %v8095_v41 = vadd.f32 %v8094_v35, %v8032_v24 }
 0xa70   :  { %v7963_v51 = vadd.f32 %v7962_v32, %v14473_v14 }
 0xa71   :  { %v8096_v4 = vadd.f32 %v8095_v41, %v8033_v33  ;;  %v8037_v41 = vmul.f32 %v14502_v55, %v14502_v55 }
 0xa74   :  { %v7601_v58 = vpop.f32.mrb[180].mxu1 }
 0xa75   :  { %v7603_v46 = vpop.f32.mrb[181].mxu1 }
 0xa76   :  { %v7604_v50 = vpop.f32.mrb[182].mxu1  ;;  %v7964_v46 = vadd.f32 %v7963_v51, %v14482_v22 }
 0xa77   :  { %v7606_v6 = vpop.f32.mrb[183].mxu1 }
 0xa78   :  { %v8097_v6 = vadd.f32 %v8096_v4, %v8034_v28  ;;  %v7965_v45 = vadd.f32 %v7964_v46, %v14487_v37  ;;  %v8038_v28 = vmul.f32 %v14511_v26, %v14511_v26 }
 0xa7a   :  { %v8098_v32 = vadd.f32 %v8097_v6, %v8035_v7  ;;  %v7966_v24 = vadd.f32 %v7965_v45, %v14496_v12  ;;  %v8039_v6 = vmul.f32 %v14515_v61, %v14515_v61 }
 0xa7c   :  { %v7609_v8 = vpop.f32.mrb[184].mxu1  ;;  %v7967_v51 = vadd.f32 %v7966_v24, %v14502_v55 }
 0xa7d   :  { %v7611_v34 = vpop.f32.mrb[185].mxu1 }
 0xa7e   :  { %v7612_v3 = vpop.f32.mrb[186].mxu1  ;;  %v8099_v34 = vadd.f32 %v8098_v32, %v8036_v31  ;;  %v7968_v46 = vadd.f32 %v7967_v51, %v14511_v26 }
 0xa7f   :  { %v7614_v30 = vpop.f32.mrb[187].mxu1 }
 0xa80   :  { %v8100_v4 = vadd.f32 %v8099_v34, %v8037_v41  ;;  %v7969_v31 = vadd.f32 %v7968_v46, %v14515_v61 }
 0xa82   :  { %v8101_v37 = vadd.f32 %v8100_v4, %v8038_v28 }
 0xa84   :  { %v7617_v35 = vpop.f32.mrb[188].mxu1  ;;  %v8102_v12 = vadd.f32 %v8101_v37, %v8039_v6 }
 0xa85   :  { %v7619_v14 = vpop.f32.mrb[189].mxu1 }
 0xa86   :  { %v7620_v33 = vpop.f32.mrb[190].mxu1 }
 0xa87   :  { %v7622_v30 = vpop.f32.mrb[191].mxu1 }
 0xa8c   :  { %v8914_v7 = vpop.f32.mrb[192].mxu1 }
 0xa8d   :  { %v14555_v14 = vadd.f32 %v8914_v7, %v7601_v58  ;;  %v7882_v45 = vpop.f32.mrb[193].mxu1 }
 0xa8e   :  { %v14558_v32 = vadd.f32 %v7882_v45, %v7593_v29  ;;  %v8915_v30 = vpop.f32.mrb[194].mxu1 }
 0xa8f   :  { %16287 = vst [vmem:[#allocation30_spill] sm:$0xff] %v14555_v14  ;;  %v14560_v24 = vadd.f32 %v8915_v30, %v7604_v50  ;;  %v7885_v55 = vpop.f32.mrb[195].mxu1  ;;  %v8042_v29 = vmul.f32 %v14555_v14, %v14555_v14 }
 0xa90   :  { %16288 = vst [vmem:[#allocation31_spill] sm:$0xff] %v14558_v32  ;;  %v7970_v34 = vadd.f32 %v7969_v31, %v14558_v32  ;;  %v8040_v41 = vmul.f32 %v14558_v32, %v14558_v32  ;;  %v14565_v51 = vadd.f32 %v7885_v55, %v7596_v48 }
 0xa91   :  { %16289 = vst [vmem:[#allocation37_spill] sm:$0xff] %v14560_v24  ;;  %v8043_v55 = vmul.f32 %v14560_v24, %v14560_v24 }
 0xa92   :  { %16290 = vst [vmem:[#allocation38_spill] sm:$0xff] %v14565_v51  ;;  %v8103_v28 = vadd.f32 %v8102_v12, %v8040_v41  ;;  %v7971_v58 = vadd.f32 %v7970_v34, %v14565_v51  ;;  %v8041_v4 = vmul.f32 %v14565_v51, %v14565_v51 }
 0xa94   :  { %v7972_v50 = vadd.f32 %v7971_v58, %v14555_v14  ;;  %v8104_v46 = vadd.f32 %v8103_v28, %v8041_v4  ;;  %v8918_v37 = vpop.f32.mrb[196].mxu1  ;;  %v16312_v14 = vld [vmem:[#allocation12_spill] sm:$0xff] }
 0xa95   :  { %v14573_v6 = vadd.f32 %v8918_v37, %v7617_v35  ;;  %v7898_v7 = vpop.f32.mrb[197].mxu1 }
 0xa96   :  { %v8105_v48 = vadd.f32 %v8104_v46, %v8042_v29  ;;  %v14577_v12 = vadd.f32 %v7898_v7, %v7609_v8  ;;  %v7973_v45 = vadd.f32 %v7972_v50, %v14560_v24  ;;  %v8919_v31 = vpop.f32.mrb[198].mxu1 }
 0xa97   :  { %16291 = vst [vmem:[#allocation39_spill] sm:$0xff] %v14573_v6  ;;  %v14580_v30 = vadd.f32 %v8919_v31, %v7620_v33  ;;  %v7901_v34 = vpop.f32.mrb[199].mxu1  ;;  %v8046_v29 = vmul.f32 %v14573_v6, %v14573_v6 }
 0xa98   :  { %16292 = vst [vmem:[#allocation35_spill] sm:$0xff] %v14577_v12  ;;  %v7974_v41 = vadd.f32 %v7973_v45, %v14577_v12  ;;  %v8044_v28 = vmul.f32 %v14577_v12, %v14577_v12  ;;  %v8106_v35 = vadd.f32 %v8105_v48, %v8043_v55  ;;  %v14585_v58 = vadd.f32 %v7901_v34, %v7612_v3  ;;  %v14730_v12 = vld [vmem:[%s15628_s7] ss:$0 sm:$0xff] }
 0xa99   :  { %16293 = vst [vmem:[#allocation23_spill] sm:$0xff] %v14580_v30  ;;  %v8047_v46 = vmul.f32 %v14580_v30, %v14580_v30 }
 0xa9a   :  { %v8107_v4 = vadd.f32 %v8106_v35, %v8044_v28  ;;  %v7975_v37 = vadd.f32 %v7974_v41, %v14585_v58  ;;  %v8045_v8 = vmul.f32 %v14585_v58, %v14585_v58 }
 0xa9c   :  { %v7976_v33 = vadd.f32 %v7975_v37, %v14573_v6  ;;  %v8108_v50 = vadd.f32 %v8107_v4, %v8045_v8 }
 0xa9e   :  { %v7977_v7 = vadd.f32 %v7976_v33, %v14580_v30  ;;  %v8109_v55 = vadd.f32 %v8108_v50, %v8046_v29  ;;  %v16311_v29 = vld [vmem:[#allocation26_spill] sm:$0xff] }
 0xaa0   :  { %v7978_v3 = vrot.slane %v7977_v7, 4  ;;  %v8110_v48 = vadd.f32 %v8109_v55, %v8047_v46  ;;  %v16302_v55 = vld [vmem:[#allocation77_spill] sm:$0xff] }
 0xaa2   :  { %v7979_v45 = vadd.f32 %v7978_v3, %v7977_v7  ;;  %v8111_v31 = vrot.slane %v8110_v48, 4  ;;  %v16303_v7 = vld [vmem:[#allocation78_spill] sm:$0xff] }
 0xaa4   :  { %v7980_v34 = vrot.slane %v7979_v45, 2  ;;  %v8112_v41 = vadd.f32 %v8111_v31, %v8110_v48  ;;  %v16301_v31 = vld [vmem:[#allocation76_spill] sm:$0xff]  ;;  %v16310_v48 = vld [vmem:[#allocation82_spill] sm:$0xff] }
 0xaa6   :  { %v7981_v28 = vadd.f32 %v7980_v34, %v7979_v45  ;;  %v8113_v35 = vrot.slane %v8112_v41, 2  ;;  %v16300_v34 = vld [vmem:[#allocation75_spill] sm:$0xff] }
 0xaa8   :  { %v7982_v61 = vrot.slane %v7981_v28, 1  ;;  %v8114_v26 = vadd.f32 %v8113_v35, %v8112_v41  ;;  %v16298_v41 = vld [vmem:[#allocation73_spill] sm:$0xff] }
 0xaaa   :  { %v7983_v22 = vadd.f32 %v7982_v61, %v7981_v28  ;;  %v8115_v40 = vrot.slane %v8114_v26, 1  ;;  %v16295_v28 = vld [vmem:[#allocation71_spill] sm:$0xff] }
 0xaac   :  { %v8116_v37 = vadd.f32 %v8115_v40, %v8114_v26  ;;  %v14596_v4 = vmul.f32 0.001953125, %v7983_v22  ;;  %v16308_v22 = vld [vmem:[#allocation36_spill] sm:$0xff] }
 0xaad   :  { %v16309_v40 = vsub.s32 0, %v16308_v22 }
 0xaae   :  { %v8118_v8 = vmul.f32 0.001953125, %v8116_v37  ;;  %v8119_v33 = vmul.f32 %v14596_v4, %v14596_v4  ;;  %v16296_v37 = vld [vmem:[#allocation10_spill] sm:$0xff]  ;;  %v8173_v51 = vsub.f32 %v16310_v48, %v14596_v4  ;;  %v8174_v30 = vsub.f32 %v16311_v29, %v14596_v4 }
 0xaaf   :  { %v8175_v32 = vsub.f32 %v16312_v14, %v14596_v4  ;;  %v16317_v14 = vsub.f32 %v14585_v58, %v14596_v4  ;;  %v16318_v61 = vsub.f32 %v14216_v54, %v14596_v4  ;;  %v8387_v58 = vld [vmem:[%s15621_s0 + $0x1e8] sm:$0xff]  ;;  %v16321_v54 = vsub.f32 %v14226_v19, %v14596_v4 }
 0xab0   :  { %v8120_v50 = vsub.f32 %v8118_v8, %v8119_v33  ;;  %v16297_v8 = vld [vmem:[#allocation72_spill] sm:$0xff] }
 0xab1   :  { %v7913_v33 = vld [vmem:[%s15627_s6] sm:$0x1] }
 0xab2   :  { %v8121_v46 = vadd.f32 0.8, %v8120_v50  ;;  %v16294_v50 = vld [vmem:[#allocation9_spill] sm:$0xff] }
 0xab4   :  { %9857 = vrsqrt.f32 %v8121_v46  ;;  %v16299_v46 = vld [vmem:[#allocation74_spill] sm:$0xff] }
 0xabe   :  { %v9858_v26 = vpop.eup %9857 }
 0xabf   :  { %v8123_v45 = vmul.f32 %v9858_v26, %v7913_v33  ;;  %v16313_v33 = vld [vmem:[#allocation13_spill] sm:$0xff]  ;;  %v16316_v26 = vld [vmem:[#allocation27_spill] sm:$0xff] }
 0xac0   :  { %v8176_v24 = vsub.f32 %v16313_v33, %v14596_v4  ;;  %v8179_v29 = vsub.f32 %v16316_v26, %v14596_v4  ;;  %v16319_v33 = vsub.f32 %v14219_v49, %v14596_v4  ;;  %v16320_v26 = vsub.f32 %v14223_v39, %v14596_v4 }
 0xac1   :  { %v14719_v6 = vrot.slane %v8123_v45, %v16309_v40  ;;  %v16314_v40 = vld [vmem:[#allocation15_spill] sm:$0xff]  ;;  %v16315_v45 = vld [vmem:[#allocation17_spill] sm:$0xff]  ;;  %v16322_v49 = vsub.f32 %v14230_v0, %v14596_v4  ;;  %v16323_v39 = vsub.f32 %v14233_v1, %v14596_v4  ;;  %v16325_v0 = vsub.f32 %v14240_v38, %v14596_v4 }
 0xac2   :  { %v8177_v22 = vsub.f32 %v16314_v40, %v14596_v4  ;;  %v8178_v48 = vsub.f32 %v16315_v45, %v14596_v4  ;;  %v16326_v1 = vsub.f32 %v14243_v23, %v14596_v4 }
 0xac3   :  { %v8253_v35 = vmul.f32 %v14719_v6, %v16317_v14  ;;  %v14748_v3 = vmul.f32 %v14719_v6, %v16318_v61  ;;  %v14754_v40 = vmul.f32 %v14719_v6, %v16319_v33  ;;  %v14760_v45 = vmul.f32 %v14719_v6, %v16320_v26 }
 0xac4   :  { %v14769_v61 = vmul.f32 %v14719_v6, %v16321_v54  ;;  %v14775_v14 = vmul.f32 %v14719_v6, %v16322_v49  ;;  %v14781_v33 = vmul.f32 %v14719_v6, %v16323_v39  ;;  %v16324_v26 = vsub.f32 %v14237_v18, %v14596_v4 }
 0xac5   :  { %v8323_v54 = vadd.f32 %v14730_v12, %v8253_v35  ;;  %v14794_v49 = vmul.f32 %v14719_v6, %v16325_v0  ;;  %v14800_v39 = vmul.f32 %v14719_v6, %v16326_v1  ;;  %v16327_v18 = vsub.f32 %v14246_v17, %v14596_v4 }
 0xac6   :  { %v14787_v19 = vmul.f32 %v14719_v6, %v16324_v26  ;;  %v16328_v35 = vsub.f32 %v14250_v16, %v14596_v4  ;;  %v16330_v0 = vsub.f32 %v14253_v13, %v14596_v4  ;;  %v16331_v1 = vsub.f32 %v14257_v56, %v14596_v4 }
 0xac7   :  { %v14806_v26 = vmul.f32 %v14719_v6, %v16327_v18  ;;  %v16332_v18 = vsub.f32 %v14260_v25, %v14596_v4 }
 0xac8   :  { %v14812_v38 = vmul.f32 %v14719_v6, %v16328_v35  ;;  %v14818_v23 = vmul.f32 %v14719_v6, %v16330_v0  ;;  %v14824_v17 = vmul.f32 %v14719_v6, %v16331_v1  ;;  %v8451_v35 = vadd.f32 %v8387_v58, %v8323_v54 }
 0xac9   :  { %v14830_v16 = vmul.f32 %v14719_v6, %v16332_v18  ;;  %v16334_v0 = vsub.f32 %v14266_v11, %v14596_v4  ;;  %v16335_v1 = vsub.f32 %v14269_v10, %v14596_v4  ;;  %v16336_v58 = vsub.f32 %v14272_v15, %v14596_v4 }
 0xaca   :  { %16329 = vst [vmem:[#allocation20_spill] sm:$0xff] %v14812_v38  ;;  %v16333_v38 = vsub.f32 %v14263_v62, %v14596_v4  ;;  %v16337_v54 = vsub.f32 %v14275_v52, %v14596_v4  ;;  %v16339_v18 = vsub.f32 %v14281_v47, %v14596_v4  ;;  %8515 = vst [vmem:[#allocation6 + $0x1e8] sm:$0xff] %v8451_v35 }
 0xacb   :  { %v14842_v56 = vmul.f32 %v14719_v6, %v16334_v0  ;;  %v14848_v25 = vmul.f32 %v14719_v6, %v16335_v1  ;;  %v14854_v62 = vmul.f32 %v14719_v6, %v16336_v58  ;;  %v16340_v0 = vsub.f32 %v14284_v2, %v14596_v4 }
 0xacc   :  { %v14836_v13 = vmul.f32 %v14719_v6, %v16333_v38  ;;  %v14860_v11 = vmul.f32 %v14719_v6, %v16337_v54  ;;  %v16338_v38 = vsub.f32 %v14278_v59, %v14596_v4  ;;  %v14872_v15 = vmul.f32 %v14719_v6, %v16339_v18 }
 0xacd   :  { %v14878_v52 = vmul.f32 %v14719_v6, %v16340_v0  ;;  %v16341_v1 = vsub.f32 %v14287_v60, %v14596_v4  ;;  %v16342_v58 = vsub.f32 %v14290_v57, %v14596_v4  ;;  %v16343_v35 = vsub.f32 %v14301_v44, %v14596_v4 }
 0xace   :  { %v14866_v10 = vmul.f32 %v14719_v6, %v16338_v38  ;;  %v16344_v54 = vsub.f32 %v14305_v9, %v14596_v4  ;;  %v16345_v38 = vsub.f32 %v14314_v20, %v14596_v4  ;;  %v16346_v18 = vsub.f32 %v14319_v53, %v14596_v4 }
 0xacf   :  { %v14884_v59 = vmul.f32 %v14719_v6, %v16341_v1  ;;  %v14890_v47 = vmul.f32 %v14719_v6, %v16342_v58  ;;  %v14896_v2 = vmul.f32 %v14719_v6, %v16343_v35  ;;  %v16347_v0 = vsub.f32 %v14328_v21, %v14596_v4 }
 0xad0   :  { %v14902_v60 = vmul.f32 %v14719_v6, %v16344_v54  ;;  %v14908_v57 = vmul.f32 %v14719_v6, %v16345_v38  ;;  %v14914_v44 = vmul.f32 %v14719_v6, %v16346_v18  ;;  %v16348_v1 = vsub.f32 %v14334_v5, %v14596_v4 }
 0xad1   :  { %v14920_v9 = vmul.f32 %v14719_v6, %v16347_v0  ;;  %v16349_v58 = vsub.f32 %v14343_v43, %v14596_v4  ;;  %v16350_v35 = vsub.f32 %v16294_v50, %v14596_v4  ;;  %v16351_v54 = vsub.f32 %v14356_v36, %v14596_v4 }
 0xad2   :  { %v14926_v20 = vmul.f32 %v14719_v6, %v16348_v1  ;;  %v16352_v38 = vsub.f32 %v16295_v28, %v14596_v4  ;;  %v16353_v18 = vsub.f32 %v14370_v63, %v14596_v4  ;;  %v16354_v0 = vsub.f32 %v16296_v37, %v14596_v4 }
 0xad3   :  { %v14932_v53 = vmul.f32 %v14719_v6, %v16349_v58  ;;  %v14938_v21 = vmul.f32 %v14719_v6, %v16350_v35  ;;  %v14944_v5 = vmul.f32 %v14719_v6, %v16351_v54  ;;  %v16355_v1 = vsub.f32 %v16297_v8, %v14596_v4 }
 0xad4   :  { %v14950_v43 = vmul.f32 %v14719_v6, %v16352_v38  ;;  %v14956_v50 = vmul.f32 %v14719_v6, %v16353_v18  ;;  %v14962_v36 = vmul.f32 %v14719_v6, %v16354_v0  ;;  %v16356_v58 = vsub.f32 %v16298_v41, %v14596_v4 }
 0xad5   :  { %v14968_v28 = vmul.f32 %v14719_v6, %v16355_v1  ;;  %v16357_v35 = vsub.f32 %v16299_v46, %v14596_v4  ;;  %v16358_v54 = vsub.f32 %v16300_v34, %v14596_v4  ;;  %v16359_v38 = vsub.f32 %v14412_v27, %v14596_v4 }
 0xad6   :  { %v14974_v63 = vmul.f32 %v14719_v6, %v16356_v58  ;;  %v16360_v18 = vsub.f32 %v16301_v31, %v14596_v4  ;;  %v16361_v0 = vsub.f32 %v14427_v42, %v14596_v4  ;;  %v16362_v1 = vsub.f32 %v16302_v55, %v14596_v4 }
 0xad7   :  { %v14980_v37 = vmul.f32 %v14719_v6, %v16357_v35  ;;  %v14986_v8 = vmul.f32 %v14719_v6, %v16358_v54  ;;  %v14992_v41 = vmul.f32 %v14719_v6, %v16359_v38  ;;  %v16363_v58 = vsub.f32 %v16303_v7, %v14596_v4  ;;  %v16365_v35 = vld [vmem:[#allocation79_spill] sm:$0xff]  ;;  %v16367_v38 = vld [vmem:[#allocation80_spill] sm:$0xff] }
 0xad8   :  { %v14998_v46 = vmul.f32 %v14719_v6, %v16360_v18  ;;  %v15004_v34 = vmul.f32 %v14719_v6, %v16361_v0  ;;  %v15010_v27 = vmul.f32 %v14719_v6, %v16362_v1  ;;  %v16366_v54 = vsub.f32 %v16365_v35, %v14596_v4  ;;  %v16369_v0 = vld [vmem:[#allocation81_spill] sm:$0xff] }
 0xad9   :  { %v15016_v31 = vmul.f32 %v14719_v6, %v16363_v58  ;;  %v16368_v18 = vsub.f32 %v16367_v38, %v14596_v4  ;;  %v16370_v1 = vsub.f32 %v16369_v0, %v14596_v4  ;;  %v16371_v58 = vld [vmem:[#allocation11_spill] sm:$0xff]  ;;  %v15046_v38 = vmul.f32 %v14719_v6, %v8174_v30 }
 0xada   :  { %v15022_v42 = vmul.f32 %v14719_v6, %v16366_v54  ;;  %v15043_v54 = vmul.f32 %v14719_v6, %v8173_v51  ;;  %v15052_v0 = vmul.f32 %v14719_v6, %v8176_v24  ;;  %v16377_v51 = vld [vmem:[#allocation31_spill] sm:$0xff] }
 0xadb   :  { %16364 = vst [vmem:[#allocation24_spill] sm:$0xff] %v15016_v31  ;;  %v15028_v55 = vmul.f32 %v14719_v6, %v16368_v18  ;;  %v15034_v7 = vmul.f32 %v14719_v6, %v16370_v1  ;;  %v16372_v31 = vsub.f32 %v16371_v58, %v14596_v4  ;;  %v15049_v18 = vmul.f32 %v14719_v6, %v8175_v32  ;;  %v16380_v32 = vld [vmem:[#allocation38_spill] sm:$0xff] }
 0xadc   :  { %16373 = vst [vmem:[#allocation25_spill] sm:$0xff] %v15043_v54  ;;  %v15055_v1 = vmul.f32 %v14719_v6, %v8177_v22  ;;  %v15058_v58 = vmul.f32 %v14719_v6, %v8178_v48  ;;  %v16378_v54 = vsub.f32 %v16377_v51, %v14596_v4  ;;  %v16383_v22 = vld [vmem:[#allocation30_spill] sm:$0xff] }
 0xadd   :  { %v15040_v35 = vmul.f32 %v14719_v6, %v16372_v31  ;;  %16374 = vst [vmem:[#allocation41_spill] sm:$0xff] %v15049_v18  ;;  %v15061_v31 = vmul.f32 %v14719_v6, %v8179_v29  ;;  %v16381_v18 = vsub.f32 %v16380_v32, %v14596_v4  ;;  %v16386_v29 = vld [vmem:[#allocation37_spill] sm:$0xff] }
 0xade   :  { %16375 = vst [vmem:[#allocation44_spill] sm:$0xff] %v15055_v1  ;;  %v15067_v30 = vmul.f32 %v14719_v6, %v16378_v54  ;;  %v16384_v1 = vsub.f32 %v16383_v22, %v14596_v4  ;;  %v16388_v54 = vld [vmem:[#allocation35_spill] sm:$0xff] }
 0xadf   :  { %16376 = vst [vmem:[#allocation46_spill] sm:$0xff] %v15061_v31  ;;  %v15073_v24 = vmul.f32 %v14719_v6, %v16381_v18  ;;  %v16387_v31 = vsub.f32 %v16386_v29, %v14596_v4  ;;  %v16390_v18 = vld [vmem:[#allocation39_spill] sm:$0xff] }
 0xae0   :  { %16379 = vst [vmem:[#allocation40_spill] sm:$0xff] %v15067_v30  ;;  %v15079_v48 = vmul.f32 %v14719_v6, %v16384_v1  ;;  %v16389_v30 = vsub.f32 %v16388_v54, %v14596_v4  ;;  %v16392_v1 = vld [vmem:[#allocation23_spill] sm:$0xff]  ;;  %v15115_v54 = vadd.f32 %v14730_v12, %v14760_v45  ;;  %v15139_v45 = vadd.f32 %v14730_v12, %v14800_v39 }
 0xae1   :  { %16382 = vst [vmem:[#allocation47_spill] sm:$0xff] %v15073_v24  ;;  %v15085_v51 = vmul.f32 %v14719_v6, %v16387_v31  ;;  %v16391_v24 = vsub.f32 %v16390_v18, %v14596_v4  ;;  %v15107_v31 = vadd.f32 %v14730_v12, %v14748_v3  ;;  %v15131_v3 = vadd.f32 %v14730_v12, %v14787_v19 }
 0xae2   :  { %16385 = vst [vmem:[#allocation42_spill] sm:$0xff] %v15079_v48  ;;  %v15091_v32 = vmul.f32 %v14719_v6, %v16389_v30  ;;  %v16393_v48 = vsub.f32 %v16392_v1, %v14596_v4  ;;  %v15111_v30 = vadd.f32 %v14730_v12, %v14754_v40  ;;  %v15127_v4 = vadd.f32 %v14730_v12, %v14781_v33  ;;  %v16407_v18 = vld [vmem:[#allocation24_spill] sm:$0xff] }
 0xae3   :  { %v15097_v22 = vmul.f32 %v14719_v6, %v16391_v24  ;;  %v15119_v24 = vadd.f32 %v14730_v12, %v14769_v61  ;;  %v15135_v40 = vadd.f32 %v14730_v12, %v14794_v49  ;;  %v15143_v61 = vadd.f32 %v14730_v12, %v14806_v26 }
 0xae4   :  { %v15103_v29 = vmul.f32 %v14719_v6, %v16393_v48  ;;  %v15123_v6 = vadd.f32 %v14730_v12, %v14775_v14  ;;  %v16394_v14 = vld [vmem:[#allocation20_spill] sm:$0xff]  ;;  %v15151_v19 = vadd.f32 %v14730_v12, %v14818_v23  ;;  %v15155_v49 = vadd.f32 %v14730_v12, %v14824_v17 }
 0xae5   :  { %v15147_v33 = vadd.f32 %v14730_v12, %v16394_v14  ;;  %v15159_v39 = vadd.f32 %v14730_v12, %v14830_v16  ;;  %v15163_v26 = vadd.f32 %v14730_v12, %v14836_v13  ;;  %v15167_v48 = vadd.f32 %v14730_v12, %v14842_v56 }
 0xae6   :  { %v15171_v23 = vadd.f32 %v14730_v12, %v14848_v25  ;;  %v15175_v17 = vadd.f32 %v14730_v12, %v14854_v62  ;;  %v15179_v16 = vadd.f32 %v14730_v12, %v14860_v11  ;;  %v15183_v13 = vadd.f32 %v14730_v12, %v14866_v10 }
 0xae7   :  { %v15187_v56 = vadd.f32 %v14730_v12, %v14872_v15  ;;  %v15191_v25 = vadd.f32 %v14730_v12, %v14878_v52  ;;  %v15195_v62 = vadd.f32 %v14730_v12, %v14884_v59  ;;  %v15199_v11 = vadd.f32 %v14730_v12, %v14890_v47 }
 0xae8   :  { %v15203_v10 = vadd.f32 %v14730_v12, %v14896_v2  ;;  %v15207_v15 = vadd.f32 %v14730_v12, %v14902_v60  ;;  %v15211_v52 = vadd.f32 %v14730_v12, %v14908_v57  ;;  %v15215_v59 = vadd.f32 %v14730_v12, %v14914_v44 }
 0xae9   :  { %v15219_v47 = vadd.f32 %v14730_v12, %v14920_v9  ;;  %v15223_v2 = vadd.f32 %v14730_v12, %v14926_v20  ;;  %v15227_v60 = vadd.f32 %v14730_v12, %v14932_v53  ;;  %v15231_v57 = vadd.f32 %v14730_v12, %v14938_v21 }
 0xaea   :  { %v15235_v44 = vadd.f32 %v14730_v12, %v14944_v5  ;;  %v15239_v9 = vadd.f32 %v14730_v12, %v14950_v43  ;;  %v15243_v20 = vadd.f32 %v14730_v12, %v14956_v50  ;;  %v15247_v53 = vadd.f32 %v14730_v12, %v14962_v36 }
 0xaeb   :  { %v15251_v21 = vadd.f32 %v14730_v12, %v14968_v28  ;;  %v15255_v5 = vadd.f32 %v14730_v12, %v14974_v63  ;;  %v15259_v43 = vadd.f32 %v14730_v12, %v14980_v37  ;;  %v15263_v50 = vadd.f32 %v14730_v12, %v14986_v8  ;;  %v8326_v63 = vld [vmem:[%s15621_s0] sm:$0xff]  ;;  %v8327_v37 = vld [vmem:[%s15621_s0 + $0x8] sm:$0xff]  ;;  %v8328_v8 = vld [vmem:[%s15621_s0 + $0x10] sm:$0xff] }
 0xaec   :  { %16395 = vst [vmem:[#allocation43_spill] sm:$0xff] %v15235_v44  ;;  %16396 = vst [vmem:[#allocation45_spill] sm:$0xff] %v15239_v9  ;;  %v15267_v36 = vadd.f32 %v14730_v12, %v14992_v41  ;;  %v15271_v28 = vadd.f32 %v14730_v12, %v14998_v46  ;;  %v15284_v41 = vadd.f32 %v14730_v12, %v15004_v34  ;;  %v8330_v34 = vld [vmem:[%s15621_s0 + $0x20] sm:$0xff]  ;;  %v8351_v44 = vld [vmem:[%s15621_s0 + $0xc8] sm:$0xff] }
 0xaed   :  { %16397 = vst [vmem:[#allocation14_spill] sm:$0xff] %v15243_v20  ;;  %16398 = vst [vmem:[#allocation48_spill] sm:$0xff] %v15247_v53  ;;  %v15288_v46 = vadd.f32 %v14730_v12, %v15010_v27  ;;  %v15292_v1 = vadd.f32 %v14730_v12, %v16407_v18  ;;  %v15296_v14 = vadd.f32 %v14730_v12, %v15022_v42  ;;  %v8331_v27 = vld [vmem:[%s15621_s0 + $0x28] sm:$0xff]  ;;  %v8332_v18 = vld [vmem:[%s15621_s0 + $0x30] sm:$0xff] }
 0xaee   :  { %16399 = vst [vmem:[#allocation32_spill] sm:$0xff] %v15251_v21  ;;  %16400 = vst [vmem:[#allocation50_spill] sm:$0xff] %v15255_v5  ;;  %v15312_v42 = vadd.f32 %v14730_v12, %v15028_v55  ;;  %v8334_v55 = vld [vmem:[%s15621_s0 + $0x40] sm:$0xff]  ;;  %v16426_v5 = vld [vmem:[#allocation47_spill] sm:$0xff] }
 0xaef   :  { %16401 = vst [vmem:[#allocation49_spill] sm:$0xff] %v15259_v43  ;;  %16402 = vst [vmem:[#allocation16_spill] sm:$0xff] %v15263_v50  ;;  %v8337_v43 = vld [vmem:[%s15621_s0 + $0x58] sm:$0xff]  ;;  %v15380_v21 = vadd.f32 %v14730_v12, %v16426_v5  ;;  %v8350_v9 = vld [vmem:[%s15621_s0 + $0xc0] sm:$0xff] }
 0xaf0   :  { %16403 = vst [vmem:[#allocation51_spill] sm:$0xff] %v15267_v36  ;;  %16404 = vst [vmem:[#allocation52_spill] sm:$0xff] %v15271_v28  ;;  %v8329_v28 = vld [vmem:[%s15621_s0 + $0x18] sm:$0xff] }
 0xaf1   :  { %16405 = vst [vmem:[#allocation18_spill] sm:$0xff] %v15284_v41  ;;  %16406 = vst [vmem:[#allocation19_spill] sm:$0xff] %v15288_v46  ;;  %v16413_v46 = vld [vmem:[#allocation25_spill] sm:$0xff]  ;;  %v8333_v36 = vld [vmem:[%s15621_s0 + $0x38] sm:$0xff] }
 0xaf2   :  { %16408 = vst [vmem:[#allocation54_spill] sm:$0xff] %v15292_v1  ;;  %16409 = vst [vmem:[#allocation21_spill] sm:$0xff] %v15296_v14  ;;  %v15316_v14 = vadd.f32 %v14730_v12, %v15034_v7  ;;  %v15320_v1 = vadd.f32 %v14730_v12, %v15040_v35  ;;  %v15324_v41 = vadd.f32 %v14730_v12, %v16413_v46  ;;  %v8335_v7 = vld [vmem:[%s15621_s0 + $0x48] sm:$0xff]  ;;  %v8336_v35 = vld [vmem:[%s15621_s0 + $0x50] sm:$0xff] }
 0xaf3   :  { %16410 = vst [vmem:[#allocation53_spill] sm:$0xff] %v15312_v42  ;;  %v15340_v46 = vadd.f32 %v14730_v12, %v15046_v38  ;;  %v16419_v42 = vld [vmem:[#allocation44_spill] sm:$0xff]  ;;  %16427 = vst [vmem:[#allocation22_spill] sm:$0xff] %v15380_v21  ;;  %v15400_v21 = vadd.f32 %v14730_v12, %v15085_v51  ;;  %v8347_v51 = vld [vmem:[%s15621_s0 + $0xa8] sm:$0xff] }
 0xaf4   :  { %16411 = vst [vmem:[#allocation55_spill] sm:$0xff] %v15316_v14  ;;  %16412 = vst [vmem:[#allocation57_spill] sm:$0xff] %v15320_v1  ;;  %v15348_v14 = vadd.f32 %v14730_v12, %v15052_v0  ;;  %v15352_v50 = vadd.f32 %v14730_v12, %v16419_v42  ;;  %v8338_v38 = vld [vmem:[%s15621_s0 + $0x60] sm:$0xff]  ;;  %v8340_v0 = vld [vmem:[%s15621_s0 + $0x70] sm:$0xff]  ;;  %v15368_v42 = vadd.f32 %v14730_v12, %v15058_v58 }
 0xaf5   :  { %16414 = vst [vmem:[#allocation59_spill] sm:$0xff] %v15324_v41  ;;  %16415 = vst [vmem:[#allocation56_spill] sm:$0xff] %v15340_v46  ;;  %v16416_v41 = vld [vmem:[#allocation41_spill] sm:$0xff]  ;;  %v8341_v53 = vld [vmem:[%s15621_s0 + $0x78] sm:$0xff] }
 0xaf6   :  { %v15344_v1 = vadd.f32 %v14730_v12, %v16416_v41  ;;  %16418 = vst [vmem:[#allocation61_spill] sm:$0xff] %v15348_v14  ;;  %16420 = vst [vmem:[#allocation63_spill] sm:$0xff] %v15352_v50  ;;  %v8339_v41 = vld [vmem:[%s15621_s0 + $0x68] sm:$0xff]  ;;  %v8342_v58 = vld [vmem:[%s15621_s0 + $0x80] sm:$0xff] }
 0xaf7   :  { %16421 = vst [vmem:[#allocation60_spill] sm:$0xff] %v15368_v42  ;;  %v16422_v50 = vld [vmem:[#allocation46_spill] sm:$0xff]  ;;  %16430 = vst [vmem:[#allocation65_spill] sm:$0xff] %v15400_v21  ;;  %v15408_v42 = vadd.f32 %v14730_v12, %v15097_v22  ;;  %v8345_v20 = vld [vmem:[%s15621_s0 + $0x98] sm:$0xff]  ;;  %v15424_v22 = vadd.f32 %v14730_v12, %v15103_v29  ;;  %v8392_v21 = vadd.f32 %v8328_v8, %v15115_v54 }
 0xaf8   :  { %16417 = vst [vmem:[#allocation58_spill] sm:$0xff] %v15344_v1  ;;  %v15372_v14 = vadd.f32 %v14730_v12, %v16422_v50  ;;  %v16424_v1 = vld [vmem:[#allocation40_spill] sm:$0xff]  ;;  %v8343_v50 = vld [vmem:[%s15621_s0 + $0x88] sm:$0xff]  ;;  %v8393_v29 = vadd.f32 %v8329_v28, %v15119_v24  ;;  %v8396_v54 = vadd.f32 %v8332_v18, %v15131_v3  ;;  %v8356_v24 = vld [vmem:[%s15621_s0 + $0xf0] sm:$0xff]  ;;  %v8399_v3 = vadd.f32 %v8335_v7, %v15143_v61 }
 0xaf9   :  { %v15376_v46 = vadd.f32 %v14730_v12, %v16424_v1  ;;  %v8344_v1 = vld [vmem:[%s15621_s0 + $0x90] sm:$0xff]  ;;  %16432 = vst [vmem:[#allocation68_spill] sm:$0xff] %v15408_v42  ;;  %v8390_v42 = vadd.f32 %v8326_v63, %v15107_v31  ;;  %v8394_v31 = vadd.f32 %v8330_v34, %v15123_v6  ;;  %v8353_v63 = vld [vmem:[%s15621_s0 + $0xd8] sm:$0xff]  ;;  %v8355_v8 = vld [vmem:[%s15621_s0 + $0xe8] sm:$0xff]  ;;  %v8397_v6 = vadd.f32 %v8333_v36, %v15135_v40 }
 0xafa   :  { %16423 = vst [vmem:[#allocation62_spill] sm:$0xff] %v15372_v14  ;;  %v15404_v14 = vadd.f32 %v14730_v12, %v15091_v32  ;;  %v8348_v32 = vld [vmem:[%s15621_s0 + $0xb0] sm:$0xff]  ;;  %v8400_v28 = vadd.f32 %v8336_v35, %v15147_v33  ;;  %8456 = vst [vmem:[#allocation6 + $0x10] sm:$0xff] %v8392_v21  ;;  %v8357_v34 = vld [vmem:[%s15621_s0 + $0xf8] sm:$0xff]  ;;  %v8401_v61 = vadd.f32 %v8337_v43, %v15151_v19 }
 0xafb   :  { %16425 = vst [vmem:[#allocation33_spill] sm:$0xff] %v15376_v46  ;;  %v16428_v46 = vld [vmem:[#allocation42_spill] sm:$0xff]  ;;  %8454 = vst [vmem:[#allocation6] sm:$0xff] %v8390_v42  ;;  %v8402_v33 = vadd.f32 %v8338_v38, %v15155_v49  ;;  %v8403_v21 = vadd.f32 %v8339_v41, %v15159_v39  ;;  %v8404_v36 = vadd.f32 %v8340_v0, %v15163_v26  ;;  %v8362_v18 = vld [vmem:[%s15621_s0 + $0x120] sm:$0xff] }
 0xafc   :  { %v15396_v5 = vadd.f32 %v14730_v12, %v16428_v46  ;;  %16431 = vst [vmem:[#allocation66_spill] sm:$0xff] %v15404_v14  ;;  %v8346_v46 = vld [vmem:[%s15621_s0 + $0xa0] sm:$0xff]  ;;  %v8391_v14 = vadd.f32 %v8327_v37, %v15111_v30  ;;  %v8352_v12 = vld [vmem:[%s15621_s0 + $0xd0] sm:$0xff]  ;;  %v8395_v30 = vadd.f32 %v8331_v27, %v15127_v4  ;;  %v8398_v4 = vadd.f32 %v8334_v55, %v15139_v45  ;;  %v8359_v40 = vld [vmem:[%s15621_s0 + $0x108] sm:$0xff] }
 0xafd   :  { %v8354_v37 = vld [vmem:[%s15621_s0 + $0xe0] sm:$0xff]  ;;  %v8360_v45 = vld [vmem:[%s15621_s0 + $0x110] sm:$0xff]  ;;  %8457 = vst [vmem:[#allocation6 + $0x18] sm:$0xff] %v8393_v29  ;;  %8458 = vst [vmem:[#allocation6 + $0x20] sm:$0xff] %v8394_v31  ;;  %v8405_v39 = vadd.f32 %v8341_v53, %v15167_v48  ;;  %v8406_v26 = vadd.f32 %v8342_v58, %v15171_v23  ;;  %v8407_v43 = vadd.f32 %v8343_v50, %v15175_v17 }
 0xafe   :  { %16429 = vst [vmem:[#allocation64_spill] sm:$0xff] %v15396_v5  ;;  %v8349_v5 = vld [vmem:[%s15621_s0 + $0xb8] sm:$0xff]  ;;  %8455 = vst [vmem:[#allocation6 + $0x8] sm:$0xff] %v8391_v14  ;;  %v8358_v27 = vld [vmem:[%s15621_s0 + $0x100] sm:$0xff]  ;;  %v8408_v55 = vadd.f32 %v8344_v1, %v15179_v16  ;;  %v8409_v23 = vadd.f32 %v8345_v20, %v15183_v13  ;;  %v8410_v17 = vadd.f32 %v8346_v46, %v15187_v56 }
 0xaff   :  { %8459 = vst [vmem:[#allocation6 + $0x28] sm:$0xff] %v8395_v30  ;;  %8460 = vst [vmem:[#allocation6 + $0x30] sm:$0xff] %v8396_v54  ;;  %v8361_v14 = vld [vmem:[%s15621_s0 + $0x118] sm:$0xff]  ;;  %v8363_v19 = vld [vmem:[%s15621_s0 + $0x128] sm:$0xff]  ;;  %v8411_v16 = vadd.f32 %v8347_v51, %v15191_v25  ;;  %v8412_v53 = vadd.f32 %v8348_v32, %v15195_v62  ;;  %v8413_v56 = vadd.f32 %v8349_v5, %v15199_v11 }
 0xb00   :  { %v8364_v49 = vld [vmem:[%s15621_s0 + $0x130] sm:$0xff]  ;;  %8461 = vst [vmem:[#allocation6 + $0x38] sm:$0xff] %v8397_v6  ;;  %8462 = vst [vmem:[#allocation6 + $0x40] sm:$0xff] %v8398_v4  ;;  %v8365_v7 = vld [vmem:[%s15621_s0 + $0x138] sm:$0xff]  ;;  %v8414_v25 = vadd.f32 %v8350_v9, %v15203_v10  ;;  %v8415_v62 = vadd.f32 %v8351_v44, %v15207_v15  ;;  %v8416_v20 = vadd.f32 %v8352_v12, %v15211_v52 }
 0xb01   :  { %8463 = vst [vmem:[#allocation6 + $0x48] sm:$0xff] %v8399_v3  ;;  %8464 = vst [vmem:[#allocation6 + $0x50] sm:$0xff] %v8400_v28  ;;  %v8366_v35 = vld [vmem:[%s15621_s0 + $0x140] sm:$0xff]  ;;  %v8367_v48 = vld [vmem:[%s15621_s0 + $0x148] sm:$0xff]  ;;  %v8417_v10 = vadd.f32 %v8353_v63, %v15215_v59  ;;  %v8418_v15 = vadd.f32 %v8354_v37, %v15219_v47  ;;  %v8419_v52 = vadd.f32 %v8355_v8, %v15223_v2 }
 0xb02   :  { %8465 = vst [vmem:[#allocation6 + $0x58] sm:$0xff] %v8401_v61  ;;  %8466 = vst [vmem:[#allocation6 + $0x60] sm:$0xff] %v8402_v33  ;;  %v8368_v38 = vld [vmem:[%s15621_s0 + $0x150] sm:$0xff]  ;;  %v8369_v41 = vld [vmem:[%s15621_s0 + $0x158] sm:$0xff]  ;;  %v8420_v44 = vadd.f32 %v8356_v24, %v15227_v60  ;;  %v8421_v47 = vadd.f32 %v8357_v34, %v15231_v57 }
 0xb03   :  { %8467 = vst [vmem:[#allocation6 + $0x68] sm:$0xff] %v8403_v21  ;;  %8468 = vst [vmem:[#allocation6 + $0x70] sm:$0xff] %v8404_v36  ;;  %v8370_v13 = vld [vmem:[%s15621_s0 + $0x160] sm:$0xff]  ;;  %v8371_v0 = vld [vmem:[%s15621_s0 + $0x168] sm:$0xff] }
 0xb04   :  { %8469 = vst [vmem:[#allocation6 + $0x78] sm:$0xff] %v8405_v39  ;;  %8470 = vst [vmem:[#allocation6 + $0x80] sm:$0xff] %v8406_v26  ;;  %v8372_v42 = vld [vmem:[%s15621_s0 + $0x170] sm:$0xff]  ;;  %v8373_v11 = vld [vmem:[%s15621_s0 + $0x178] sm:$0xff] }
 0xb05   :  { %8471 = vst [vmem:[#allocation6 + $0x88] sm:$0xff] %v8407_v43  ;;  %8472 = vst [vmem:[#allocation6 + $0x90] sm:$0xff] %v8408_v55  ;;  %v8374_v9 = vld [vmem:[%s15621_s0 + $0x180] sm:$0xff]  ;;  %v8375_v58 = vld [vmem:[%s15621_s0 + $0x188] sm:$0xff] }
 0xb06   :  { %8473 = vst [vmem:[#allocation6 + $0x98] sm:$0xff] %v8409_v23  ;;  %8474 = vst [vmem:[#allocation6 + $0xa0] sm:$0xff] %v8410_v17  ;;  %v8376_v59 = vld [vmem:[%s15621_s0 + $0x190] sm:$0xff]  ;;  %v16434_v50 = vld [vmem:[#allocation45_spill] sm:$0xff] }
 0xb07   :  { %8475 = vst [vmem:[#allocation6 + $0xa8] sm:$0xff] %v8411_v16  ;;  %8476 = vst [vmem:[#allocation6 + $0xb0] sm:$0xff] %v8412_v53  ;;  %v16433_v2 = vld [vmem:[#allocation43_spill] sm:$0xff]  ;;  %v8423_v1 = vadd.f32 %v8359_v40, %v16434_v50  ;;  %v16435_v5 = vld [vmem:[#allocation14_spill] sm:$0xff] }
 0xb08   :  { %v8422_v60 = vadd.f32 %v8358_v27, %v16433_v2  ;;  %v8424_v46 = vadd.f32 %v8360_v45, %v16435_v5  ;;  %8477 = vst [vmem:[#allocation6 + $0xb8] sm:$0xff] %v8413_v56  ;;  %8478 = vst [vmem:[#allocation6 + $0xc0] sm:$0xff] %v8414_v25  ;;  %v8377_v51 = vld [vmem:[%s15621_s0 + $0x198] sm:$0xff]  ;;  %v8378_v32 = vld [vmem:[%s15621_s0 + $0x1a0] sm:$0xff] }
 0xb09   :  { %8479 = vst [vmem:[#allocation6 + $0xc8] sm:$0xff] %v8415_v62  ;;  %8480 = vst [vmem:[#allocation6 + $0xd0] sm:$0xff] %v8416_v20  ;;  %v8379_v57 = vld [vmem:[%s15621_s0 + $0x1a8] sm:$0xff]  ;;  %v16436_v12 = vld [vmem:[#allocation48_spill] sm:$0xff] }
 0xb0a   :  { %v8425_v29 = vadd.f32 %v8361_v14, %v16436_v12  ;;  %v16437_v31 = vld [vmem:[#allocation32_spill] sm:$0xff]  ;;  %v16438_v54 = vld [vmem:[#allocation50_spill] sm:$0xff]  ;;  %v16439_v37 = vld [vmem:[#allocation49_spill] sm:$0xff]  ;;  %8481 = vst [vmem:[#allocation6 + $0xd8] sm:$0xff] %v8417_v10 }
 0xb0b   :  { %v8426_v30 = vadd.f32 %v8362_v18, %v16437_v31  ;;  %v8427_v63 = vadd.f32 %v8363_v19, %v16438_v54  ;;  %v8428_v8 = vadd.f32 %v8364_v49, %v16439_v37  ;;  %8482 = vst [vmem:[#allocation6 + $0xe0] sm:$0xff] %v8418_v15  ;;  %8483 = vst [vmem:[#allocation6 + $0xe8] sm:$0xff] %v8419_v52  ;;  %v8380_v24 = vld [vmem:[%s15621_s0 + $0x1b0] sm:$0xff]  ;;  %v8381_v6 = vld [vmem:[%s15621_s0 + $0x1b8] sm:$0xff] }
 0xb0c   :  { %8484 = vst [vmem:[#allocation6 + $0xf0] sm:$0xff] %v8420_v44  ;;  %v8384_v4 = vld [vmem:[%s15621_s0 + $0x1d0] sm:$0xff]  ;;  %v16440_v3 = vld [vmem:[#allocation16_spill] sm:$0xff]  ;;  %8485 = vst [vmem:[#allocation6 + $0xf8] sm:$0xff] %v8421_v47 }
 0xb0d   :  { %v8429_v28 = vadd.f32 %v8365_v7, %v16440_v3  ;;  %v16441_v34 = vld [vmem:[#allocation51_spill] sm:$0xff]  ;;  %v16442_v40 = vld [vmem:[#allocation52_spill] sm:$0xff]  ;;  %v16443_v61 = vld [vmem:[#allocation18_spill] sm:$0xff]  ;;  %8486 = vst [vmem:[#allocation6 + $0x100] sm:$0xff] %v8422_v60 }
 0xb0e   :  { %v8430_v27 = vadd.f32 %v8366_v35, %v16441_v34  ;;  %v8431_v45 = vadd.f32 %v8367_v48, %v16442_v40  ;;  %v8432_v33 = vadd.f32 %v8368_v38, %v16443_v61  ;;  %8487 = vst [vmem:[#allocation6 + $0x108] sm:$0xff] %v8423_v1  ;;  %8488 = vst [vmem:[#allocation6 + $0x110] sm:$0xff] %v8424_v46  ;;  %v8382_v21 = vld [vmem:[%s15621_s0 + $0x1c0] sm:$0xff]  ;;  %v8385_v36 = vld [vmem:[%s15621_s0 + $0x1d8] sm:$0xff] }
 0xb0f   :  { %v8383_v14 = vld [vmem:[%s15621_s0 + $0x1c8] sm:$0xff]  ;;  %v16444_v18 = vld [vmem:[#allocation19_spill] sm:$0xff]  ;;  %8489 = vst [vmem:[#allocation6 + $0x118] sm:$0xff] %v8425_v29  ;;  %8490 = vst [vmem:[#allocation6 + $0x120] sm:$0xff] %v8426_v30 }
 0xb10   :  { %v8433_v19 = vadd.f32 %v8369_v41, %v16444_v18  ;;  %v16445_v49 = vld [vmem:[#allocation54_spill] sm:$0xff]  ;;  %v16446_v26 = vld [vmem:[#allocation21_spill] sm:$0xff]  ;;  %8491 = vst [vmem:[#allocation6 + $0x128] sm:$0xff] %v8427_v63  ;;  %8492 = vst [vmem:[#allocation6 + $0x130] sm:$0xff] %v8428_v8 }
 0xb11   :  { %v8434_v39 = vadd.f32 %v8370_v13, %v16445_v49  ;;  %v8435_v43 = vadd.f32 %v8371_v0, %v16446_v26  ;;  %v16447_v55 = vld [vmem:[#allocation53_spill] sm:$0xff]  ;;  %v8388_v35 = vld [vmem:[%s15621_s0 + $0x1f0] sm:$0xff]  ;;  %v8389_v23 = vld [vmem:[%s15621_s0 + $0x1f8] sm:$0xff]  ;;  %8493 = vst [vmem:[#allocation6 + $0x138] sm:$0xff] %v8429_v28 }
 0xb12   :  { %v8436_v7 = vadd.f32 %v8372_v42, %v16447_v55  ;;  %v8386_v48 = vld [vmem:[%s15621_s0 + $0x1e0] sm:$0xff]  ;;  %v16448_v17 = vld [vmem:[#allocation55_spill] sm:$0xff]  ;;  %8494 = vst [vmem:[#allocation6 + $0x140] sm:$0xff] %v8430_v27  ;;  %8495 = vst [vmem:[#allocation6 + $0x148] sm:$0xff] %v8431_v45  ;;  %v8453_v12 = vadd.f32 %v8389_v23, %v15424_v22  ;;  %s9870_s0 = scalar_lea.vmem %s8524_s25, 8192 }
 0xb13   :  { %v8437_v16 = vadd.f32 %v8373_v11, %v16448_v17  ;;  %v16449_v53 = vld [vmem:[#allocation57_spill] sm:$0xff]  ;;  %v16450_v41 = vld [vmem:[#allocation59_spill] sm:$0xff]  ;;  %v16451_v56 = vld [vmem:[#allocation56_spill] sm:$0xff]  ;;  %8496 = vst [vmem:[#allocation6 + $0x150] sm:$0xff] %v8432_v33  ;;  %p9871_p0 = scmp.ne.s32.totalorder %s8524_s25, %s9870_s0  ;;  %p9876_p2 = scmp.lt.s32.totalorder %s9870_s0, %s9870_s0 }
 0xb14   :  { %v8438_v38 = vadd.f32 %v8374_v9, %v16449_v53  ;;  %v8439_v13 = vadd.f32 %v8375_v58, %v16450_v41  ;;  %v8440_v25 = vadd.f32 %v8376_v59, %v16451_v56  ;;  %v16452_v62 = vld [vmem:[#allocation58_spill] sm:$0xff]  ;;  %v16453_v0 = vld [vmem:[#allocation61_spill] sm:$0xff]  ;;  %v16454_v10 = vld [vmem:[#allocation63_spill] sm:$0xff]  ;;  %8497 = vst [vmem:[#allocation6 + $0x158] sm:$0xff] %v8433_v19 }
 0xb15   :  { %v8441_v20 = vadd.f32 %v8377_v51, %v16452_v62  ;;  %v8442_v42 = vadd.f32 %v8378_v32, %v16453_v0  ;;  %v8443_v15 = vadd.f32 %v8379_v57, %v16454_v10  ;;  %v16455_v52 = vld [vmem:[#allocation60_spill] sm:$0xff]  ;;  %8498 = vst [vmem:[#allocation6 + $0x160] sm:$0xff] %v8434_v39  ;;  %8499 = vst [vmem:[#allocation6 + $0x168] sm:$0xff] %v8435_v43  ;;  %v16456_v44 = vld [vmem:[#allocation62_spill] sm:$0xff]  ;;  %p9877_p3 = por %p9876_p2, %p9875_p1 }
 0xb16   :  { %v8444_v11 = vadd.f32 %v8380_v24, %v16455_v52  ;;  %8500 = vst [vmem:[#allocation6 + $0x170] sm:$0xff] %v8436_v7  ;;  %v8445_v9 = vadd.f32 %v8381_v6, %v16456_v44  ;;  %v16457_v58 = vld [vmem:[#allocation33_spill] sm:$0xff]  ;;  %v16458_v47 = vld [vmem:[#allocation22_spill] sm:$0xff]  ;;  %v16459_v60 = vld [vmem:[#allocation64_spill] sm:$0xff] }
 0xb17   :  { %v8446_v59 = vadd.f32 %v8382_v21, %v16457_v58  ;;  %v8447_v2 = vadd.f32 %v8383_v14, %v16458_v47  ;;  %v8448_v50 = vadd.f32 %v8384_v4, %v16459_v60  ;;  %8501 = vst [vmem:[#allocation6 + $0x178] sm:$0xff] %v8437_v16  ;;  %8502 = vst [vmem:[#allocation6 + $0x180] sm:$0xff] %v8438_v38  ;;  %v16460_v1 = vld [vmem:[#allocation65_spill] sm:$0xff]  ;;  %v16461_v46 = vld [vmem:[#allocation66_spill] sm:$0xff]  ;;  %p9878_p4 = pnand %p9877_p3, %p9871_p0 }
 0xb18   :  { %8503 = vst [vmem:[#allocation6 + $0x188] sm:$0xff] %v8439_v13  ;;  %8504 = vst [vmem:[#allocation6 + $0x190] sm:$0xff] %v8440_v25  ;;  %v8449_v5 = vadd.f32 %v8385_v36, %v16460_v1  ;;  %v8450_v51 = vadd.f32 %v8386_v48, %v16461_v46  ;;  %v16462_v32 = vld [vmem:[#allocation68_spill] sm:$0xff] }
 0xb19   :  { %v8452_v57 = vadd.f32 %v8388_v35, %v16462_v32  ;;  %8505 = vst [vmem:[#allocation6 + $0x198] sm:$0xff] %v8441_v20  ;;  %8506 = vst [vmem:[#allocation6 + $0x1a0] sm:$0xff] %v8442_v42 }
 0xb1a   :  { %8507 = vst [vmem:[#allocation6 + $0x1a8] sm:$0xff] %v8443_v15  ;;  %8508 = vst [vmem:[#allocation6 + $0x1b0] sm:$0xff] %v8444_v11 }
 0xb1b   :  { %8509 = vst [vmem:[#allocation6 + $0x1b8] sm:$0xff] %v8445_v9  ;;  %8510 = vst [vmem:[#allocation6 + $0x1c0] sm:$0xff] %v8446_v59 }
 0xb1c   :  { %8511 = vst [vmem:[#allocation6 + $0x1c8] sm:$0xff] %v8447_v2  ;;  %8512 = vst [vmem:[#allocation6 + $0x1d0] sm:$0xff] %v8448_v50 }
 0xb1d   :  { %8513 = vst [vmem:[#allocation6 + $0x1d8] sm:$0xff] %v8449_v5  ;;  %8514 = vst [vmem:[#allocation6 + $0x1e0] sm:$0xff] %v8450_v51 }
 0xb1e   :  { %8516 = vst [vmem:[#allocation6 + $0x1f0] sm:$0xff] %v8452_v57  ;;  %8517 = vst [vmem:[#allocation6 + $0x1f8] sm:$0xff] %v8453_v12 }
 0xb1f   :  { %9881 = shalt.err (!%p9878_p4)
}
 0xb20   :  { %s9882_s28 = scalar_lea.hbm %s15629_s8, 8192 }
 0xb21   :  { %p9883_p5 = scmp.ne.s32.totalorder %s15629_s8, %s9882_s28  ;;  %p9886_p6 = scmp.lt.u32.totalorder %s9882_s28, %s15629_s8 }
 0xb23   :  { %p9888_p7 = pnand %p9886_p6, %p9883_p5 }
 0xb25   :  { %9891 = shalt.err (!%p9888_p7)
}
 0xb26   :  { %s9898_s10 = smov 128   ;;  %s9899_s4 = smov 8  }
 0xb27   :  { %8529 = dma.vmem_to_hbm [thread:$0]  %s8524_s25, 8192, %s15629_s8, [#allocation7], %s9898_s10, %s9898_s10, %s9899_s4  }
 0xb28   :  { %9892 = dma.done.wait [#allocation7], 8192  }
 0xb29   :  { %9893 = vsyncadd [#allocation7], 4294959104 }
 0xb2a   :  { %8533 = vsyncpa [#allocation7], 1 }

</bundles_post_ra>
